<compile_context>
chip_gen: v7x
topology: tpu7x:2x2x1
jax: 0.10.0
libtpu: 0.0.40
codegen_flags: <defaults>
</compile_context>

<pallas_src>
import functools
import math

import jax
import jax.numpy as jnp
from jax.experimental import pallas as pl
from jax.experimental.pallas import tpu as pltpu

NEG_SLOPE = 0.01            # nn.LeakyReLU() default negative_slope
BN_EPS = 1e-5               # nn.BatchNorm2d default eps
TM_MAX = 512                # row-tile size (multiple of 8, sized for VMEM)
VMEM_LIMIT = 48 * 1024 * 1024   # < 64 MiB physical on v7x, > default scoped


# ----------------------------- Pallas kernels ------------------------------ #

def _conv_bn_lrelu_pool_kernel(patches_ref, w_ref, scale_ref, bias_ref, out_ref):
    """Fused Conv3x3 (taps folded into K) + BN + LeakyReLU + MaxPool2x2.

    patches_ref: (4, TM, 9*Cin) bf16   4 = position in the 2x2 pool window
    w_ref:       (9*Cin, Cout)  bf16
    scale_ref:   (1, Cout) f32   gamma / sqrt(running_var + eps)
    bias_ref:    (1, Cout) f32   (conv_bias - running_mean) * scale + beta
    out_ref:     (TM, Cout) f32
    """
    w = w_ref[...]
    s = scale_ref[...]          # hoisted reads (loop below is unrolled)
    b = bias_ref[...]
    pooled = None
    for g in range(4):          # 2x2 max-pool window positions
        acc = jnp.dot(patches_ref[g], w, preferred_element_type=jnp.float32)
        y = acc * s + b                                 # folded BatchNorm
        y = jnp.where(y > 0, y, NEG_SLOPE * y)          # LeakyReLU
        pooled = y if pooled is None else jnp.maximum(pooled, y)
    out_ref[...] = pooled


def _conv_bn_lrelu_gap_kernel(patches_ref, w_ref, avg_ref, scale_ref, bias_ref,
                              out_ref):
    """Fused Conv3x3 (taps folded into K) + BN + LeakyReLU + AdaptiveAvgPool2d((1,1)).

    patches_ref: (M, 9*Cin) bf16 with M = N * H * W
    w_ref:       (9*Cin, Cout) bf16
    avg_ref:     (N, M) f32 -- row i holds 1/(H*W) on sample i's pixel columns
    out_ref:     (N, Cout) f32
    """
    acc = jnp.dot(patches_ref[...], w_ref[...],
                  preferred_element_type=jnp.float32)
    y = acc * scale_ref[...] + bias_ref[...]
    y = jnp.where(y > 0, y, NEG_SLOPE * y)
    # Global average pool as a single MXU matmul + one full-tile store.
    out_ref[...] = jnp.dot(avg_ref[...], y, preferred_element_type=jnp.float32)


# ------------------------------- glue / wrappers ---------------------------- #

def _pad_channels(x_nhwc, w9):
    """Zero-pad Cin to a multiple of 8 (matched zero-padded weights)."""
    cin = x_nhwc.shape[-1]
    pad = (-cin) % 8
    if pad:
        x_nhwc = jnp.pad(x_nhwc, ((0, 0), (0, 0), (0, 0), (0, pad)))
        w9 = jnp.pad(w9, ((0, 0), (0, pad), (0, 0)))
    return x_nhwc, w9


def _row_tile(m):
    """Full M when it is small, else a fixed TM_MAX tile (M gets zero-padded)."""
    return m if m <= TM_MAX else TM_MAX


def conv_block(x_nhwc, w9, scale, bias):
    """One conv_module: Conv3x3(pad=1) -> BN -> LeakyReLU -> MaxPool2x2."""
    x_nhwc, w9 = _pad_channels(x_nhwc, w9)
    n, h, w, cin = x_nhwc.shape
    cout = w9.shape[-1]
    ho, wo = h // 2, w // 2
    m = n * ho * wo
    k = 9 * cin

    # bf16 before the im2col to halve the XLA-side HBM traffic too.
    xp = jnp.pad(x_nhwc.astype(jnp.bfloat16), ((0, 0), (1, 1), (1, 1), (0, 0)))

    # im2col with the 9 taps folded into the contraction dim: (4, M, 9*Cin).
    # TODO(synk): patches are still materialized by XLA (9x activation bytes);
    # in-kernel tap formation from a pl.ANY ref would remove that round trip.
    groups = []
    for a in range(2):
        for b in range(2):
            taps = []
            for kh in range(3):
                for kw in range(3):
                    sl = xp[:, a + kh:a + kh + h:2, b + kw:b + kw + w:2, :]
                    taps.append(sl.reshape(m, cin))
            groups.append(jnp.concatenate(taps, axis=-1))
    patches = jnp.stack(groups, axis=0)                       # (4, M, 9*Cin) bf16
    w_flat = w9.reshape(k, cout).astype(jnp.bfloat16)          # (9*Cin, Cout)

    tm = _row_tile(m)
    m_pad = (-m) % tm
    if m_pad:
        patches = jnp.pad(patches, ((0, 0), (0, m_pad), (0, 0)))
    grid = ((m + m_pad) // tm,)

    out = pl.pallas_call(
        _conv_bn_lrelu_pool_kernel,
        out_shape=jax.ShapeDtypeStruct((m + m_pad, cout), jnp.float32),
        grid=grid,
        in_specs=[
            pl.BlockSpec((4, tm, k), lambda i: (0, i, 0)),     # row tile
            pl.BlockSpec((k, cout), lambda i: (0, 0)),          # weights (resident)
            pl.BlockSpec((1, cout), lambda i: (0, 0)),          # BN scale
            pl.BlockSpec((1, cout), lambda i: (0, 0)),          # BN bias
        ],
        out_specs=pl.BlockSpec((tm, cout), lambda i: (i, 0)),
        compiler_params=pltpu.CompilerParams(
            dimension_semantics=("parallel",),
            vmem_limit_bytes=VMEM_LIMIT),
    )(patches, w_flat, scale, bias)

    if m_pad:
        out = out[:m]
    return out.reshape(n, ho, wo, cout)


def gap_block(x_nhwc, w9, scale, bias):
    """Head: Conv3x3(pad=1) -> BN -> LeakyReLU -> AdaptiveAvgPool2d((1,1))."""
    x_nhwc, w9 = _pad_channels(x_nhwc, w9)
    n, h, w, cin = x_nhwc.shape
    cout = w9.shape[-1]
    hw = h * w
    m = n * hw
    k = 9 * cin

    xp = jnp.pad(x_nhwc.astype(jnp.bfloat16), ((0, 0), (1, 1), (1, 1), (0, 0)))
    taps = [xp[:, kh:kh + h, kw:kw + w, :].reshape(m, cin)
            for kh in range(3) for kw in range(3)]
    patches = jnp.concatenate(taps, axis=-1)                   # (M, 9*Cin) bf16
    w_flat = w9.reshape(k, cout).astype(jnp.bfloat16)

    # (N, M) per-sample averaging matrix -> GAP becomes one matmul.
    avg = jnp.repeat(jnp.eye(n, dtype=jnp.float32), hw, axis=1) / float(hw)

    vmem = pl.BlockSpec(memory_space=pltpu.MemorySpace.VMEM)
    # TODO(synk): the head's M = N*(H/32)*(W/32) is tiny; tile over M like
    # conv_block if this ever grows.
    out = pl.pallas_call(
        _conv_bn_lrelu_gap_kernel,
        out_shape=jax.ShapeDtypeStruct((n, cout), jnp.float32),
        in_specs=[vmem] * 5,
        out_specs=vmem,
        compiler_params=pltpu.CompilerParams(vmem_limit_bytes=VMEM_LIMIT),
    )(patches, w_flat, avg, scale, bias)
    return out


# ----------------------------- parameters / model --------------------------- #

def init_conv_bn(key, cin, cout):
    """Deterministic synthetic Conv2d + BatchNorm2d parameters (BN folded, eval mode)."""
    k_w, k_b, k_g, k_be, k_m, k_v = jax.random.split(key, 6)
    bound = 1.0 / math.sqrt(cin * 9)
    w = jax.random.uniform(k_w, (3, 3, cin, cout), jnp.float32, -bound, bound)
    b = jax.random.uniform(k_b, (cout,), jnp.float32, -bound, bound)
    gamma = 1.0 + 0.1 * jax.random.normal(k_g, (cout,), jnp.float32)
    beta = 0.1 * jax.random.normal(k_be, (cout,), jnp.float32)
    run_mean = 0.1 * jax.random.normal(k_m, (cout,), jnp.float32)
    run_var = 1.0 + 0.1 * jnp.abs(jax.random.normal(k_v, (cout,), jnp.float32))
    # TODO(synk): BatchNorm is applied in eval mode (running stats folded into
    # scale/bias); training-mode batch statistics are not reproduced.
    scale = gamma / jnp.sqrt(run_var + BN_EPS)
    bias = (b - run_mean) * scale + beta
    return (w.reshape(9, cin, cout),
            scale.reshape(1, cout).astype(jnp.float32),
            bias.reshape(1, cout).astype(jnp.float32))


def init_params(key, num_classes):
    chans = [(3, 16), (16, 32), (32, 64), (64, 128), (128, 256)]
    keys = jax.random.split(key, len(chans) + 1)
    layers = [init_conv_bn(k, ci, co) for k, (ci, co) in zip(keys[:-1], chans)]
    gap = init_conv_bn(keys[-1], 256, num_classes)
    return {"layers": layers, "gap": gap}


def custom_convnet_forward(x_nchw, params, num_classes):
    x = jnp.transpose(x_nchw, (0, 2, 3, 1)).astype(jnp.float32)   # NCHW -> NHWC
    # TODO(synk): layers 1-2 (Cout=16/32) have lane-sparse intermediates; they
    # could be fused into a single pallas_call keeping the activation in VMEM.
    for w9, scale, bias in params["layers"]:
        x = conv_block(x, w9, scale, bias)
    w9, scale, bias = params["gap"]
    out = gap_block(x, w9, scale, bias)
    return out.reshape(-1, num_classes)                           # out.view(-1, C)


# ----------------------------------- main ----------------------------------- #

if __name__ == "__main__":
    num_classes = 4
    key = jax.random.PRNGKey(0)
    k_x, k_p = jax.random.split(key)
    # Smallest clean input: 5 MaxPool2d(2,2) halvings require spatial >= 32.
    x = jax.random.normal(k_x, (2, 3, 32, 32), jnp.float32)       # NCHW like PyTorch
    params = init_params(k_p, num_classes)

    fwd = jax.jit(functools.partial(custom_convnet_forward, num_classes=num_classes))
    out = fwd(x, params)
    out = jax.block_until_ready(out)
    assert out.shape == (2, num_classes), out.shape
    assert bool(jnp.all(jnp.isfinite(out)))
    print("KERNEL_OK")
</pallas_src>

<mosaic_0001>
module attributes {stable_mosaic.version = 11 : i64} {
  func.func @_conv_bn_lrelu_pool_kernel(%arg0: i32, %arg1: memref<4x512x72xbf16, #tpu.memory_space<vmem>>, %arg2: memref<72x16xbf16, #tpu.memory_space<vmem>>, %arg3: memref<1x16xf32, #tpu.memory_space<vmem>>, %arg4: memref<1x16xf32, #tpu.memory_space<vmem>>, %arg5: memref<512x16xf32, #tpu.memory_space<vmem>>) attributes {dimension_semantics = [#tpu.dimension_semantics<parallel>], iteration_bounds = array<i64: 1>, scalar_prefetch = 0 : i64, scratch_operands = 0 : i64, tpu.core_type = #tpu.core_type<tc>, window_params = [{transform_indices = @transform_0, window_bounds = array<i64: 4, 512, 72>}, {pipeline_mode = #tpu.pipeline_mode<synchronous>, transform_indices = @transform_1, window_bounds = array<i64: 72, 16>}, {pipeline_mode = #tpu.pipeline_mode<synchronous>, transform_indices = @transform_2, window_bounds = array<i64: 1, 16>}, {pipeline_mode = #tpu.pipeline_mode<synchronous>, transform_indices = @transform_3, window_bounds = array<i64: 1, 16>}, {transform_indices = @transform_4, window_bounds = array<i64: 512, 16>}]} {
    %c0 = arith.constant 0 : index
    %c0_0 = arith.constant 0 : index
    %0 = vector.load %arg2[%c0, %c0_0] : memref<72x16xbf16, #tpu.memory_space<vmem>>, vector<72x16xbf16>
    %c0_1 = arith.constant 0 : index
    %c0_2 = arith.constant 0 : index
    %1 = vector.load %arg3[%c0_1, %c0_2] : memref<1x16xf32, #tpu.memory_space<vmem>>, vector<1x16xf32>
    %c0_3 = arith.constant 0 : index
    %c0_4 = arith.constant 0 : index
    %2 = vector.load %arg4[%c0_3, %c0_4] : memref<1x16xf32, #tpu.memory_space<vmem>>, vector<1x16xf32>
    %c0_5 = arith.constant 0 : index
    %c0_6 = arith.constant 0 : index
    %c0_7 = arith.constant 0 : index
    %3 = vector.load %arg1[%c0_5, %c0_6, %c0_7] : memref<4x512x72xbf16, #tpu.memory_space<vmem>>, vector<1x512x72xbf16>
    %4 = vector.shape_cast %3 : vector<1x512x72xbf16> to vector<512x72xbf16>
    %cst = arith.constant dense<0.000000e+00> : vector<512x16xf32>
    %5 = tpu.matmul %4, %0, %cst {dimension_numbers = #tpu.dot_dimension_numbers<[1], [0], [0], [1], [0, 0, 1, 1], [], []>} : vector<512x72xbf16>, vector<72x16xbf16>, vector<512x16xf32> -> vector<512x16xf32>
    %6 = vector.broadcast %1 : vector<1x16xf32> to vector<512x16xf32>
    %7 = arith.mulf %5, %6 : vector<512x16xf32>
    %8 = vector.broadcast %2 : vector<1x16xf32> to vector<512x16xf32>
    %9 = arith.addf %7, %8 : vector<512x16xf32>
    %cst_8 = arith.constant 0.000000e+00 : f32
    %10 = vector.broadcast %cst_8 : f32 to vector<512x16xf32>
    %11 = arith.cmpf ogt, %9, %10 : vector<512x16xf32>
    %cst_9 = arith.constant 0.00999999977 : f32
    %12 = vector.broadcast %cst_9 : f32 to vector<512x16xf32>
    %13 = arith.mulf %12, %9 : vector<512x16xf32>
    %14 = arith.select %11, %9, %13 : vector<512x16xi1>, vector<512x16xf32>
    %c1 = arith.constant 1 : index
    %c0_10 = arith.constant 0 : index
    %c0_11 = arith.constant 0 : index
    %15 = vector.load %arg1[%c1, %c0_10, %c0_11] : memref<4x512x72xbf16, #tpu.memory_space<vmem>>, vector<1x512x72xbf16>
    %16 = vector.shape_cast %15 : vector<1x512x72xbf16> to vector<512x72xbf16>
    %cst_12 = arith.constant dense<0.000000e+00> : vector<512x16xf32>
    %17 = tpu.matmul %16, %0, %cst_12 {dimension_numbers = #tpu.dot_dimension_numbers<[1], [0], [0], [1], [0, 0, 1, 1], [], []>} : vector<512x72xbf16>, vector<72x16xbf16>, vector<512x16xf32> -> vector<512x16xf32>
    %18 = vector.broadcast %1 : vector<1x16xf32> to vector<512x16xf32>
    %19 = arith.mulf %17, %18 : vector<512x16xf32>
    %20 = vector.broadcast %2 : vector<1x16xf32> to vector<512x16xf32>
    %21 = arith.addf %19, %20 : vector<512x16xf32>
    %cst_13 = arith.constant 0.000000e+00 : f32
    %22 = vector.broadcast %cst_13 : f32 to vector<512x16xf32>
    %23 = arith.cmpf ogt, %21, %22 : vector<512x16xf32>
    %cst_14 = arith.constant 0.00999999977 : f32
    %24 = vector.broadcast %cst_14 : f32 to vector<512x16xf32>
    %25 = arith.mulf %24, %21 : vector<512x16xf32>
    %26 = arith.select %23, %21, %25 : vector<512x16xi1>, vector<512x16xf32>
    %27 = arith.maximumf %14, %26 : vector<512x16xf32>
    %c2 = arith.constant 2 : index
    %c0_15 = arith.constant 0 : index
    %c0_16 = arith.constant 0 : index
    %28 = vector.load %arg1[%c2, %c0_15, %c0_16] : memref<4x512x72xbf16, #tpu.memory_space<vmem>>, vector<1x512x72xbf16>
    %29 = vector.shape_cast %28 : vector<1x512x72xbf16> to vector<512x72xbf16>
    %cst_17 = arith.constant dense<0.000000e+00> : vector<512x16xf32>
    %30 = tpu.matmul %29, %0, %cst_17 {dimension_numbers = #tpu.dot_dimension_numbers<[1], [0], [0], [1], [0, 0, 1, 1], [], []>} : vector<512x72xbf16>, vector<72x16xbf16>, vector<512x16xf32> -> vector<512x16xf32>
    %31 = vector.broadcast %1 : vector<1x16xf32> to vector<512x16xf32>
    %32 = arith.mulf %30, %31 : vector<512x16xf32>
    %33 = vector.broadcast %2 : vector<1x16xf32> to vector<512x16xf32>
    %34 = arith.addf %32, %33 : vector<512x16xf32>
    %cst_18 = arith.constant 0.000000e+00 : f32
    %35 = vector.broadcast %cst_18 : f32 to vector<512x16xf32>
    %36 = arith.cmpf ogt, %34, %35 : vector<512x16xf32>
    %cst_19 = arith.constant 0.00999999977 : f32
    %37 = vector.broadcast %cst_19 : f32 to vector<512x16xf32>
    %38 = arith.mulf %37, %34 : vector<512x16xf32>
    %39 = arith.select %36, %34, %38 : vector<512x16xi1>, vector<512x16xf32>
    %40 = arith.maximumf %27, %39 : vector<512x16xf32>
    %c3 = arith.constant 3 : index
    %c0_20 = arith.constant 0 : index
    %c0_21 = arith.constant 0 : index
    %41 = vector.load %arg1[%c3, %c0_20, %c0_21] : memref<4x512x72xbf16, #tpu.memory_space<vmem>>, vector<1x512x72xbf16>
    %42 = vector.shape_cast %41 : vector<1x512x72xbf16> to vector<512x72xbf16>
    %cst_22 = arith.constant dense<0.000000e+00> : vector<512x16xf32>
    %43 = tpu.matmul %42, %0, %cst_22 {dimension_numbers = #tpu.dot_dimension_numbers<[1], [0], [0], [1], [0, 0, 1, 1], [], []>} : vector<512x72xbf16>, vector<72x16xbf16>, vector<512x16xf32> -> vector<512x16xf32>
    %44 = vector.broadcast %1 : vector<1x16xf32> to vector<512x16xf32>
    %45 = arith.mulf %43, %44 : vector<512x16xf32>
    %46 = vector.broadcast %2 : vector<1x16xf32> to vector<512x16xf32>
    %47 = arith.addf %45, %46 : vector<512x16xf32>
    %cst_23 = arith.constant 0.000000e+00 : f32
    %48 = vector.broadcast %cst_23 : f32 to vector<512x16xf32>
    %49 = arith.cmpf ogt, %47, %48 : vector<512x16xf32>
    %cst_24 = arith.constant 0.00999999977 : f32
    %50 = vector.broadcast %cst_24 : f32 to vector<512x16xf32>
    %51 = arith.mulf %50, %47 : vector<512x16xf32>
    %52 = arith.select %49, %47, %51 : vector<512x16xi1>, vector<512x16xf32>
    %53 = arith.maximumf %40, %52 : vector<512x16xf32>
    %c0_25 = arith.constant 0 : index
    %c0_26 = arith.constant 0 : index
    %54 = vector.load %arg5[%c0_25, %c0_26] : memref<512x16xf32, #tpu.memory_space<vmem>>, vector<512x16xf32>
    tpu.vector_store %arg5[%c0_25, %c0_26], %53 {strides = array<i32>} : memref<512x16xf32, #tpu.memory_space<vmem>>, vector<512x16xf32>,
    return
  }
  func.func @transform_0(%arg0: i32) -> (i32, i32, i32) {
    %c0_i32 = arith.constant 0 : i32
    %c0_i32_0 = arith.constant 0 : i32
    %c0_i32_1 = arith.constant 0 : i32
    return %c0_i32, %arg0, %c0_i32_0 : i32, i32, i32
  }
  func.func @transform_1(%arg0: i32) -> (i32, i32) {
    %c0_i32 = arith.constant 0 : i32
    %c0_i32_0 = arith.constant 0 : i32
    %c0_i32_1 = arith.constant 0 : i32
    return %c0_i32, %c0_i32_0 : i32, i32
  }
  func.func @transform_2(%arg0: i32) -> (i32, i32) {
    %c0_i32 = arith.constant 0 : i32
    %c0_i32_0 = arith.constant 0 : i32
    %c0_i32_1 = arith.constant 0 : i32
    return %c0_i32, %c0_i32_0 : i32, i32
  }
  func.func @transform_3(%arg0: i32) -> (i32, i32) {
    %c0_i32 = arith.constant 0 : i32
    %c0_i32_0 = arith.constant 0 : i32
    %c0_i32_1 = arith.constant 0 : i32
    return %c0_i32, %c0_i32_0 : i32, i32
  }
  func.func @transform_4(%arg0: i32) -> (i32, i32) {
    %c0_i32 = arith.constant 0 : i32
    %c0_i32_0 = arith.constant 0 : i32
    return %arg0, %c0_i32 : i32, i32
  }
}

module attributes {stable_mosaic.version = 11 : i64} {
  func.func @_conv_bn_lrelu_pool_kernel(%arg0: i32, %arg1: memref<4x128x144xbf16, #tpu.memory_space<vmem>>, %arg2: memref<144x32xbf16, #tpu.memory_space<vmem>>, %arg3: memref<1x32xf32, #tpu.memory_space<vmem>>, %arg4: memref<1x32xf32, #tpu.memory_space<vmem>>, %arg5: memref<128x32xf32, #tpu.memory_space<vmem>>) attributes {dimension_semantics = [#tpu.dimension_semantics<parallel>], iteration_bounds = array<i64: 1>, scalar_prefetch = 0 : i64, scratch_operands = 0 : i64, tpu.core_type = #tpu.core_type<tc>, window_params = [{transform_indices = @transform_0, window_bounds = array<i64: 4, 128, 144>}, {pipeline_mode = #tpu.pipeline_mode<synchronous>, transform_indices = @transform_1, window_bounds = array<i64: 144, 32>}, {pipeline_mode = #tpu.pipeline_mode<synchronous>, transform_indices = @transform_2, window_bounds = array<i64: 1, 32>}, {pipeline_mode = #tpu.pipeline_mode<synchronous>, transform_indices = @transform_3, window_bounds = array<i64: 1, 32>}, {transform_indices = @transform_4, window_bounds = array<i64: 128, 32>}]} {
    %c0 = arith.constant 0 : index
    %c0_0 = arith.constant 0 : index
    %0 = vector.load %arg2[%c0, %c0_0] : memref<144x32xbf16, #tpu.memory_space<vmem>>, vector<144x32xbf16>
    %c0_1 = arith.constant 0 : index
    %c0_2 = arith.constant 0 : index
    %1 = vector.load %arg3[%c0_1, %c0_2] : memref<1x32xf32, #tpu.memory_space<vmem>>, vector<1x32xf32>
    %c0_3 = arith.constant 0 : index
    %c0_4 = arith.constant 0 : index
    %2 = vector.load %arg4[%c0_3, %c0_4] : memref<1x32xf32, #tpu.memory_space<vmem>>, vector<1x32xf32>
    %c0_5 = arith.constant 0 : index
    %c0_6 = arith.constant 0 : index
    %c0_7 = arith.constant 0 : index
    %3 = vector.load %arg1[%c0_5, %c0_6, %c0_7] : memref<4x128x144xbf16, #tpu.memory_space<vmem>>, vector<1x128x144xbf16>
    %4 = vector.shape_cast %3 : vector<1x128x144xbf16> to vector<128x144xbf16>
    %cst = arith.constant dense<0.000000e+00> : vector<128x32xf32>
    %5 = tpu.matmul %4, %0, %cst {dimension_numbers = #tpu.dot_dimension_numbers<[1], [0], [0], [1], [0, 0, 1, 1], [], []>} : vector<128x144xbf16>, vector<144x32xbf16>, vector<128x32xf32> -> vector<128x32xf32>
    %6 = vector.broadcast %1 : vector<1x32xf32> to vector<128x32xf32>
    %7 = arith.mulf %5, %6 : vector<128x32xf32>
    %8 = vector.broadcast %2 : vector<1x32xf32> to vector<128x32xf32>
    %9 = arith.addf %7, %8 : vector<128x32xf32>
    %cst_8 = arith.constant 0.000000e+00 : f32
    %10 = vector.broadcast %cst_8 : f32 to vector<128x32xf32>
    %11 = arith.cmpf ogt, %9, %10 : vector<128x32xf32>
    %cst_9 = arith.constant 0.00999999977 : f32
    %12 = vector.broadcast %cst_9 : f32 to vector<128x32xf32>
    %13 = arith.mulf %12, %9 : vector<128x32xf32>
    %14 = arith.select %11, %9, %13 : vector<128x32xi1>, vector<128x32xf32>
    %c1 = arith.constant 1 : index
    %c0_10 = arith.constant 0 : index
    %c0_11 = arith.constant 0 : index
    %15 = vector.load %arg1[%c1, %c0_10, %c0_11] : memref<4x128x144xbf16, #tpu.memory_space<vmem>>, vector<1x128x144xbf16>
    %16 = vector.shape_cast %15 : vector<1x128x144xbf16> to vector<128x144xbf16>
    %cst_12 = arith.constant dense<0.000000e+00> : vector<128x32xf32>
    %17 = tpu.matmul %16, %0, %cst_12 {dimension_numbers = #tpu.dot_dimension_numbers<[1], [0], [0], [1], [0, 0, 1, 1], [], []>} : vector<128x144xbf16>, vector<144x32xbf16>, vector<128x32xf32> -> vector<128x32xf32>
    %18 = vector.broadcast %1 : vector<1x32xf32> to vector<128x32xf32>
    %19 = arith.mulf %17, %18 : vector<128x32xf32>
    %20 = vector.broadcast %2 : vector<1x32xf32> to vector<128x32xf32>
    %21 = arith.addf %19, %20 : vector<128x32xf32>
    %cst_13 = arith.constant 0.000000e+00 : f32
    %22 = vector.broadcast %cst_13 : f32 to vector<128x32xf32>
    %23 = arith.cmpf ogt, %21, %22 : vector<128x32xf32>
    %cst_14 = arith.constant 0.00999999977 : f32
    %24 = vector.broadcast %cst_14 : f32 to vector<128x32xf32>
    %25 = arith.mulf %24, %21 : vector<128x32xf32>
    %26 = arith.select %23, %21, %25 : vector<128x32xi1>, vector<128x32xf32>
    %27 = arith.maximumf %14, %26 : vector<128x32xf32>
    %c2 = arith.constant 2 : index
    %c0_15 = arith.constant 0 : index
    %c0_16 = arith.constant 0 : index
    %28 = vector.load %arg1[%c2, %c0_15, %c0_16] : memref<4x128x144xbf16, #tpu.memory_space<vmem>>, vector<1x128x144xbf16>
    %29 = vector.shape_cast %28 : vector<1x128x144xbf16> to vector<128x144xbf16>
    %cst_17 = arith.constant dense<0.000000e+00> : vector<128x32xf32>
    %30 = tpu.matmul %29, %0, %cst_17 {dimension_numbers = #tpu.dot_dimension_numbers<[1], [0], [0], [1], [0, 0, 1, 1], [], []>} : vector<128x144xbf16>, vector<144x32xbf16>, vector<128x32xf32> -> vector<128x32xf32>
    %31 = vector.broadcast %1 : vector<1x32xf32> to vector<128x32xf32>
    %32 = arith.mulf %30, %31 : vector<128x32xf32>
    %33 = vector.broadcast %2 : vector<1x32xf32> to vector<128x32xf32>
    %34 = arith.addf %32, %33 : vector<128x32xf32>
    %cst_18 = arith.constant 0.000000e+00 : f32
    %35 = vector.broadcast %cst_18 : f32 to vector<128x32xf32>
    %36 = arith.cmpf ogt, %34, %35 : vector<128x32xf32>
    %cst_19 = arith.constant 0.00999999977 : f32
    %37 = vector.broadcast %cst_19 : f32 to vector<128x32xf32>
    %38 = arith.mulf %37, %34 : vector<128x32xf32>
    %39 = arith.select %36, %34, %38 : vector<128x32xi1>, vector<128x32xf32>
    %40 = arith.maximumf %27, %39 : vector<128x32xf32>
    %c3 = arith.constant 3 : index
    %c0_20 = arith.constant 0 : index
    %c0_21 = arith.constant 0 : index
    %41 = vector.load %arg1[%c3, %c0_20, %c0_21] : memref<4x128x144xbf16, #tpu.memory_space<vmem>>, vector<1x128x144xbf16>
    %42 = vector.shape_cast %41 : vector<1x128x144xbf16> to vector<128x144xbf16>
    %cst_22 = arith.constant dense<0.000000e+00> : vector<128x32xf32>
    %43 = tpu.matmul %42, %0, %cst_22 {dimension_numbers = #tpu.dot_dimension_numbers<[1], [0], [0], [1], [0, 0, 1, 1], [], []>} : vector<128x144xbf16>, vector<144x32xbf16>, vector<128x32xf32> -> vector<128x32xf32>
    %44 = vector.broadcast %1 : vector<1x32xf32> to vector<128x32xf32>
    %45 = arith.mulf %43, %44 : vector<128x32xf32>
    %46 = vector.broadcast %2 : vector<1x32xf32> to vector<128x32xf32>
    %47 = arith.addf %45, %46 : vector<128x32xf32>
    %cst_23 = arith.constant 0.000000e+00 : f32
    %48 = vector.broadcast %cst_23 : f32 to vector<128x32xf32>
    %49 = arith.cmpf ogt, %47, %48 : vector<128x32xf32>
    %cst_24 = arith.constant 0.00999999977 : f32
    %50 = vector.broadcast %cst_24 : f32 to vector<128x32xf32>
    %51 = arith.mulf %50, %47 : vector<128x32xf32>
    %52 = arith.select %49, %47, %51 : vector<128x32xi1>, vector<128x32xf32>
    %53 = arith.maximumf %40, %52 : vector<128x32xf32>
    %c0_25 = arith.constant 0 : index
    %c0_26 = arith.constant 0 : index
    %54 = vector.load %arg5[%c0_25, %c0_26] : memref<128x32xf32, #tpu.memory_space<vmem>>, vector<128x32xf32>
    tpu.vector_store %arg5[%c0_25, %c0_26], %53 {strides = array<i32>} : memref<128x32xf32, #tpu.memory_space<vmem>>, vector<128x32xf32>,
    return
  }
  func.func @transform_0(%arg0: i32) -> (i32, i32, i32) {
    %c0_i32 = arith.constant 0 : i32
    %c0_i32_0 = arith.constant 0 : i32
    %c0_i32_1 = arith.constant 0 : i32
    return %c0_i32, %arg0, %c0_i32_0 : i32, i32, i32
  }
  func.func @transform_1(%arg0: i32) -> (i32, i32) {
    %c0_i32 = arith.constant 0 : i32
    %c0_i32_0 = arith.constant 0 : i32
    %c0_i32_1 = arith.constant 0 : i32
    return %c0_i32, %c0_i32_0 : i32, i32
  }
  func.func @transform_2(%arg0: i32) -> (i32, i32) {
    %c0_i32 = arith.constant 0 : i32
    %c0_i32_0 = arith.constant 0 : i32
    %c0_i32_1 = arith.constant 0 : i32
    return %c0_i32, %c0_i32_0 : i32, i32
  }
  func.func @transform_3(%arg0: i32) -> (i32, i32) {
    %c0_i32 = arith.constant 0 : i32
    %c0_i32_0 = arith.constant 0 : i32
    %c0_i32_1 = arith.constant 0 : i32
    return %c0_i32, %c0_i32_0 : i32, i32
  }
  func.func @transform_4(%arg0: i32) -> (i32, i32) {
    %c0_i32 = arith.constant 0 : i32
    %c0_i32_0 = arith.constant 0 : i32
    return %arg0, %c0_i32 : i32, i32
  }
}

module attributes {stable_mosaic.version = 11 : i64} {
  func.func @_conv_bn_lrelu_pool_kernel(%arg0: i32, %arg1: memref<4x32x288xbf16, #tpu.memory_space<vmem>>, %arg2: memref<288x64xbf16, #tpu.memory_space<vmem>>, %arg3: memref<1x64xf32, #tpu.memory_space<vmem>>, %arg4: memref<1x64xf32, #tpu.memory_space<vmem>>, %arg5: memref<32x64xf32, #tpu.memory_space<vmem>>) attributes {dimension_semantics = [#tpu.dimension_semantics<parallel>], iteration_bounds = array<i64: 1>, scalar_prefetch = 0 : i64, scratch_operands = 0 : i64, tpu.core_type = #tpu.core_type<tc>, window_params = [{transform_indices = @transform_0, window_bounds = array<i64: 4, 32, 288>}, {pipeline_mode = #tpu.pipeline_mode<synchronous>, transform_indices = @transform_1, window_bounds = array<i64: 288, 64>}, {pipeline_mode = #tpu.pipeline_mode<synchronous>, transform_indices = @transform_2, window_bounds = array<i64: 1, 64>}, {pipeline_mode = #tpu.pipeline_mode<synchronous>, transform_indices = @transform_3, window_bounds = array<i64: 1, 64>}, {transform_indices = @transform_4, window_bounds = array<i64: 32, 64>}]} {
    %c0 = arith.constant 0 : index
    %c0_0 = arith.constant 0 : index
    %0 = vector.load %arg2[%c0, %c0_0] : memref<288x64xbf16, #tpu.memory_space<vmem>>, vector<288x64xbf16>
    %c0_1 = arith.constant 0 : index
    %c0_2 = arith.constant 0 : index
    %1 = vector.load %arg3[%c0_1, %c0_2] : memref<1x64xf32, #tpu.memory_space<vmem>>, vector<1x64xf32>
    %c0_3 = arith.constant 0 : index
    %c0_4 = arith.constant 0 : index
    %2 = vector.load %arg4[%c0_3, %c0_4] : memref<1x64xf32, #tpu.memory_space<vmem>>, vector<1x64xf32>
    %c0_5 = arith.constant 0 : index
    %c0_6 = arith.constant 0 : index
    %c0_7 = arith.constant 0 : index
    %3 = vector.load %arg1[%c0_5, %c0_6, %c0_7] : memref<4x32x288xbf16, #tpu.memory_space<vmem>>, vector<1x32x288xbf16>
    %4 = vector.shape_cast %3 : vector<1x32x288xbf16> to vector<32x288xbf16>
    %cst = arith.constant dense<0.000000e+00> : vector<32x64xf32>
    %5 = tpu.matmul %4, %0, %cst {dimension_numbers = #tpu.dot_dimension_numbers<[1], [0], [0], [1], [0, 0, 1, 1], [], []>} : vector<32x288xbf16>, vector<288x64xbf16>, vector<32x64xf32> -> vector<32x64xf32>
    %6 = vector.broadcast %1 : vector<1x64xf32> to vector<32x64xf32>
    %7 = arith.mulf %5, %6 : vector<32x64xf32>
    %8 = vector.broadcast %2 : vector<1x64xf32> to vector<32x64xf32>
    %9 = arith.addf %7, %8 : vector<32x64xf32>
    %cst_8 = arith.constant 0.000000e+00 : f32
    %10 = vector.broadcast %cst_8 : f32 to vector<32x64xf32>
    %11 = arith.cmpf ogt, %9, %10 : vector<32x64xf32>
    %cst_9 = arith.constant 0.00999999977 : f32
    %12 = vector.broadcast %cst_9 : f32 to vector<32x64xf32>
    %13 = arith.mulf %12, %9 : vector<32x64xf32>
    %14 = arith.select %11, %9, %13 : vector<32x64xi1>, vector<32x64xf32>
    %c1 = arith.constant 1 : index
    %c0_10 = arith.constant 0 : index
    %c0_11 = arith.constant 0 : index
    %15 = vector.load %arg1[%c1, %c0_10, %c0_11] : memref<4x32x288xbf16, #tpu.memory_space<vmem>>, vector<1x32x288xbf16>
    %16 = vector.shape_cast %15 : vector<1x32x288xbf16> to vector<32x288xbf16>
    %cst_12 = arith.constant dense<0.000000e+00> : vector<32x64xf32>
    %17 = tpu.matmul %16, %0, %cst_12 {dimension_numbers = #tpu.dot_dimension_numbers<[1], [0], [0], [1], [0, 0, 1, 1], [], []>} : vector<32x288xbf16>, vector<288x64xbf16>, vector<32x64xf32> -> vector<32x64xf32>
    %18 = vector.broadcast %1 : vector<1x64xf32> to vector<32x64xf32>
    %19 = arith.mulf %17, %18 : vector<32x64xf32>
    %20 = vector.broadcast %2 : vector<1x64xf32> to vector<32x64xf32>
    %21 = arith.addf %19, %20 : vector<32x64xf32>
    %cst_13 = arith.constant 0.000000e+00 : f32
    %22 = vector.broadcast %cst_13 : f32 to vector<32x64xf32>
    %23 = arith.cmpf ogt, %21, %22 : vector<32x64xf32>
    %cst_14 = arith.constant 0.00999999977 : f32
    %24 = vector.broadcast %cst_14 : f32 to vector<32x64xf32>
    %25 = arith.mulf %24, %21 : vector<32x64xf32>
    %26 = arith.select %23, %21, %25 : vector<32x64xi1>, vector<32x64xf32>
    %27 = arith.maximumf %14, %26 : vector<32x64xf32>
    %c2 = arith.constant 2 : index
    %c0_15 = arith.constant 0 : index
    %c0_16 = arith.constant 0 : index
    %28 = vector.load %arg1[%c2, %c0_15, %c0_16] : memref<4x32x288xbf16, #tpu.memory_space<vmem>>, vector<1x32x288xbf16>
    %29 = vector.shape_cast %28 : vector<1x32x288xbf16> to vector<32x288xbf16>
    %cst_17 = arith.constant dense<0.000000e+00> : vector<32x64xf32>
    %30 = tpu.matmul %29, %0, %cst_17 {dimension_numbers = #tpu.dot_dimension_numbers<[1], [0], [0], [1], [0, 0, 1, 1], [], []>} : vector<32x288xbf16>, vector<288x64xbf16>, vector<32x64xf32> -> vector<32x64xf32>
    %31 = vector.broadcast %1 : vector<1x64xf32> to vector<32x64xf32>
    %32 = arith.mulf %30, %31 : vector<32x64xf32>
    %33 = vector.broadcast %2 : vector<1x64xf32> to vector<32x64xf32>
    %34 = arith.addf %32, %33 : vector<32x64xf32>
    %cst_18 = arith.constant 0.000000e+00 : f32
    %35 = vector.broadcast %cst_18 : f32 to vector<32x64xf32>
    %36 = arith.cmpf ogt, %34, %35 : vector<32x64xf32>
    %cst_19 = arith.constant 0.00999999977 : f32
    %37 = vector.broadcast %cst_19 : f32 to vector<32x64xf32>
    %38 = arith.mulf %37, %34 : vector<32x64xf32>
    %39 = arith.select %36, %34, %38 : vector<32x64xi1>, vector<32x64xf32>
    %40 = arith.maximumf %27, %39 : vector<32x64xf32>
    %c3 = arith.constant 3 : index
    %c0_20 = arith.constant 0 : index
    %c0_21 = arith.constant 0 : index
    %41 = vector.load %arg1[%c3, %c0_20, %c0_21] : memref<4x32x288xbf16, #tpu.memory_space<vmem>>, vector<1x32x288xbf16>
    %42 = vector.shape_cast %41 : vector<1x32x288xbf16> to vector<32x288xbf16>
    %cst_22 = arith.constant dense<0.000000e+00> : vector<32x64xf32>
    %43 = tpu.matmul %42, %0, %cst_22 {dimension_numbers = #tpu.dot_dimension_numbers<[1], [0], [0], [1], [0, 0, 1, 1], [], []>} : vector<32x288xbf16>, vector<288x64xbf16>, vector<32x64xf32> -> vector<32x64xf32>
    %44 = vector.broadcast %1 : vector<1x64xf32> to vector<32x64xf32>
    %45 = arith.mulf %43, %44 : vector<32x64xf32>
    %46 = vector.broadcast %2 : vector<1x64xf32> to vector<32x64xf32>
    %47 = arith.addf %45, %46 : vector<32x64xf32>
    %cst_23 = arith.constant 0.000000e+00 : f32
    %48 = vector.broadcast %cst_23 : f32 to vector<32x64xf32>
    %49 = arith.cmpf ogt, %47, %48 : vector<32x64xf32>
    %cst_24 = arith.constant 0.00999999977 : f32
    %50 = vector.broadcast %cst_24 : f32 to vector<32x64xf32>
    %51 = arith.mulf %50, %47 : vector<32x64xf32>
    %52 = arith.select %49, %47, %51 : vector<32x64xi1>, vector<32x64xf32>
    %53 = arith.maximumf %40, %52 : vector<32x64xf32>
    %c0_25 = arith.constant 0 : index
    %c0_26 = arith.constant 0 : index
    %54 = vector.load %arg5[%c0_25, %c0_26] : memref<32x64xf32, #tpu.memory_space<vmem>>, vector<32x64xf32>
    tpu.vector_store %arg5[%c0_25, %c0_26], %53 {strides = array<i32>} : memref<32x64xf32, #tpu.memory_space<vmem>>, vector<32x64xf32>,
    return
  }
  func.func @transform_0(%arg0: i32) -> (i32, i32, i32) {
    %c0_i32 = arith.constant 0 : i32
    %c0_i32_0 = arith.constant 0 : i32
    %c0_i32_1 = arith.constant 0 : i32
    return %c0_i32, %arg0, %c0_i32_0 : i32, i32, i32
  }
  func.func @transform_1(%arg0: i32) -> (i32, i32) {
    %c0_i32 = arith.constant 0 : i32
    %c0_i32_0 = arith.constant 0 : i32
    %c0_i32_1 = arith.constant 0 : i32
    return %c0_i32, %c0_i32_0 : i32, i32
  }
  func.func @transform_2(%arg0: i32) -> (i32, i32) {
    %c0_i32 = arith.constant 0 : i32
    %c0_i32_0 = arith.constant 0 : i32
    %c0_i32_1 = arith.constant 0 : i32
    return %c0_i32, %c0_i32_0 : i32, i32
  }
  func.func @transform_3(%arg0: i32) -> (i32, i32) {
    %c0_i32 = arith.constant 0 : i32
    %c0_i32_0 = arith.constant 0 : i32
    %c0_i32_1 = arith.constant 0 : i32
    return %c0_i32, %c0_i32_0 : i32, i32
  }
  func.func @transform_4(%arg0: i32) -> (i32, i32) {
    %c0_i32 = arith.constant 0 : i32
    %c0_i32_0 = arith.constant 0 : i32
    return %arg0, %c0_i32 : i32, i32
  }
}

module attributes {stable_mosaic.version = 11 : i64} {
  func.func @_conv_bn_lrelu_pool_kernel(%arg0: i32, %arg1: memref<4x8x576xbf16, #tpu.memory_space<vmem>>, %arg2: memref<576x128xbf16, #tpu.memory_space<vmem>>, %arg3: memref<1x128xf32, #tpu.memory_space<vmem>>, %arg4: memref<1x128xf32, #tpu.memory_space<vmem>>, %arg5: memref<8x128xf32, #tpu.memory_space<vmem>>) attributes {dimension_semantics = [#tpu.dimension_semantics<parallel>], iteration_bounds = array<i64: 1>, scalar_prefetch = 0 : i64, scratch_operands = 0 : i64, tpu.core_type = #tpu.core_type<tc>, window_params = [{transform_indices = @transform_0, window_bounds = array<i64: 4, 8, 576>}, {pipeline_mode = #tpu.pipeline_mode<synchronous>, transform_indices = @transform_1, window_bounds = array<i64: 576, 128>}, {pipeline_mode = #tpu.pipeline_mode<synchronous>, transform_indices = @transform_2, window_bounds = array<i64: 1, 128>}, {pipeline_mode = #tpu.pipeline_mode<synchronous>, transform_indices = @transform_3, window_bounds = array<i64: 1, 128>}, {transform_indices = @transform_4, window_bounds = array<i64: 8, 128>}]} {
    %c0 = arith.constant 0 : index
    %c0_0 = arith.constant 0 : index
    %0 = vector.load %arg2[%c0, %c0_0] : memref<576x128xbf16, #tpu.memory_space<vmem>>, vector<576x128xbf16>
    %c0_1 = arith.constant 0 : index
    %c0_2 = arith.constant 0 : index
    %1 = vector.load %arg3[%c0_1, %c0_2] : memref<1x128xf32, #tpu.memory_space<vmem>>, vector<1x128xf32>
    %c0_3 = arith.constant 0 : index
    %c0_4 = arith.constant 0 : index
    %2 = vector.load %arg4[%c0_3, %c0_4] : memref<1x128xf32, #tpu.memory_space<vmem>>, vector<1x128xf32>
    %c0_5 = arith.constant 0 : index
    %c0_6 = arith.constant 0 : index
    %c0_7 = arith.constant 0 : index
    %3 = vector.load %arg1[%c0_5, %c0_6, %c0_7] : memref<4x8x576xbf16, #tpu.memory_space<vmem>>, vector<1x8x576xbf16>
    %4 = vector.shape_cast %3 : vector<1x8x576xbf16> to vector<8x576xbf16>
    %cst = arith.constant dense<0.000000e+00> : vector<8x128xf32>
    %5 = tpu.matmul %4, %0, %cst {dimension_numbers = #tpu.dot_dimension_numbers<[1], [0], [0], [1], [0, 0, 1, 1], [], []>} : vector<8x576xbf16>, vector<576x128xbf16>, vector<8x128xf32> -> vector<8x128xf32>
    %6 = vector.broadcast %1 : vector<1x128xf32> to vector<8x128xf32>
    %7 = arith.mulf %5, %6 : vector<8x128xf32>
    %8 = vector.broadcast %2 : vector<1x128xf32> to vector<8x128xf32>
    %9 = arith.addf %7, %8 : vector<8x128xf32>
    %cst_8 = arith.constant 0.000000e+00 : f32
    %10 = vector.broadcast %cst_8 : f32 to vector<8x128xf32>
    %11 = arith.cmpf ogt, %9, %10 : vector<8x128xf32>
    %cst_9 = arith.constant 0.00999999977 : f32
    %12 = vector.broadcast %cst_9 : f32 to vector<8x128xf32>
    %13 = arith.mulf %12, %9 : vector<8x128xf32>
    %14 = arith.select %11, %9, %13 : vector<8x128xi1>, vector<8x128xf32>
    %c1 = arith.constant 1 : index
    %c0_10 = arith.constant 0 : index
    %c0_11 = arith.constant 0 : index
    %15 = vector.load %arg1[%c1, %c0_10, %c0_11] : memref<4x8x576xbf16, #tpu.memory_space<vmem>>, vector<1x8x576xbf16>
    %16 = vector.shape_cast %15 : vector<1x8x576xbf16> to vector<8x576xbf16>
    %cst_12 = arith.constant dense<0.000000e+00> : vector<8x128xf32>
    %17 = tpu.matmul %16, %0, %cst_12 {dimension_numbers = #tpu.dot_dimension_numbers<[1], [0], [0], [1], [0, 0, 1, 1], [], []>} : vector<8x576xbf16>, vector<576x128xbf16>, vector<8x128xf32> -> vector<8x128xf32>
    %18 = vector.broadcast %1 : vector<1x128xf32> to vector<8x128xf32>
    %19 = arith.mulf %17, %18 : vector<8x128xf32>
    %20 = vector.broadcast %2 : vector<1x128xf32> to vector<8x128xf32>
    %21 = arith.addf %19, %20 : vector<8x128xf32>
    %cst_13 = arith.constant 0.000000e+00 : f32
    %22 = vector.broadcast %cst_13 : f32 to vector<8x128xf32>
    %23 = arith.cmpf ogt, %21, %22 : vector<8x128xf32>
    %cst_14 = arith.constant 0.00999999977 : f32
    %24 = vector.broadcast %cst_14 : f32 to vector<8x128xf32>
    %25 = arith.mulf %24, %21 : vector<8x128xf32>
    %26 = arith.select %23, %21, %25 : vector<8x128xi1>, vector<8x128xf32>
    %27 = arith.maximumf %14, %26 : vector<8x128xf32>
    %c2 = arith.constant 2 : index
    %c0_15 = arith.constant 0 : index
    %c0_16 = arith.constant 0 : index
    %28 = vector.load %arg1[%c2, %c0_15, %c0_16] : memref<4x8x576xbf16, #tpu.memory_space<vmem>>, vector<1x8x576xbf16>
    %29 = vector.shape_cast %28 : vector<1x8x576xbf16> to vector<8x576xbf16>
    %cst_17 = arith.constant dense<0.000000e+00> : vector<8x128xf32>
    %30 = tpu.matmul %29, %0, %cst_17 {dimension_numbers = #tpu.dot_dimension_numbers<[1], [0], [0], [1], [0, 0, 1, 1], [], []>} : vector<8x576xbf16>, vector<576x128xbf16>, vector<8x128xf32> -> vector<8x128xf32>
    %31 = vector.broadcast %1 : vector<1x128xf32> to vector<8x128xf32>
    %32 = arith.mulf %30, %31 : vector<8x128xf32>
    %33 = vector.broadcast %2 : vector<1x128xf32> to vector<8x128xf32>
    %34 = arith.addf %32, %33 : vector<8x128xf32>
    %cst_18 = arith.constant 0.000000e+00 : f32
    %35 = vector.broadcast %cst_18 : f32 to vector<8x128xf32>
    %36 = arith.cmpf ogt, %34, %35 : vector<8x128xf32>
    %cst_19 = arith.constant 0.00999999977 : f32
    %37 = vector.broadcast %cst_19 : f32 to vector<8x128xf32>
    %38 = arith.mulf %37, %34 : vector<8x128xf32>
    %39 = arith.select %36, %34, %38 : vector<8x128xi1>, vector<8x128xf32>
    %40 = arith.maximumf %27, %39 : vector<8x128xf32>
    %c3 = arith.constant 3 : index
    %c0_20 = arith.constant 0 : index
    %c0_21 = arith.constant 0 : index
    %41 = vector.load %arg1[%c3, %c0_20, %c0_21] : memref<4x8x576xbf16, #tpu.memory_space<vmem>>, vector<1x8x576xbf16>
    %42 = vector.shape_cast %41 : vector<1x8x576xbf16> to vector<8x576xbf16>
    %cst_22 = arith.constant dense<0.000000e+00> : vector<8x128xf32>
    %43 = tpu.matmul %42, %0, %cst_22 {dimension_numbers = #tpu.dot_dimension_numbers<[1], [0], [0], [1], [0, 0, 1, 1], [], []>} : vector<8x576xbf16>, vector<576x128xbf16>, vector<8x128xf32> -> vector<8x128xf32>
    %44 = vector.broadcast %1 : vector<1x128xf32> to vector<8x128xf32>
    %45 = arith.mulf %43, %44 : vector<8x128xf32>
    %46 = vector.broadcast %2 : vector<1x128xf32> to vector<8x128xf32>
    %47 = arith.addf %45, %46 : vector<8x128xf32>
    %cst_23 = arith.constant 0.000000e+00 : f32
    %48 = vector.broadcast %cst_23 : f32 to vector<8x128xf32>
    %49 = arith.cmpf ogt, %47, %48 : vector<8x128xf32>
    %cst_24 = arith.constant 0.00999999977 : f32
    %50 = vector.broadcast %cst_24 : f32 to vector<8x128xf32>
    %51 = arith.mulf %50, %47 : vector<8x128xf32>
    %52 = arith.select %49, %47, %51 : vector<8x128xi1>, vector<8x128xf32>
    %53 = arith.maximumf %40, %52 : vector<8x128xf32>
    %c0_25 = arith.constant 0 : index
    %c0_26 = arith.constant 0 : index
    %54 = vector.load %arg5[%c0_25, %c0_26] : memref<8x128xf32, #tpu.memory_space<vmem>>, vector<8x128xf32>
    tpu.vector_store %arg5[%c0_25, %c0_26], %53 {strides = array<i32>} : memref<8x128xf32, #tpu.memory_space<vmem>>, vector<8x128xf32>,
    return
  }
  func.func @transform_0(%arg0: i32) -> (i32, i32, i32) {
    %c0_i32 = arith.constant 0 : i32
    %c0_i32_0 = arith.constant 0 : i32
    %c0_i32_1 = arith.constant 0 : i32
    return %c0_i32, %arg0, %c0_i32_0 : i32, i32, i32
  }
  func.func @transform_1(%arg0: i32) -> (i32, i32) {
    %c0_i32 = arith.constant 0 : i32
    %c0_i32_0 = arith.constant 0 : i32
    %c0_i32_1 = arith.constant 0 : i32
    return %c0_i32, %c0_i32_0 : i32, i32
  }
  func.func @transform_2(%arg0: i32) -> (i32, i32) {
    %c0_i32 = arith.constant 0 : i32
    %c0_i32_0 = arith.constant 0 : i32
    %c0_i32_1 = arith.constant 0 : i32
    return %c0_i32, %c0_i32_0 : i32, i32
  }
  func.func @transform_3(%arg0: i32) -> (i32, i32) {
    %c0_i32 = arith.constant 0 : i32
    %c0_i32_0 = arith.constant 0 : i32
    %c0_i32_1 = arith.constant 0 : i32
    return %c0_i32, %c0_i32_0 : i32, i32
  }
  func.func @transform_4(%arg0: i32) -> (i32, i32) {
    %c0_i32 = arith.constant 0 : i32
    %c0_i32_0 = arith.constant 0 : i32
    return %arg0, %c0_i32 : i32, i32
  }
}

module attributes {stable_mosaic.version = 11 : i64} {
  func.func @_conv_bn_lrelu_pool_kernel(%arg0: i32, %arg1: memref<4x2x1152xbf16, #tpu.memory_space<vmem>>, %arg2: memref<1152x256xbf16, #tpu.memory_space<vmem>>, %arg3: memref<1x256xf32, #tpu.memory_space<vmem>>, %arg4: memref<1x256xf32, #tpu.memory_space<vmem>>, %arg5: memref<2x256xf32, #tpu.memory_space<vmem>>) attributes {dimension_semantics = [#tpu.dimension_semantics<parallel>], iteration_bounds = array<i64: 1>, scalar_prefetch = 0 : i64, scratch_operands = 0 : i64, tpu.core_type = #tpu.core_type<tc>, window_params = [{transform_indices = @transform_0, window_bounds = array<i64: 4, 2, 1152>}, {pipeline_mode = #tpu.pipeline_mode<synchronous>, transform_indices = @transform_1, window_bounds = array<i64: 1152, 256>}, {pipeline_mode = #tpu.pipeline_mode<synchronous>, transform_indices = @transform_2, window_bounds = array<i64: 1, 256>}, {pipeline_mode = #tpu.pipeline_mode<synchronous>, transform_indices = @transform_3, window_bounds = array<i64: 1, 256>}, {transform_indices = @transform_4, window_bounds = array<i64: 2, 256>}]} {
    %c0 = arith.constant 0 : index
    %c0_0 = arith.constant 0 : index
    %0 = vector.load %arg2[%c0, %c0_0] : memref<1152x256xbf16, #tpu.memory_space<vmem>>, vector<1152x256xbf16>
    %c0_1 = arith.constant 0 : index
    %c0_2 = arith.constant 0 : index
    %1 = vector.load %arg3[%c0_1, %c0_2] : memref<1x256xf32, #tpu.memory_space<vmem>>, vector<1x256xf32>
    %c0_3 = arith.constant 0 : index
    %c0_4 = arith.constant 0 : index
    %2 = vector.load %arg4[%c0_3, %c0_4] : memref<1x256xf32, #tpu.memory_space<vmem>>, vector<1x256xf32>
    %c0_5 = arith.constant 0 : index
    %c0_6 = arith.constant 0 : index
    %c0_7 = arith.constant 0 : index
    %3 = vector.load %arg1[%c0_5, %c0_6, %c0_7] : memref<4x2x1152xbf16, #tpu.memory_space<vmem>>, vector<1x2x1152xbf16>
    %4 = vector.shape_cast %3 : vector<1x2x1152xbf16> to vector<2x1152xbf16>
    %cst = arith.constant dense<0.000000e+00> : vector<2x256xf32>
    %5 = tpu.matmul %4, %0, %cst {dimension_numbers = #tpu.dot_dimension_numbers<[1], [0], [0], [1], [0, 0, 1, 1], [], []>} : vector<2x1152xbf16>, vector<1152x256xbf16>, vector<2x256xf32> -> vector<2x256xf32>
    %6 = vector.broadcast %1 : vector<1x256xf32> to vector<2x256xf32>
    %7 = arith.mulf %5, %6 : vector<2x256xf32>
    %8 = vector.broadcast %2 : vector<1x256xf32> to vector<2x256xf32>
    %9 = arith.addf %7, %8 : vector<2x256xf32>
    %cst_8 = arith.constant 0.000000e+00 : f32
    %10 = vector.broadcast %cst_8 : f32 to vector<2x256xf32>
    %11 = arith.cmpf ogt, %9, %10 : vector<2x256xf32>
    %cst_9 = arith.constant 0.00999999977 : f32
    %12 = vector.broadcast %cst_9 : f32 to vector<2x256xf32>
    %13 = arith.mulf %12, %9 : vector<2x256xf32>
    %14 = arith.select %11, %9, %13 : vector<2x256xi1>, vector<2x256xf32>
    %c1 = arith.constant 1 : index
    %c0_10 = arith.constant 0 : index
    %c0_11 = arith.constant 0 : index
    %15 = vector.load %arg1[%c1, %c0_10, %c0_11] : memref<4x2x1152xbf16, #tpu.memory_space<vmem>>, vector<1x2x1152xbf16>
    %16 = vector.shape_cast %15 : vector<1x2x1152xbf16> to vector<2x1152xbf16>
    %cst_12 = arith.constant dense<0.000000e+00> : vector<2x256xf32>
    %17 = tpu.matmul %16, %0, %cst_12 {dimension_numbers = #tpu.dot_dimension_numbers<[1], [0], [0], [1], [0, 0, 1, 1], [], []>} : vector<2x1152xbf16>, vector<1152x256xbf16>, vector<2x256xf32> -> vector<2x256xf32>
    %18 = vector.broadcast %1 : vector<1x256xf32> to vector<2x256xf32>
    %19 = arith.mulf %17, %18 : vector<2x256xf32>
    %20 = vector.broadcast %2 : vector<1x256xf32> to vector<2x256xf32>
    %21 = arith.addf %19, %20 : vector<2x256xf32>
    %cst_13 = arith.constant 0.000000e+00 : f32
    %22 = vector.broadcast %cst_13 : f32 to vector<2x256xf32>
    %23 = arith.cmpf ogt, %21, %22 : vector<2x256xf32>
    %cst_14 = arith.constant 0.00999999977 : f32
    %24 = vector.broadcast %cst_14 : f32 to vector<2x256xf32>
    %25 = arith.mulf %24, %21 : vector<2x256xf32>
    %26 = arith.select %23, %21, %25 : vector<2x256xi1>, vector<2x256xf32>
    %27 = arith.maximumf %14, %26 : vector<2x256xf32>
    %c2 = arith.constant 2 : index
    %c0_15 = arith.constant 0 : index
    %c0_16 = arith.constant 0 : index
    %28 = vector.load %arg1[%c2, %c0_15, %c0_16] : memref<4x2x1152xbf16, #tpu.memory_space<vmem>>, vector<1x2x1152xbf16>
    %29 = vector.shape_cast %28 : vector<1x2x1152xbf16> to vector<2x1152xbf16>
    %cst_17 = arith.constant dense<0.000000e+00> : vector<2x256xf32>
    %30 = tpu.matmul %29, %0, %cst_17 {dimension_numbers = #tpu.dot_dimension_numbers<[1], [0], [0], [1], [0, 0, 1, 1], [], []>} : vector<2x1152xbf16>, vector<1152x256xbf16>, vector<2x256xf32> -> vector<2x256xf32>
    %31 = vector.broadcast %1 : vector<1x256xf32> to vector<2x256xf32>
    %32 = arith.mulf %30, %31 : vector<2x256xf32>
    %33 = vector.broadcast %2 : vector<1x256xf32> to vector<2x256xf32>
    %34 = arith.addf %32, %33 : vector<2x256xf32>
    %cst_18 = arith.constant 0.000000e+00 : f32
    %35 = vector.broadcast %cst_18 : f32 to vector<2x256xf32>
    %36 = arith.cmpf ogt, %34, %35 : vector<2x256xf32>
    %cst_19 = arith.constant 0.00999999977 : f32
    %37 = vector.broadcast %cst_19 : f32 to vector<2x256xf32>
    %38 = arith.mulf %37, %34 : vector<2x256xf32>
    %39 = arith.select %36, %34, %38 : vector<2x256xi1>, vector<2x256xf32>
    %40 = arith.maximumf %27, %39 : vector<2x256xf32>
    %c3 = arith.constant 3 : index
    %c0_20 = arith.constant 0 : index
    %c0_21 = arith.constant 0 : index
    %41 = vector.load %arg1[%c3, %c0_20, %c0_21] : memref<4x2x1152xbf16, #tpu.memory_space<vmem>>, vector<1x2x1152xbf16>
    %42 = vector.shape_cast %41 : vector<1x2x1152xbf16> to vector<2x1152xbf16>
    %cst_22 = arith.constant dense<0.000000e+00> : vector<2x256xf32>
    %43 = tpu.matmul %42, %0, %cst_22 {dimension_numbers = #tpu.dot_dimension_numbers<[1], [0], [0], [1], [0, 0, 1, 1], [], []>} : vector<2x1152xbf16>, vector<1152x256xbf16>, vector<2x256xf32> -> vector<2x256xf32>
    %44 = vector.broadcast %1 : vector<1x256xf32> to vector<2x256xf32>
    %45 = arith.mulf %43, %44 : vector<2x256xf32>
    %46 = vector.broadcast %2 : vector<1x256xf32> to vector<2x256xf32>
    %47 = arith.addf %45, %46 : vector<2x256xf32>
    %cst_23 = arith.constant 0.000000e+00 : f32
    %48 = vector.broadcast %cst_23 : f32 to vector<2x256xf32>
    %49 = arith.cmpf ogt, %47, %48 : vector<2x256xf32>
    %cst_24 = arith.constant 0.00999999977 : f32
    %50 = vector.broadcast %cst_24 : f32 to vector<2x256xf32>
    %51 = arith.mulf %50, %47 : vector<2x256xf32>
    %52 = arith.select %49, %47, %51 : vector<2x256xi1>, vector<2x256xf32>
    %53 = arith.maximumf %40, %52 : vector<2x256xf32>
    %c0_25 = arith.constant 0 : index
    %c0_26 = arith.constant 0 : index
    %54 = vector.load %arg5[%c0_25, %c0_26] : memref<2x256xf32, #tpu.memory_space<vmem>>, vector<2x256xf32>
    tpu.vector_store %arg5[%c0_25, %c0_26], %53 {strides = array<i32>} : memref<2x256xf32, #tpu.memory_space<vmem>>, vector<2x256xf32>,
    return
  }
  func.func @transform_0(%arg0: i32) -> (i32, i32, i32) {
    %c0_i32 = arith.constant 0 : i32
    %c0_i32_0 = arith.constant 0 : i32
    %c0_i32_1 = arith.constant 0 : i32
    return %c0_i32, %arg0, %c0_i32_0 : i32, i32, i32
  }
  func.func @transform_1(%arg0: i32) -> (i32, i32) {
    %c0_i32 = arith.constant 0 : i32
    %c0_i32_0 = arith.constant 0 : i32
    %c0_i32_1 = arith.constant 0 : i32
    return %c0_i32, %c0_i32_0 : i32, i32
  }
  func.func @transform_2(%arg0: i32) -> (i32, i32) {
    %c0_i32 = arith.constant 0 : i32
    %c0_i32_0 = arith.constant 0 : i32
    %c0_i32_1 = arith.constant 0 : i32
    return %c0_i32, %c0_i32_0 : i32, i32
  }
  func.func @transform_3(%arg0: i32) -> (i32, i32) {
    %c0_i32 = arith.constant 0 : i32
    %c0_i32_0 = arith.constant 0 : i32
    %c0_i32_1 = arith.constant 0 : i32
    return %c0_i32, %c0_i32_0 : i32, i32
  }
  func.func @transform_4(%arg0: i32) -> (i32, i32) {
    %c0_i32 = arith.constant 0 : i32
    %c0_i32_0 = arith.constant 0 : i32
    return %arg0, %c0_i32 : i32, i32
  }
}

module attributes {stable_mosaic.version = 11 : i64} {
  func.func @_conv_bn_lrelu_gap_kernel(%arg0: memref<2x2304xbf16, #tpu.memory_space<vmem>>, %arg1: memref<2304x4xbf16, #tpu.memory_space<vmem>>, %arg2: memref<2x2xf32, #tpu.memory_space<vmem>>, %arg3: memref<1x4xf32, #tpu.memory_space<vmem>>, %arg4: memref<1x4xf32, #tpu.memory_space<vmem>>, %arg5: memref<2x4xf32, #tpu.memory_space<vmem>>) attributes {dimension_semantics = [], scalar_prefetch = 0 : i64, scratch_operands = 0 : i64, tpu.core_type = #tpu.core_type<tc>} {
    %c0 = arith.constant 0 : index
    %c0_0 = arith.constant 0 : index
    %0 = vector.load %arg0[%c0, %c0_0] : memref<2x2304xbf16, #tpu.memory_space<vmem>>, vector<2x2304xbf16>
    %c0_1 = arith.constant 0 : index
    %c0_2 = arith.constant 0 : index
    %1 = vector.load %arg1[%c0_1, %c0_2] : memref<2304x4xbf16, #tpu.memory_space<vmem>>, vector<2304x4xbf16>
    %cst = arith.constant dense<0.000000e+00> : vector<2x4xf32>
    %2 = tpu.matmul %0, %1, %cst {dimension_numbers = #tpu.dot_dimension_numbers<[1], [0], [0], [1], [0, 0, 1, 1], [], []>} : vector<2x2304xbf16>, vector<2304x4xbf16>, vector<2x4xf32> -> vector<2x4xf32>
    %c0_3 = arith.constant 0 : index
    %c0_4 = arith.constant 0 : index
    %3 = vector.load %arg3[%c0_3, %c0_4] : memref<1x4xf32, #tpu.memory_space<vmem>>, vector<1x4xf32>
    %4 = vector.broadcast %3 : vector<1x4xf32> to vector<2x4xf32>
    %5 = arith.mulf %2, %4 : vector<2x4xf32>
    %c0_5 = arith.constant 0 : index
    %c0_6 = arith.constant 0 : index
    %6 = vector.load %arg4[%c0_5, %c0_6] : memref<1x4xf32, #tpu.memory_space<vmem>>, vector<1x4xf32>
    %7 = vector.broadcast %6 : vector<1x4xf32> to vector<2x4xf32>
    %8 = arith.addf %5, %7 : vector<2x4xf32>
    %cst_7 = arith.constant 0.000000e+00 : f32
    %9 = vector.broadcast %cst_7 : f32 to vector<2x4xf32>
    %10 = arith.cmpf ogt, %8, %9 : vector<2x4xf32>
    %cst_8 = arith.constant 0.00999999977 : f32
    %11 = vector.broadcast %cst_8 : f32 to vector<2x4xf32>
    %12 = arith.mulf %11, %8 : vector<2x4xf32>
    %13 = arith.select %10, %8, %12 : vector<2x4xi1>, vector<2x4xf32>
    %c0_9 = arith.constant 0 : index
    %c0_10 = arith.constant 0 : index
    %14 = vector.load %arg2[%c0_9, %c0_10] : memref<2x2xf32, #tpu.memory_space<vmem>>, vector<2x2xf32>
    %cst_11 = arith.constant dense<0.000000e+00> : vector<2x4xf32>
    %15 = tpu.matmul %14, %13, %cst_11 {dimension_numbers = #tpu.dot_dimension_numbers<[1], [0], [0], [1], [0, 0, 1, 1], [], []>} : vector<2x2xf32>, vector<2x4xf32>, vector<2x4xf32> -> vector<2x4xf32>
    %c0_12 = arith.constant 0 : index
    %c0_13 = arith.constant 0 : index
    %16 = vector.load %arg5[%c0_12, %c0_13] : memref<2x4xf32, #tpu.memory_space<vmem>>, vector<2x4xf32>
    tpu.vector_store %arg5[%c0_12, %c0_13], %15 {strides = array<i32>} : memref<2x4xf32, #tpu.memory_space<vmem>>, vector<2x4xf32>,
    return
  }
}

</mosaic_0001>

<bundles_post_ra>
// kernel: custom_convnet_forward.7
= control target key start
LH: loop header
LB: loop body
LE: loop exit
PB: predicated region body
PF: predicated region fallthrough
CT: control target
= control target key end

     0   :  { %v1594_v0 = vmov 0   ;;  %vm180_vm0 = vcmask 130048   ;;  %s2308_s1 = inlined_call_operand.vmem [shape: bf16[144,32], index: 1, kind: input, shape index: {}]   ;;  %s2309_s0 = inlined_call_operand.vmem [shape: bf16[4,128,144], index: 0, kind: input, shape index: {}]   ;;  %s2310_s2 = inlined_call_operand.vmem [shape: f32[1,32], index: 2, kind: input, shape index: {}]   ;;  %s2311_s3 = inlined_call_operand.vmem [shape: f32[1,32], index: 3, kind: input, shape index: {}]   ;;  %s2312_s4 = inlined_call_operand.vmem [shape: f32[128,32], index: 4, kind: output, shape index: {}]  }
   0x1   :  { %205 = vmatprep.subr.bf16.mxu0 %v1594_v0  ;;  %507 = vmatprep.subr.bf16.mxu1 %v1594_v0  ;;  %v1489_v1 = vld [vmem:[%s2308_s1] sm:$0xff]   ;;  %v1628_v2 = vld [vmem:[%s2308_s1 + $0x8] sm:$0xff]   ;;  %v1637_v3 = vld [vmem:[%s2308_s1 + $0x10] sm:$0xff]  }
   0x2   :  { %206 = vmatpush1.bf16.msra.mxu0 %v1489_v1  ;;  %508 = vmatpush1.bf16.msra.mxu1 %v1489_v1  ;;  %v1644_v4 = vld [vmem:[%s2308_s1 + $0x18] sm:$0xff]   ;;  %v1500_v5 = vld [vmem:[%s2309_s0 + $0x4] ss:$8 sps:$4 sm:$0xff]   ;;  %v1681_v9 = vld [vmem:[%s2308_s1 + $0x30] sm:$0xff]  }
   0x3   :  { %207 = vmatprep.subr.bf16.mxu0 %v1594_v0  ;;  %509 = vmatprep.subr.bf16.mxu1 %v1594_v0  ;;  %v1503_v6 = vld [vmem:[%s2309_s0 + $0x84] ss:$8 sps:$4 sm:$0xff]   ;;  %v1690_v10 = vld [vmem:[%s2308_s1 + $0x38] sm:$0xff]   ;;  %v1498_v12 = vld [vmem:[%s2309_s0] ss:$8 sps:$4 sm:$0xff]  }
   0x4   :  { %1358 = vmatprep.mubr.msk.bf16.mxu0 %vm180_vm0, %v1500_v5  ;;  %1400 = vmatprep.mubr.msk.bf16.mxu1 %vm180_vm0, %v1503_v6  ;;  %v1663_v7 = vld [vmem:[%s2308_s1 + $0x20] sm:$0xff]   ;;  %v1672_v8 = vld [vmem:[%s2308_s1 + $0x28] sm:$0xff]   ;;  %v1504_v14 = vld [vmem:[%s2309_s0 + $0x14] ss:$8 sps:$4 sm:$0xff]  }
   0x5   :  { %v1699_v11 = vld [vmem:[%s2308_s1 + $0x40] sm:$0xff]   ;;  %v1506_v15 = vld [vmem:[%s2309_s0 + $0x94] ss:$8 sps:$4 sm:$0xff]   ;;  %v1508_v16 = vld [vmem:[%s2309_s0 + $0x10] ss:$8 sps:$4 sm:$0xff]  }
   0x6   :  { %208 = vmatpush1.bf16.msra.mxu0 %v1628_v2  ;;  %510 = vmatpush1.bf16.msra.mxu1 %v1628_v2  ;;  %v1501_v13 = vld [vmem:[%s2309_s0 + $0x80] ss:$8 sps:$4 sm:$0xff]   ;;  %v1509_v17 = vld [vmem:[%s2309_s0 + $0x90] ss:$8 sps:$4 sm:$0xff]   ;;  %v1510_v18 = vld [vmem:[%s2309_s0 + $0x24] ss:$8 sps:$4 sm:$0xff]  }
   0x7   :  { %209 = vmatprep.subr.bf16.mxu0 %v1594_v0  ;;  %511 = vmatprep.subr.bf16.mxu1 %v1594_v0  ;;  %v1512_v19 = vld [vmem:[%s2309_s0 + $0xa4] ss:$8 sps:$4 sm:$0xff]   ;;  %v1514_v20 = vld [vmem:[%s2309_s0 + $0x20] ss:$8 sps:$4 sm:$0xff]   ;;  %v1516_v22 = vld [vmem:[%s2309_s0 + $0x34] ss:$8 sps:$4 sm:$0xff]  }
   0x8   :  { %v1515_v21 = vld [vmem:[%s2309_s0 + $0xa0] ss:$8 sps:$4 sm:$0xff]   ;;  %v1518_v23 = vld [vmem:[%s2309_s0 + $0xb4] ss:$8 sps:$4 sm:$0xff]   ;;  %v1520_v24 = vld [vmem:[%s2309_s0 + $0x30] ss:$8 sps:$4 sm:$0xff]  }
   0x9   :  { %v1521_v25 = vld [vmem:[%s2309_s0 + $0xb0] ss:$8 sps:$4 sm:$0xff]   ;;  %v1522_v26 = vld [vmem:[%s2309_s0 + $0x44] ss:$8 sps:$4 sm:$0xff]   ;;  %v1526_v28 = vld [vmem:[%s2309_s0 + $0x40] ss:$8 sps:$4 sm:$0xff]  }
   0xa   :  { %210 = vmatpush1.bf16.msra.mxu0 %v1637_v3  ;;  %512 = vmatpush1.bf16.msra.mxu1 %v1637_v3  ;;  %v1524_v27 = vld [vmem:[%s2309_s0 + $0xc4] ss:$8 sps:$4 sm:$0xff]   ;;  %v1527_v29 = vld [vmem:[%s2309_s0 + $0xc0] ss:$8 sps:$4 sm:$0xff]   ;;  %v1528_v30 = vld [vmem:[%s2309_s0 + $0x54] ss:$8 sps:$4 sm:$0xff]  }
   0xb   :  { %211 = vmatprep.subr.bf16.mxu0 %v1594_v0  ;;  %513 = vmatprep.subr.bf16.mxu1 %v1594_v0  ;;  %v1530_v31 = vld [vmem:[%s2309_s0 + $0xd4] ss:$8 sps:$4 sm:$0xff]   ;;  %v1532_v32 = vld [vmem:[%s2309_s0 + $0x50] ss:$8 sps:$4 sm:$0xff]   ;;  %v1534_v34 = vld [vmem:[%s2309_s0 + $0x64] ss:$8 sps:$4 sm:$0xff]  }
   0xc   :  { %v1533_v33 = vld [vmem:[%s2309_s0 + $0xd0] ss:$8 sps:$4 sm:$0xff]   ;;  %v1536_v35 = vld [vmem:[%s2309_s0 + $0xe4] ss:$8 sps:$4 sm:$0xff]   ;;  %v1538_v36 = vld [vmem:[%s2309_s0 + $0x60] ss:$8 sps:$4 sm:$0xff]  }
   0xd   :  { %v1539_v37 = vld [vmem:[%s2309_s0 + $0xe0] ss:$8 sps:$4 sm:$0xff]   ;;  %v1540_v38 = vld [vmem:[%s2309_s0 + $0x74] ss:$8 sps:$4 sm:$0xff]   ;;  %v1544_v40 = vld [vmem:[%s2309_s0 + $0x70] ss:$8 sps:$4 sm:$0xff]  }
   0xe   :  { %212 = vmatpush1.bf16.msra.mxu0 %v1644_v4  ;;  %514 = vmatpush1.bf16.msra.mxu1 %v1644_v4  ;;  %v1542_v39 = vld [vmem:[%s2309_s0 + $0xf4] ss:$8 sps:$4 sm:$0xff]   ;;  %v1545_v41 = vld [vmem:[%s2309_s0 + $0xf0] ss:$8 sps:$4 sm:$0xff]   ;;  %v1548_v42 = vld [vmem:[%s2309_s0 + $0x104] ss:$8 sps:$4 sm:$0xff]  }
   0xf   :  { %213 = vmatprep.subr.bf16.mxu0 %v1594_v0  ;;  %515 = vmatprep.subr.bf16.mxu1 %v1594_v0  ;;  %v1551_v43 = vld [vmem:[%s2309_s0 + $0x184] ss:$8 sps:$4 sm:$0xff]   ;;  %v1546_v44 = vld [vmem:[%s2309_s0 + $0x100] ss:$8 sps:$4 sm:$0xff]   ;;  %v1552_v46 = vld [vmem:[%s2309_s0 + $0x114] ss:$8 sps:$4 sm:$0xff]  }
  0x10   :  { %v1549_v45 = vld [vmem:[%s2309_s0 + $0x180] ss:$8 sps:$4 sm:$0xff]   ;;  %v1554_v47 = vld [vmem:[%s2309_s0 + $0x194] ss:$8 sps:$4 sm:$0xff]   ;;  %v1556_v48 = vld [vmem:[%s2309_s0 + $0x110] ss:$8 sps:$4 sm:$0xff]  }
  0x11   :  { %v1557_v49 = vld [vmem:[%s2309_s0 + $0x190] ss:$8 sps:$4 sm:$0xff]   ;;  %v1558_v50 = vld [vmem:[%s2309_s0 + $0x124] ss:$8 sps:$4 sm:$0xff]   ;;  %v1562_v52 = vld [vmem:[%s2309_s0 + $0x120] ss:$8 sps:$4 sm:$0xff]  }
  0x12   :  { %214 = vmatpush1.bf16.msra.mxu0 %v1663_v7  ;;  %516 = vmatpush1.bf16.msra.mxu1 %v1663_v7  ;;  %v1560_v51 = vld [vmem:[%s2309_s0 + $0x1a4] ss:$8 sps:$4 sm:$0xff]   ;;  %v1563_v53 = vld [vmem:[%s2309_s0 + $0x1a0] ss:$8 sps:$4 sm:$0xff]   ;;  %v1564_v54 = vld [vmem:[%s2309_s0 + $0x134] ss:$8 sps:$4 sm:$0xff]  }
  0x13   :  { %215 = vmatprep.subr.bf16.mxu0 %v1594_v0  ;;  %517 = vmatprep.subr.bf16.mxu1 %v1594_v0  ;;  %v1566_v55 = vld [vmem:[%s2309_s0 + $0x1b4] ss:$8 sps:$4 sm:$0xff]   ;;  %v1568_v56 = vld [vmem:[%s2309_s0 + $0x130] ss:$8 sps:$4 sm:$0xff]   ;;  %v1570_v58 = vld [vmem:[%s2309_s0 + $0x144] ss:$8 sps:$4 sm:$0xff]  }
  0x14   :  { %v1569_v57 = vld [vmem:[%s2309_s0 + $0x1b0] ss:$8 sps:$4 sm:$0xff]   ;;  %v1572_v59 = vld [vmem:[%s2309_s0 + $0x1c4] ss:$8 sps:$4 sm:$0xff]   ;;  %v1574_v60 = vld [vmem:[%s2309_s0 + $0x140] ss:$8 sps:$4 sm:$0xff]  }
  0x15   :  { %v1575_v61 = vld [vmem:[%s2309_s0 + $0x1c0] ss:$8 sps:$4 sm:$0xff]   ;;  %v1576_v62 = vld [vmem:[%s2309_s0 + $0x154] ss:$8 sps:$4 sm:$0xff]  }
  0x16   :  { %216 = vmatpush1.bf16.msra.mxu0 %v1672_v8  ;;  %518 = vmatpush1.bf16.msra.mxu1 %v1672_v8  ;;  %v1578_v63 = vld [vmem:[%s2309_s0 + $0x1d4] ss:$8 sps:$4 sm:$0xff]   ;;  %v1587_v5 = vld [vmem:[%s2309_s0 + $0x1e0] ss:$8 sps:$4 sm:$0xff]  }
  0x17   :  { %217 = vmatprep.subr.bf16.mxu0 %v1594_v0  ;;  %519 = vmatprep.subr.bf16.mxu1 %v1594_v0  ;;  %v1588_v6 = vld [vmem:[%s2309_s0 + $0x174] ss:$8 sps:$4 sm:$0xff]  }
  0x1a   :  { %218 = vmatpush1.bf16.msra.mxu0 %v1681_v9  ;;  %520 = vmatpush1.bf16.msra.mxu1 %v1681_v9 }
  0x1b   :  { %219 = vmatprep.subr.bf16.mxu0 %v1594_v0  ;;  %521 = vmatprep.subr.bf16.mxu1 %v1594_v0 }
  0x1e   :  { %220 = vmatpush1.bf16.msra.mxu0 %v1690_v10  ;;  %522 = vmatpush1.bf16.msra.mxu1 %v1690_v10 }
  0x1f   :  { %221 = vmatprep.subr.bf16.mxu0 %v1594_v0  ;;  %523 = vmatprep.subr.bf16.mxu1 %v1594_v0 }
  0x22   :  { %222 = vmatpush1.bf16.msra.mxu0 %v1699_v11  ;;  %524 = vmatpush1.bf16.msra.mxu1 %v1699_v11 }
  0x23   :  { %813 = vmatprep.subr.bf16.mxu0 %v1594_v0  ;;  %1119 = vmatprep.subr.bf16.mxu1 %v1594_v0 }
  0x25   :  { %238 = vmatmul.mubr.bf16.vlgmr.msra.gmra.mrb[0].mxu0 %v1498_v12  ;;  %540 = vmatmul.mubr.bf16.vlgmr.msra.gmra.mrb[0].mxu1 %v1501_v13 }
  0x26   :  { %814 = vmatpush1.bf16.msra.mxu0 %v1489_v1  ;;  %1120 = vmatpush1.bf16.msra.mxu1 %v1489_v1  ;;  %v1581_v1 = vld [vmem:[%s2309_s0 + $0x1d0] ss:$8 sps:$4 sm:$0xff]  }
  0x27   :  { %1359 = vmatprep.mubr.msk.bf16.mxu0 %vm180_vm0, %v1504_v14  ;;  %1401 = vmatprep.mubr.msk.bf16.mxu1 %vm180_vm0, %v1506_v15 }
  0x28   :  { %815 = vmatprep.subr.bf16.mxu0 %v1594_v0  ;;  %1121 = vmatprep.subr.bf16.mxu1 %v1594_v0 }
  0x2a   :  { %816 = vmatpush1.bf16.msra.mxu0 %v1628_v2  ;;  %1122 = vmatpush1.bf16.msra.mxu1 %v1628_v2  ;;  %v1582_v2 = vld [vmem:[%s2309_s0 + $0x164] ss:$8 sps:$4 sm:$0xff]  }
  0x2b   :  { %817 = vmatprep.subr.bf16.mxu0 %v1594_v0  ;;  %1123 = vmatprep.subr.bf16.mxu1 %v1594_v0 }
  0x2d   :  { %246 = vmatmul.mubr.bf16.gmra.mrb[4].mxu0 %v1508_v16  ;;  %548 = vmatmul.mubr.bf16.gmra.mrb[4].mxu1 %v1509_v17 }
  0x2e   :  { %1360 = vmatprep.mubr.msk.bf16.mxu0 %vm180_vm0, %v1510_v18  ;;  %1402 = vmatprep.mubr.msk.bf16.mxu1 %vm180_vm0, %v1512_v19 }
  0x2f   :  { %818 = vmatpush1.bf16.msra.mxu0 %v1637_v3  ;;  %1124 = vmatpush1.bf16.msra.mxu1 %v1637_v3  ;;  %v1584_v3 = vld [vmem:[%s2309_s0 + $0x1e4] ss:$8 sps:$4 sm:$0xff]  }
  0x30   :  { %819 = vmatprep.subr.bf16.mxu0 %v1594_v0  ;;  %1125 = vmatprep.subr.bf16.mxu1 %v1594_v0 }
  0x33   :  { %820 = vmatpush1.bf16.msra.mxu0 %v1644_v4  ;;  %1126 = vmatpush1.bf16.msra.mxu1 %v1644_v4  ;;  %v1586_v4 = vld [vmem:[%s2309_s0 + $0x160] ss:$8 sps:$4 sm:$0xff]  }
  0x34   :  { %821 = vmatprep.subr.bf16.mxu0 %v1594_v0  ;;  %1127 = vmatprep.subr.bf16.mxu1 %v1594_v0 }
  0x35   :  { %254 = vmatmul.mubr.bf16.gmra.mrb[8].mxu0 %v1514_v20  ;;  %556 = vmatmul.mubr.bf16.gmra.mrb[8].mxu1 %v1515_v21 }
  0x36   :  { %1361 = vmatprep.mubr.msk.bf16.mxu0 %vm180_vm0, %v1516_v22  ;;  %1403 = vmatprep.mubr.msk.bf16.mxu1 %vm180_vm0, %v1518_v23 }
  0x37   :  { %822 = vmatpush1.bf16.msra.mxu0 %v1663_v7  ;;  %1128 = vmatpush1.bf16.msra.mxu1 %v1663_v7  ;;  %v1590_v7 = vld [vmem:[%s2309_s0 + $0x1f4] ss:$8 sps:$4 sm:$0xff]  }
  0x38   :  { %823 = vmatprep.subr.bf16.mxu0 %v1594_v0  ;;  %1129 = vmatprep.subr.bf16.mxu1 %v1594_v0 }
  0x3b   :  { %824 = vmatpush1.bf16.msra.mxu0 %v1672_v8  ;;  %1130 = vmatpush1.bf16.msra.mxu1 %v1672_v8  ;;  %v1592_v8 = vld [vmem:[%s2309_s0 + $0x170] ss:$8 sps:$4 sm:$0xff]  }
  0x3c   :  { %825 = vmatprep.subr.bf16.mxu0 %v1594_v0  ;;  %1131 = vmatprep.subr.bf16.mxu1 %v1594_v0 }
  0x3d   :  { %262 = vmatmul.mubr.bf16.gmra.mrb[12].mxu0 %v1520_v24  ;;  %564 = vmatmul.mubr.bf16.gmra.mrb[12].mxu1 %v1521_v25 }
  0x3e   :  { %1362 = vmatprep.mubr.msk.bf16.mxu0 %vm180_vm0, %v1522_v26  ;;  %1404 = vmatprep.mubr.msk.bf16.mxu1 %vm180_vm0, %v1524_v27 }
  0x3f   :  { %826 = vmatpush1.bf16.msra.mxu0 %v1681_v9  ;;  %1132 = vmatpush1.bf16.msra.mxu1 %v1681_v9  ;;  %v1593_v9 = vld [vmem:[%s2309_s0 + $0x1f0] ss:$8 sps:$4 sm:$0xff]  }
  0x40   :  { %827 = vmatprep.subr.bf16.mxu0 %v1594_v0  ;;  %1133 = vmatprep.subr.bf16.mxu1 %v1594_v0 }
  0x43   :  { %828 = vmatpush1.bf16.msra.mxu0 %v1690_v10  ;;  %1134 = vmatpush1.bf16.msra.mxu1 %v1690_v10  ;;  %v1958_v10 = vld [vmem:[%s2310_s2] ss:$0 sm:$0xff] }
  0x44   :  { %829 = vmatprep.subr.bf16.mxu0 %v1594_v0  ;;  %1135 = vmatprep.subr.bf16.mxu1 %v1594_v0  ;;  %v1580_v0 = vld [vmem:[%s2309_s0 + $0x150] ss:$8 sps:$4 sm:$0xff]  }
  0x45   :  { %270 = vmatmul.mubr.bf16.gmra.mrb[16].mxu0 %v1526_v28  ;;  %572 = vmatmul.mubr.bf16.gmra.mrb[16].mxu1 %v1527_v29 }
  0x46   :  { %1363 = vmatprep.mubr.msk.bf16.mxu0 %vm180_vm0, %v1528_v30  ;;  %1405 = vmatprep.mubr.msk.bf16.mxu1 %vm180_vm0, %v1530_v31 }
  0x47   :  { %830 = vmatpush1.bf16.msra.mxu0 %v1699_v11  ;;  %1136 = vmatpush1.bf16.msra.mxu1 %v1699_v11  ;;  %v1963_v11 = vld [vmem:[%s2311_s3] ss:$0 sm:$0xff] }
  0x4d   :  { %278 = vmatmul.mubr.bf16.gmra.mrb[20].mxu0 %v1532_v32  ;;  %580 = vmatmul.mubr.bf16.gmra.mrb[20].mxu1 %v1533_v33 }
  0x4e   :  { %1364 = vmatprep.mubr.msk.bf16.mxu0 %vm180_vm0, %v1534_v34  ;;  %1406 = vmatprep.mubr.msk.bf16.mxu1 %vm180_vm0, %v1536_v35 }
  0x55   :  { %286 = vmatmul.mubr.bf16.gmra.mrb[24].mxu0 %v1538_v36  ;;  %588 = vmatmul.mubr.bf16.gmra.mrb[24].mxu1 %v1539_v37 }
  0x56   :  { %1365 = vmatprep.mubr.msk.bf16.mxu0 %vm180_vm0, %v1540_v38  ;;  %1407 = vmatprep.mubr.msk.bf16.mxu1 %vm180_vm0, %v1542_v39 }
  0x5d   :  { %294 = vmatmul.mubr.bf16.gmra.mrb[28].mxu0 %v1544_v40  ;;  %596 = vmatmul.mubr.bf16.gmra.mrb[28].mxu1 %v1545_v41 }
  0x5e   :  { %1440 = vmatprep.mubr.msk.bf16.mxu0 %vm180_vm0, %v1548_v42  ;;  %1480 = vmatprep.mubr.msk.bf16.mxu1 %vm180_vm0, %v1551_v43 }
  0x65   :  { %846 = vmatmul.mubr.bf16.vlgmr.msra.gmra.mrb[32].mxu0 %v1546_v44  ;;  %1152 = vmatmul.mubr.bf16.vlgmr.msra.gmra.mrb[32].mxu1 %v1549_v45 }
  0x66   :  { %1441 = vmatprep.mubr.msk.bf16.mxu0 %vm180_vm0, %v1552_v46  ;;  %1481 = vmatprep.mubr.msk.bf16.mxu1 %vm180_vm0, %v1554_v47 }
  0x6d   :  { %854 = vmatmul.mubr.bf16.gmra.mrb[36].mxu0 %v1556_v48  ;;  %1160 = vmatmul.mubr.bf16.gmra.mrb[36].mxu1 %v1557_v49 }
  0x6e   :  { %1442 = vmatprep.mubr.msk.bf16.mxu0 %vm180_vm0, %v1558_v50  ;;  %1482 = vmatprep.mubr.msk.bf16.mxu1 %vm180_vm0, %v1560_v51 }
  0x75   :  { %862 = vmatmul.mubr.bf16.gmra.mrb[40].mxu0 %v1562_v52  ;;  %1168 = vmatmul.mubr.bf16.gmra.mrb[40].mxu1 %v1563_v53 }
  0x76   :  { %1443 = vmatprep.mubr.msk.bf16.mxu0 %vm180_vm0, %v1564_v54  ;;  %1483 = vmatprep.mubr.msk.bf16.mxu1 %vm180_vm0, %v1566_v55 }
  0x7d   :  { %870 = vmatmul.mubr.bf16.gmra.mrb[44].mxu0 %v1568_v56  ;;  %1176 = vmatmul.mubr.bf16.gmra.mrb[44].mxu1 %v1569_v57 }
  0x7e   :  { %1444 = vmatprep.mubr.msk.bf16.mxu0 %vm180_vm0, %v1570_v58  ;;  %1484 = vmatprep.mubr.msk.bf16.mxu1 %vm180_vm0, %v1572_v59 }
  0x85   :  { %878 = vmatmul.mubr.bf16.gmra.mrb[48].mxu0 %v1574_v60  ;;  %1184 = vmatmul.mubr.bf16.gmra.mrb[48].mxu1 %v1575_v61 }
  0x86   :  { %1445 = vmatprep.mubr.msk.bf16.mxu0 %vm180_vm0, %v1576_v62  ;;  %1485 = vmatprep.mubr.msk.bf16.mxu1 %vm180_vm0, %v1578_v63 }
  0x8d   :  { %886 = vmatmul.mubr.bf16.gmra.mrb[52].mxu0 %v1580_v0  ;;  %1192 = vmatmul.mubr.bf16.gmra.mrb[52].mxu1 %v1581_v1 }
  0x8e   :  { %1446 = vmatprep.mubr.msk.bf16.mxu0 %vm180_vm0, %v1582_v2  ;;  %1486 = vmatprep.mubr.msk.bf16.mxu1 %vm180_vm0, %v1584_v3 }
  0x95   :  { %894 = vmatmul.mubr.bf16.gmra.mrb[56].mxu0 %v1586_v4  ;;  %1200 = vmatmul.mubr.bf16.gmra.mrb[56].mxu1 %v1587_v5 }
  0x96   :  { %1447 = vmatprep.mubr.msk.bf16.mxu0 %vm180_vm0, %v1588_v6  ;;  %1487 = vmatprep.mubr.msk.bf16.mxu1 %vm180_vm0, %v1590_v7 }
  0x9d   :  { %902 = vmatmul.mubr.bf16.gmra.mrb[60].mxu0 %v1592_v8  ;;  %1208 = vmatmul.mubr.bf16.gmra.mrb[60].mxu1 %v1593_v9 }
  0xf8   :  { %v239_v12 = vpop.f32.mrb[0].mxu0  ;;  %v541_v13 = vpop.f32.mrb[0].mxu1 }
  0xf9   :  { %v308_v14 = vmul.f32 %v1958_v10, %v239_v12  ;;  %v604_v15 = vmul.f32 %v1958_v10, %v541_v13  ;;  %v241_v16 = vpop.f32.mrb[1].mxu0  ;;  %v543_v17 = vpop.f32.mrb[1].mxu1 }
  0xfa   :  { %v242_v18 = vpop.f32.mrb[2].mxu0  ;;  %v544_v19 = vpop.f32.mrb[2].mxu1 }
  0xfb   :  { %v330_v20 = vadd.f32 %v1963_v11, %v308_v14  ;;  %v620_v21 = vadd.f32 %v1963_v11, %v604_v15  ;;  %v309_v22 = vmul.f32 %v1958_v10, %v242_v18  ;;  %v605_v23 = vmul.f32 %v1958_v10, %v544_v19  ;;  %v244_v24 = vpop.f32.mrb[3].mxu0  ;;  %v546_v25 = vpop.f32.mrb[3].mxu1 }
  0xfd   :  { %vm346_vm1 = vcmp.gt.f32.partialorder %v330_v20, 0.0  ;;  %v362_v26 = vmul.f32 0.01, %v330_v20  ;;  %vm636_vm2 = vcmp.gt.f32.partialorder %v620_v21, 0.0  ;;  %v652_v27 = vmul.f32 0.01, %v620_v21 }
  0xfe   :  { %v331_v28 = vadd.f32 %v1963_v11, %v309_v22  ;;  %v621_v29 = vadd.f32 %v1963_v11, %v605_v23 }
  0xff   :  { %v1973_v30 = vsel %vm346_vm1, %v330_v20, %v362_v26  ;;  %v1975_v31 = vsel %vm636_vm2, %v620_v21, %v652_v27 }
 0x100   :  { %v684_v32 = vmax.f32 %v1973_v30, %v1975_v31  ;;  %vm347_vm3 = vcmp.gt.f32.partialorder %v331_v28, 0.0  ;;  %v363_v33 = vmul.f32 0.01, %v331_v28  ;;  %vm637_vm4 = vcmp.gt.f32.partialorder %v621_v29, 0.0  ;;  %v247_v34 = vpop.f32.mrb[4].mxu0  ;;  %v549_v35 = vpop.f32.mrb[4].mxu1 }
 0x101   :  { %v653_v36 = vmul.f32 0.01, %v621_v29  ;;  %v310_v37 = vmul.f32 %v1958_v10, %v247_v34  ;;  %v606_v38 = vmul.f32 %v1958_v10, %v549_v35  ;;  %v249_v39 = vpop.f32.mrb[5].mxu0  ;;  %v551_v40 = vpop.f32.mrb[5].mxu1 }
 0x102   :  { %v1981_v41 = vsel %vm347_vm3, %v331_v28, %v363_v33  ;;  %v250_v42 = vpop.f32.mrb[6].mxu0  ;;  %v552_v43 = vpop.f32.mrb[6].mxu1 }
 0x103   :  { %v1983_v44 = vsel %vm637_vm4, %v621_v29, %v653_v36  ;;  %v332_v45 = vadd.f32 %v1963_v11, %v310_v37  ;;  %v622_v46 = vadd.f32 %v1963_v11, %v606_v38  ;;  %v311_v47 = vmul.f32 %v1958_v10, %v250_v42  ;;  %v252_v48 = vpop.f32.mrb[7].mxu0  ;;  %v554_v49 = vpop.f32.mrb[7].mxu1 }
 0x104   :  { %v685_v50 = vmax.f32 %v1981_v41, %v1983_v44  ;;  %v607_v51 = vmul.f32 %v1958_v10, %v552_v43 }
 0x105   :  { %vm348_vm5 = vcmp.gt.f32.partialorder %v332_v45, 0.0  ;;  %v364_v52 = vmul.f32 0.01, %v332_v45  ;;  %vm638_vm6 = vcmp.gt.f32.partialorder %v622_v46, 0.0  ;;  %v654_v53 = vmul.f32 0.01, %v622_v46 }
 0x106   :  { %v333_v54 = vadd.f32 %v1963_v11, %v311_v47  ;;  %v623_v55 = vadd.f32 %v1963_v11, %v607_v51 }
 0x107   :  { %v1993_v56 = vsel %vm348_vm5, %v332_v45, %v364_v52  ;;  %v1995_v57 = vsel %vm638_vm6, %v622_v46, %v654_v53 }
 0x108   :  { %v686_v58 = vmax.f32 %v1993_v56, %v1995_v57  ;;  %vm349_vm7 = vcmp.gt.f32.partialorder %v333_v54, 0.0  ;;  %v365_v59 = vmul.f32 0.01, %v333_v54  ;;  %vm639_vm8 = vcmp.gt.f32.partialorder %v623_v55, 0.0  ;;  %v255_v60 = vpop.f32.mrb[8].mxu0  ;;  %v557_v61 = vpop.f32.mrb[8].mxu1 }
 0x109   :  { %v655_v62 = vmul.f32 0.01, %v623_v55  ;;  %v312_v63 = vmul.f32 %v1958_v10, %v255_v60  ;;  %v608_v0 = vmul.f32 %v1958_v10, %v557_v61  ;;  %v257_v1 = vpop.f32.mrb[9].mxu0  ;;  %v559_v2 = vpop.f32.mrb[9].mxu1 }
 0x10a   :  { %v2001_v3 = vsel %vm349_vm7, %v333_v54, %v365_v59  ;;  %v258_v4 = vpop.f32.mrb[10].mxu0  ;;  %v560_v5 = vpop.f32.mrb[10].mxu1 }
 0x10b   :  { %v2003_v6 = vsel %vm639_vm8, %v623_v55, %v655_v62  ;;  %v334_v7 = vadd.f32 %v1963_v11, %v312_v63  ;;  %v624_v8 = vadd.f32 %v1963_v11, %v608_v0  ;;  %v313_v9 = vmul.f32 %v1958_v10, %v258_v4  ;;  %v260_v12 = vpop.f32.mrb[11].mxu0  ;;  %v562_v13 = vpop.f32.mrb[11].mxu1 }
 0x10c   :  { %v687_v14 = vmax.f32 %v2001_v3, %v2003_v6  ;;  %v609_v15 = vmul.f32 %v1958_v10, %v560_v5 }
 0x10d   :  { %vm350_vm9 = vcmp.gt.f32.partialorder %v334_v7, 0.0  ;;  %v366_v16 = vmul.f32 0.01, %v334_v7  ;;  %vm640_vm10 = vcmp.gt.f32.partialorder %v624_v8, 0.0  ;;  %v656_v17 = vmul.f32 0.01, %v624_v8 }
 0x10e   :  { %v335_v18 = vadd.f32 %v1963_v11, %v313_v9  ;;  %v625_v19 = vadd.f32 %v1963_v11, %v609_v15 }
 0x10f   :  { %v2013_v20 = vsel %vm350_vm9, %v334_v7, %v366_v16  ;;  %v2015_v21 = vsel %vm640_vm10, %v624_v8, %v656_v17 }
 0x110   :  { %v688_v22 = vmax.f32 %v2013_v20, %v2015_v21  ;;  %vm351_vm11 = vcmp.gt.f32.partialorder %v335_v18, 0.0  ;;  %v367_v23 = vmul.f32 0.01, %v335_v18  ;;  %vm641_vm12 = vcmp.gt.f32.partialorder %v625_v19, 0.0  ;;  %v263_v24 = vpop.f32.mrb[12].mxu0  ;;  %v565_v25 = vpop.f32.mrb[12].mxu1 }
 0x111   :  { %v657_v26 = vmul.f32 0.01, %v625_v19  ;;  %v314_v27 = vmul.f32 %v1958_v10, %v263_v24  ;;  %v610_v28 = vmul.f32 %v1958_v10, %v565_v25  ;;  %v265_v29 = vpop.f32.mrb[13].mxu0  ;;  %v567_v33 = vpop.f32.mrb[13].mxu1 }
 0x112   :  { %v2021_v34 = vsel %vm351_vm11, %v335_v18, %v367_v23  ;;  %v266_v35 = vpop.f32.mrb[14].mxu0  ;;  %v568_v36 = vpop.f32.mrb[14].mxu1 }
 0x113   :  { %v2023_v37 = vsel %vm641_vm12, %v625_v19, %v657_v26  ;;  %v336_v38 = vadd.f32 %v1963_v11, %v314_v27  ;;  %v626_v39 = vadd.f32 %v1963_v11, %v610_v28  ;;  %v315_v40 = vmul.f32 %v1958_v10, %v266_v35  ;;  %v268_v42 = vpop.f32.mrb[15].mxu0  ;;  %v570_v43 = vpop.f32.mrb[15].mxu1 }
 0x114   :  { %v689_v45 = vmax.f32 %v2021_v34, %v2023_v37  ;;  %v611_v46 = vmul.f32 %v1958_v10, %v568_v36 }
 0x115   :  { %vm352_vm13 = vcmp.gt.f32.partialorder %v336_v38, 0.0  ;;  %v368_v47 = vmul.f32 0.01, %v336_v38  ;;  %vm642_vm14 = vcmp.gt.f32.partialorder %v626_v39, 0.0  ;;  %v658_v48 = vmul.f32 0.01, %v626_v39 }
 0x116   :  { %v337_v49 = vadd.f32 %v1963_v11, %v315_v40  ;;  %v627_v51 = vadd.f32 %v1963_v11, %v611_v46 }
 0x117   :  { %v2033_v52 = vsel %vm352_vm13, %v336_v38, %v368_v47  ;;  %v2035_v53 = vsel %vm642_vm14, %v626_v39, %v658_v48 }
 0x118   :  { %v690_v54 = vmax.f32 %v2033_v52, %v2035_v53  ;;  %vm353_vm15 = vcmp.gt.f32.partialorder %v337_v49, 0.0  ;;  %v369_v55 = vmul.f32 0.01, %v337_v49  ;;  %vm643_vm0 = vcmp.gt.f32.partialorder %v627_v51, 0.0  ;;  %v271_v59 = vpop.f32.mrb[16].mxu0  ;;  %v573_v60 = vpop.f32.mrb[16].mxu1 }
 0x119   :  { %v659_v61 = vmul.f32 0.01, %v627_v51  ;;  %v316_v62 = vmul.f32 %v1958_v10, %v271_v59  ;;  %v612_v63 = vmul.f32 %v1958_v10, %v573_v60  ;;  %v273_v0 = vpop.f32.mrb[17].mxu0  ;;  %v575_v1 = vpop.f32.mrb[17].mxu1 }
 0x11a   :  { %v2041_v2 = vsel %vm353_vm15, %v337_v49, %v369_v55  ;;  %v274_v4 = vpop.f32.mrb[18].mxu0  ;;  %v576_v5 = vpop.f32.mrb[18].mxu1 }
 0x11b   :  { %v2043_v7 = vsel %vm643_vm0, %v627_v51, %v659_v61  ;;  %v338_v8 = vadd.f32 %v1963_v11, %v316_v62  ;;  %v628_v9 = vadd.f32 %v1963_v11, %v612_v63  ;;  %v317_v12 = vmul.f32 %v1958_v10, %v274_v4  ;;  %v276_v13 = vpop.f32.mrb[19].mxu0  ;;  %v578_v15 = vpop.f32.mrb[19].mxu1 }
 0x11c   :  { %v691_v16 = vmax.f32 %v2041_v2, %v2043_v7  ;;  %v613_v17 = vmul.f32 %v1958_v10, %v576_v5 }
 0x11d   :  { %vm354_vm1 = vcmp.gt.f32.partialorder %v338_v8, 0.0  ;;  %v370_v18 = vmul.f32 0.01, %v338_v8  ;;  %vm644_vm2 = vcmp.gt.f32.partialorder %v628_v9, 0.0  ;;  %v660_v19 = vmul.f32 0.01, %v628_v9 }
 0x11e   :  { %v339_v23 = vadd.f32 %v1963_v11, %v317_v12  ;;  %v629_v24 = vadd.f32 %v1963_v11, %v613_v17 }
 0x11f   :  { %v2053_v25 = vsel %vm354_vm1, %v338_v8, %v370_v18  ;;  %v2055_v26 = vsel %vm644_vm2, %v628_v9, %v660_v19 }
 0x120   :  { %v692_v27 = vmax.f32 %v2053_v25, %v2055_v26  ;;  %vm355_vm3 = vcmp.gt.f32.partialorder %v339_v23, 0.0  ;;  %v371_v28 = vmul.f32 0.01, %v339_v23  ;;  %vm645_vm4 = vcmp.gt.f32.partialorder %v629_v24, 0.0  ;;  %v279_v29 = vpop.f32.mrb[20].mxu0  ;;  %v581_v33 = vpop.f32.mrb[20].mxu1 }
 0x121   :  { %v661_v35 = vmul.f32 0.01, %v629_v24  ;;  %v318_v36 = vmul.f32 %v1958_v10, %v279_v29  ;;  %v614_v38 = vmul.f32 %v1958_v10, %v581_v33  ;;  %v281_v39 = vpop.f32.mrb[21].mxu0  ;;  %v583_v40 = vpop.f32.mrb[21].mxu1 }
 0x122   :  { %v2061_v42 = vsel %vm355_vm3, %v339_v23, %v371_v28  ;;  %v282_v43 = vpop.f32.mrb[22].mxu0  ;;  %v584_v46 = vpop.f32.mrb[22].mxu1  ;;  %vm1312_vm3 = vcmask 261120  }
 0x123   :  { %v2063_v47 = vsel %vm645_vm4, %v629_v24, %v661_v35  ;;  %v340_v48 = vadd.f32 %v1963_v11, %v318_v36  ;;  %v630_v49 = vadd.f32 %v1963_v11, %v614_v38  ;;  %v319_v51 = vmul.f32 %v1958_v10, %v282_v43  ;;  %v284_v55 = vpop.f32.mrb[23].mxu0  ;;  %v586_v59 = vpop.f32.mrb[23].mxu1 }
 0x124   :  { %v693_v60 = vmax.f32 %v2061_v42, %v2063_v47  ;;  %v615_v61 = vmul.f32 %v1958_v10, %v584_v46 }
 0x125   :  { %vm356_vm5 = vcmp.gt.f32.partialorder %v340_v48, 0.0  ;;  %v372_v62 = vmul.f32 0.01, %v340_v48  ;;  %vm646_vm6 = vcmp.gt.f32.partialorder %v630_v49, 0.0  ;;  %v662_v63 = vmul.f32 0.01, %v630_v49 }
 0x126   :  { %v341_v0 = vadd.f32 %v1963_v11, %v319_v51  ;;  %v631_v1 = vadd.f32 %v1963_v11, %v615_v61 }
 0x127   :  { %v2073_v4 = vsel %vm356_vm5, %v340_v48, %v372_v62  ;;  %v2075_v5 = vsel %vm646_vm6, %v630_v49, %v662_v63 }
 0x128   :  { %v694_v8 = vmax.f32 %v2073_v4, %v2075_v5  ;;  %vm357_vm7 = vcmp.gt.f32.partialorder %v341_v0, 0.0  ;;  %v373_v9 = vmul.f32 0.01, %v341_v0  ;;  %vm647_vm8 = vcmp.gt.f32.partialorder %v631_v1, 0.0  ;;  %v287_v12 = vpop.f32.mrb[24].mxu0  ;;  %v589_v13 = vpop.f32.mrb[24].mxu1 }
 0x129   :  { %v663_v15 = vmul.f32 0.01, %v631_v1  ;;  %v320_v17 = vmul.f32 %v1958_v10, %v287_v12  ;;  %v616_v18 = vmul.f32 %v1958_v10, %v589_v13  ;;  %v289_v19 = vpop.f32.mrb[25].mxu0  ;;  %v591_v23 = vpop.f32.mrb[25].mxu1 }
 0x12a   :  { %v2081_v24 = vsel %vm357_vm7, %v341_v0, %v373_v9  ;;  %v290_v28 = vpop.f32.mrb[26].mxu0  ;;  %v592_v29 = vpop.f32.mrb[26].mxu1 }
 0x12b   :  { %v2083_v33 = vsel %vm647_vm8, %v631_v1, %v663_v15  ;;  %v342_v35 = vadd.f32 %v1963_v11, %v320_v17  ;;  %v632_v36 = vadd.f32 %v1963_v11, %v616_v18  ;;  %v321_v38 = vmul.f32 %v1958_v10, %v290_v28  ;;  %v292_v39 = vpop.f32.mrb[27].mxu0  ;;  %v594_v40 = vpop.f32.mrb[27].mxu1 }
 0x12c   :  { %v617_v46 = vmul.f32 %v1958_v10, %v592_v29  ;;  %v2313_v4 = vmax.f32 %v2081_v24, %v2083_v33 }
 0x12d   :  { %vm358_vm9 = vcmp.gt.f32.partialorder %v342_v35, 0.0  ;;  %v374_v48 = vmul.f32 0.01, %v342_v35  ;;  %vm648_vm10 = vcmp.gt.f32.partialorder %v632_v36, 0.0  ;;  %v664_v49 = vmul.f32 0.01, %v632_v36 }
 0x12e   :  { %v343_v51 = vadd.f32 %v1963_v11, %v321_v38  ;;  %v633_v55 = vadd.f32 %v1963_v11, %v617_v46 }
 0x12f   :  { %v2093_v59 = vsel %vm358_vm9, %v342_v35, %v374_v48  ;;  %v2095_v61 = vsel %vm648_vm10, %v632_v36, %v664_v49 }
 0x130   :  { %vm359_vm11 = vcmp.gt.f32.partialorder %v343_v51, 0.0  ;;  %v375_v63 = vmul.f32 0.01, %v343_v51  ;;  %vm649_vm12 = vcmp.gt.f32.partialorder %v633_v55, 0.0  ;;  %v295_v0 = vpop.f32.mrb[28].mxu0  ;;  %v597_v1 = vpop.f32.mrb[28].mxu1 }
 0x131   :  { %v665_v9 = vmul.f32 0.01, %v633_v55  ;;  %v322_v12 = vmul.f32 %v1958_v10, %v295_v0  ;;  %v618_v13 = vmul.f32 %v1958_v10, %v597_v1  ;;  %v297_v15 = vpop.f32.mrb[29].mxu0  ;;  %v599_v17 = vpop.f32.mrb[29].mxu1 }
 0x132   :  { %v2101_v18 = vsel %vm359_vm11, %v343_v51, %v375_v63  ;;  %v298_v19 = vpop.f32.mrb[30].mxu0  ;;  %v600_v23 = vpop.f32.mrb[30].mxu1 }
 0x133   :  { %v2103_v28 = vsel %vm649_vm12, %v633_v55, %v665_v9  ;;  %v344_v29 = vadd.f32 %v1963_v11, %v322_v12  ;;  %v634_v35 = vadd.f32 %v1963_v11, %v618_v13  ;;  %v323_v36 = vmul.f32 %v1958_v10, %v298_v19  ;;  %v300_v38 = vpop.f32.mrb[31].mxu0  ;;  %v602_v39 = vpop.f32.mrb[31].mxu1 }
 0x134   :  { %v619_v46 = vmul.f32 %v1958_v10, %v600_v23 }
 0x135   :  { %vm360_vm13 = vcmp.gt.f32.partialorder %v344_v29, 0.0  ;;  %v376_v48 = vmul.f32 0.01, %v344_v29  ;;  %vm650_vm14 = vcmp.gt.f32.partialorder %v634_v35, 0.0  ;;  %v666_v49 = vmul.f32 0.01, %v634_v35 }
 0x136   :  { %v345_v51 = vadd.f32 %v1963_v11, %v323_v36  ;;  %v635_v55 = vadd.f32 %v1963_v11, %v619_v46 }
 0x137   :  { %v2113_v63 = vsel %vm360_vm13, %v344_v29, %v376_v48  ;;  %v2115_v0 = vsel %vm650_vm14, %v634_v35, %v666_v49 }
 0x138   :  { %vm361_vm15 = vcmp.gt.f32.partialorder %v345_v51, 0.0  ;;  %v377_v9 = vmul.f32 0.01, %v345_v51  ;;  %vm651_vm0 = vcmp.gt.f32.partialorder %v635_v55, 0.0  ;;  %v847_v12 = vpop.f32.mrb[32].mxu0  ;;  %v1153_v13 = vpop.f32.mrb[32].mxu1 }
 0x139   :  { %v667_v15 = vmul.f32 0.01, %v635_v55  ;;  %v910_v17 = vmul.f32 %v1958_v10, %v847_v12  ;;  %v1216_v19 = vmul.f32 %v1958_v10, %v1153_v13  ;;  %v849_v23 = vpop.f32.mrb[33].mxu0  ;;  %v1155_v36 = vpop.f32.mrb[33].mxu1 }
 0x13a   :  { %v2121_v38 = vsel %vm361_vm15, %v345_v51, %v377_v9  ;;  %v850_v29 = vpop.f32.mrb[34].mxu0  ;;  %v1156_v35 = vpop.f32.mrb[34].mxu1 }
 0x13b   :  { %v2123_v39 = vsel %vm651_vm0, %v635_v55, %v667_v15  ;;  %v926_v46 = vadd.f32 %v1963_v11, %v910_v17  ;;  %v1232_v48 = vadd.f32 %v1963_v11, %v1216_v19  ;;  %v911_v49 = vmul.f32 %v1958_v10, %v850_v29  ;;  %v852_v1 = vpop.f32.mrb[35].mxu0  ;;  %v1158_v40 = vpop.f32.mrb[35].mxu1 }
 0x13c   :  { %v1217_v13 = vmul.f32 %v1958_v10, %v1156_v35 }
 0x13d   :  { %vm942_vm1 = vcmp.gt.f32.partialorder %v926_v46, 0.0  ;;  %v958_v51 = vmul.f32 0.01, %v926_v46  ;;  %vm1248_vm2 = vcmp.gt.f32.partialorder %v1232_v48, 0.0  ;;  %v1264_v9 = vmul.f32 0.01, %v1232_v48 }
 0x13e   :  { %v927_v55 = vadd.f32 %v1963_v11, %v911_v49  ;;  %v1233_v15 = vadd.f32 %v1963_v11, %v1217_v13 }
 0x13f   :  { %v974_v17 = vsel %vm942_vm1, %v926_v46, %v958_v51  ;;  %v1280_v40 = vsel %vm1248_vm2, %v1232_v48, %v1264_v9 }
 0x140   :  { %v990_v1 = vmax.f32 %v684_v32, %v974_v17  ;;  %vm943_vm4 = vcmp.gt.f32.partialorder %v927_v55, 0.0  ;;  %v959_v19 = vmul.f32 0.01, %v927_v55  ;;  %v855_v23 = vpop.f32.mrb[36].mxu0  ;;  %v1161_v36 = vpop.f32.mrb[36].mxu1  ;;  %vm1249_vm5 = vcmp.gt.f32.partialorder %v1233_v15, 0.0 }
 0x141   :  { %v1265_v29 = vmul.f32 0.01, %v1233_v15  ;;  %v912_v35 = vmul.f32 %v1958_v10, %v855_v23  ;;  %v1218_v12 = vmul.f32 %v1958_v10, %v1161_v36  ;;  %v857_v49 = vpop.f32.mrb[37].mxu0  ;;  %v1163_v62 = vpop.f32.mrb[37].mxu1 }
 0x142   :  { %v1296_v13 = vmax.f32 %v990_v1, %v1280_v40  ;;  %v975_v46 = vsel %vm943_vm4, %v927_v55, %v959_v19  ;;  %v858_v51 = vpop.f32.mrb[38].mxu0  ;;  %v1164_v43 = vpop.f32.mrb[38].mxu1 }
 0x143   :  { %v991_v30 = vmax.f32 %v685_v50, %v975_v46  ;;  %v928_v31 = vadd.f32 %v1963_v11, %v912_v35  ;;  %v1234_v32 = vadd.f32 %v1963_v11, %v1218_v12  ;;  %v860_v48 = vpop.f32.mrb[39].mxu0  ;;  %v1166_v9 = vpop.f32.mrb[39].mxu1  ;;  %v1281_v62 = vsel %vm1249_vm5, %v1233_v15, %v1265_v29 }
 0x144   :  { %1313 = vst.msk [vmem:[%s2312_s4] sm:$0xff] %vm1312_vm3, %v1296_v13  ;;  %v913_v55 = vmul.f32 %v1958_v10, %v858_v51  ;;  %v1219_v17 = vmul.f32 %v1958_v10, %v1164_v43 }
 0x145   :  { %v1297_v1 = vmax.f32 %v991_v30, %v1281_v62  ;;  %vm944_vm6 = vcmp.gt.f32.partialorder %v928_v31, 0.0  ;;  %v960_v41 = vmul.f32 0.01, %v928_v31  ;;  %vm1250_vm7 = vcmp.gt.f32.partialorder %v1234_v32, 0.0 }
 0x146   :  { %v1266_v44 = vmul.f32 0.01, %v1234_v32  ;;  %v929_v50 = vadd.f32 %v1963_v11, %v913_v55  ;;  %v1235_v12 = vadd.f32 %v1963_v11, %v1219_v17 }
 0x147   :  { %1314 = vst.msk [vmem:[%s2312_s4 + $0x8] sm:$0xff] %vm1312_vm3, %v1297_v1  ;;  %v976_v40 = vsel %vm944_vm6, %v928_v31, %v960_v41 }
 0x148   :  { %v992_v15 = vmax.f32 %v686_v58, %v976_v40  ;;  %v1282_v43 = vsel %vm1250_vm7, %v1234_v32, %v1266_v44  ;;  %vm945_vm8 = vcmp.gt.f32.partialorder %v929_v50, 0.0  ;;  %v961_v19 = vmul.f32 0.01, %v929_v50  ;;  %v863_v23 = vpop.f32.mrb[40].mxu0  ;;  %v1169_v36 = vpop.f32.mrb[40].mxu1 }
 0x149   :  { %vm1251_vm9 = vcmp.gt.f32.partialorder %v1235_v12, 0.0  ;;  %v1267_v29 = vmul.f32 0.01, %v1235_v12  ;;  %v914_v35 = vmul.f32 %v1958_v10, %v863_v23  ;;  %v1220_v49 = vmul.f32 %v1958_v10, %v1169_v36  ;;  %v865_v13 = vpop.f32.mrb[41].mxu0  ;;  %v1171_v46 = vpop.f32.mrb[41].mxu1 }
 0x14a   :  { %v1298_v51 = vmax.f32 %v992_v15, %v1282_v43  ;;  %v977_v30 = vsel %vm945_vm8, %v929_v50, %v961_v19  ;;  %v866_v31 = vpop.f32.mrb[42].mxu0  ;;  %v1172_v48 = vpop.f32.mrb[42].mxu1 }
 0x14b   :  { %v993_v56 = vmax.f32 %v687_v14, %v977_v30  ;;  %v930_v57 = vadd.f32 %v1963_v11, %v914_v35  ;;  %v1236_v58 = vadd.f32 %v1963_v11, %v1220_v49  ;;  %v868_v32 = vpop.f32.mrb[43].mxu0  ;;  %v1174_v9 = vpop.f32.mrb[43].mxu1  ;;  %v1283_v62 = vsel %vm1251_vm9, %v1235_v12, %v1267_v29 }
 0x14c   :  { %1315 = vst.msk [vmem:[%s2312_s4 + $0x10] sm:$0xff] %vm1312_vm3, %v1298_v51  ;;  %v915_v55 = vmul.f32 %v1958_v10, %v866_v31  ;;  %v1221_v17 = vmul.f32 %v1958_v10, %v1172_v48 }
 0x14d   :  { %v1299_v1 = vmax.f32 %v993_v56, %v1283_v62  ;;  %vm946_vm10 = vcmp.gt.f32.partialorder %v930_v57, 0.0  ;;  %v962_v3 = vmul.f32 0.01, %v930_v57  ;;  %vm1252_vm11 = vcmp.gt.f32.partialorder %v1236_v58, 0.0 }
 0x14e   :  { %v1268_v6 = vmul.f32 0.01, %v1236_v58  ;;  %v931_v14 = vadd.f32 %v1963_v11, %v915_v55  ;;  %v1237_v41 = vadd.f32 %v1963_v11, %v1221_v17 }
 0x14f   :  { %1316 = vst.msk [vmem:[%s2312_s4 + $0x18] sm:$0xff] %vm1312_vm3, %v1299_v1  ;;  %v978_v44 = vsel %vm946_vm10, %v930_v57, %v962_v3 }
 0x150   :  { %v994_v50 = vmax.f32 %v688_v22, %v978_v44  ;;  %v1284_v12 = vsel %vm1252_vm11, %v1236_v58, %v1268_v6  ;;  %vm947_vm12 = vcmp.gt.f32.partialorder %v931_v14, 0.0  ;;  %v963_v40 = vmul.f32 0.01, %v931_v14  ;;  %v871_v15 = vpop.f32.mrb[44].mxu0  ;;  %v1177_v43 = vpop.f32.mrb[44].mxu1 }
 0x151   :  { %vm1253_vm13 = vcmp.gt.f32.partialorder %v1237_v41, 0.0  ;;  %v1269_v19 = vmul.f32 0.01, %v1237_v41  ;;  %v916_v23 = vmul.f32 %v1958_v10, %v871_v15  ;;  %v1222_v36 = vmul.f32 %v1958_v10, %v1177_v43  ;;  %v873_v29 = vpop.f32.mrb[45].mxu0  ;;  %v1179_v35 = vpop.f32.mrb[45].mxu1 }
 0x152   :  { %v1300_v49 = vmax.f32 %v994_v50, %v1284_v12  ;;  %v979_v13 = vsel %vm947_vm12, %v931_v14, %v963_v40  ;;  %v874_v46 = vpop.f32.mrb[46].mxu0  ;;  %v1180_v51 = vpop.f32.mrb[46].mxu1 }
 0x153   :  { %v995_v20 = vmax.f32 %v689_v45, %v979_v13  ;;  %v932_v21 = vadd.f32 %v1963_v11, %v916_v23  ;;  %v1238_v22 = vadd.f32 %v1963_v11, %v1222_v36  ;;  %v876_v30 = vpop.f32.mrb[47].mxu0  ;;  %v1182_v31 = vpop.f32.mrb[47].mxu1  ;;  %v1285_v48 = vsel %vm1253_vm13, %v1237_v41, %v1269_v19 }
 0x154   :  { %1317 = vst.msk [vmem:[%s2312_s4 + $0x20] sm:$0xff] %vm1312_vm3, %v1300_v49  ;;  %v917_v56 = vmul.f32 %v1958_v10, %v874_v46  ;;  %v1223_v57 = vmul.f32 %v1958_v10, %v1180_v51 }
 0x155   :  { %v1301_v58 = vmax.f32 %v995_v20, %v1285_v48  ;;  %vm948_vm14 = vcmp.gt.f32.partialorder %v932_v21, 0.0  ;;  %v964_v34 = vmul.f32 0.01, %v932_v21  ;;  %vm1254_vm15 = vcmp.gt.f32.partialorder %v1238_v22, 0.0 }
 0x156   :  { %v1270_v37 = vmul.f32 0.01, %v1238_v22  ;;  %v933_v45 = vadd.f32 %v1963_v11, %v917_v56  ;;  %v1239_v32 = vadd.f32 %v1963_v11, %v1223_v57 }
 0x157   :  { %1318 = vst.msk [vmem:[%s2312_s4 + $0x28] sm:$0xff] %vm1312_vm3, %v1301_v58  ;;  %v980_v9 = vsel %vm948_vm14, %v932_v21, %v964_v34 }
 0x158   :  { %v996_v62 = vmax.f32 %v690_v54, %v980_v9  ;;  %v1286_v55 = vsel %vm1254_vm15, %v1238_v22, %v1270_v37  ;;  %vm949_vm0 = vcmp.gt.f32.partialorder %v933_v45, 0.0  ;;  %v965_v17 = vmul.f32 0.01, %v933_v45  ;;  %v879_v1 = vpop.f32.mrb[48].mxu0  ;;  %v1185_v3 = vpop.f32.mrb[48].mxu1 }
 0x159   :  { %vm1255_vm1 = vcmp.gt.f32.partialorder %v1239_v32, 0.0  ;;  %v1271_v6 = vmul.f32 0.01, %v1239_v32  ;;  %v918_v14 = vmul.f32 %v1958_v10, %v879_v1  ;;  %v1224_v41 = vmul.f32 %v1958_v10, %v1185_v3  ;;  %v881_v44 = vpop.f32.mrb[49].mxu0  ;;  %v1187_v50 = vpop.f32.mrb[49].mxu1 }
 0x15a   :  { %v1302_v12 = vmax.f32 %v996_v62, %v1286_v55  ;;  %v981_v40 = vsel %vm949_vm0, %v933_v45, %v965_v17  ;;  %v882_v15 = vpop.f32.mrb[50].mxu0  ;;  %v1188_v43 = vpop.f32.mrb[50].mxu1 }
 0x15b   :  { %v997_v52 = vmax.f32 %v691_v16, %v981_v40  ;;  %v934_v53 = vadd.f32 %v1963_v11, %v918_v14  ;;  %v1240_v54 = vadd.f32 %v1963_v11, %v1224_v41  ;;  %v884_v19 = vpop.f32.mrb[51].mxu0  ;;  %v1190_v23 = vpop.f32.mrb[51].mxu1  ;;  %v1287_v36 = vsel %vm1255_vm1, %v1239_v32, %v1271_v6 }
 0x15c   :  { %1319 = vst.msk [vmem:[%s2312_s4 + $0x30] sm:$0xff] %vm1312_vm3, %v1302_v12  ;;  %v919_v29 = vmul.f32 %v1958_v10, %v882_v15  ;;  %v1225_v35 = vmul.f32 %v1958_v10, %v1188_v43 }
 0x15d   :  { %v1303_v49 = vmax.f32 %v997_v52, %v1287_v36  ;;  %vm950_vm2 = vcmp.gt.f32.partialorder %v934_v53, 0.0  ;;  %v966_v2 = vmul.f32 0.01, %v934_v53  ;;  %vm1256_vm4 = vcmp.gt.f32.partialorder %v1240_v54, 0.0 }
 0x15e   :  { %v1272_v7 = vmul.f32 0.01, %v1240_v54  ;;  %v935_v16 = vadd.f32 %v1963_v11, %v919_v29  ;;  %v1241_v13 = vadd.f32 %v1963_v11, %v1225_v35 }
 0x15f   :  { %1320 = vst.msk [vmem:[%s2312_s4 + $0x38] sm:$0xff] %vm1312_vm3, %v1303_v49  ;;  %v982_v46 = vsel %vm950_vm2, %v934_v53, %v966_v2 }
 0x160   :  { %v998_v51 = vmax.f32 %v692_v27, %v982_v46  ;;  %v1288_v20 = vsel %vm1256_vm4, %v1240_v54, %v1272_v7  ;;  %vm951_vm5 = vcmp.gt.f32.partialorder %v935_v16, 0.0  ;;  %v967_v21 = vmul.f32 0.01, %v935_v16  ;;  %v887_v22 = vpop.f32.mrb[52].mxu0  ;;  %v1193_v30 = vpop.f32.mrb[52].mxu1 }
 0x161   :  { %vm1257_vm6 = vcmp.gt.f32.partialorder %v1241_v13, 0.0  ;;  %v1273_v31 = vmul.f32 0.01, %v1241_v13  ;;  %v920_v48 = vmul.f32 %v1958_v10, %v887_v22  ;;  %v1226_v56 = vmul.f32 %v1958_v10, %v1193_v30  ;;  %v889_v57 = vpop.f32.mrb[53].mxu0  ;;  %v1195_v58 = vpop.f32.mrb[53].mxu1 }
 0x162   :  { %v1304_v34 = vmax.f32 %v998_v51, %v1288_v20  ;;  %v983_v37 = vsel %vm951_vm5, %v935_v16, %v967_v21  ;;  %v890_v45 = vpop.f32.mrb[54].mxu0  ;;  %v1196_v32 = vpop.f32.mrb[54].mxu1  ;;  %v2314_v22 = vmax.f32 %v2093_v59, %v2095_v61  ;;  %v2315_v59 = vmax.f32 %v2101_v18, %v2103_v28 }
 0x163   :  { %v999_v25 = vmax.f32 %v693_v60, %v983_v37  ;;  %v936_v26 = vadd.f32 %v1963_v11, %v920_v48  ;;  %v1242_v27 = vadd.f32 %v1963_v11, %v1226_v56  ;;  %v892_v9 = vpop.f32.mrb[55].mxu0  ;;  %v1198_v62 = vpop.f32.mrb[55].mxu1  ;;  %v1289_v55 = vsel %vm1257_vm6, %v1241_v13, %v1273_v31 }
 0x164   :  { %1321 = vst.msk [vmem:[%s2312_s4 + $0x40] sm:$0xff] %vm1312_vm3, %v1304_v34  ;;  %v921_v17 = vmul.f32 %v1958_v10, %v890_v45  ;;  %v1227_v1 = vmul.f32 %v1958_v10, %v1196_v32 }
 0x165   :  { %v1305_v3 = vmax.f32 %v999_v25, %v1289_v55  ;;  %vm952_vm7 = vcmp.gt.f32.partialorder %v936_v26, 0.0  ;;  %v968_v42 = vmul.f32 0.01, %v936_v26  ;;  %vm1258_vm8 = vcmp.gt.f32.partialorder %v1242_v27, 0.0 }
 0x166   :  { %v1274_v47 = vmul.f32 0.01, %v1242_v27  ;;  %v937_v60 = vadd.f32 %v1963_v11, %v921_v17  ;;  %v1243_v6 = vadd.f32 %v1963_v11, %v1227_v1 }
 0x167   :  { %1322 = vst.msk [vmem:[%s2312_s4 + $0x48] sm:$0xff] %vm1312_vm3, %v1305_v3  ;;  %v984_v14 = vsel %vm952_vm7, %v936_v26, %v968_v42 }
 0x168   :  { %v1000_v41 = vmax.f32 %v694_v8, %v984_v14  ;;  %v1290_v44 = vsel %vm1258_vm8, %v1242_v27, %v1274_v47  ;;  %vm953_vm9 = vcmp.gt.f32.partialorder %v937_v60, 0.0  ;;  %v969_v50 = vmul.f32 0.01, %v937_v60  ;;  %v895_v12 = vpop.f32.mrb[56].mxu0  ;;  %v1201_v40 = vpop.f32.mrb[56].mxu1 }
 0x169   :  { %vm1259_vm10 = vcmp.gt.f32.partialorder %v1243_v6, 0.0  ;;  %v1275_v15 = vmul.f32 0.01, %v1243_v6  ;;  %v922_v43 = vmul.f32 %v1958_v10, %v895_v12  ;;  %v1228_v52 = vmul.f32 %v1958_v10, %v1201_v40  ;;  %v897_v53 = vpop.f32.mrb[57].mxu0  ;;  %v1203_v54 = vpop.f32.mrb[57].mxu1 }
 0x16a   :  { %v1306_v19 = vmax.f32 %v1000_v41, %v1290_v44  ;;  %v985_v23 = vsel %vm953_vm9, %v937_v60, %v969_v50  ;;  %v898_v36 = vpop.f32.mrb[58].mxu0  ;;  %v1204_v29 = vpop.f32.mrb[58].mxu1  ;;  %v2316_v44 = vmax.f32 %v2113_v63, %v2115_v0 }
 0x16b   :  { %v1001_v5 = vmax.f32 %v2313_v4, %v985_v23  ;;  %v938_v8 = vadd.f32 %v1963_v11, %v922_v43  ;;  %v1244_v35 = vadd.f32 %v1963_v11, %v1228_v52  ;;  %v900_v49 = vpop.f32.mrb[59].mxu0  ;;  %v1206_v2 = vpop.f32.mrb[59].mxu1  ;;  %v1291_v7 = vsel %vm1259_vm10, %v1243_v6, %v1275_v15 }
 0x16c   :  { %1323 = vst.msk [vmem:[%s2312_s4 + $0x50] sm:$0xff] %vm1312_vm3, %v1306_v19  ;;  %v923_v16 = vmul.f32 %v1958_v10, %v898_v36  ;;  %v1229_v13 = vmul.f32 %v1958_v10, %v1204_v29 }
 0x16d   :  { %v1307_v46 = vmax.f32 %v1001_v5, %v1291_v7  ;;  %vm954_vm11 = vcmp.gt.f32.partialorder %v938_v8, 0.0  ;;  %v970_v24 = vmul.f32 0.01, %v938_v8  ;;  %vm1260_vm12 = vcmp.gt.f32.partialorder %v1244_v35, 0.0 }
 0x16e   :  { %v1276_v33 = vmul.f32 0.01, %v1244_v35  ;;  %v939_v51 = vadd.f32 %v1963_v11, %v923_v16  ;;  %v1245_v20 = vadd.f32 %v1963_v11, %v1229_v13 }
 0x16f   :  { %1324 = vst.msk [vmem:[%s2312_s4 + $0x58] sm:$0xff] %vm1312_vm3, %v1307_v46  ;;  %v986_v21 = vsel %vm954_vm11, %v938_v8, %v970_v24 }
 0x170   :  { %v1002_v30 = vmax.f32 %v2314_v22, %v986_v21  ;;  %v1292_v31 = vsel %vm1260_vm12, %v1244_v35, %v1276_v33  ;;  %vm955_vm13 = vcmp.gt.f32.partialorder %v939_v51, 0.0  ;;  %v971_v48 = vmul.f32 0.01, %v939_v51  ;;  %v903_v56 = vpop.f32.mrb[60].mxu0  ;;  %v1209_v57 = vpop.f32.mrb[60].mxu1 }
 0x171   :  { %vm1261_vm14 = vcmp.gt.f32.partialorder %v1245_v20, 0.0  ;;  %v1277_v58 = vmul.f32 0.01, %v1245_v20  ;;  %v924_v34 = vmul.f32 %v1958_v10, %v903_v56  ;;  %v1230_v37 = vmul.f32 %v1958_v10, %v1209_v57  ;;  %v905_v45 = vpop.f32.mrb[61].mxu0  ;;  %v1211_v32 = vpop.f32.mrb[61].mxu1 }
 0x172   :  { %v1308_v25 = vmax.f32 %v1002_v30, %v1292_v31  ;;  %v987_v26 = vsel %vm955_vm13, %v939_v51, %v971_v48  ;;  %v906_v27 = vpop.f32.mrb[62].mxu0  ;;  %v1212_v9 = vpop.f32.mrb[62].mxu1 }
 0x173   :  { %v1003_v61 = vmax.f32 %v2315_v59, %v987_v26  ;;  %v940_v62 = vadd.f32 %v1963_v11, %v924_v34  ;;  %v1246_v55 = vadd.f32 %v1963_v11, %v1230_v37  ;;  %v908_v17 = vpop.f32.mrb[63].mxu0  ;;  %v1214_v1 = vpop.f32.mrb[63].mxu1  ;;  %v1293_v3 = vsel %vm1261_vm14, %v1245_v20, %v1277_v58 }
 0x174   :  { %1325 = vst.msk [vmem:[%s2312_s4 + $0x60] sm:$0xff] %vm1312_vm3, %v1308_v25  ;;  %v925_v42 = vmul.f32 %v1958_v10, %v906_v27  ;;  %v1231_v47 = vmul.f32 %v1958_v10, %v1212_v9 }
 0x175   :  { %v1309_v60 = vmax.f32 %v1003_v61, %v1293_v3  ;;  %vm956_vm15 = vcmp.gt.f32.partialorder %v940_v62, 0.0  ;;  %v972_v18 = vmul.f32 0.01, %v940_v62  ;;  %vm1262_vm0 = vcmp.gt.f32.partialorder %v1246_v55, 0.0 }
 0x176   :  { %v1278_v28 = vmul.f32 0.01, %v1246_v55  ;;  %v941_v6 = vadd.f32 %v1963_v11, %v925_v42  ;;  %v1247_v14 = vadd.f32 %v1963_v11, %v1231_v47  ;;  %v2317_v11 = vmax.f32 %v2121_v38, %v2123_v39 }
 0x177   :  { %1326 = vst.msk [vmem:[%s2312_s4 + $0x68] sm:$0xff] %vm1312_vm3, %v1309_v60  ;;  %v988_v41 = vsel %vm956_vm15, %v940_v62, %v972_v18 }
 0x178   :  { %v1004_v50 = vmax.f32 %v2316_v44, %v988_v41  ;;  %vm957_vm1 = vcmp.gt.f32.partialorder %v941_v6, 0.0  ;;  %v973_v10 = vmul.f32 0.01, %v941_v6  ;;  %v1294_v12 = vsel %vm1262_vm0, %v1246_v55, %v1278_v28 }
 0x179   :  { %vm1263_vm2 = vcmp.gt.f32.partialorder %v1247_v14, 0.0  ;;  %v1279_v40 = vmul.f32 0.01, %v1247_v14 }
 0x17a   :  { %v1310_v15 = vmax.f32 %v1004_v50, %v1294_v12  ;;  %v989_v43 = vsel %vm957_vm1, %v941_v6, %v973_v10 }
 0x17b   :  { %v1005_v52 = vmax.f32 %v2317_v11, %v989_v43  ;;  %v1295_v53 = vsel %vm1263_vm2, %v1247_v14, %v1279_v40 }
 0x17c   :  { %1327 = vst.msk [vmem:[%s2312_s4 + $0x70] sm:$0xff] %vm1312_vm3, %v1310_v15 }
 0x17d   :  { %v1311_v54 = vmax.f32 %v1005_v52, %v1295_v53 }
 0x17f   :  { %1328 = vst.msk [vmem:[%s2312_s4 + $0x78] sm:$0xff] %vm1312_vm3, %v1311_v54 }

// kernel: custom_convnet_forward.6
= control target key start
LH: loop header
LB: loop body
LE: loop exit
PB: predicated region body
PF: predicated region fallthrough
CT: control target
= control target key end

     0   :  { %vm280_vm0 = vcmask 588800   ;;  %vm377_vm1 = vcmask 1043456   ;;  %s7714_s1 = inlined_call_operand.vmem [shape: bf16[72,16], index: 1, kind: input, shape index: {}]   ;;  %s7715_s0 = inlined_call_operand.vmem [shape: bf16[4,512,72], index: 0, kind: input, shape index: {}]   ;;  %s7716_s2 = inlined_call_operand.vmem [shape: f32[1,16], index: 2, kind: input, shape index: {}]   ;;  %s7717_s3 = inlined_call_operand.vmem [shape: f32[1,16], index: 3, kind: input, shape index: {}]   ;;  %s7718_s4 = inlined_call_operand.vmem [shape: f32[512,16], index: 4, kind: output, shape index: {}]  }
   0x1   :  { %v4956_v0 = vld [vmem:[%s7714_s1] sm:$0xff]   ;;  %v4957_v1 = vld [vmem:[%s7714_s1 + $0x8] sm:$0xff]   ;;  %v4958_v2 = vld [vmem:[%s7714_s1 + $0x10] sm:$0xff]  }
   0x2   :  { %4656 = vmatprep.subr.bf16.mxu0 %v4956_v0  ;;  %4730 = vmatprep.subr.bf16.mxu1 %v4956_v0  ;;  %v4961_v3 = vld [vmem:[%s7715_s0] sm:$0xff]   ;;  %v4959_v5 = vld [vmem:[%s7714_s1 + $0x18] sm:$0xff]   ;;  %v4963_v8 = vld [vmem:[%s7715_s0 + $0x8] sm:$0xff]  }
   0x3   :  { %4657 = vmatpush3.bf16.msra.mxu0 %v4956_v0  ;;  %4731 = vmatpush3.bf16.msra.mxu1 %v4956_v0  ;;  %v4962_v4 = vld [vmem:[%s7715_s0 + $0x100] sm:$0xff]   ;;  %v4964_v9 = vld [vmem:[%s7715_s0 + $0x108] sm:$0xff]   ;;  %v4965_v10 = vld [vmem:[%s7715_s0 + $0x10] sm:$0xff]  }
   0x4   :  { %4658 = vmatprep.subr.bf16.mxu0 %v4957_v1  ;;  %4732 = vmatprep.subr.bf16.mxu1 %v4957_v1  ;;  %v4960_v6 = vld [vmem:[%s7714_s1 + $0x20] ss:$0 sps:$4 sm:$0xff]   ;;  %v4966_v11 = vld [vmem:[%s7715_s0 + $0x110] sm:$0xff]   ;;  %v4967_v12 = vld [vmem:[%s7715_s0 + $0x18] sm:$0xff]  }
   0x5   :  { %4666 = vmatprep.mubr.msk.bf16.mxu0 %vm280_vm0, %v4961_v3  ;;  %4740 = vmatprep.mubr.msk.bf16.mxu1 %vm280_vm0, %v4962_v4  ;;  %v379_v7 = vsel %vm377_vm1, %v4960_v6, 0  ;;  %v4968_v13 = vld [vmem:[%s7715_s0 + $0x118] sm:$0xff]   ;;  %v4969_v14 = vld [vmem:[%s7715_s0 + $0x20] sm:$0xff]   ;;  %v4971_v16 = vld [vmem:[%s7715_s0 + $0x28] sm:$0xff]  }
   0x6   :  { %v4970_v15 = vld [vmem:[%s7715_s0 + $0x120] sm:$0xff]   ;;  %v4972_v17 = vld [vmem:[%s7715_s0 + $0x128] sm:$0xff]   ;;  %v4973_v18 = vld [vmem:[%s7715_s0 + $0x30] sm:$0xff]  }
   0x7   :  { %4659 = vmatpush3.bf16.msra.mxu0 %v4957_v1  ;;  %4733 = vmatpush3.bf16.msra.mxu1 %v4957_v1  ;;  %v4974_v19 = vld [vmem:[%s7715_s0 + $0x130] sm:$0xff]   ;;  %v4975_v20 = vld [vmem:[%s7715_s0 + $0x38] sm:$0xff]   ;;  %v4977_v22 = vld [vmem:[%s7715_s0 + $0x40] sm:$0xff]  }
   0x8   :  { %4660 = vmatprep.subr.bf16.mxu0 %v4958_v2  ;;  %4734 = vmatprep.subr.bf16.mxu1 %v4958_v2  ;;  %v4976_v21 = vld [vmem:[%s7715_s0 + $0x138] sm:$0xff]   ;;  %v4978_v23 = vld [vmem:[%s7715_s0 + $0x140] sm:$0xff]   ;;  %v4979_v24 = vld [vmem:[%s7715_s0 + $0x48] sm:$0xff]  }
   0x9   :  { %v4980_v25 = vld [vmem:[%s7715_s0 + $0x148] sm:$0xff]   ;;  %v4981_v26 = vld [vmem:[%s7715_s0 + $0x50] sm:$0xff]   ;;  %v4983_v28 = vld [vmem:[%s7715_s0 + $0x58] sm:$0xff]  }
   0xa   :  { %v4982_v27 = vld [vmem:[%s7715_s0 + $0x150] sm:$0xff]   ;;  %v4984_v29 = vld [vmem:[%s7715_s0 + $0x158] sm:$0xff]   ;;  %v4985_v30 = vld [vmem:[%s7715_s0 + $0x60] sm:$0xff]  }
   0xb   :  { %4661 = vmatpush3.bf16.msra.mxu0 %v4958_v2  ;;  %4735 = vmatpush3.bf16.msra.mxu1 %v4958_v2  ;;  %v4986_v31 = vld [vmem:[%s7715_s0 + $0x160] sm:$0xff]   ;;  %v4987_v32 = vld [vmem:[%s7715_s0 + $0x68] sm:$0xff]   ;;  %v4989_v34 = vld [vmem:[%s7715_s0 + $0x70] sm:$0xff]  }
   0xc   :  { %4662 = vmatprep.subr.bf16.mxu0 %v4959_v5  ;;  %4736 = vmatprep.subr.bf16.mxu1 %v4959_v5  ;;  %v4988_v33 = vld [vmem:[%s7715_s0 + $0x168] sm:$0xff]   ;;  %v4990_v35 = vld [vmem:[%s7715_s0 + $0x170] sm:$0xff]   ;;  %v4991_v36 = vld [vmem:[%s7715_s0 + $0x78] sm:$0xff]  }
   0xd   :  { %v4992_v37 = vld [vmem:[%s7715_s0 + $0x178] sm:$0xff]   ;;  %v4993_v38 = vld [vmem:[%s7715_s0 + $0x80] sm:$0xff]   ;;  %v4995_v40 = vld [vmem:[%s7715_s0 + $0x88] sm:$0xff]  }
   0xe   :  { %v4994_v39 = vld [vmem:[%s7715_s0 + $0x180] sm:$0xff]   ;;  %v4996_v41 = vld [vmem:[%s7715_s0 + $0x188] sm:$0xff]   ;;  %v4997_v42 = vld [vmem:[%s7715_s0 + $0x90] sm:$0xff]  }
   0xf   :  { %4663 = vmatpush3.bf16.msra.mxu0 %v4959_v5  ;;  %4737 = vmatpush3.bf16.msra.mxu1 %v4959_v5  ;;  %v4998_v43 = vld [vmem:[%s7715_s0 + $0x190] sm:$0xff]   ;;  %v4999_v44 = vld [vmem:[%s7715_s0 + $0x98] sm:$0xff]   ;;  %v5001_v46 = vld [vmem:[%s7715_s0 + $0xa0] sm:$0xff]  }
  0x10   :  { %4952 = vmatprep.subr.msk.bf16.mxu0 %vm377_vm1, %v4960_v6  ;;  %4953 = vmatprep.subr.msk.bf16.mxu1 %vm377_vm1, %v4960_v6  ;;  %v5000_v45 = vld [vmem:[%s7715_s0 + $0x198] sm:$0xff]   ;;  %v5002_v47 = vld [vmem:[%s7715_s0 + $0x1a0] sm:$0xff]   ;;  %v5003_v48 = vld [vmem:[%s7715_s0 + $0xa8] sm:$0xff]  }
  0x11   :  { %v5004_v49 = vld [vmem:[%s7715_s0 + $0x1a8] sm:$0xff]   ;;  %v5005_v50 = vld [vmem:[%s7715_s0 + $0xb0] sm:$0xff]   ;;  %v5007_v52 = vld [vmem:[%s7715_s0 + $0xb8] sm:$0xff]  }
  0x12   :  { %v5006_v51 = vld [vmem:[%s7715_s0 + $0x1b0] sm:$0xff]   ;;  %v5008_v53 = vld [vmem:[%s7715_s0 + $0x1b8] sm:$0xff]   ;;  %v5009_v54 = vld [vmem:[%s7715_s0 + $0xc0] sm:$0xff]  }
  0x13   :  { %4665 = vmatpush3.bf16.msra.mxu0 %v379_v7  ;;  %4739 = vmatpush3.bf16.msra.mxu1 %v379_v7  ;;  %v5010_v55 = vld [vmem:[%s7715_s0 + $0x1c0] sm:$0xff]   ;;  %v5011_v56 = vld [vmem:[%s7715_s0 + $0xc8] sm:$0xff]   ;;  %v5013_v58 = vld [vmem:[%s7715_s0 + $0xd0] sm:$0xff]  }
  0x14   :  { %4804 = vmatprep.subr.bf16.mxu0 %v4956_v0  ;;  %4878 = vmatprep.subr.bf16.mxu1 %v4956_v0  ;;  %v5012_v57 = vld [vmem:[%s7715_s0 + $0x1c8] sm:$0xff]   ;;  %v5014_v59 = vld [vmem:[%s7715_s0 + $0x1d0] sm:$0xff]   ;;  %v5015_v60 = vld [vmem:[%s7715_s0 + $0xd8] sm:$0xff]  }
  0x15   :  { %v5016_v61 = vld [vmem:[%s7715_s0 + $0x1d8] sm:$0xff]   ;;  %v5017_v62 = vld [vmem:[%s7715_s0 + $0xe0] sm:$0xff]   ;;  %v5022_v3 = vld [vmem:[%s7715_s0 + $0x1f0] sm:$0xff]  }
  0x16   :  { %4667 = vmatmul.mubr.msk.bf16.vlgmr.msra.gmra.mrb[0].mxu0 %vm280_vm0, %v4963_v8  ;;  %4741 = vmatmul.mubr.msk.bf16.vlgmr.msra.gmra.mrb[0].mxu1 %vm280_vm0, %v4964_v9  ;;  %v5018_v63 = vld [vmem:[%s7715_s0 + $0x1e0] sm:$0xff]   ;;  %v5023_v4 = vld [vmem:[%s7715_s0 + $0xf8] sm:$0xff]   ;;  %v5027_v8 = vld [vmem:[%s7715_s0 + $0x208] sm:$0xff]  }
  0x17   :  { %4805 = vmatpush3.bf16.msra.mxu0 %v4956_v0  ;;  %4879 = vmatpush3.bf16.msra.mxu1 %v4956_v0  ;;  %v5019_v0 = vld [vmem:[%s7715_s0 + $0xe8] sm:$0xff]  }
  0x18   :  { %4670 = vmatprep.mubr.msk.bf16.mxu0 %vm280_vm0, %v4965_v10  ;;  %4744 = vmatprep.mubr.msk.bf16.mxu1 %vm280_vm0, %v4966_v11  ;;  %v5028_v9 = vld [vmem:[%s7715_s0 + $0x308] sm:$0xff]   ;;  %v5029_v10 = vld [vmem:[%s7715_s0 + $0x210] sm:$0xff]  }
  0x19   :  { %4806 = vmatprep.subr.bf16.mxu0 %v4957_v1  ;;  %4880 = vmatprep.subr.bf16.mxu1 %v4957_v1  ;;  %v5030_v11 = vld [vmem:[%s7715_s0 + $0x310] sm:$0xff]  }
  0x1b   :  { %4807 = vmatpush3.bf16.msra.mxu0 %v4957_v1  ;;  %4881 = vmatpush3.bf16.msra.mxu1 %v4957_v1  ;;  %v5020_v1 = vld [vmem:[%s7715_s0 + $0x1e8] sm:$0xff]  }
  0x1c   :  { %4808 = vmatprep.subr.bf16.mxu0 %v4958_v2  ;;  %4882 = vmatprep.subr.bf16.mxu1 %v4958_v2 }
  0x1e   :  { %4671 = vmatmul.mubr.msk.bf16.gmra.mrb[4].mxu0 %vm280_vm0, %v4967_v12  ;;  %4745 = vmatmul.mubr.msk.bf16.gmra.mrb[4].mxu1 %vm280_vm0, %v4968_v13  ;;  %v5031_v12 = vld [vmem:[%s7715_s0 + $0x218] sm:$0xff]  }
  0x1f   :  { %4674 = vmatprep.mubr.msk.bf16.mxu0 %vm280_vm0, %v4969_v14  ;;  %4748 = vmatprep.mubr.msk.bf16.mxu1 %vm280_vm0, %v4970_v15  ;;  %v5032_v13 = vld [vmem:[%s7715_s0 + $0x318] sm:$0xff]   ;;  %v5033_v14 = vld [vmem:[%s7715_s0 + $0x220] sm:$0xff]  }
  0x20   :  { %4809 = vmatpush3.bf16.msra.mxu0 %v4958_v2  ;;  %4883 = vmatpush3.bf16.msra.mxu1 %v4958_v2  ;;  %v5021_v2 = vld [vmem:[%s7715_s0 + $0xf0] sm:$0xff]   ;;  %v5034_v15 = vld [vmem:[%s7715_s0 + $0x320] sm:$0xff]  }
  0x21   :  { %4810 = vmatprep.subr.bf16.mxu0 %v4959_v5  ;;  %4884 = vmatprep.subr.bf16.mxu1 %v4959_v5 }
  0x24   :  { %4811 = vmatpush3.bf16.msra.mxu0 %v4959_v5  ;;  %4885 = vmatpush3.bf16.msra.mxu1 %v4959_v5  ;;  %v5024_v5 = vld [vmem:[%s7715_s0 + $0x1f8] sm:$0xff]  }
  0x25   :  { %4954 = vmatprep.subr.msk.bf16.mxu0 %vm377_vm1, %v4960_v6  ;;  %4955 = vmatprep.subr.msk.bf16.mxu1 %vm377_vm1, %v4960_v6  ;;  %v5025_v6 = vld [vmem:[%s7715_s0 + $0x200] sm:$0xff]  }
  0x26   :  { %4675 = vmatmul.mubr.msk.bf16.gmra.mrb[8].mxu0 %vm280_vm0, %v4971_v16  ;;  %4749 = vmatmul.mubr.msk.bf16.gmra.mrb[8].mxu1 %vm280_vm0, %v4972_v17  ;;  %v5035_v16 = vld [vmem:[%s7715_s0 + $0x228] sm:$0xff]  }
  0x27   :  { %4678 = vmatprep.mubr.msk.bf16.mxu0 %vm280_vm0, %v4973_v18  ;;  %4752 = vmatprep.mubr.msk.bf16.mxu1 %vm280_vm0, %v4974_v19  ;;  %v5036_v17 = vld [vmem:[%s7715_s0 + $0x328] sm:$0xff]   ;;  %v5037_v18 = vld [vmem:[%s7715_s0 + $0x230] sm:$0xff]  }
  0x28   :  { %4813 = vmatpush3.bf16.msra.mxu0 %v379_v7  ;;  %4887 = vmatpush3.bf16.msra.mxu1 %v379_v7  ;;  %v5026_v7 = vld [vmem:[%s7715_s0 + $0x300] sm:$0xff]   ;;  %v5038_v19 = vld [vmem:[%s7715_s0 + $0x330] sm:$0xff]  }
  0x2e   :  { %4679 = vmatmul.mubr.msk.bf16.gmra.mrb[12].mxu0 %vm280_vm0, %v4975_v20  ;;  %4753 = vmatmul.mubr.msk.bf16.gmra.mrb[12].mxu1 %vm280_vm0, %v4976_v21  ;;  %v5039_v20 = vld [vmem:[%s7715_s0 + $0x238] sm:$0xff]  }
  0x2f   :  { %4682 = vmatprep.mubr.msk.bf16.mxu0 %vm280_vm0, %v4977_v22  ;;  %4756 = vmatprep.mubr.msk.bf16.mxu1 %vm280_vm0, %v4978_v23  ;;  %v5040_v21 = vld [vmem:[%s7715_s0 + $0x338] sm:$0xff]   ;;  %v5041_v22 = vld [vmem:[%s7715_s0 + $0x240] sm:$0xff]  }
  0x30   :  { %v5042_v23 = vld [vmem:[%s7715_s0 + $0x340] sm:$0xff]  }
  0x36   :  { %4683 = vmatmul.mubr.msk.bf16.gmra.mrb[16].mxu0 %vm280_vm0, %v4979_v24  ;;  %4757 = vmatmul.mubr.msk.bf16.gmra.mrb[16].mxu1 %vm280_vm0, %v4980_v25  ;;  %v5043_v24 = vld [vmem:[%s7715_s0 + $0x248] sm:$0xff]  }
  0x37   :  { %4686 = vmatprep.mubr.msk.bf16.mxu0 %vm280_vm0, %v4981_v26  ;;  %4760 = vmatprep.mubr.msk.bf16.mxu1 %vm280_vm0, %v4982_v27  ;;  %v5044_v25 = vld [vmem:[%s7715_s0 + $0x348] sm:$0xff]   ;;  %v5045_v26 = vld [vmem:[%s7715_s0 + $0x250] sm:$0xff]  }
  0x38   :  { %v5046_v27 = vld [vmem:[%s7715_s0 + $0x350] sm:$0xff]  }
  0x3e   :  { %4687 = vmatmul.mubr.msk.bf16.gmra.mrb[20].mxu0 %vm280_vm0, %v4983_v28  ;;  %4761 = vmatmul.mubr.msk.bf16.gmra.mrb[20].mxu1 %vm280_vm0, %v4984_v29  ;;  %v5047_v28 = vld [vmem:[%s7715_s0 + $0x258] sm:$0xff]  }
  0x3f   :  { %4690 = vmatprep.mubr.msk.bf16.mxu0 %vm280_vm0, %v4985_v30  ;;  %4764 = vmatprep.mubr.msk.bf16.mxu1 %vm280_vm0, %v4986_v31  ;;  %v5048_v29 = vld [vmem:[%s7715_s0 + $0x358] sm:$0xff]   ;;  %v5049_v30 = vld [vmem:[%s7715_s0 + $0x260] sm:$0xff]  }
  0x40   :  { %v5050_v31 = vld [vmem:[%s7715_s0 + $0x360] sm:$0xff]  }
  0x46   :  { %4691 = vmatmul.mubr.msk.bf16.gmra.mrb[24].mxu0 %vm280_vm0, %v4987_v32  ;;  %4765 = vmatmul.mubr.msk.bf16.gmra.mrb[24].mxu1 %vm280_vm0, %v4988_v33  ;;  %v5051_v32 = vld [vmem:[%s7715_s0 + $0x268] sm:$0xff]  }
  0x47   :  { %4694 = vmatprep.mubr.msk.bf16.mxu0 %vm280_vm0, %v4989_v34  ;;  %4768 = vmatprep.mubr.msk.bf16.mxu1 %vm280_vm0, %v4990_v35  ;;  %v5052_v33 = vld [vmem:[%s7715_s0 + $0x368] sm:$0xff]   ;;  %v5053_v34 = vld [vmem:[%s7715_s0 + $0x270] sm:$0xff]  }
  0x48   :  { %v5054_v35 = vld [vmem:[%s7715_s0 + $0x370] sm:$0xff]  }
  0x4e   :  { %4695 = vmatmul.mubr.msk.bf16.gmra.mrb[28].mxu0 %vm280_vm0, %v4991_v36  ;;  %4769 = vmatmul.mubr.msk.bf16.gmra.mrb[28].mxu1 %vm280_vm0, %v4992_v37  ;;  %v5055_v36 = vld [vmem:[%s7715_s0 + $0x278] sm:$0xff]  }
  0x4f   :  { %4698 = vmatprep.mubr.msk.bf16.mxu0 %vm280_vm0, %v4993_v38  ;;  %4772 = vmatprep.mubr.msk.bf16.mxu1 %vm280_vm0, %v4994_v39  ;;  %v5056_v37 = vld [vmem:[%s7715_s0 + $0x378] sm:$0xff]   ;;  %v5057_v38 = vld [vmem:[%s7715_s0 + $0x280] sm:$0xff]  }
  0x50   :  { %v5058_v39 = vld [vmem:[%s7715_s0 + $0x380] sm:$0xff]  }
  0x56   :  { %4699 = vmatmul.mubr.msk.bf16.gmra.mrb[32].mxu0 %vm280_vm0, %v4995_v40  ;;  %4773 = vmatmul.mubr.msk.bf16.gmra.mrb[32].mxu1 %vm280_vm0, %v4996_v41  ;;  %v5059_v40 = vld [vmem:[%s7715_s0 + $0x288] sm:$0xff]  }
  0x57   :  { %4702 = vmatprep.mubr.msk.bf16.mxu0 %vm280_vm0, %v4997_v42  ;;  %4776 = vmatprep.mubr.msk.bf16.mxu1 %vm280_vm0, %v4998_v43  ;;  %v5060_v41 = vld [vmem:[%s7715_s0 + $0x388] sm:$0xff]   ;;  %v5061_v42 = vld [vmem:[%s7715_s0 + $0x290] sm:$0xff]  }
  0x58   :  { %v5062_v43 = vld [vmem:[%s7715_s0 + $0x390] sm:$0xff]  }
  0x5e   :  { %4703 = vmatmul.mubr.msk.bf16.gmra.mrb[36].mxu0 %vm280_vm0, %v4999_v44  ;;  %4777 = vmatmul.mubr.msk.bf16.gmra.mrb[36].mxu1 %vm280_vm0, %v5000_v45  ;;  %v5063_v44 = vld [vmem:[%s7715_s0 + $0x298] sm:$0xff]  }
  0x5f   :  { %4706 = vmatprep.mubr.msk.bf16.mxu0 %vm280_vm0, %v5001_v46  ;;  %4780 = vmatprep.mubr.msk.bf16.mxu1 %vm280_vm0, %v5002_v47  ;;  %v5064_v45 = vld [vmem:[%s7715_s0 + $0x398] sm:$0xff]   ;;  %v5065_v46 = vld [vmem:[%s7715_s0 + $0x2a0] sm:$0xff]  }
  0x60   :  { %v5066_v47 = vld [vmem:[%s7715_s0 + $0x3a0] sm:$0xff]  }
  0x66   :  { %4707 = vmatmul.mubr.msk.bf16.gmra.mrb[40].mxu0 %vm280_vm0, %v5003_v48  ;;  %4781 = vmatmul.mubr.msk.bf16.gmra.mrb[40].mxu1 %vm280_vm0, %v5004_v49  ;;  %v5067_v48 = vld [vmem:[%s7715_s0 + $0x2a8] sm:$0xff]  }
  0x67   :  { %4710 = vmatprep.mubr.msk.bf16.mxu0 %vm280_vm0, %v5005_v50  ;;  %4784 = vmatprep.mubr.msk.bf16.mxu1 %vm280_vm0, %v5006_v51  ;;  %v5068_v49 = vld [vmem:[%s7715_s0 + $0x3a8] sm:$0xff]   ;;  %v5069_v50 = vld [vmem:[%s7715_s0 + $0x2b0] sm:$0xff]  }
  0x68   :  { %v5070_v51 = vld [vmem:[%s7715_s0 + $0x3b0] sm:$0xff]  }
  0x6e   :  { %4711 = vmatmul.mubr.msk.bf16.gmra.mrb[44].mxu0 %vm280_vm0, %v5007_v52  ;;  %4785 = vmatmul.mubr.msk.bf16.gmra.mrb[44].mxu1 %vm280_vm0, %v5008_v53  ;;  %v5581_v52 = vld [vmem:[%s7716_s2] ss:$0 sm:$0xff] }
  0x6f   :  { %4714 = vmatprep.mubr.msk.bf16.mxu0 %vm280_vm0, %v5009_v54  ;;  %4788 = vmatprep.mubr.msk.bf16.mxu1 %vm280_vm0, %v5010_v55  ;;  %v5588_v53 = vld [vmem:[%s7717_s3] ss:$0 sm:$0xff] }
  0x76   :  { %4715 = vmatmul.mubr.msk.bf16.gmra.mrb[48].mxu0 %vm280_vm0, %v5011_v56  ;;  %4789 = vmatmul.mubr.msk.bf16.gmra.mrb[48].mxu1 %vm280_vm0, %v5012_v57 }
  0x77   :  { %4718 = vmatprep.mubr.msk.bf16.mxu0 %vm280_vm0, %v5013_v58  ;;  %4792 = vmatprep.mubr.msk.bf16.mxu1 %vm280_vm0, %v5014_v59 }
  0x7e   :  { %4719 = vmatmul.mubr.msk.bf16.gmra.mrb[52].mxu0 %vm280_vm0, %v5015_v60  ;;  %4793 = vmatmul.mubr.msk.bf16.gmra.mrb[52].mxu1 %vm280_vm0, %v5016_v61  ;;  %v5071_v60 = vld [vmem:[%s7715_s0 + $0x2b8] sm:$0xff]  }
  0x7f   :  { %4722 = vmatprep.mubr.msk.bf16.mxu0 %vm280_vm0, %v5017_v62  ;;  %4796 = vmatprep.mubr.msk.bf16.mxu1 %vm280_vm0, %v5018_v63  ;;  %v5072_v61 = vld [vmem:[%s7715_s0 + $0x3b8] sm:$0xff]  }
  0x86   :  { %4723 = vmatmul.mubr.msk.bf16.gmra.mrb[56].mxu0 %vm280_vm0, %v5019_v0  ;;  %4797 = vmatmul.mubr.msk.bf16.gmra.mrb[56].mxu1 %vm280_vm0, %v5020_v1 }
  0x87   :  { %4726 = vmatprep.mubr.msk.bf16.mxu0 %vm280_vm0, %v5021_v2  ;;  %4800 = vmatprep.mubr.msk.bf16.mxu1 %vm280_vm0, %v5022_v3  ;;  %v5073_v2 = vld [vmem:[%s7715_s0 + $0x2c0] sm:$0xff]  }
  0x88   :  { %v5074_v3 = vld [vmem:[%s7715_s0 + $0x3c0] sm:$0xff]  }
  0x8e   :  { %4727 = vmatmul.mubr.msk.bf16.gmra.mrb[60].mxu0 %vm280_vm0, %v5023_v4  ;;  %4801 = vmatmul.mubr.msk.bf16.gmra.mrb[60].mxu1 %vm280_vm0, %v5024_v5 }
  0x8f   :  { %4814 = vmatprep.mubr.msk.bf16.mxu0 %vm280_vm0, %v5025_v6  ;;  %4888 = vmatprep.mubr.msk.bf16.mxu1 %vm280_vm0, %v5026_v7 }
  0x96   :  { %4815 = vmatmul.mubr.msk.bf16.vlgmr.msra.gmra.mrb[64].mxu0 %vm280_vm0, %v5027_v8  ;;  %4889 = vmatmul.mubr.msk.bf16.vlgmr.msra.gmra.mrb[64].mxu1 %vm280_vm0, %v5028_v9 }
  0x97   :  { %4818 = vmatprep.mubr.msk.bf16.mxu0 %vm280_vm0, %v5029_v10  ;;  %4892 = vmatprep.mubr.msk.bf16.mxu1 %vm280_vm0, %v5030_v11 }
  0x9e   :  { %4819 = vmatmul.mubr.msk.bf16.gmra.mrb[68].mxu0 %vm280_vm0, %v5031_v12  ;;  %4893 = vmatmul.mubr.msk.bf16.gmra.mrb[68].mxu1 %vm280_vm0, %v5032_v13 }
  0x9f   :  { %4822 = vmatprep.mubr.msk.bf16.mxu0 %vm280_vm0, %v5033_v14  ;;  %4896 = vmatprep.mubr.msk.bf16.mxu1 %vm280_vm0, %v5034_v15 }
  0xa6   :  { %4823 = vmatmul.mubr.msk.bf16.gmra.mrb[72].mxu0 %vm280_vm0, %v5035_v16  ;;  %4897 = vmatmul.mubr.msk.bf16.gmra.mrb[72].mxu1 %vm280_vm0, %v5036_v17 }
  0xa7   :  { %4826 = vmatprep.mubr.msk.bf16.mxu0 %vm280_vm0, %v5037_v18  ;;  %4900 = vmatprep.mubr.msk.bf16.mxu1 %vm280_vm0, %v5038_v19 }
  0xae   :  { %4827 = vmatmul.mubr.msk.bf16.gmra.mrb[76].mxu0 %vm280_vm0, %v5039_v20  ;;  %4901 = vmatmul.mubr.msk.bf16.gmra.mrb[76].mxu1 %vm280_vm0, %v5040_v21 }
  0xaf   :  { %4830 = vmatprep.mubr.msk.bf16.mxu0 %vm280_vm0, %v5041_v22  ;;  %4904 = vmatprep.mubr.msk.bf16.mxu1 %vm280_vm0, %v5042_v23 }
  0xb6   :  { %4831 = vmatmul.mubr.msk.bf16.gmra.mrb[80].mxu0 %vm280_vm0, %v5043_v24  ;;  %4905 = vmatmul.mubr.msk.bf16.gmra.mrb[80].mxu1 %vm280_vm0, %v5044_v25 }
  0xb7   :  { %4834 = vmatprep.mubr.msk.bf16.mxu0 %vm280_vm0, %v5045_v26  ;;  %4908 = vmatprep.mubr.msk.bf16.mxu1 %vm280_vm0, %v5046_v27 }
  0xbe   :  { %4835 = vmatmul.mubr.msk.bf16.gmra.mrb[84].mxu0 %vm280_vm0, %v5047_v28  ;;  %4909 = vmatmul.mubr.msk.bf16.gmra.mrb[84].mxu1 %vm280_vm0, %v5048_v29  ;;  %v5075_v28 = vld [vmem:[%s7715_s0 + $0x2c8] sm:$0xff]  }
  0xbf   :  { %4838 = vmatprep.mubr.msk.bf16.mxu0 %vm280_vm0, %v5049_v30  ;;  %4912 = vmatprep.mubr.msk.bf16.mxu1 %vm280_vm0, %v5050_v31  ;;  %v5076_v29 = vld [vmem:[%s7715_s0 + $0x3c8] sm:$0xff]  }
  0xc6   :  { %4839 = vmatmul.mubr.msk.bf16.gmra.mrb[88].mxu0 %vm280_vm0, %v5051_v32  ;;  %4913 = vmatmul.mubr.msk.bf16.gmra.mrb[88].mxu1 %vm280_vm0, %v5052_v33 }
  0xc7   :  { %4842 = vmatprep.mubr.msk.bf16.mxu0 %vm280_vm0, %v5053_v34  ;;  %4916 = vmatprep.mubr.msk.bf16.mxu1 %vm280_vm0, %v5054_v35 }
  0xce   :  { %4843 = vmatmul.mubr.msk.bf16.gmra.mrb[92].mxu0 %vm280_vm0, %v5055_v36  ;;  %4917 = vmatmul.mubr.msk.bf16.gmra.mrb[92].mxu1 %vm280_vm0, %v5056_v37 }
  0xcf   :  { %4846 = vmatprep.mubr.msk.bf16.mxu0 %vm280_vm0, %v5057_v38  ;;  %4920 = vmatprep.mubr.msk.bf16.mxu1 %vm280_vm0, %v5058_v39 }
  0xd6   :  { %4847 = vmatmul.mubr.msk.bf16.gmra.mrb[96].mxu0 %vm280_vm0, %v5059_v40  ;;  %4921 = vmatmul.mubr.msk.bf16.gmra.mrb[96].mxu1 %vm280_vm0, %v5060_v41 }
  0xd7   :  { %4850 = vmatprep.mubr.msk.bf16.mxu0 %vm280_vm0, %v5061_v42  ;;  %4924 = vmatprep.mubr.msk.bf16.mxu1 %vm280_vm0, %v5062_v43 }
  0xde   :  { %4851 = vmatmul.mubr.msk.bf16.gmra.mrb[100].mxu0 %vm280_vm0, %v5063_v44  ;;  %4925 = vmatmul.mubr.msk.bf16.gmra.mrb[100].mxu1 %vm280_vm0, %v5064_v45  ;;  %v5077_v44 = vld [vmem:[%s7715_s0 + $0x2d0] sm:$0xff]  }
  0xdf   :  { %4854 = vmatprep.mubr.msk.bf16.mxu0 %vm280_vm0, %v5065_v46  ;;  %4928 = vmatprep.mubr.msk.bf16.mxu1 %vm280_vm0, %v5066_v47  ;;  %v5078_v45 = vld [vmem:[%s7715_s0 + $0x3d0] sm:$0xff]  }
  0xe6   :  { %4855 = vmatmul.mubr.msk.bf16.gmra.mrb[104].mxu0 %vm280_vm0, %v5067_v48  ;;  %4929 = vmatmul.mubr.msk.bf16.gmra.mrb[104].mxu1 %vm280_vm0, %v5068_v49 }
  0xe7   :  { %4858 = vmatprep.mubr.msk.bf16.mxu0 %vm280_vm0, %v5069_v50  ;;  %4932 = vmatprep.mubr.msk.bf16.mxu1 %vm280_vm0, %v5070_v51 }
  0xe9   :  { %v4668_v54 = vpop.f32.mrb[0].mxu0  ;;  %v4742_v55 = vpop.f32.mrb[0].mxu1 }
  0xea   :  { %v678_v56 = vmul.f32 %v4668_v54, %v5581_v52  ;;  %v1614_v57 = vmul.f32 %v4742_v55, %v5581_v52  ;;  %v415_v58 = vpop.f32.mrb[1].mxu0  ;;  %v1357_v59 = vpop.f32.mrb[1].mxu1 }
  0xeb   :  { %v676_v62 = vmul.f32 %v5581_v52, %v415_v58  ;;  %v1612_v63 = vmul.f32 %v5581_v52, %v1357_v59  ;;  %v4669_v0 = vpop.f32.mrb[2].mxu0  ;;  %v4743_v1 = vpop.f32.mrb[2].mxu1 }
  0xec   :  { %v748_v4 = vadd.f32 %v5588_v53, %v678_v56  ;;  %v1678_v5 = vadd.f32 %v5588_v53, %v1614_v57  ;;  %v679_v6 = vmul.f32 %v4669_v0, %v5581_v52  ;;  %v1615_v7 = vmul.f32 %v4743_v1, %v5581_v52  ;;  %v418_v8 = vpop.f32.mrb[3].mxu0  ;;  %v1360_v9 = vpop.f32.mrb[3].mxu1 }
  0xed   :  { %v746_v10 = vadd.f32 %v5588_v53, %v676_v62  ;;  %v1676_v11 = vadd.f32 %v5588_v53, %v1612_v63  ;;  %v677_v12 = vmul.f32 %v5581_v52, %v418_v8  ;;  %v1613_v13 = vmul.f32 %v5581_v52, %v1360_v9  ;;  %v5079_v8 = vld [vmem:[%s7715_s0 + $0x2d8] sm:$0xff]  }
  0xee   :  { %vm812_vm2 = vcmp.gt.f32.partialorder %v748_v4, 0.0  ;;  %v876_v14 = vmul.f32 0.01, %v748_v4  ;;  %vm1742_vm3 = vcmp.gt.f32.partialorder %v1678_v5, 0.0  ;;  %v1806_v15 = vmul.f32 0.01, %v1678_v5  ;;  %4859 = vmatmul.mubr.msk.bf16.gmra.mrb[108].mxu0 %vm280_vm0, %v5071_v60  ;;  %4933 = vmatmul.mubr.msk.bf16.gmra.mrb[108].mxu1 %vm280_vm0, %v5072_v61 }
  0xef   :  { %vm810_vm4 = vcmp.gt.f32.partialorder %v746_v10, 0.0  ;;  %v874_v16 = vmul.f32 0.01, %v746_v10  ;;  %vm1740_vm5 = vcmp.gt.f32.partialorder %v1676_v11, 0.0  ;;  %v1804_v17 = vmul.f32 0.01, %v1676_v11  ;;  %4862 = vmatprep.mubr.msk.bf16.mxu0 %vm280_vm0, %v5073_v2  ;;  %4936 = vmatprep.mubr.msk.bf16.mxu1 %vm280_vm0, %v5074_v3 }
  0xf0   :  { %v5618_v18 = vsel %vm812_vm2, %v748_v4, %v876_v14  ;;  %v5620_v19 = vsel %vm1742_vm3, %v1678_v5, %v1806_v15  ;;  %v749_v20 = vadd.f32 %v5588_v53, %v679_v6  ;;  %v1679_v21 = vadd.f32 %v5588_v53, %v1615_v7  ;;  %v5080_v9 = vld [vmem:[%s7715_s0 + $0x3d8] sm:$0xff]  }
  0xf1   :  { %v5626_v23 = vsel %vm810_vm4, %v746_v10, %v874_v16  ;;  %v5628_v24 = vsel %vm1740_vm5, %v1676_v11, %v1804_v17  ;;  %v747_v25 = vadd.f32 %v5588_v53, %v677_v12  ;;  %v4672_v26 = vpop.f32.mrb[4].mxu0  ;;  %v4746_v27 = vpop.f32.mrb[4].mxu1  ;;  %v1677_v36 = vadd.f32 %v5588_v53, %v1613_v13  ;;  %v5081_v10 = vld [vmem:[%s7715_s0 + $0x2e0] sm:$0xff]  }
  0xf2   :  { %vm813_vm6 = vcmp.gt.f32.partialorder %v749_v20, 0.0  ;;  %v877_v31 = vmul.f32 0.01, %v749_v20  ;;  %vm1743_vm7 = vcmp.gt.f32.partialorder %v1679_v21, 0.0  ;;  %v431_v32 = vpop.f32.mrb[5].mxu0  ;;  %v1373_v33 = vpop.f32.mrb[5].mxu1  ;;  %v682_v39 = vmul.f32 %v4672_v26, %v5581_v52 }
  0xf3   :  { %v1807_v34 = vmul.f32 0.01, %v1679_v21  ;;  %vm811_vm8 = vcmp.gt.f32.partialorder %v747_v25, 0.0  ;;  %v875_v35 = vmul.f32 0.01, %v747_v25  ;;  %v4673_v37 = vpop.f32.mrb[6].mxu0  ;;  %v1618_v40 = vmul.f32 %v4746_v27, %v5581_v52 }
  0xf4   :  { %v5640_v38 = vsel %vm813_vm6, %v749_v20, %v877_v31  ;;  %v680_v41 = vmul.f32 %v5581_v52, %v431_v32  ;;  %v4747_v42 = vpop.f32.mrb[6].mxu1  ;;  %v434_v43 = vpop.f32.mrb[7].mxu0  ;;  %vm1741_vm9 = vcmp.gt.f32.partialorder %v1677_v36, 0.0  ;;  %v1805_v48 = vmul.f32 0.01, %v1677_v36  ;;  %v5082_v16 = vld [vmem:[%s7715_s0 + $0x3e0] sm:$0xff]  }
  0xf5   :  { %v5652_v46 = vsel %vm1743_vm7, %v1679_v21, %v1807_v34  ;;  %v5654_v47 = vsel %vm811_vm8, %v747_v25, %v875_v35  ;;  %v1376_v49 = vpop.f32.mrb[7].mxu1  ;;  %v752_v51 = vadd.f32 %v5588_v53, %v682_v39  ;;  %v1682_v54 = vadd.f32 %v5588_v53, %v1618_v40 }
  0xf6   :  { %7842 = vst [vmem:[#allocation2_spill] sm:$0xff] %v5652_v46  ;;  %7843 = vst [vmem:[#allocation3_spill] sm:$0xff] %v5654_v47  ;;  %v750_v55 = vadd.f32 %v5588_v53, %v680_v41  ;;  %4863 = vmatmul.mubr.msk.bf16.gmra.mrb[112].mxu0 %vm280_vm0, %v5075_v28  ;;  %v5662_v56 = vsel %vm1741_vm9, %v1677_v36, %v1805_v48  ;;  %v1616_v57 = vmul.f32 %v5581_v52, %v1373_v33 }
  0xf7   :  { %7844 = vst [vmem:[#allocation4_spill] sm:$0xff] %v5662_v56  ;;  %v683_v58 = vmul.f32 %v4673_v37, %v5581_v52  ;;  %v1619_v59 = vmul.f32 %v4747_v42, %v5581_v52  ;;  %4937 = vmatmul.mubr.msk.bf16.gmra.mrb[112].mxu1 %vm280_vm0, %v5076_v29  ;;  %vm816_vm10 = vcmp.gt.f32.partialorder %v752_v51, 0.0  ;;  %v880_v61 = vmul.f32 0.01, %v752_v51  ;;  %4866 = vmatprep.mubr.msk.bf16.mxu0 %vm280_vm0, %v5077_v44 }
  0xf8   :  { %vm1746_vm11 = vcmp.gt.f32.partialorder %v1682_v54, 0.0  ;;  %4940 = vmatprep.mubr.msk.bf16.mxu1 %vm280_vm0, %v5078_v45  ;;  %v1810_v62 = vmul.f32 0.01, %v1682_v54  ;;  %vm814_vm12 = vcmp.gt.f32.partialorder %v750_v55, 0.0  ;;  %v878_v63 = vmul.f32 0.01, %v750_v55 }
  0xf9   :  { %v1680_v0 = vadd.f32 %v5588_v53, %v1616_v57  ;;  %v4676_v1 = vpop.f32.mrb[8].mxu0  ;;  %v5673_v2 = vsel %vm816_vm10, %v752_v51, %v880_v61  ;;  %v753_v3 = vadd.f32 %v5588_v53, %v683_v58  ;;  %v1683_v4 = vadd.f32 %v5588_v53, %v1619_v59  ;;  %v4750_v6 = vpop.f32.mrb[8].mxu1 }
  0xfa   :  { %7845 = vst [vmem:[#allocation5_spill] sm:$0xff] %v5673_v2  ;;  %v681_v5 = vmul.f32 %v5581_v52, %v434_v43  ;;  %v447_v7 = vpop.f32.mrb[9].mxu0  ;;  %v5688_v11 = vsel %vm1746_vm11, %v1682_v54, %v1810_v62  ;;  %v5690_v12 = vsel %vm814_vm12, %v750_v55, %v878_v63  ;;  %v1389_v14 = vpop.f32.mrb[9].mxu1  ;;  %v1617_v29 = vmul.f32 %v5581_v52, %v1376_v49  ;;  %v5083_v54 = vld [vmem:[%s7715_s0 + $0x2e8] sm:$0xff]  }
  0xfb   :  { %7846 = vst [vmem:[#allocation6_spill] sm:$0xff] %v5688_v11  ;;  %7847 = vst [vmem:[#allocation7_spill] sm:$0xff] %v5690_v12  ;;  %vm1744_vm13 = vcmp.gt.f32.partialorder %v1680_v0, 0.0  ;;  %v1808_v13 = vmul.f32 0.01, %v1680_v0  ;;  %v4677_v15 = vpop.f32.mrb[10].mxu0  ;;  %v686_v34 = vmul.f32 %v4676_v1, %v5581_v52  ;;  %v1622_v35 = vmul.f32 %v4750_v6, %v5581_v52 }
  0xfc   :  { %vm817_vm14 = vcmp.gt.f32.partialorder %v753_v3, 0.0  ;;  %v881_v20 = vmul.f32 0.01, %v753_v3  ;;  %vm1747_vm15 = vcmp.gt.f32.partialorder %v1683_v4, 0.0  ;;  %v4751_v21 = vpop.f32.mrb[10].mxu1  ;;  %v450_v25 = vpop.f32.mrb[11].mxu0  ;;  %v751_v28 = vadd.f32 %v5588_v53, %v681_v5 }
  0xfd   :  { %v5697_v26 = vsel %vm1744_vm13, %v1680_v0, %v1808_v13  ;;  %v1811_v27 = vmul.f32 0.01, %v1683_v4  ;;  %v1392_v31 = vpop.f32.mrb[11].mxu1  ;;  %v1681_v39 = vadd.f32 %v5588_v53, %v1617_v29  ;;  %v756_v41 = vadd.f32 %v5588_v53, %v686_v34  ;;  %v5084_v1 = vld [vmem:[%s7715_s0 + $0x3e8] sm:$0xff]  }
  0xfe   :  { %7848 = vst [vmem:[#allocation8_spill] sm:$0xff] %v5697_v26  ;;  %v5703_v33 = vsel %vm817_vm14, %v753_v3, %v881_v20  ;;  %4867 = vmatmul.mubr.msk.bf16.gmra.mrb[116].mxu0 %vm280_vm0, %v5079_v8  ;;  %vm815_vm1 = vcmp.gt.f32.partialorder %v751_v28, 0.0  ;;  %v879_v37 = vmul.f32 0.01, %v751_v28  ;;  %v1686_v42 = vadd.f32 %v5588_v53, %v1622_v35 }
  0xff   :  { %7849 = vst [vmem:[#allocation9_spill] sm:$0xff] %v5703_v33  ;;  %v5708_v36 = vsel %vm1747_vm15, %v1683_v4, %v1811_v27  ;;  %4941 = vmatmul.mubr.msk.bf16.gmra.mrb[116].mxu1 %vm280_vm0, %v5080_v9  ;;  %4870 = vmatprep.mubr.msk.bf16.mxu0 %vm280_vm0, %v5081_v10  ;;  %v684_v43 = vmul.f32 %v5581_v52, %v447_v7  ;;  %vm1745_vm2 = vcmp.gt.f32.partialorder %v1681_v39, 0.0  ;;  %v1809_v45 = vmul.f32 0.01, %v1681_v39  ;;  %v5085_v9 = vld [vmem:[%s7715_s0 + $0x2f0] sm:$0xff]  }
 0x100   :  { %7850 = vst [vmem:[#allocation10_spill] sm:$0xff] %v5708_v36  ;;  %4944 = vmatprep.mubr.msk.bf16.mxu1 %vm280_vm0, %v5082_v16  ;;  %v5719_v44 = vsel %vm815_vm1, %v751_v28, %v879_v37  ;;  %v1620_v48 = vmul.f32 %v5581_v52, %v1389_v14  ;;  %vm820_vm3 = vcmp.gt.f32.partialorder %v756_v41, 0.0  ;;  %v884_v55 = vmul.f32 0.01, %v756_v41  ;;  %v5086_v10 = vld [vmem:[%s7715_s0 + $0x3f0] sm:$0xff]  }
 0x101   :  { %7851 = vst [vmem:[#allocation11_spill] sm:$0xff] %v5719_v44  ;;  %v4680_v49 = vpop.f32.mrb[12].mxu0  ;;  %v4754_v51 = vpop.f32.mrb[12].mxu1  ;;  %vm1750_vm4 = vcmp.gt.f32.partialorder %v1686_v42, 0.0  ;;  %v1814_v57 = vmul.f32 0.01, %v1686_v42  ;;  %v5725_v58 = vsel %vm1745_vm2, %v1681_v39, %v1809_v45  ;;  %v754_v59 = vadd.f32 %v5588_v53, %v684_v43 }
 0x102   :  { %7852 = vst [vmem:[#allocation12_spill] sm:$0xff] %v5725_v58  ;;  %v1684_v61 = vadd.f32 %v5588_v53, %v1620_v48  ;;  %v687_v62 = vmul.f32 %v4677_v15, %v5581_v52  ;;  %v463_v63 = vpop.f32.mrb[13].mxu0  ;;  %v5730_v0 = vpop.f32.mrb[13].mxu1  ;;  %v5737_v4 = vsel %vm820_vm3, %v756_v41, %v884_v55  ;;  %v1623_v6 = vmul.f32 %v4751_v21, %v5581_v52 }
 0x103   :  { %7853 = vst [vmem:[#allocation13_spill] sm:$0xff] %v5737_v4  ;;  %v5739_v5 = vsel %vm1750_vm4, %v1686_v42, %v1814_v57  ;;  %v4681_v7 = vpop.f32.mrb[14].mxu0  ;;  %v5742_v8 = vpop.f32.mrb[14].mxu1  ;;  %vm818_vm5 = vcmp.gt.f32.partialorder %v754_v59, 0.0  ;;  %v882_v14 = vmul.f32 0.01, %v754_v59  ;;  %v685_v28 = vmul.f32 %v5581_v52, %v450_v25 }
 0x104   :  { %7854 = vst [vmem:[#allocation14_spill] sm:$0xff] %v5739_v5  ;;  %vm1748_vm6 = vcmp.gt.f32.partialorder %v1684_v61, 0.0  ;;  %v5752_v15 = vpop.f32.mrb[15].mxu0  ;;  %v5754_v16 = vpop.f32.mrb[15].mxu1  ;;  %v1812_v20 = vmul.f32 0.01, %v1684_v61  ;;  %v757_v21 = vadd.f32 %v5588_v53, %v687_v62  ;;  %v1687_v27 = vadd.f32 %v5588_v53, %v1623_v6 }
 0x105   :  { %v5760_v29 = vsel %vm818_vm5, %v754_v59, %v882_v14  ;;  %v1621_v34 = vmul.f32 %v5581_v52, %v1392_v31  ;;  %v690_v35 = vmul.f32 %v4680_v49, %v5581_v52  ;;  %v1626_v37 = vmul.f32 %v4754_v51, %v5581_v52  ;;  %v5088_v62 = vld [vmem:[%s7715_s0 + $0x3f8] sm:$0xff]  }
 0x106   :  { %4871 = vmatmul.mubr.msk.bf16.gmra.mrb[120].mxu0 %vm280_vm0, %v5083_v54  ;;  %7855 = vst [vmem:[#allocation15_spill] sm:$0xff] %v5760_v29  ;;  %v5766_v39 = vsel %vm1748_vm6, %v1684_v61, %v1812_v20  ;;  %vm821_vm7 = vcmp.gt.f32.partialorder %v757_v21, 0.0  ;;  %v885_v41 = vmul.f32 0.01, %v757_v21  ;;  %vm1751_vm8 = vcmp.gt.f32.partialorder %v1687_v27, 0.0  ;;  %v5087_v61 = vld [vmem:[%s7715_s0 + $0x2f8] sm:$0xff]  }
 0x107   :  { %4945 = vmatmul.mubr.msk.bf16.gmra.mrb[120].mxu1 %vm280_vm0, %v5084_v1  ;;  %7856 = vst [vmem:[#allocation16_spill] sm:$0xff] %v5766_v39  ;;  %4874 = vmatprep.mubr.msk.bf16.mxu0 %vm280_vm0, %v5085_v9  ;;  %v1815_v42 = vmul.f32 0.01, %v1687_v27  ;;  %v755_v31 = vadd.f32 %v5588_v53, %v685_v28  ;;  %v1685_v43 = vadd.f32 %v5588_v53, %v1621_v34 }
 0x108   :  { %4948 = vmatprep.mubr.msk.bf16.mxu1 %vm280_vm0, %v5086_v10  ;;  %v5774_v49 = vsel %vm821_vm7, %v757_v21, %v885_v41  ;;  %v760_v51 = vadd.f32 %v5588_v53, %v690_v35  ;;  %v1690_v54 = vadd.f32 %v5588_v53, %v1626_v37  ;;  %v688_v55 = vmul.f32 %v5581_v52, %v463_v63 }
 0x109   :  { %v4684_v45 = vpop.f32.mrb[16].mxu0  ;;  %v4758_v48 = vpop.f32.mrb[16].mxu1  ;;  %7857 = vst [vmem:[#allocation17_spill] sm:$0xff] %v5774_v49  ;;  %v5788_v1 = vsel %vm1751_vm8, %v1687_v27, %v1815_v42  ;;  %vm819_vm9 = vcmp.gt.f32.partialorder %v755_v31, 0.0  ;;  %v883_v6 = vmul.f32 0.01, %v755_v31  ;;  %v1624_v42 = vmul.f32 %v5581_v52, %v5730_v0 }
 0x10a   :  { %v479_v57 = vpop.f32.mrb[17].mxu0  ;;  %v5779_v59 = vpop.f32.mrb[17].mxu1  ;;  %7858 = vst [vmem:[#allocation18_spill] sm:$0xff] %v5788_v1  ;;  %vm1749_vm10 = vcmp.gt.f32.partialorder %v1685_v43, 0.0  ;;  %v1813_v14 = vmul.f32 0.01, %v1685_v43  ;;  %v758_v34 = vadd.f32 %v5588_v53, %v688_v55  ;;  %v691_v10 = vmul.f32 %v4681_v7, %v5581_v52 }
 0x10b   :  { %v5790_v9 = vpop.f32.mrb[18].mxu0  ;;  %v5792_v63 = vpop.f32.mrb[18].mxu1  ;;  %vm824_vm11 = vcmp.gt.f32.partialorder %v760_v51, 0.0  ;;  %v888_v20 = vmul.f32 0.01, %v760_v51  ;;  %v5798_v28 = vsel %vm819_vm9, %v755_v31, %v883_v6  ;;  %vm1754_vm12 = vcmp.gt.f32.partialorder %v1690_v54, 0.0 }
 0x10c   :  { %v5796_v21 = vpop.f32.mrb[19].mxu0  ;;  %7859 = vst [vmem:[#allocation19_spill] sm:$0xff] %v5798_v28  ;;  %v1818_v27 = vmul.f32 0.01, %v1690_v54  ;;  %v5801_v35 = vpop.f32.mrb[19].mxu1  ;;  %v5803_v37 = vsel %vm1749_vm10, %v1685_v43, %v1813_v14  ;;  %vm822_vm13 = vcmp.gt.f32.partialorder %v758_v34, 0.0  ;;  %v761_v0 = vadd.f32 %v5588_v53, %v691_v10 }
 0x10d   :  { %7860 = vst [vmem:[#allocation20_spill] sm:$0xff] %v5803_v37  ;;  %v5805_v41 = vsel %vm824_vm11, %v760_v51, %v888_v20  ;;  %v886_v55 = vmul.f32 0.01, %v758_v34  ;;  %v1688_v51 = vadd.f32 %v5588_v53, %v1624_v42  ;;  %v1627_v7 = vmul.f32 %v5742_v8, %v5581_v52 }
 0x10e   :  { %7861 = vst [vmem:[#allocation21_spill] sm:$0xff] %v5805_v41  ;;  %4875 = vmatmul.mubr.msk.bf16.gmra.mrb[124].mxu0 %vm280_vm0, %v5087_v61  ;;  %v5813_v6 = vsel %vm1754_vm12, %v1690_v54, %v1818_v27  ;;  %v689_v54 = vmul.f32 %v5581_v52, %v5752_v15  ;;  %v1625_v14 = vmul.f32 %v5581_v52, %v5754_v16  ;;  %vm825_vm14 = vcmp.gt.f32.partialorder %v761_v0, 0.0 }
 0x10f   :  { %7862 = vst [vmem:[#allocation22_spill] sm:$0xff] %v5813_v6  ;;  %4949 = vmatmul.mubr.msk.bf16.gmra.mrb[124].mxu1 %vm280_vm0, %v5088_v62  ;;  %v5822_v61 = vsel %vm822_vm13, %v758_v34, %v886_v55  ;;  %v694_v62 = vmul.f32 %v4684_v45, %v5581_v52  ;;  %vm1752_vm0 = vcmp.gt.f32.partialorder %v1688_v51, 0.0  ;;  %v1816_v42 = vmul.f32 0.01, %v1688_v51 }
 0x110   :  { %7863 = vst [vmem:[#allocation23_spill] sm:$0xff] %v5822_v61  ;;  %v889_v10 = vmul.f32 0.01, %v761_v0  ;;  %v1691_v8 = vadd.f32 %v5588_v53, %v1627_v7  ;;  %v759_v34 = vadd.f32 %v5588_v53, %v689_v54  ;;  %v1689_v55 = vadd.f32 %v5588_v53, %v1625_v14 }
 0x111   :  { %v5829_v20 = vpop.f32.mrb[20].mxu0  ;;  %v5831_v27 = vpop.f32.mrb[20].mxu1  ;;  %v764_v15 = vadd.f32 %v5588_v53, %v694_v62  ;;  %v5839_v45 = vsel %vm1752_vm0, %v1688_v51, %v1816_v42  ;;  %v1630_v25 = vmul.f32 %v4758_v48, %v5581_v52  ;;  %v692_v13 = vmul.f32 %v5581_v52, %v479_v57 }
 0x112   :  { %v495_v43 = vpop.f32.mrb[21].mxu0  ;;  %v5837_v16 = vpop.f32.mrb[21].mxu1  ;;  %7864 = vst [vmem:[#allocation24_spill] sm:$0xff] %v5839_v45  ;;  %v5841_v31 = vsel %vm825_vm14, %v761_v0, %v889_v10  ;;  %vm1755_vm15 = vcmp.gt.f32.partialorder %v1691_v8, 0.0  ;;  %v1819_v14 = vmul.f32 0.01, %v1691_v8  ;;  %v1628_v60 = vmul.f32 %v5581_v52, %v5779_v59 }
 0x113   :  { %7865 = vst [vmem:[#allocation25_spill] sm:$0xff] %v5841_v31  ;;  %v5845_v3 = vpop.f32.mrb[22].mxu0  ;;  %v5847_v7 = vpop.f32.mrb[22].mxu1  ;;  %vm823_vm1 = vcmp.gt.f32.partialorder %v759_v34, 0.0  ;;  %v887_v0 = vmul.f32 0.01, %v759_v34  ;;  %v1694_v10 = vadd.f32 %v5588_v53, %v1630_v25  ;;  %v762_v40 = vadd.f32 %v5588_v53, %v692_v13 }
 0x114   :  { %v5851_v62 = vpop.f32.mrb[23].mxu0  ;;  %v5853_v51 = vpop.f32.mrb[23].mxu1  ;;  %vm1753_vm2 = vcmp.gt.f32.partialorder %v1689_v55, 0.0  ;;  %v1817_v42 = vmul.f32 0.01, %v1689_v55  ;;  %vm828_vm3 = vcmp.gt.f32.partialorder %v764_v15, 0.0  ;;  %v5855_v48 = vsel %vm1755_vm15, %v1691_v8, %v1819_v14 }
 0x115   :  { %7866 = vst [vmem:[#allocation26_spill] sm:$0xff] %v5855_v48  ;;  %v892_v57 = vmul.f32 0.01, %v764_v15  ;;  %v5861_v32 = vsel %vm823_vm1, %v759_v34, %v887_v0  ;;  %vm1758_vm4 = vcmp.gt.f32.partialorder %v1694_v10, 0.0  ;;  %v1822_v14 = vmul.f32 0.01, %v1694_v10 }
 0x116   :  { %7867 = vst [vmem:[#allocation27_spill] sm:$0xff] %v5861_v32  ;;  %v5863_v17 = vsel %vm1753_vm2, %v1689_v55, %v1817_v42  ;;  %vm826_vm5 = vcmp.gt.f32.partialorder %v762_v40, 0.0  ;;  %v890_v54 = vmul.f32 0.01, %v762_v40  ;;  %v1692_v34 = vadd.f32 %v5588_v53, %v1628_v60 }
 0x117   :  { %7868 = vst [vmem:[#allocation28_spill] sm:$0xff] %v5863_v17  ;;  %v5869_v8 = vsel %vm828_vm3, %v764_v15, %v892_v57  ;;  %v695_v55 = vmul.f32 %v5790_v9, %v5581_v52  ;;  %v5882_v42 = vsel %vm1758_vm4, %v1694_v10, %v1822_v14  ;;  %v1631_v15 = vmul.f32 %v5792_v63, %v5581_v52 }
 0x118   :  { %7869 = vst [vmem:[#allocation29_spill] sm:$0xff] %v5869_v8  ;;  %7870 = vst [vmem:[#allocation30_spill] sm:$0xff] %v5882_v42  ;;  %v693_v57 = vmul.f32 %v5581_v52, %v5796_v21  ;;  %v1629_v50 = vmul.f32 %v5581_v52, %v5801_v35  ;;  %v5896_v22 = vsel %vm826_vm5, %v762_v40, %v890_v54  ;;  %vm1756_vm6 = vcmp.gt.f32.partialorder %v1692_v34, 0.0 }
 0x119   :  { %v5871_v25 = vpop.f32.mrb[24].mxu0  ;;  %v5873_v13 = vpop.f32.mrb[24].mxu1  ;;  %7871 = vst [vmem:[#allocation31_spill] sm:$0xff] %v5896_v22  ;;  %v1820_v10 = vmul.f32 0.01, %v1692_v34  ;;  %v765_v21 = vadd.f32 %v5588_v53, %v695_v55  ;;  %v1695_v17 = vadd.f32 %v5588_v53, %v1631_v15  ;;  %v698_v40 = vmul.f32 %v5829_v20, %v5581_v52 }
 0x11a   :  { %v5878_v0 = vpop.f32.mrb[25].mxu0  ;;  %v5880_v59 = vpop.f32.mrb[25].mxu1  ;;  %v763_v35 = vadd.f32 %v5588_v53, %v693_v57  ;;  %v1693_v32 = vadd.f32 %v5588_v53, %v1629_v50  ;;  %v1634_v54 = vmul.f32 %v5831_v27, %v5581_v52  ;;  %v696_v9 = vmul.f32 %v5581_v52, %v495_v43 }
 0x11b   :  { %v5890_v30 = vpop.f32.mrb[26].mxu0  ;;  %v5892_v60 = vpop.f32.mrb[26].mxu1  ;;  %v5906_v48 = vsel %vm1756_vm6, %v1692_v34, %v1820_v10  ;;  %vm829_vm7 = vcmp.gt.f32.partialorder %v765_v21, 0.0  ;;  %v893_v55 = vmul.f32 0.01, %v765_v21  ;;  %vm1759_vm8 = vcmp.gt.f32.partialorder %v1695_v17, 0.0 }
 0x11c   :  { %v5898_v14 = vpop.f32.mrb[27].mxu0  ;;  %v5900_v63 = vpop.f32.mrb[27].mxu1  ;;  %7872 = vst [vmem:[#allocation32_spill] sm:$0xff] %v5906_v48  ;;  %v1823_v15 = vmul.f32 0.01, %v1695_v17  ;;  %vm827_vm9 = vcmp.gt.f32.partialorder %v763_v35, 0.0  ;;  %v768_v20 = vadd.f32 %v5588_v53, %v698_v40  ;;  %v1698_v10 = vadd.f32 %v5588_v53, %v1634_v54 }
 0x11d   :  { %v891_v57 = vmul.f32 0.01, %v763_v35  ;;  %vm1757_vm10 = vcmp.gt.f32.partialorder %v1693_v32, 0.0  ;;  %v5915_v50 = vsel %vm829_vm7, %v765_v21, %v893_v55  ;;  %v1821_v34 = vmul.f32 0.01, %v1693_v32 }
 0x11e   :  { %7873 = vst [vmem:[#allocation33_spill] sm:$0xff] %v5915_v50  ;;  %v5923_v8 = vsel %vm1759_vm8, %v1695_v17, %v1823_v15  ;;  %v766_v48 = vadd.f32 %v5588_v53, %v696_v9  ;;  %v1632_v22 = vmul.f32 %v5581_v52, %v5837_v16  ;;  %vm832_vm11 = vcmp.gt.f32.partialorder %v768_v20, 0.0 }
 0x11f   :  { %7874 = vst [vmem:[#allocation34_spill] sm:$0xff] %v5923_v8  ;;  %v5925_v42 = vsel %vm827_vm9, %v763_v35, %v891_v57  ;;  %v5936_v54 = vsel %vm1757_vm10, %v1693_v32, %v1821_v34  ;;  %v896_v31 = vmul.f32 0.01, %v768_v20  ;;  %vm1762_vm12 = vcmp.gt.f32.partialorder %v1698_v10, 0.0 }
 0x120   :  { %7875 = vst [vmem:[#allocation35_spill] sm:$0xff] %v5925_v42  ;;  %7876 = vst [vmem:[#allocation36_spill] sm:$0xff] %v5936_v54  ;;  %v1826_v16 = vmul.f32 0.01, %v1698_v10  ;;  %vm830_vm13 = vcmp.gt.f32.partialorder %v766_v48, 0.0  ;;  %v1696_v34 = vadd.f32 %v5588_v53, %v1632_v22  ;;  %v699_v40 = vmul.f32 %v5845_v3, %v5581_v52 }
 0x121   :  { %v5919_v27 = vpop.f32.mrb[28].mxu0  ;;  %v5921_v43 = vpop.f32.mrb[28].mxu1  ;;  %v5948_v45 = vsel %vm832_vm11, %v768_v20, %v896_v31  ;;  %v894_v32 = vmul.f32 0.01, %v766_v48  ;;  %v1635_v9 = vmul.f32 %v5847_v7, %v5581_v52  ;;  %v697_v54 = vmul.f32 %v5581_v52, %v5851_v62 }
 0x122   :  { %v5930_v21 = vpop.f32.mrb[29].mxu0  ;;  %v5932_v55 = vpop.f32.mrb[29].mxu1  ;;  %7877 = vst [vmem:[#allocation37_spill] sm:$0xff] %v5948_v45  ;;  %v5953_v8 = vsel %vm1762_vm12, %v1698_v10, %v1826_v16  ;;  %v1633_v42 = vmul.f32 %v5581_v52, %v5853_v51  ;;  %vm1760_vm0 = vcmp.gt.f32.partialorder %v1696_v34, 0.0  ;;  %v1824_v22 = vmul.f32 0.01, %v1696_v34 }
 0x123   :  { %v5938_v17 = vpop.f32.mrb[30].mxu0  ;;  %v5940_v35 = vpop.f32.mrb[30].mxu1  ;;  %7878 = vst [vmem:[#allocation38_spill] sm:$0xff] %v5953_v8  ;;  %v5963_v20 = vsel %vm830_vm13, %v766_v48, %v894_v32  ;;  %v769_v3 = vadd.f32 %v5588_v53, %v699_v40  ;;  %v1699_v10 = vadd.f32 %v5588_v53, %v1635_v9  ;;  %v767_v16 = vadd.f32 %v5588_v53, %v697_v54 }
 0x124   :  { %v5944_v15 = vpop.f32.mrb[31].mxu0  ;;  %v5946_v57 = vpop.f32.mrb[31].mxu1  ;;  %7879 = vst [vmem:[#allocation39_spill] sm:$0xff] %v5963_v20  ;;  %v1697_v7 = vadd.f32 %v5588_v53, %v1633_v42  ;;  %v5969_v50 = vsel %vm1760_vm0, %v1696_v34, %v1824_v22  ;;  %v702_v62 = vmul.f32 %v5871_v25, %v5581_v52  ;;  %v1638_v51 = vmul.f32 %v5873_v13, %v5581_v52 }
 0x125   :  { %7880 = vst [vmem:[#allocation40_spill] sm:$0xff] %v5969_v50  ;;  %v700_v48 = vmul.f32 %v5581_v52, %v5878_v0  ;;  %vm833_vm14 = vcmp.gt.f32.partialorder %v769_v3, 0.0  ;;  %v897_v42 = vmul.f32 0.01, %v769_v3  ;;  %vm1763_vm15 = vcmp.gt.f32.partialorder %v1699_v10, 0.0 }
 0x126   :  { %v1827_v25 = vmul.f32 0.01, %v1699_v10  ;;  %vm831_vm1 = vcmp.gt.f32.partialorder %v767_v16, 0.0  ;;  %v895_v13 = vmul.f32 0.01, %v767_v16  ;;  %vm1761_vm2 = vcmp.gt.f32.partialorder %v1697_v7, 0.0 }
 0x127   :  { %v5987_v22 = vsel %vm833_vm14, %v769_v3, %v897_v42  ;;  %v1825_v0 = vmul.f32 0.01, %v1697_v7  ;;  %v772_v31 = vadd.f32 %v5588_v53, %v702_v62  ;;  %v1702_v8 = vadd.f32 %v5588_v53, %v1638_v51 }
 0x128   :  { %7881 = vst [vmem:[#allocation41_spill] sm:$0xff] %v5987_v22  ;;  %v5995_v50 = vsel %vm1763_vm15, %v1699_v10, %v1827_v25  ;;  %v5997_v20 = vsel %vm831_vm1, %v767_v16, %v895_v13  ;;  %v770_v61 = vadd.f32 %v5588_v53, %v700_v48  ;;  %v1636_v6 = vmul.f32 %v5581_v52, %v5880_v59 }
 0x129   :  { %v5977_v32 = vpop.f32.mrb[32].mxu0  ;;  %v5979_v40 = vpop.f32.mrb[32].mxu1  ;;  %7882 = vst [vmem:[#allocation42_spill] sm:$0xff] %v5995_v50  ;;  %7883 = vst [vmem:[#allocation43_spill] sm:$0xff] %v5997_v20  ;;  %v6008_v51 = vsel %vm1761_vm2, %v1697_v7, %v1825_v0  ;;  %vm836_vm3 = vcmp.gt.f32.partialorder %v772_v31, 0.0  ;;  %vm1766_vm4 = vcmp.gt.f32.partialorder %v1702_v8, 0.0  ;;  %v703_v13 = vmul.f32 %v5890_v30, %v5581_v52 }
 0x12a   :  { %v5983_v9 = vpop.f32.mrb[33].mxu0  ;;  %v5985_v34 = vpop.f32.mrb[33].mxu1  ;;  %7884 = vst [vmem:[#allocation44_spill] sm:$0xff] %v6008_v51  ;;  %v900_v41 = vmul.f32 0.01, %v772_v31  ;;  %vm834_vm5 = vcmp.gt.f32.partialorder %v770_v61, 0.0  ;;  %v1700_v25 = vadd.f32 %v5588_v53, %v1636_v6  ;;  %v1639_v7 = vmul.f32 %v5892_v60, %v5581_v52 }
 0x12b   :  { %v5991_v45 = vpop.f32.mrb[34].mxu0  ;;  %v5993_v54 = vpop.f32.mrb[34].mxu1  ;;  %v1830_v16 = vmul.f32 0.01, %v1702_v8  ;;  %v898_v59 = vmul.f32 0.01, %v770_v61  ;;  %v701_v0 = vmul.f32 %v5581_v52, %v5898_v14  ;;  %v1637_v10 = vmul.f32 %v5581_v52, %v5900_v63 }
 0x12c   :  { %v6002_v3 = vpop.f32.mrb[35].mxu0  ;;  %v6004_v42 = vpop.f32.mrb[35].mxu1  ;;  %v6012_v48 = vsel %vm836_vm3, %v772_v31, %v900_v41  ;;  %vm1764_vm6 = vcmp.gt.f32.partialorder %v1700_v25, 0.0  ;;  %v1828_v30 = vmul.f32 0.01, %v1700_v25  ;;  %v773_v14 = vadd.f32 %v5588_v53, %v703_v13 }
 0x12d   :  { %7885 = vst [vmem:[#allocation45_spill] sm:$0xff] %v6012_v48  ;;  %v6017_v37 = vsel %vm1766_vm4, %v1702_v8, %v1830_v16  ;;  %v6031_v31 = vsel %vm834_vm5, %v770_v61, %v898_v59  ;;  %v1703_v16 = vadd.f32 %v5588_v53, %v1639_v7  ;;  %v771_v63 = vadd.f32 %v5588_v53, %v701_v0 }
 0x12e   :  { %7886 = vst [vmem:[#allocation46_spill] sm:$0xff] %v6017_v37  ;;  %7887 = vst [vmem:[#allocation47_spill] sm:$0xff] %v6031_v31  ;;  %v1701_v51 = vadd.f32 %v5588_v53, %v1637_v10  ;;  %v6045_v61 = vsel %vm1764_vm6, %v1700_v25, %v1828_v30  ;;  %v706_v59 = vmul.f32 %v5919_v27, %v5581_v52  ;;  %vm837_vm7 = vcmp.gt.f32.partialorder %v773_v14, 0.0 }
 0x12f   :  { %7888 = vst [vmem:[#allocation48_spill] sm:$0xff] %v6045_v61  ;;  %v1642_v6 = vmul.f32 %v5921_v43, %v5581_v52  ;;  %v704_v13 = vmul.f32 %v5581_v52, %v5930_v21  ;;  %v901_v37 = vmul.f32 0.01, %v773_v14  ;;  %vm1767_vm8 = vcmp.gt.f32.partialorder %v1703_v16, 0.0 }
 0x130   :  { %v1831_v25 = vmul.f32 0.01, %v1703_v16  ;;  %vm835_vm9 = vcmp.gt.f32.partialorder %v771_v63, 0.0  ;;  %v899_v30 = vmul.f32 0.01, %v771_v63  ;;  %vm1765_vm10 = vcmp.gt.f32.partialorder %v1701_v51, 0.0 }
 0x131   :  { %v6025_v62 = vpop.f32.mrb[36].mxu0  ;;  %v6027_v41 = vpop.f32.mrb[36].mxu1  ;;  %v6059_v27 = vsel %vm837_vm7, %v773_v14, %v901_v37  ;;  %v1829_v43 = vmul.f32 0.01, %v1701_v51  ;;  %v776_v48 = vadd.f32 %v5588_v53, %v706_v59  ;;  %v1706_v21 = vadd.f32 %v5588_v53, %v1642_v6 }
 0x132   :  { %v6033_v8 = vpop.f32.mrb[37].mxu0  ;;  %v6035_v60 = vpop.f32.mrb[37].mxu1  ;;  %7889 = vst [vmem:[#allocation49_spill] sm:$0xff] %v6059_v27  ;;  %v6063_v22 = vsel %vm1767_vm8, %v1703_v16, %v1831_v25  ;;  %v6065_v28 = vsel %vm835_vm9, %v771_v63, %v899_v30  ;;  %v774_v10 = vadd.f32 %v5588_v53, %v704_v13  ;;  %v1640_v61 = vmul.f32 %v5581_v52, %v5932_v55 }
 0x133   :  { %v6041_v20 = vpop.f32.mrb[38].mxu0  ;;  %v6043_v50 = vpop.f32.mrb[38].mxu1  ;;  %7890 = vst [vmem:[#allocation50_spill] sm:$0xff] %v6063_v22  ;;  %7891 = vst [vmem:[#allocation51_spill] sm:$0xff] %v6065_v28  ;;  %v6072_v1 = vsel %vm1765_vm10, %v1701_v51, %v1829_v43  ;;  %vm840_vm11 = vcmp.gt.f32.partialorder %v776_v48, 0.0  ;;  %vm1770_vm12 = vcmp.gt.f32.partialorder %v1706_v21, 0.0  ;;  %v707_v30 = vmul.f32 %v5938_v17, %v5581_v52 }
 0x134   :  { %v6053_v7 = vpop.f32.mrb[39].mxu0  ;;  %v6055_v0 = vpop.f32.mrb[39].mxu1  ;;  %7892 = vst [vmem:[#allocation52_spill] sm:$0xff] %v6072_v1  ;;  %v904_v37 = vmul.f32 0.01, %v776_v48  ;;  %vm838_vm13 = vcmp.gt.f32.partialorder %v774_v10, 0.0  ;;  %v1704_v25 = vadd.f32 %v5588_v53, %v1640_v61  ;;  %v1643_v1 = vmul.f32 %v5940_v35, %v5581_v52 }
 0x135   :  { %v1834_v16 = vmul.f32 0.01, %v1706_v21  ;;  %v902_v51 = vmul.f32 0.01, %v774_v10  ;;  %v705_v28 = vmul.f32 %v5581_v52, %v5944_v15  ;;  %v777_v35 = vadd.f32 %v5588_v53, %v707_v30 }
 0x136   :  { %v6084_v13 = vsel %vm840_vm11, %v776_v48, %v904_v37  ;;  %v1641_v48 = vmul.f32 %v5581_v52, %v5946_v57  ;;  %vm1768_vm0 = vcmp.gt.f32.partialorder %v1704_v25, 0.0  ;;  %v710_v49 = vmul.f32 %v5977_v32, %v5581_v52 }
 0x137   :  { %7893 = vst [vmem:[#allocation53_spill] sm:$0xff] %v6084_v13  ;;  %v6093_v6 = vsel %vm1770_vm12, %v1706_v21, %v1834_v16  ;;  %v6108_v22 = vsel %vm838_vm13, %v774_v10, %v902_v51  ;;  %v1832_v21 = vmul.f32 0.01, %v1704_v25  ;;  %v1707_v16 = vadd.f32 %v5588_v53, %v1643_v1 }
 0x138   :  { %7894 = vst [vmem:[#allocation54_spill] sm:$0xff] %v6093_v6  ;;  %7895 = vst [vmem:[#allocation55_spill] sm:$0xff] %v6108_v22  ;;  %v775_v15 = vadd.f32 %v5588_v53, %v705_v28  ;;  %v1705_v57 = vadd.f32 %v5588_v53, %v1641_v48  ;;  %v1646_v17 = vmul.f32 %v5979_v40, %v5581_v52  ;;  %vm841_vm14 = vcmp.gt.f32.partialorder %v777_v35, 0.0 }
 0x139   :  { %v6074_v14 = vpop.f32.mrb[40].mxu0  ;;  %v6076_v59 = vpop.f32.mrb[40].mxu1  ;;  %v6114_v27 = vsel %vm1768_vm0, %v1704_v25, %v1832_v21  ;;  %v708_v10 = vmul.f32 %v5581_v52, %v5983_v9  ;;  %v905_v1 = vmul.f32 0.01, %v777_v35  ;;  %vm1771_vm15 = vcmp.gt.f32.partialorder %v1707_v16, 0.0 }
 0x13a   :  { %v6080_v63 = vpop.f32.mrb[41].mxu0  ;;  %v6082_v55 = vpop.f32.mrb[41].mxu1  ;;  %7896 = vst [vmem:[#allocation56_spill] sm:$0xff] %v6114_v27  ;;  %v1835_v28 = vmul.f32 0.01, %v1707_v16  ;;  %vm839_vm1 = vcmp.gt.f32.partialorder %v775_v15, 0.0  ;;  %v780_v32 = vadd.f32 %v5588_v53, %v710_v49  ;;  %v1710_v40 = vadd.f32 %v5588_v53, %v1646_v17 }
 0x13b   :  { %v6089_v43 = vpop.f32.mrb[42].mxu0  ;;  %v6091_v31 = vpop.f32.mrb[42].mxu1  ;;  %v903_v30 = vmul.f32 0.01, %v775_v15  ;;  %vm1769_vm2 = vcmp.gt.f32.partialorder %v1705_v57, 0.0  ;;  %v6124_v25 = vsel %vm841_vm14, %v777_v35, %v905_v1  ;;  %v778_v27 = vadd.f32 %v5588_v53, %v708_v10 }
 0x13c   :  { %v6101_v37 = vpop.f32.mrb[43].mxu0  ;;  %v6103_v61 = vpop.f32.mrb[43].mxu1  ;;  %7897 = vst [vmem:[#allocation57_spill] sm:$0xff] %v6124_v25  ;;  %v1833_v48 = vmul.f32 0.01, %v1705_v57  ;;  %v6132_v6 = vsel %vm1771_vm15, %v1707_v16, %v1835_v28  ;;  %v1644_v22 = vmul.f32 %v5581_v52, %v5985_v34  ;;  %vm844_vm3 = vcmp.gt.f32.partialorder %v780_v32, 0.0 }
 0x13d   :  { %7898 = vst [vmem:[#allocation58_spill] sm:$0xff] %v6132_v6  ;;  %v6134_v51 = vsel %vm839_vm1, %v775_v15, %v903_v30  ;;  %v908_v13 = vmul.f32 0.01, %v780_v32  ;;  %vm1774_vm4 = vcmp.gt.f32.partialorder %v1710_v40, 0.0  ;;  %v1838_v34 = vmul.f32 0.01, %v1710_v40 }
 0x13e   :  { %7899 = vst [vmem:[#allocation59_spill] sm:$0xff] %v6134_v51  ;;  %v6145_v17 = vsel %vm1769_vm2, %v1705_v57, %v1833_v48  ;;  %vm842_vm5 = vcmp.gt.f32.partialorder %v778_v27, 0.0  ;;  %v906_v57 = vmul.f32 0.01, %v778_v27  ;;  %v1708_v48 = vadd.f32 %v5588_v53, %v1644_v22 }
 0x13f   :  { %7900 = vst [vmem:[#allocation60_spill] sm:$0xff] %v6145_v17  ;;  %v6157_v39 = vsel %vm844_vm3, %v780_v32, %v908_v13  ;;  %v711_v49 = vmul.f32 %v5991_v45, %v5581_v52  ;;  %v6162_v6 = vsel %vm1774_vm4, %v1710_v40, %v1838_v34  ;;  %v1647_v10 = vmul.f32 %v5993_v54, %v5581_v52  ;;  %v6180_v54 = vld [vmem:[%s7717_s3] ss:$0 sm:$0xff] }
 0x140   :  { %7901 = vst [vmem:[#allocation61_spill] sm:$0xff] %v6157_v39  ;;  %7902 = vst [vmem:[#allocation62_spill] sm:$0xff] %v6162_v6  ;;  %v709_v17 = vmul.f32 %v5581_v52, %v6002_v3  ;;  %v1645_v51 = vmul.f32 %v5581_v52, %v6004_v42  ;;  %v6172_v32 = vsel %vm842_vm5, %v778_v27, %v906_v57  ;;  %vm1772_vm6 = vcmp.gt.f32.partialorder %v1708_v48, 0.0 }
 0x141   :  { %v6128_v21 = vpop.f32.mrb[44].mxu0  ;;  %v6130_v9 = vpop.f32.mrb[44].mxu1  ;;  %7903 = vst [vmem:[#allocation63_spill] sm:$0xff] %v6172_v32  ;;  %v1836_v22 = vmul.f32 0.01, %v1708_v48  ;;  %v781_v45 = vadd.f32 %v5588_v53, %v711_v49  ;;  %v1711_v40 = vadd.f32 %v5588_v53, %v1647_v10 }
 0x142   :  { %v6139_v35 = vpop.f32.mrb[45].mxu0  ;;  %v6141_v1 = vpop.f32.mrb[45].mxu1  ;;  %v779_v34 = vadd.f32 %v5588_v53, %v709_v17  ;;  %v1709_v52 = vadd.f32 %v6180_v54, %v1645_v51  ;;  %v6192_v49 = vld [vmem:[%s7716_s2] ss:$0 sm:$0xff] }
 0x143   :  { %v6147_v16 = vpop.f32.mrb[46].mxu0  ;;  %v6149_v15 = vpop.f32.mrb[46].mxu1  ;;  %v6187_v27 = vsel %vm1772_vm6, %v1708_v48, %v1836_v22  ;;  %v714_v53 = vmul.f32 %v6192_v49, %v6025_v62  ;;  %v1650_v17 = vmul.f32 %v6192_v49, %v6027_v41  ;;  %v712_v51 = vmul.f32 %v6192_v49, %v6033_v8 }
 0x144   :  { %v6153_v28 = vpop.f32.mrb[47].mxu0  ;;  %v6155_v30 = vpop.f32.mrb[47].mxu1  ;;  %7904 = vst [vmem:[#allocation64_spill] sm:$0xff] %v6187_v27  ;;  %vm845_vm7 = vcmp.gt.f32.partialorder %v781_v45, 0.0  ;;  %v909_v22 = vmul.f32 0.01, %v781_v45  ;;  %v1648_v58 = vmul.f32 %v6192_v49, %v6035_v60  ;;  %v715_v60 = vmul.f32 %v6192_v49, %v6041_v20 }
 0x145   :  { %vm1775_vm8 = vcmp.gt.f32.partialorder %v1711_v40, 0.0  ;;  %v1839_v62 = vmul.f32 0.01, %v1711_v40  ;;  %vm843_vm9 = vcmp.gt.f32.partialorder %v779_v34, 0.0  ;;  %v907_v41 = vmul.f32 0.01, %v779_v34 }
 0x146   :  { %vm1773_vm10 = vcmp.gt.f32.partialorder %v1709_v52, 0.0  ;;  %v6210_v39 = vsel %vm845_vm7, %v781_v45, %v909_v22  ;;  %v1837_v8 = vmul.f32 0.01, %v1709_v52  ;;  %v784_v25 = vadd.f32 %v6180_v54, %v714_v53 }
 0x147   :  { %7905 = vst [vmem:[#allocation65_spill] sm:$0xff] %v6210_v39  ;;  %v1714_v29 = vadd.f32 %v6180_v54, %v1650_v17  ;;  %v6218_v27 = vsel %vm1775_vm8, %v1711_v40, %v1839_v62  ;;  %v6220_v32 = vsel %vm843_vm9, %v779_v34, %v907_v41  ;;  %v782_v4 = vadd.f32 %v6180_v54, %v712_v51 }
 0x148   :  { %7906 = vst [vmem:[#allocation66_spill] sm:$0xff] %v6218_v27  ;;  %7907 = vst [vmem:[#allocation67_spill] sm:$0xff] %v6220_v32  ;;  %v6227_v22 = vsel %vm1773_vm10, %v1709_v52, %v1837_v8  ;;  %vm848_vm11 = vcmp.gt.f32.partialorder %v784_v25, 0.0  ;;  %v912_v53 = vmul.f32 0.01, %v784_v25  ;;  %v1712_v51 = vadd.f32 %v6180_v54, %v1648_v58 }
 0x149   :  { %v6183_v3 = vpop.f32.mrb[48].mxu0  ;;  %v6185_v42 = vpop.f32.mrb[48].mxu1  ;;  %7908 = vst [vmem:[#allocation68_spill] sm:$0xff] %v6227_v22  ;;  %vm1778_vm12 = vcmp.gt.f32.partialorder %v1714_v29, 0.0  ;;  %v1842_v40 = vmul.f32 0.01, %v1714_v29  ;;  %v1651_v17 = vmul.f32 %v6192_v49, %v6043_v50  ;;  %v713_v45 = vmul.f32 %v6192_v49, %v6053_v7 }
 0x14a   :  { %v6200_v10 = vpop.f32.mrb[49].mxu0  ;;  %v6202_v57 = vpop.f32.mrb[49].mxu1  ;;  %vm846_vm13 = vcmp.gt.f32.partialorder %v782_v4, 0.0  ;;  %v6231_v34 = vsel %vm848_vm11, %v784_v25, %v912_v53  ;;  %v910_v62 = vmul.f32 0.01, %v782_v4  ;;  %v1649_v25 = vmul.f32 %v6192_v49, %v6055_v0 }
 0x14b   :  { %v6206_v13 = vpop.f32.mrb[50].mxu0  ;;  %v6208_v6 = vpop.f32.mrb[50].mxu1  ;;  %7909 = vst [vmem:[#allocation69_spill] sm:$0xff] %v6231_v34  ;;  %v6240_v8 = vsel %vm1778_vm12, %v1714_v29, %v1842_v40  ;;  %vm1776_vm0 = vcmp.gt.f32.partialorder %v1712_v51, 0.0  ;;  %v1840_v29 = vmul.f32 0.01, %v1712_v51  ;;  %v785_v7 = vadd.f32 %v6180_v54, %v715_v60 }
 0x14c   :  { %v6214_v5 = vpop.f32.mrb[51].mxu0  ;;  %v6216_v48 = vpop.f32.mrb[51].mxu1  ;;  %7910 = vst [vmem:[#allocation70_spill] sm:$0xff] %v6240_v8  ;;  %v6254_v22 = vsel %vm846_vm13, %v782_v4, %v910_v62  ;;  %v1715_v32 = vadd.f32 %v6180_v54, %v1651_v17  ;;  %v783_v0 = vadd.f32 %v6180_v54, %v713_v45  ;;  %v1713_v27 = vadd.f32 %v6180_v54, %v1649_v25 }
 0x14d   :  { %7911 = vst [vmem:[#allocation71_spill] sm:$0xff] %v6254_v22  ;;  %v6268_v4 = vsel %vm1776_vm0, %v1712_v51, %v1840_v29  ;;  %v718_v62 = vmul.f32 %v6192_v49, %v6074_v14  ;;  %v1654_v20 = vmul.f32 %v6192_v49, %v6076_v59  ;;  %v716_v60 = vmul.f32 %v6192_v49, %v6080_v63 }
 0x14e   :  { %7912 = vst [vmem:[#allocation72_spill] sm:$0xff] %v6268_v4  ;;  %vm849_vm14 = vcmp.gt.f32.partialorder %v785_v7, 0.0  ;;  %v913_v17 = vmul.f32 0.01, %v785_v7  ;;  %vm1779_vm15 = vcmp.gt.f32.partialorder %v1715_v32, 0.0  ;;  %vm847_vm1 = vcmp.gt.f32.partialorder %v783_v0, 0.0 }
 0x14f   :  { %v1843_v25 = vmul.f32 0.01, %v1715_v32  ;;  %v911_v8 = vmul.f32 0.01, %v783_v0  ;;  %vm1777_vm2 = vcmp.gt.f32.partialorder %v1713_v27, 0.0  ;;  %v788_v14 = vadd.f32 %v6180_v54, %v718_v62 }
 0x150   :  { %v6278_v51 = vsel %vm849_vm14, %v785_v7, %v913_v17  ;;  %v1841_v29 = vmul.f32 0.01, %v1713_v27  ;;  %v1718_v59 = vadd.f32 %v6180_v54, %v1654_v20  ;;  %v786_v45 = vadd.f32 %v6180_v54, %v716_v60 }
 0x151   :  { %v6236_v41 = vpop.f32.mrb[52].mxu0  ;;  %v6238_v52 = vpop.f32.mrb[52].mxu1  ;;  %7913 = vst [vmem:[#allocation73_spill] sm:$0xff] %v6278_v51  ;;  %v6282_v34 = vsel %vm1779_vm15, %v1715_v32, %v1843_v25  ;;  %v6284_v63 = vsel %vm847_vm1, %v783_v0, %v911_v8  ;;  %v1652_v4 = vmul.f32 %v6192_v49, %v6082_v55  ;;  %vm852_vm3 = vcmp.gt.f32.partialorder %v788_v14, 0.0 }
 0x152   :  { %v6248_v53 = vpop.f32.mrb[53].mxu0  ;;  %v6250_v58 = vpop.f32.mrb[53].mxu1  ;;  %7914 = vst [vmem:[#allocation74_spill] sm:$0xff] %v6282_v34  ;;  %7915 = vst [vmem:[#allocation75_spill] sm:$0xff] %v6284_v63  ;;  %v6295_v17 = vsel %vm1777_vm2, %v1713_v27, %v1841_v29  ;;  %v916_v20 = vmul.f32 0.01, %v788_v14  ;;  %v719_v7 = vmul.f32 %v6192_v49, %v6089_v43  ;;  %v717_v63 = vmul.f32 %v6192_v49, %v6101_v37 }
 0x153   :  { %v6256_v40 = vpop.f32.mrb[54].mxu0  ;;  %v6258_v50 = vpop.f32.mrb[54].mxu1  ;;  %7916 = vst [vmem:[#allocation76_spill] sm:$0xff] %v6295_v17  ;;  %vm1782_vm4 = vcmp.gt.f32.partialorder %v1718_v59, 0.0  ;;  %v1846_v55 = vmul.f32 0.01, %v1718_v59  ;;  %v1716_v29 = vadd.f32 %v6180_v54, %v1652_v4  ;;  %v1655_v17 = vmul.f32 %v6192_v49, %v6091_v31 }
 0x154   :  { %v6264_v39 = vpop.f32.mrb[55].mxu0  ;;  %v6266_v44 = vpop.f32.mrb[55].mxu1  ;;  %vm850_vm5 = vcmp.gt.f32.partialorder %v786_v45, 0.0  ;;  %v6307_v25 = vsel %vm852_vm3, %v788_v14, %v916_v20  ;;  %v914_v27 = vmul.f32 0.01, %v786_v45  ;;  %v1653_v14 = vmul.f32 %v6192_v49, %v6103_v61 }
 0x155   :  { %7917 = vst [vmem:[#allocation77_spill] sm:$0xff] %v6307_v25  ;;  %v6316_v0 = vsel %vm1782_vm4, %v1718_v59, %v1846_v55  ;;  %vm1780_vm6 = vcmp.gt.f32.partialorder %v1716_v29, 0.0  ;;  %v1844_v43 = vmul.f32 0.01, %v1716_v29  ;;  %v789_v33 = vadd.f32 %v6180_v54, %v719_v7 }
 0x156   :  { %7918 = vst [vmem:[#allocation78_spill] sm:$0xff] %v6316_v0  ;;  %v6326_v20 = vsel %vm850_vm5, %v786_v45, %v914_v27  ;;  %v1719_v59 = vadd.f32 %v6180_v54, %v1655_v17  ;;  %v787_v55 = vadd.f32 %v6180_v54, %v717_v63  ;;  %v1717_v31 = vadd.f32 %v6180_v54, %v1653_v14 }
 0x157   :  { %7919 = vst [vmem:[#allocation79_spill] sm:$0xff] %v6326_v20  ;;  %v6332_v26 = vsel %vm1780_vm6, %v1716_v29, %v1844_v43  ;;  %v722_v37 = vmul.f32 %v6192_v49, %v6128_v21  ;;  %v1658_v61 = vmul.f32 %v6192_v49, %v6130_v9  ;;  %v720_v45 = vmul.f32 %v6192_v49, %v6139_v35 }
 0x158   :  { %7920 = vst [vmem:[#allocation80_spill] sm:$0xff] %v6332_v26  ;;  %vm853_vm7 = vcmp.gt.f32.partialorder %v789_v33, 0.0  ;;  %v917_v17 = vmul.f32 0.01, %v789_v33  ;;  %vm1783_vm8 = vcmp.gt.f32.partialorder %v1719_v59, 0.0  ;;  %vm851_vm9 = vcmp.gt.f32.partialorder %v787_v55, 0.0 }
 0x159   :  { %v6289_v22 = vpop.f32.mrb[56].mxu0  ;;  %v6291_v36 = vpop.f32.mrb[56].mxu1  ;;  %v1847_v29 = vmul.f32 0.01, %v1719_v59  ;;  %v915_v14 = vmul.f32 0.01, %v787_v55  ;;  %v792_v43 = vadd.f32 %v6180_v54, %v722_v37  ;;  %v1722_v35 = vadd.f32 %v6180_v54, %v1658_v61 }
 0x15a   :  { %v6297_v32 = vpop.f32.mrb[57].mxu0  ;;  %v6299_v8 = vpop.f32.mrb[57].mxu1  ;;  %vm1781_vm10 = vcmp.gt.f32.partialorder %v1717_v31, 0.0  ;;  %v6346_v21 = vsel %vm853_vm7, %v789_v33, %v917_v17  ;;  %v1845_v9 = vmul.f32 0.01, %v1717_v31  ;;  %v790_v0 = vadd.f32 %v6180_v54, %v720_v45 }
 0x15b   :  { %v6303_v62 = vpop.f32.mrb[58].mxu0  ;;  %v6305_v60 = vpop.f32.mrb[58].mxu1  ;;  %7921 = vst [vmem:[#allocation81_spill] sm:$0xff] %v6346_v21  ;;  %v6354_v26 = vsel %vm1783_vm8, %v1719_v59, %v1847_v29  ;;  %v6356_v20 = vsel %vm851_vm9, %v787_v55, %v915_v14  ;;  %v1656_v25 = vmul.f32 %v6192_v49, %v6141_v1  ;;  %vm856_vm11 = vcmp.gt.f32.partialorder %v792_v43, 0.0 }
 0x15c   :  { %v6312_v34 = vpop.f32.mrb[59].mxu0  ;;  %v6314_v51 = vpop.f32.mrb[59].mxu1  ;;  %7922 = vst [vmem:[#allocation82_spill] sm:$0xff] %v6354_v26  ;;  %7923 = vst [vmem:[#allocation83_spill] sm:$0xff] %v6356_v20  ;;  %v6367_v61 = vsel %vm1781_vm10, %v1717_v31, %v1845_v9  ;;  %v920_v12 = vmul.f32 0.01, %v792_v43  ;;  %v723_v31 = vmul.f32 %v6192_v49, %v6147_v16  ;;  %v1659_v37 = vmul.f32 %v6192_v49, %v6149_v15 }
 0x15d   :  { %7924 = vst [vmem:[#allocation84_spill] sm:$0xff] %v6367_v61  ;;  %vm1786_vm12 = vcmp.gt.f32.partialorder %v1722_v35, 0.0  ;;  %v1850_v1 = vmul.f32 0.01, %v1722_v35  ;;  %vm854_vm13 = vcmp.gt.f32.partialorder %v790_v0, 0.0  ;;  %v1720_v11 = vadd.f32 %v6180_v54, %v1656_v25 }
 0x15e   :  { %v6375_v29 = vsel %vm856_vm11, %v792_v43, %v920_v12  ;;  %v918_v14 = vmul.f32 0.01, %v790_v0  ;;  %v721_v26 = vmul.f32 %v6192_v49, %v6153_v28  ;;  %v1657_v45 = vmul.f32 %v6192_v49, %v6155_v30 }
 0x15f   :  { %7925 = vst [vmem:[#allocation85_spill] sm:$0xff] %v6375_v29  ;;  %v6380_v9 = vsel %vm1786_vm12, %v1722_v35, %v1850_v1  ;;  %vm1784_vm0 = vcmp.gt.f32.partialorder %v1720_v11, 0.0  ;;  %v1848_v25 = vmul.f32 0.01, %v1720_v11  ;;  %v793_v35 = vadd.f32 %v6180_v54, %v723_v31 }
 0x160   :  { %7926 = vst [vmem:[#allocation86_spill] sm:$0xff] %v6380_v9  ;;  %v6390_v43 = vsel %vm854_vm13, %v790_v0, %v918_v14  ;;  %v1723_v15 = vadd.f32 %v6180_v54, %v1659_v37  ;;  %v791_v28 = vadd.f32 %v6180_v54, %v721_v26  ;;  %v1721_v1 = vadd.f32 %v6180_v54, %v1657_v45 }
 0x161   :  { %v6342_v63 = vpop.f32.mrb[60].mxu0  ;;  %v6344_v27 = vpop.f32.mrb[60].mxu1  ;;  %7927 = vst [vmem:[#allocation87_spill] sm:$0xff] %v6390_v43  ;;  %v6404_v0 = vsel %vm1784_vm0, %v1720_v11, %v1848_v25  ;;  %v726_v14 = vmul.f32 %v6192_v49, %v6183_v3  ;;  %v1662_v12 = vmul.f32 %v6192_v49, %v6185_v42  ;;  %v724_v31 = vmul.f32 %v6192_v49, %v6200_v10 }
 0x162   :  { %v6350_v4 = vpop.f32.mrb[61].mxu0  ;;  %v6352_v7 = vpop.f32.mrb[61].mxu1  ;;  %7928 = vst [vmem:[#allocation88_spill] sm:$0xff] %v6404_v0  ;;  %vm857_vm14 = vcmp.gt.f32.partialorder %v793_v35, 0.0  ;;  %v921_v9 = vmul.f32 0.01, %v793_v35  ;;  %v1660_v43 = vmul.f32 %v6192_v49, %v6202_v57  ;;  %v725_v47 = vmul.f32 %v6192_v49, %v6214_v5 }
 0x163   :  { %v6361_v33 = vpop.f32.mrb[62].mxu0  ;;  %v6363_v17 = vpop.f32.mrb[62].mxu1  ;;  %vm1787_vm15 = vcmp.gt.f32.partialorder %v1723_v15, 0.0  ;;  %v1851_v3 = vmul.f32 0.01, %v1723_v15  ;;  %vm855_vm1 = vcmp.gt.f32.partialorder %v791_v28, 0.0  ;;  %v796_v21 = vadd.f32 %v6180_v54, %v726_v14 }
 0x164   :  { %v6369_v59 = vpop.f32.mrb[63].mxu0  ;;  %v6371_v55 = vpop.f32.mrb[63].mxu1  ;;  %v919_v42 = vmul.f32 0.01, %v791_v28  ;;  %vm1785_vm2 = vcmp.gt.f32.partialorder %v1721_v1, 0.0  ;;  %v6422_v29 = vsel %vm857_vm14, %v793_v35, %v921_v9  ;;  %v1726_v2 = vadd.f32 %v6180_v54, %v1662_v12 }
 0x165   :  { %7929 = vst [vmem:[#allocation89_spill] sm:$0xff] %v6422_v29  ;;  %v1849_v10 = vmul.f32 0.01, %v1721_v1  ;;  %v6426_v56 = vsel %vm1787_vm15, %v1723_v15, %v1851_v3  ;;  %v794_v0 = vadd.f32 %v6180_v54, %v724_v31  ;;  %vm860_vm3 = vcmp.gt.f32.partialorder %v796_v21, 0.0 }
 0x166   :  { %7930 = vst [vmem:[#allocation90_spill] sm:$0xff] %v6426_v56  ;;  %v6428_v45 = vsel %vm855_vm1, %v791_v28, %v919_v42  ;;  %v924_v9 = vmul.f32 0.01, %v796_v21  ;;  %vm1790_vm4 = vcmp.gt.f32.partialorder %v1726_v2, 0.0  ;;  %v1854_v12 = vmul.f32 0.01, %v1726_v2 }
 0x167   :  { %7931 = vst [vmem:[#allocation91_spill] sm:$0xff] %v6428_v45  ;;  %v6435_v46 = vsel %vm1785_vm2, %v1721_v1, %v1849_v10  ;;  %vm858_vm5 = vcmp.gt.f32.partialorder %v794_v0, 0.0  ;;  %v922_v57 = vmul.f32 0.01, %v794_v0  ;;  %v1724_v31 = vadd.f32 %v6180_v54, %v1660_v43 }
 0x168   :  { %7932 = vst [vmem:[#allocation92_spill] sm:$0xff] %v6435_v46  ;;  %v6443_v14 = vsel %vm860_vm3, %v796_v21, %v924_v9  ;;  %v727_v1 = vmul.f32 %v6192_v49, %v6206_v13  ;;  %v6452_v10 = vsel %vm1790_vm4, %v1726_v2, %v1854_v12  ;;  %v1663_v35 = vmul.f32 %v6192_v49, %v6208_v6 }
 0x169   :  { %v6392_v61 = vpop.f32.mrb[64].mxu0  ;;  %v6394_v16 = vpop.f32.mrb[64].mxu1  ;;  %7933 = vst [vmem:[#allocation93_spill] sm:$0xff] %v6443_v14  ;;  %7934 = vst [vmem:[#allocation94_spill] sm:$0xff] %v6452_v10  ;;  %v1661_v21 = vmul.f32 %v6192_v49, %v6216_v48  ;;  %v6467_v46 = vsel %vm858_vm5, %v794_v0, %v922_v57  ;;  %vm1788_vm6 = vcmp.gt.f32.partialorder %v1724_v31, 0.0  ;;  %v795_v45 = vadd.f32 %v6180_v54, %v725_v47 }
 0x16a   :  { %v6400_v30 = vpop.f32.mrb[65].mxu0  ;;  %v6402_v20 = vpop.f32.mrb[65].mxu1  ;;  %7935 = vst [vmem:[#allocation95_spill] sm:$0xff] %v6467_v46  ;;  %v1852_v2 = vmul.f32 0.01, %v1724_v31  ;;  %v797_v5 = vadd.f32 %v6180_v54, %v727_v1  ;;  %v1727_v48 = vadd.f32 %v6180_v54, %v1663_v35  ;;  %v730_v0 = vmul.f32 %v6192_v49, %v6236_v41 }
 0x16b   :  { %v6412_v37 = vpop.f32.mrb[66].mxu0  ;;  %v6414_v26 = vpop.f32.mrb[66].mxu1  ;;  %v1725_v56 = vadd.f32 %v6180_v54, %v1661_v21  ;;  %v1666_v57 = vmul.f32 %v6192_v49, %v6238_v52  ;;  %v728_v13 = vmul.f32 %v6192_v49, %v6248_v53  ;;  %vm859_vm9 = vcmp.gt.f32.partialorder %v795_v45, 0.0 }
 0x16c   :  { %v6418_v11 = vpop.f32.mrb[67].mxu0  ;;  %v6420_v25 = vpop.f32.mrb[67].mxu1  ;;  %v6477_v29 = vsel %vm1788_vm6, %v1724_v31, %v1852_v2  ;;  %vm861_vm7 = vcmp.gt.f32.partialorder %v797_v5, 0.0  ;;  %v925_v35 = vmul.f32 0.01, %v797_v5  ;;  %vm1791_vm8 = vcmp.gt.f32.partialorder %v1727_v48, 0.0 }
 0x16d   :  { %7936 = vst [vmem:[#allocation96_spill] sm:$0xff] %v6477_v29  ;;  %v1855_v47 = vmul.f32 0.01, %v1727_v48  ;;  %v923_v21 = vmul.f32 0.01, %v795_v45  ;;  %vm1789_vm10 = vcmp.gt.f32.partialorder %v1725_v56, 0.0  ;;  %v800_v41 = vadd.f32 %v6180_v54, %v730_v0 }
 0x16e   :  { %v6487_v31 = vsel %vm861_vm7, %v797_v5, %v925_v35  ;;  %v1853_v2 = vmul.f32 0.01, %v1725_v56  ;;  %v1730_v52 = vadd.f32 %v6180_v54, %v1666_v57  ;;  %v798_v29 = vadd.f32 %v6180_v54, %v728_v13 }
 0x16f   :  { %7937 = vst [vmem:[#allocation97_spill] sm:$0xff] %v6487_v31  ;;  %v6495_v14 = vsel %vm1791_vm8, %v1727_v48, %v1855_v47  ;;  %v6497_v1 = vsel %vm859_vm9, %v795_v45, %v923_v21  ;;  %v1664_v46 = vmul.f32 %v6192_v49, %v6250_v58  ;;  %vm864_vm11 = vcmp.gt.f32.partialorder %v800_v41, 0.0 }
 0x170   :  { %7939 = vst [vmem:[#allocation99_spill] sm:$0xff] %v6495_v14  ;;  %7940 = vst [vmem:[#allocation100_spill] sm:$0xff] %v6497_v1  ;;  %v6508_v57 = vsel %vm1789_vm10, %v1725_v56, %v1853_v2  ;;  %vm1794_vm12 = vcmp.gt.f32.partialorder %v1730_v52, 0.0  ;;  %v1858_v58 = vmul.f32 0.01, %v1730_v52  ;;  %vm862_vm13 = vcmp.gt.f32.partialorder %v798_v29, 0.0 }
 0x171   :  { %v6439_v15 = vpop.f32.mrb[68].mxu0  ;;  %v6441_v28 = vpop.f32.mrb[68].mxu1  ;;  %7942 = vst [vmem:[#allocation102_spill] sm:$0xff] %v6508_v57  ;;  %v926_v56 = vmul.f32 0.01, %v798_v29  ;;  %v1728_v2 = vadd.f32 %v6180_v54, %v1664_v46  ;;  %v731_v0 = vmul.f32 %v6192_v49, %v6256_v40  ;;  %v1667_v13 = vmul.f32 %v6192_v49, %v6258_v50 }
 0x172   :  { %v6448_v3 = vpop.f32.mrb[69].mxu0  ;;  %v6450_v42 = vpop.f32.mrb[69].mxu1  ;;  %v6525_v14 = vsel %vm1794_vm12, %v1730_v52, %v1858_v58  ;;  %v729_v57 = vmul.f32 %v6192_v49, %v6264_v39  ;;  %v1665_v1 = vmul.f32 %v6192_v49, %v6266_v44  ;;  %v734_v44 = vmul.f32 %v6192_v49, %v6289_v22 }
 0x173   :  { %v6460_v9 = vpop.f32.mrb[70].mxu0  ;;  %v6462_v43 = vpop.f32.mrb[70].mxu1  ;;  %7944 = vst [vmem:[#allocation104_spill] sm:$0xff] %v6525_v14  ;;  %vm1792_vm0 = vcmp.gt.f32.partialorder %v1728_v2, 0.0  ;;  %v1856_v46 = vmul.f32 0.01, %v1728_v2  ;;  %v801_v40 = vadd.f32 %v6180_v54, %v731_v0  ;;  %v1731_v52 = vadd.f32 %v6180_v54, %v1667_v13 }
 0x174   :  { %v6469_v12 = vpop.f32.mrb[71].mxu0  ;;  %v6471_v6 = vpop.f32.mrb[71].mxu1  ;;  %v799_v58 = vadd.f32 %v6180_v54, %v729_v57  ;;  %v1729_v50 = vadd.f32 %v6180_v54, %v1665_v1  ;;  %v1670_v39 = vmul.f32 %v6192_v49, %v6291_v36 }
 0x175   :  { %v6541_v31 = vsel %vm1792_vm0, %v1728_v2, %v1856_v46  ;;  %vm865_vm14 = vcmp.gt.f32.partialorder %v801_v40, 0.0  ;;  %v929_v1 = vmul.f32 0.01, %v801_v40  ;;  %vm1795_vm15 = vcmp.gt.f32.partialorder %v1731_v52, 0.0 }
 0x176   :  { %7946 = vst [vmem:[#allocation106_spill] sm:$0xff] %v6541_v31  ;;  %v1859_v22 = vmul.f32 0.01, %v1731_v52  ;;  %vm863_vm1 = vcmp.gt.f32.partialorder %v799_v58, 0.0  ;;  %v927_v36 = vmul.f32 0.01, %v799_v58  ;;  %v1734_v14 = vadd.f32 %v6180_v54, %v1670_v39 }
 0x177   :  { %vm1793_vm2 = vcmp.gt.f32.partialorder %v1729_v50, 0.0  ;;  %v6559_v46 = vsel %vm865_vm14, %v801_v40, %v929_v1 }
 0x178   :  { %7949 = vst [vmem:[#allocation109_spill] sm:$0xff] %v6559_v46  ;;  %v6567_v31 = vsel %vm1795_vm15, %v1731_v52, %v1859_v22  ;;  %vm1798_vm4 = vcmp.gt.f32.partialorder %v1734_v14, 0.0  ;;  %v1669_v52 = vmul.f32 %v6192_v49, %v6314_v51 }
 0x179   :  { %v6491_v10 = vpop.f32.mrb[72].mxu0  ;;  %v6493_v53 = vpop.f32.mrb[72].mxu1  ;;  %7951 = vst [vmem:[#allocation111_spill] sm:$0xff] %v6567_v31 }
 0x17a   :  { %7938 = vst [vmem:[#allocation98_spill] sm:$0xff] %v6493_v53  ;;  %v6502_v5 = vpop.f32.mrb[73].mxu0  ;;  %v6504_v35 = vpop.f32.mrb[73].mxu1  ;;  %v928_v53 = vmul.f32 0.01, %v800_v41 }
 0x17b   :  { %7941 = vst [vmem:[#allocation101_spill] sm:$0xff] %v6504_v35  ;;  %v6510_v48 = vpop.f32.mrb[74].mxu0  ;;  %v6512_v45 = vpop.f32.mrb[74].mxu1 }
 0x17c   :  { %v6516_v47 = vpop.f32.mrb[75].mxu0  ;;  %v6518_v21 = vpop.f32.mrb[75].mxu1  ;;  %v6520_v35 = vsel %vm864_vm11, %v800_v41, %v928_v53  ;;  %v6535_v53 = vsel %vm862_vm13, %v798_v29, %v926_v56  ;;  %v732_v29 = vmul.f32 %v6192_v49, %v6297_v32  ;;  %v1857_v32 = vmul.f32 0.01, %v1729_v50 }
 0x17d   :  { %7943 = vst [vmem:[#allocation103_spill] sm:$0xff] %v6520_v35  ;;  %7945 = vst [vmem:[#allocation105_spill] sm:$0xff] %v6535_v53  ;;  %v804_v41 = vadd.f32 %v6180_v54, %v734_v44  ;;  %v6569_v53 = vsel %vm863_vm1, %v799_v58, %v927_v36  ;;  %v1862_v58 = vmul.f32 0.01, %v1734_v14  ;;  %v735_v36 = vmul.f32 %v6192_v49, %v6303_v62 }
 0x17e   :  { %7952 = vst [vmem:[#allocation112_spill] sm:$0xff] %v6569_v53  ;;  %v6580_v39 = vsel %vm1793_vm2, %v1729_v50, %v1857_v32  ;;  %v1671_v50 = vmul.f32 %v6192_v49, %v6305_v60  ;;  %v733_v32 = vmul.f32 %v6192_v49, %v6312_v34  ;;  %vm3984_vm1 = vcmask 130048  }
 0x17f   :  { %7954 = vst [vmem:[#allocation114_spill] sm:$0xff] %v6580_v39  ;;  %vm868_vm3 = vcmp.gt.f32.partialorder %v804_v41, 0.0  ;;  %v805_v34 = vadd.f32 %v6180_v54, %v735_v36  ;;  %v1733_v39 = vadd.f32 %v6180_v54, %v1669_v52  ;;  %v736_v36 = vmul.f32 %v6192_v49, %v6350_v4 }
 0x180   :  { %v803_v51 = vadd.f32 %v6180_v54, %v733_v32 }
 0x181   :  { %v6549_v56 = vpop.f32.mrb[76].mxu0  ;;  %v6551_v0 = vpop.f32.mrb[76].mxu1  ;;  %vm869_vm7 = vcmp.gt.f32.partialorder %v805_v34, 0.0  ;;  %vm1797_vm10 = vcmp.gt.f32.partialorder %v1733_v39, 0.0  ;;  %v806_v52 = vadd.f32 %v6180_v54, %v736_v36 }
 0x182   :  { %v6555_v13 = vpop.f32.mrb[77].mxu0  ;;  %v6557_v2 = vpop.f32.mrb[77].mxu1  ;;  %vm867_vm9 = vcmp.gt.f32.partialorder %v803_v51, 0.0 }
 0x183   :  { %7947 = vst [vmem:[#allocation107_spill] sm:$0xff] %v6555_v13  ;;  %7948 = vst [vmem:[#allocation108_spill] sm:$0xff] %v6557_v2  ;;  %v6563_v35 = vpop.f32.mrb[78].mxu0  ;;  %v6565_v57 = vpop.f32.mrb[78].mxu1  ;;  %v802_v2 = vadd.f32 %v6180_v54, %v732_v29  ;;  %v1668_v13 = vmul.f32 %v6192_v49, %v6299_v8  ;;  %vm870_vm13 = vcmp.gt.f32.partialorder %v806_v52, 0.0 }
 0x184   :  { %7950 = vst [vmem:[#allocation110_spill] sm:$0xff] %v6565_v57  ;;  %v6574_v40 = vpop.f32.mrb[79].mxu0  ;;  %v6576_v1 = vpop.f32.mrb[79].mxu1  ;;  %v932_v57 = vmul.f32 0.01, %v804_v41 }
 0x185   :  { %7953 = vst [vmem:[#allocation113_spill] sm:$0xff] %v6576_v1  ;;  %vm866_vm5 = vcmp.gt.f32.partialorder %v802_v2, 0.0  ;;  %v930_v8 = vmul.f32 0.01, %v802_v2  ;;  %v1732_v22 = vadd.f32 %v6180_v54, %v1668_v13  ;;  %v6589_v1 = vsel %vm1798_vm4, %v1734_v14, %v1862_v58 }
 0x186   :  { %v6584_v29 = vsel %vm868_vm3, %v804_v41, %v932_v57  ;;  %7956 = vst [vmem:[#allocation116_spill] sm:$0xff] %v6589_v1  ;;  %v1735_v58 = vadd.f32 %v6180_v54, %v1671_v50  ;;  %v1674_v57 = vmul.f32 %v6192_v49, %v6344_v27  ;;  %v933_v1 = vmul.f32 0.01, %v805_v34 }
 0x187   :  { %7955 = vst [vmem:[#allocation115_spill] sm:$0xff] %v6584_v29  ;;  %v6603_v13 = vsel %vm866_vm5, %v802_v2, %v930_v8  ;;  %vm1796_vm6 = vcmp.gt.f32.partialorder %v1732_v22, 0.0  ;;  %v1860_v62 = vmul.f32 0.01, %v1732_v22  ;;  %v738_v8 = vmul.f32 %v6192_v49, %v6342_v63 }
 0x188   :  { %7957 = vst [vmem:[#allocation117_spill] sm:$0xff] %v6603_v13  ;;  %vm1799_vm8 = vcmp.gt.f32.partialorder %v1735_v58, 0.0  ;;  %v6631_v63 = vsel %vm869_vm7, %v805_v34, %v933_v1  ;;  %v1861_v27 = vmul.f32 0.01, %v1733_v39  ;;  %v1738_v4 = vadd.f32 %v6180_v54, %v1674_v57 }
 0x189   :  { %v6597_v44 = vpop.f32.mrb[80].mxu0  ;;  %v6599_v41 = vpop.f32.mrb[80].mxu1  ;;  %v6617_v2 = vsel %vm1796_vm6, %v1732_v22, %v1860_v62  ;;  %v1863_v22 = vmul.f32 0.01, %v1735_v58  ;;  %v931_v62 = vmul.f32 0.01, %v803_v51  ;;  %v808_v29 = vadd.f32 %v6180_v54, %v738_v8 }
 0x18a   :  { %v6605_v14 = vpop.f32.mrb[81].mxu0  ;;  %v6607_v60 = vpop.f32.mrb[81].mxu1  ;;  %7958 = vst [vmem:[#allocation118_spill] sm:$0xff] %v6617_v2  ;;  %7961 = vst [vmem:[#allocation121_spill] sm:$0xff] %v6631_v63  ;;  %v1672_v2 = vmul.f32 %v6192_v49, %v6352_v7  ;;  %vm1802_vm12 = vcmp.gt.f32.partialorder %v1738_v4, 0.0 }
 0x18b   :  { %v6613_v53 = vpop.f32.mrb[82].mxu0  ;;  %v6615_v31 = vpop.f32.mrb[82].mxu1  ;;  %v6635_v46 = vsel %vm1799_vm8, %v1735_v58, %v1863_v22  ;;  %vm872_vm11 = vcmp.gt.f32.partialorder %v808_v29, 0.0  ;;  %v936_v1 = vmul.f32 0.01, %v808_v29 }
 0x18c   :  { %v6625_v50 = vpop.f32.mrb[83].mxu0  ;;  %v6627_v32 = vpop.f32.mrb[83].mxu1  ;;  %7962 = vst [vmem:[#allocation122_spill] sm:$0xff] %v6635_v46  ;;  %v1866_v58 = vmul.f32 0.01, %v1738_v4  ;;  %v1736_v22 = vadd.f32 %v6180_v54, %v1672_v2 }
 0x18d   :  { %7959 = vst [vmem:[#allocation119_spill] sm:$0xff] %v6625_v50  ;;  %7960 = vst [vmem:[#allocation120_spill] sm:$0xff] %v6627_v32  ;;  %v6637_v32 = vsel %vm867_vm9, %v803_v51, %v931_v62  ;;  %v6644_v50 = vsel %vm1797_vm10, %v1733_v39, %v1861_v27  ;;  %v6656_v36 = vsel %vm872_vm11, %v808_v29, %v936_v1  ;;  %v934_v39 = vmul.f32 0.01, %v806_v52 }
 0x18e   :  { %7963 = vst [vmem:[#allocation123_spill] sm:$0xff] %v6637_v32  ;;  %7964 = vst [vmem:[#allocation124_spill] sm:$0xff] %v6644_v50  ;;  %v739_v62 = vmul.f32 %v6192_v49, %v6361_v33  ;;  %v6665_v57 = vsel %vm1802_vm12, %v1738_v4, %v1866_v58  ;;  %v1675_v50 = vmul.f32 %v6192_v49, %v6363_v17  ;;  %vm1800_vm0 = vcmp.gt.f32.partialorder %v1736_v22, 0.0 }
 0x18f   :  { %7965 = vst [vmem:[#allocation125_spill] sm:$0xff] %v6656_v36  ;;  %7966 = vst [vmem:[#allocation126_spill] sm:$0xff] %v6665_v57  ;;  %v737_v32 = vmul.f32 %v6192_v49, %v6369_v59  ;;  %v1673_v29 = vmul.f32 %v6192_v49, %v6371_v55  ;;  %v6680_v46 = vsel %vm870_vm13, %v806_v52, %v934_v39  ;;  %v1864_v4 = vmul.f32 0.01, %v1736_v22 }
 0x190   :  { %7968 = vst [vmem:[#allocation128_spill] sm:$0xff] %v6680_v46  ;;  %v809_v17 = vadd.f32 %v6180_v54, %v739_v62  ;;  %v1739_v58 = vadd.f32 %v6180_v54, %v1675_v50  ;;  %v3602_v33 = vmul.f32 %v6192_v49, %v6394_v16  ;;  %v2606_v46 = vmul.f32 %v6192_v49, %v6400_v30 }
 0x191   :  { %v6646_v34 = vpop.f32.mrb[84].mxu0  ;;  %v6648_v8 = vpop.f32.mrb[84].mxu1  ;;  %v807_v59 = vadd.f32 %v6180_v54, %v737_v32  ;;  %v1737_v55 = vadd.f32 %v6180_v54, %v1673_v29  ;;  %v6686_v63 = vsel %vm1800_vm0, %v1736_v22, %v1864_v4  ;;  %v7977_v30 = vmax.f32 %v5618_v18, %v5620_v19 }
 0x192   :  { %v6652_v51 = vpop.f32.mrb[85].mxu0  ;;  %v6654_v7 = vpop.f32.mrb[85].mxu1  ;;  %7969 = vst [vmem:[#allocation129_spill] sm:$0xff] %v6686_v63  ;;  %vm873_vm14 = vcmp.gt.f32.partialorder %v809_v17, 0.0  ;;  %v937_v39 = vmul.f32 0.01, %v809_v17  ;;  %v7978_v19 = vmax.f32 %v5626_v23, %v5628_v24 }
 0x193   :  { %v6661_v27 = vpop.f32.mrb[86].mxu0  ;;  %v6663_v13 = vpop.f32.mrb[86].mxu1  ;;  %vm1803_vm15 = vcmp.gt.f32.partialorder %v1739_v58, 0.0  ;;  %v1867_v50 = vmul.f32 0.01, %v1739_v58  ;;  %vm871_vm2 = vcmp.gt.f32.partialorder %v807_v59, 0.0 }
 0x194   :  { %v6673_v1 = vpop.f32.mrb[87].mxu0  ;;  %v6675_v2 = vpop.f32.mrb[87].mxu1  ;;  %v935_v32 = vmul.f32 0.01, %v807_v59  ;;  %vm1801_vm3 = vcmp.gt.f32.partialorder %v1737_v55, 0.0  ;;  %v6694_v62 = vsel %vm873_vm14, %v809_v17, %v937_v39  ;;  %v3600_v17 = vmul.f32 %v6192_v49, %v6402_v20 }
 0x195   :  { %7967 = vst [vmem:[#allocation127_spill] sm:$0xff] %v6675_v2  ;;  %v2608_v2 = vmul.f32 %v6192_v49, %v6392_v61  ;;  %7970 = vst [vmem:[#allocation130_spill] sm:$0xff] %v6694_v62  ;;  %v1865_v22 = vmul.f32 0.01, %v1737_v55  ;;  %v3666_v61 = vadd.f32 %v6180_v54, %v3602_v33  ;;  %v6702_v52 = vsel %vm1803_vm15, %v1739_v58, %v1867_v50 }
 0x196   :  { %7971 = vst [vmem:[#allocation131_spill] sm:$0xff] %v6702_v52  ;;  %v6704_v63 = vsel %vm871_vm2, %v807_v59, %v935_v32  ;;  %v2670_v32 = vadd.f32 %v6180_v54, %v2606_v46  ;;  %v3603_v52 = vmul.f32 %v6192_v49, %v6414_v26  ;;  %v3601_v26 = vmul.f32 %v6192_v49, %v6420_v25 }
 0x197   :  { %v2672_v29 = vadd.f32 %v6180_v54, %v2608_v2  ;;  %7972 = vst [vmem:[#allocation132_spill] sm:$0xff] %v6704_v63  ;;  %v6716_v33 = vsel %vm1801_vm3, %v1737_v55, %v1865_v22  ;;  %vm3730_vm5 = vcmp.gt.f32.partialorder %v3666_v61, 0.0  ;;  %v3794_v20 = vmul.f32 0.01, %v3666_v61 }
 0x198   :  { %7974 = vst [vmem:[#allocation134_spill] sm:$0xff] %v6716_v33  ;;  %v3664_v55 = vadd.f32 %v6180_v54, %v3600_v17  ;;  %v2609_v22 = vmul.f32 %v6192_v49, %v6412_v37  ;;  %vm2734_vm6 = vcmp.gt.f32.partialorder %v2670_v32, 0.0  ;;  %v2798_v46 = vmul.f32 0.01, %v2670_v32 }
 0x199   :  { %v6698_v4 = vpop.f32.mrb[88].mxu0  ;;  %v6700_v16 = vpop.f32.mrb[88].mxu1  ;;  %vm2736_vm4 = vcmp.gt.f32.partialorder %v2672_v29, 0.0  ;;  %v2800_v58 = vmul.f32 0.01, %v2672_v29  ;;  %v3858_v63 = vsel %vm3730_vm5, %v3666_v61, %v3794_v20  ;;  %v2607_v37 = vmul.f32 %v6192_v49, %v6418_v11 }
 0x19a   :  { %v6710_v39 = vpop.f32.mrb[89].mxu0  ;;  %v6712_v57 = vpop.f32.mrb[89].mxu1  ;;  %vm3728_vm7 = vcmp.gt.f32.partialorder %v3664_v55, 0.0  ;;  %v3792_v62 = vmul.f32 0.01, %v3664_v55 }
 0x19b   :  { %7973 = vst [vmem:[#allocation133_spill] sm:$0xff] %v6712_v57  ;;  %v6718_v50 = vpop.f32.mrb[90].mxu0  ;;  %v6720_v59 = vpop.f32.mrb[90].mxu1  ;;  %v2864_v2 = vsel %vm2736_vm4, %v2672_v29, %v2800_v58  ;;  %v3667_v29 = vadd.f32 %v6180_v54, %v3603_v52  ;;  %v2862_v58 = vsel %vm2734_vm6, %v2670_v32, %v2798_v46  ;;  %v2671_v25 = vadd.f32 %v6180_v54, %v2607_v37 }
 0x19c   :  { %v6725_v36 = vpop.f32.mrb[91].mxu0  ;;  %v6727_v57 = vpop.f32.mrb[91].mxu1  ;;  %v2928_v33 = vmax.f32 %v7977_v30, %v2864_v2  ;;  %v2926_v61 = vmax.f32 %v7978_v19, %v2862_v58  ;;  %v3856_v2 = vsel %vm3728_vm7, %v3664_v55, %v3792_v62  ;;  %v2612_v32 = vmul.f32 %v6192_v49, %v6439_v15 }
 0x19d   :  { %7975 = vst [vmem:[#allocation135_spill] sm:$0xff] %v6725_v36  ;;  %7976 = vst [vmem:[#allocation136_spill] sm:$0xff] %v6727_v57  ;;  %v2673_v57 = vadd.f32 %v6180_v54, %v2609_v22  ;;  %vm3731_vm9 = vcmp.gt.f32.partialorder %v3667_v29, 0.0  ;;  %v3795_v11 = vmul.f32 0.01, %v3667_v29  ;;  %v3606_v55 = vmul.f32 %v6192_v49, %v6441_v28 }
 0x19e   :  { %v3922_v17 = vmax.f32 %v2928_v33, %v3858_v63  ;;  %v3665_v33 = vadd.f32 %v6180_v54, %v3601_v26  ;;  %v3920_v62 = vmax.f32 %v2926_v61, %v3856_v2  ;;  %vm2735_vm10 = vcmp.gt.f32.partialorder %v2671_v25, 0.0 }
 0x19f   :  { %vm2737_vm8 = vcmp.gt.f32.partialorder %v2673_v57, 0.0  ;;  %v2801_v30 = vmul.f32 0.01, %v2673_v57  ;;  %v3859_v26 = vsel %vm3731_vm9, %v3667_v29, %v3795_v11  ;;  %v2799_v19 = vmul.f32 0.01, %v2671_v25  ;;  %v7982_v11 = vld [vmem:[#allocation4_spill] sm:$0xff] }
 0x1a0   :  { %3987 = vst.msk [vmem:[%s7718_s4 + $0x10] sm:$0xff] %vm3984_vm1, %v3922_v17  ;;  %v7979_v17 = vld [vmem:[#allocation2_spill] sm:$0xff]  ;;  %3985 = vst.msk [vmem:[%s7718_s4] sm:$0xff] %vm3984_vm1, %v3920_v62  ;;  %vm3729_vm11 = vcmp.gt.f32.partialorder %v3665_v33, 0.0  ;;  %v3793_v15 = vmul.f32 0.01, %v3665_v33  ;;  %v2676_v28 = vadd.f32 %v6180_v54, %v2612_v32  ;;  %v3604_v29 = vmul.f32 %v6192_v49, %v6450_v42 }
 0x1a1   :  { %v6743_v36 = vpop.f32.mrb[92].mxu0  ;;  %v6745_v18 = vpop.f32.mrb[92].mxu1  ;;  %v2865_v20 = vsel %vm2737_vm8, %v2673_v57, %v2801_v30  ;;  %v7980_v58 = vmax.f32 %v5640_v38, %v7979_v17  ;;  %v3670_v57 = vadd.f32 %v6180_v54, %v3606_v55  ;;  %v2863_v2 = vsel %vm2735_vm10, %v2671_v25, %v2799_v19  ;;  %v7981_v30 = vld [vmem:[#allocation3_spill] sm:$0xff] }
 0x1a2   :  { %v6750_v52 = vpop.f32.mrb[93].mxu0  ;;  %v6752_v63 = vpop.f32.mrb[93].mxu1  ;;  %v2610_v38 = vmul.f32 %v6192_v49, %v6448_v3  ;;  %vm2740_vm12 = vcmp.gt.f32.partialorder %v2676_v28, 0.0  ;;  %v2804_v62 = vmul.f32 0.01, %v2676_v28  ;;  %v3668_v3 = vadd.f32 %v6180_v54, %v3604_v29 }
 0x1a3   :  { %v6760_v23 = vpop.f32.mrb[94].mxu0  ;;  %v6762_v24 = vpop.f32.mrb[94].mxu1  ;;  %v2929_v37 = vmax.f32 %v7980_v58, %v2865_v20  ;;  %v7983_v20 = vmax.f32 %v7981_v30, %v7982_v11  ;;  %v3857_v58 = vsel %vm3729_vm11, %v3665_v33, %v3793_v15  ;;  %vm3734_vm13 = vcmp.gt.f32.partialorder %v3670_v57, 0.0 }
 0x1a4   :  { %v6768_v22 = vpop.f32.mrb[95].mxu0  ;;  %v6770_v46 = vpop.f32.mrb[95].mxu1  ;;  %v3798_v25 = vmul.f32 0.01, %v3670_v57  ;;  %v2674_v32 = vadd.f32 %v6180_v54, %v2610_v38  ;;  %v2613_v33 = vmul.f32 %v6192_v49, %v6460_v9  ;;  %v3607_v19 = vmul.f32 %v6192_v49, %v6462_v43  ;;  %v7986_v38 = vld [vmem:[#allocation6_spill] sm:$0xff] }
 0x1a5   :  { %v3923_v61 = vmax.f32 %v2929_v37, %v3859_v26  ;;  %v2927_v17 = vmax.f32 %v7983_v20, %v2863_v2  ;;  %v2868_v26 = vsel %vm2740_vm12, %v2676_v28, %v2804_v62  ;;  %v7985_v2 = vld [vmem:[#allocation5_spill] sm:$0xff]  ;;  %vm3732_vm14 = vcmp.gt.f32.partialorder %v3668_v3, 0.0 }
 0x1a6   :  { %v7987_v30 = vmax.f32 %v7985_v2, %v7986_v38  ;;  %v3862_v11 = vsel %vm3734_vm13, %v3670_v57, %v3798_v25  ;;  %vm2738_vm0 = vcmp.gt.f32.partialorder %v2674_v32, 0.0  ;;  %v2802_v20 = vmul.f32 0.01, %v2674_v32  ;;  %v7990_v38 = vld [vmem:[#allocation7_spill] sm:$0xff] }
 0x1a7   :  { %3988 = vst.msk [vmem:[%s7718_s4 + $0x18] sm:$0xff] %vm3984_vm1, %v3923_v61  ;;  %v3921_v37 = vmax.f32 %v2927_v17, %v3857_v58  ;;  %v3796_v9 = vmul.f32 0.01, %v3668_v3  ;;  %v2677_v43 = vadd.f32 %v6180_v54, %v2613_v33  ;;  %v3671_v17 = vadd.f32 %v6180_v54, %v3607_v19  ;;  %v6844_v19 = vld [vmem:[%s7716_s2] ss:$0 sm:$0xff] }
 0x1a8   :  { %v2932_v29 = vmax.f32 %v7987_v30, %v2868_v26  ;;  %v2866_v25 = vsel %vm2738_vm0, %v2674_v32, %v2802_v20  ;;  %v2611_v26 = vmul.f32 %v6192_v49, %v6469_v12  ;;  %v3605_v2 = vmul.f32 %v6192_v49, %v6471_v6  ;;  %v6837_v12 = vld [vmem:[%s7717_s3] ss:$0 sm:$0xff] }
 0x1a9   :  { %v6794_v55 = vpop.f32.mrb[96].mxu0  ;;  %v6796_v42 = vpop.f32.mrb[96].mxu1  ;;  %3986 = vst.msk [vmem:[%s7718_s4 + $0x8] sm:$0xff] %vm3984_vm1, %v3921_v37  ;;  %v7991_v37 = vld [vmem:[#allocation8_spill] sm:$0xff]  ;;  %vm2741_vm15 = vcmp.gt.f32.partialorder %v2677_v43, 0.0  ;;  %vm3735_vm2 = vcmp.gt.f32.partialorder %v3671_v17, 0.0 }
 0x1aa   :  { %7984 = vst [vmem:[#allocation2_spill] sm:$0xff] %v6796_v42  ;;  %v6802_v15 = vpop.f32.mrb[97].mxu0  ;;  %v6804_v61 = vpop.f32.mrb[97].mxu1  ;;  %v3926_v62 = vmax.f32 %v2932_v29, %v3862_v11  ;;  %v7992_v30 = vmax.f32 %v7990_v38, %v7991_v37  ;;  %v2805_v33 = vmul.f32 0.01, %v2677_v43  ;;  %v2675_v49 = vadd.f32 %v6837_v12, %v2611_v26  ;;  %v7993_v11 = vld [vmem:[#allocation98_spill] sm:$0xff] }
 0x1ab   :  { %v6809_v42 = vpop.f32.mrb[98].mxu0  ;;  %v6811_v28 = vpop.f32.mrb[98].mxu1  ;;  %v3799_v54 = vmul.f32 0.01, %v3671_v17  ;;  %v3669_v6 = vadd.f32 %v6837_v12, %v3605_v2  ;;  %v2616_v29 = vmul.f32 %v6844_v19, %v6491_v10  ;;  %v3610_v20 = vmul.f32 %v6844_v19, %v7993_v11  ;;  %v8001_v11 = vld [vmem:[#allocation101_spill] sm:$0xff] }
 0x1ac   :  { %7988 = vst [vmem:[#allocation3_spill] sm:$0xff] %v6809_v42  ;;  %7989 = vst [vmem:[#allocation4_spill] sm:$0xff] %v6811_v28  ;;  %v6819_v58 = vpop.f32.mrb[99].mxu0  ;;  %v6821_v57 = vpop.f32.mrb[99].mxu1  ;;  %v2930_v28 = vmax.f32 %v7992_v30, %v2866_v25  ;;  %v3860_v42 = vsel %vm3732_vm14, %v3668_v3, %v3796_v9  ;;  %v2869_v3 = vsel %vm2741_vm15, %v2677_v43, %v2805_v33  ;;  %v7994_v9 = vld [vmem:[#allocation9_spill] sm:$0xff]  ;;  %vm2739_vm3 = vcmp.gt.f32.partialorder %v2675_v49, 0.0 }
 0x1ad   :  { %3991 = vst.msk [vmem:[%s7718_s4 + $0x30] sm:$0xff] %vm3984_vm1, %v3926_v62  ;;  %v7995_v62 = vld [vmem:[#allocation10_spill] sm:$0xff]  ;;  %v3863_v26 = vsel %vm3735_vm2, %v3671_v17, %v3799_v54  ;;  %v2803_v2 = vmul.f32 0.01, %v2675_v49  ;;  %vm3733_vm4 = vcmp.gt.f32.partialorder %v3669_v6, 0.0  ;;  %v2680_v43 = vadd.f32 %v6837_v12, %v2616_v29  ;;  %v8003_v29 = vld [vmem:[#allocation12_spill] sm:$0xff] }
 0x1ae   :  { %v3924_v32 = vmax.f32 %v2930_v28, %v3860_v42  ;;  %v7996_v25 = vmax.f32 %v7994_v9, %v7995_v62  ;;  %v3797_v10 = vmul.f32 0.01, %v3669_v6  ;;  %v3674_v37 = vadd.f32 %v6837_v12, %v3610_v20 }
 0x1af   :  { %v2867_v54 = vsel %vm2739_vm3, %v2675_v49, %v2803_v2  ;;  %v3608_v9 = vmul.f32 %v6844_v19, %v8001_v11  ;;  %vm2744_vm5 = vcmp.gt.f32.partialorder %v2680_v43, 0.0  ;;  %v8007_v11 = vld [vmem:[#allocation14_spill] sm:$0xff] }
 0x1b0   :  { %v2933_v38 = vmax.f32 %v7996_v25, %v2869_v3  ;;  %3989 = vst.msk [vmem:[%s7718_s4 + $0x20] sm:$0xff] %vm3984_vm1, %v3924_v32  ;;  %v2614_v3 = vmul.f32 %v6844_v19, %v6502_v5  ;;  %v8002_v25 = vld [vmem:[#allocation11_spill] sm:$0xff]  ;;  %vm3738_vm6 = vcmp.gt.f32.partialorder %v3674_v37, 0.0  ;;  %v3802_v5 = vmul.f32 0.01, %v3674_v37 }
 0x1b1   :  { %v6853_v42 = vpop.f32.mrb[100].mxu0  ;;  %v6855_v28 = vpop.f32.mrb[100].mxu1 }
 0x1b2   :  { %7997 = vst [vmem:[#allocation5_spill] sm:$0xff] %v6853_v42  ;;  %7998 = vst [vmem:[#allocation6_spill] sm:$0xff] %v6855_v28  ;;  %v6863_v30 = vpop.f32.mrb[101].mxu0  ;;  %v6865_v17 = vpop.f32.mrb[101].mxu1  ;;  %v3927_v33 = vmax.f32 %v2933_v38, %v3863_v26  ;;  %v8004_v28 = vmax.f32 %v8002_v25, %v8003_v29  ;;  %v3861_v42 = vsel %vm3733_vm4, %v3669_v6, %v3797_v10 }
 0x1b3   :  { %7999 = vst [vmem:[#allocation7_spill] sm:$0xff] %v6863_v30  ;;  %8000 = vst [vmem:[#allocation8_spill] sm:$0xff] %v6865_v17  ;;  %v6871_v62 = vpop.f32.mrb[102].mxu0  ;;  %v6873_v32 = vpop.f32.mrb[102].mxu1  ;;  %v2808_v30 = vmul.f32 0.01, %v2680_v43  ;;  %v2678_v38 = vadd.f32 %v6837_v12, %v2614_v3  ;;  %v3672_v26 = vadd.f32 %v6837_v12, %v3608_v9  ;;  %v2617_v6 = vmul.f32 %v6844_v19, %v6510_v48 }
 0x1b4   :  { %v2931_v20 = vmax.f32 %v8004_v28, %v2867_v54  ;;  %v6878_v17 = vpop.f32.mrb[103].mxu0  ;;  %v6880_v49 = vpop.f32.mrb[103].mxu1  ;;  %3992 = vst.msk [vmem:[%s7718_s4 + $0x38] sm:$0xff] %vm3984_vm1, %v3927_v33  ;;  %v3611_v10 = vmul.f32 %v6844_v19, %v6512_v45  ;;  %v8006_v54 = vld [vmem:[#allocation13_spill] sm:$0xff]  ;;  %v2615_v3 = vmul.f32 %v6844_v19, %v6516_v47 }
 0x1b5   :  { %8005 = vst [vmem:[#allocation98_spill] sm:$0xff] %v6880_v49  ;;  %v2872_v28 = vsel %vm2744_vm5, %v2680_v43, %v2808_v30  ;;  %v8008_v25 = vmax.f32 %v8006_v54, %v8007_v11  ;;  %v3866_v49 = vsel %vm3738_vm6, %v3674_v37, %v3802_v5  ;;  %vm2742_vm7 = vcmp.gt.f32.partialorder %v2678_v38, 0.0  ;;  %v8009_v5 = vld [vmem:[#allocation15_spill] sm:$0xff] }
 0x1b6   :  { %v3925_v2 = vmax.f32 %v2931_v20, %v3861_v42  ;;  %v2806_v33 = vmul.f32 0.01, %v2678_v38  ;;  %vm3736_vm8 = vcmp.gt.f32.partialorder %v3672_v26, 0.0  ;;  %v3800_v42 = vmul.f32 0.01, %v3672_v26 }
 0x1b7   :  { %v2936_v29 = vmax.f32 %v8008_v25, %v2872_v28  ;;  %v2681_v43 = vadd.f32 %v6837_v12, %v2617_v6  ;;  %v3675_v48 = vadd.f32 %v6837_v12, %v3611_v10  ;;  %v3609_v37 = vmul.f32 %v6844_v19, %v6518_v21 }
 0x1b8   :  { %3990 = vst.msk [vmem:[%s7718_s4 + $0x28] sm:$0xff] %vm3984_vm1, %v3925_v2  ;;  %v2870_v45 = vsel %vm2742_vm7, %v2678_v38, %v2806_v33  ;;  %v8010_v2 = vld [vmem:[#allocation16_spill] sm:$0xff]  ;;  %v3864_v11 = vsel %vm3736_vm8, %v3672_v26, %v3800_v42  ;;  %v2679_v21 = vadd.f32 %v6837_v12, %v2615_v3  ;;  %v2620_v42 = vmul.f32 %v6844_v19, %v6549_v56  ;;  %v8017_v3 = vld [vmem:[#allocation18_spill] sm:$0xff] }
 0x1b9   :  { %v3930_v30 = vmax.f32 %v2936_v29, %v3866_v49  ;;  %v6905_v9 = vpop.f32.mrb[104].mxu0  ;;  %v6907_v20 = vpop.f32.mrb[104].mxu1  ;;  %v8011_v28 = vmax.f32 %v8009_v5, %v8010_v2  ;;  %vm2745_vm9 = vcmp.gt.f32.partialorder %v2681_v43, 0.0  ;;  %v2809_v6 = vmul.f32 0.01, %v2681_v43  ;;  %v8016_v2 = vld [vmem:[#allocation17_spill] sm:$0xff] }
 0x1ba   :  { %v6912_v10 = vpop.f32.mrb[105].mxu0  ;;  %v6914_v49 = vpop.f32.mrb[105].mxu1  ;;  %vm3739_vm10 = vcmp.gt.f32.partialorder %v3675_v48, 0.0  ;;  %v3803_v47 = vmul.f32 0.01, %v3675_v48  ;;  %v3673_v38 = vadd.f32 %v6837_v12, %v3609_v37  ;;  %vm2743_vm11 = vcmp.gt.f32.partialorder %v2679_v21, 0.0 }
 0x1bb   :  { %v2934_v54 = vmax.f32 %v8011_v28, %v2870_v45  ;;  %8012 = vst [vmem:[#allocation9_spill] sm:$0xff] %v6914_v49  ;;  %3995 = vst.msk [vmem:[%s7718_s4 + $0x50] sm:$0xff] %vm3984_vm1, %v3930_v30  ;;  %v6922_v25 = vpop.f32.mrb[106].mxu0  ;;  %v6924_v26 = vpop.f32.mrb[106].mxu1  ;;  %v2873_v33 = vsel %vm2745_vm9, %v2681_v43, %v2809_v6  ;;  %v3614_v45 = vmul.f32 %v6844_v19, %v6551_v0  ;;  %v8019_v6 = vld [vmem:[#allocation107_spill] sm:$0xff] }
 0x1bc   :  { %8013 = vst [vmem:[#allocation10_spill] sm:$0xff] %v6922_v25  ;;  %v6930_v5 = vpop.f32.mrb[107].mxu0  ;;  %v6932_v30 = vpop.f32.mrb[107].mxu1  ;;  %v8018_v28 = vmax.f32 %v8016_v2, %v8017_v3  ;;  %v3867_v49 = vsel %vm3739_vm10, %v3675_v48, %v3803_v47  ;;  %v2807_v25 = vmul.f32 0.01, %v2679_v21  ;;  %vm3737_vm12 = vcmp.gt.f32.partialorder %v3673_v38, 0.0 }
 0x1bd   :  { %v3928_v29 = vmax.f32 %v2934_v54, %v3864_v11  ;;  %8014 = vst [vmem:[#allocation101_spill] sm:$0xff] %v6930_v5  ;;  %8015 = vst [vmem:[#allocation11_spill] sm:$0xff] %v6932_v30  ;;  %v3801_v56 = vmul.f32 0.01, %v3673_v38  ;;  %v2684_v0 = vadd.f32 %v6837_v12, %v2620_v42  ;;  %v3678_v43 = vadd.f32 %v6837_v12, %v3614_v45  ;;  %v8021_v47 = vld [vmem:[#allocation19_spill] sm:$0xff]  ;;  %v8022_v3 = vld [vmem:[#allocation20_spill] sm:$0xff] }
 0x1be   :  { %v2937_v37 = vmax.f32 %v8018_v28, %v2873_v33  ;;  %v2871_v11 = vsel %vm2743_vm11, %v2679_v21, %v2807_v25  ;;  %v2618_v2 = vmul.f32 %v6844_v19, %v8019_v6  ;;  %v8020_v33 = vld [vmem:[#allocation108_spill] sm:$0xff]  ;;  %v8023_v28 = vmax.f32 %v8021_v47, %v8022_v3  ;;  %v8028_v47 = vld [vmem:[#allocation21_spill] sm:$0xff] }
 0x1bf   :  { %3993 = vst.msk [vmem:[%s7718_s4 + $0x40] sm:$0xff] %vm3984_vm1, %v3928_v29  ;;  %v3612_v48 = vmul.f32 %v6844_v19, %v8020_v33  ;;  %v3865_v5 = vsel %vm3737_vm12, %v3673_v38, %v3801_v56  ;;  %vm2748_vm13 = vcmp.gt.f32.partialorder %v2684_v0, 0.0  ;;  %v2812_v29 = vmul.f32 0.01, %v2684_v0  ;;  %v8026_v56 = vld [vmem:[#allocation110_spill] sm:$0xff] }
 0x1c0   :  { %v3931_v54 = vmax.f32 %v2937_v37, %v3867_v49  ;;  %v2935_v30 = vmax.f32 %v8023_v28, %v2871_v11  ;;  %vm3742_vm0 = vcmp.gt.f32.partialorder %v3678_v43, 0.0  ;;  %v3806_v49 = vmul.f32 0.01, %v3678_v43 }
 0x1c1   :  { %v2682_v21 = vadd.f32 %v6837_v12, %v2618_v2  ;;  %v3676_v25 = vadd.f32 %v6837_v12, %v3612_v48  ;;  %v6956_v42 = vpop.f32.mrb[108].mxu0  ;;  %v6958_v45 = vpop.f32.mrb[108].mxu1  ;;  %v2876_v11 = vsel %vm2748_vm13, %v2684_v0, %v2812_v29  ;;  %v2621_v38 = vmul.f32 %v6844_v19, %v6563_v35  ;;  %v8029_v2 = vld [vmem:[#allocation22_spill] sm:$0xff] }
 0x1c2   :  { %3996 = vst.msk [vmem:[%s7718_s4 + $0x58] sm:$0xff] %vm3984_vm1, %v3931_v54  ;;  %8024 = vst [vmem:[#allocation12_spill] sm:$0xff] %v6956_v42  ;;  %v3929_v37 = vmax.f32 %v2935_v30, %v3865_v5  ;;  %v3615_v6 = vmul.f32 %v6844_v19, %v8026_v56  ;;  %v6964_v33 = vpop.f32.mrb[109].mxu0  ;;  %v6966_v54 = vpop.f32.mrb[109].mxu1  ;;  %v8030_v3 = vmax.f32 %v8028_v47, %v8029_v2  ;;  %v8033_v47 = vld [vmem:[#allocation113_spill] sm:$0xff] }
 0x1c3   :  { %8025 = vst [vmem:[#allocation13_spill] sm:$0xff] %v6958_v45  ;;  %8027 = vst [vmem:[#allocation14_spill] sm:$0xff] %v6966_v54  ;;  %v3870_v28 = vsel %vm3742_vm0, %v3678_v43, %v3806_v49  ;;  %vm2746_vm14 = vcmp.gt.f32.partialorder %v2682_v21, 0.0  ;;  %v2810_v42 = vmul.f32 0.01, %v2682_v21  ;;  %v6971_v45 = vpop.f32.mrb[110].mxu0  ;;  %v2685_v30 = vadd.f32 %v6837_v12, %v2621_v38 }
 0x1c4   :  { %v2940_v48 = vmax.f32 %v8030_v3, %v2876_v11  ;;  %8031 = vst [vmem:[#allocation15_spill] sm:$0xff] %v6971_v45  ;;  %v6973_v5 = vpop.f32.mrb[110].mxu1  ;;  %3994 = vst.msk [vmem:[%s7718_s4 + $0x48] sm:$0xff] %vm3984_vm1, %v3929_v37  ;;  %vm3740_vm15 = vcmp.gt.f32.partialorder %v3676_v25, 0.0  ;;  %v3804_v35 = vmul.f32 0.01, %v3676_v25  ;;  %v3679_v0 = vadd.f32 %v6837_v12, %v3615_v6 }
 0x1c5   :  { %8032 = vst [vmem:[#allocation16_spill] sm:$0xff] %v6973_v5  ;;  %v6981_v29 = vpop.f32.mrb[111].mxu0  ;;  %v6983_v43 = vpop.f32.mrb[111].mxu1  ;;  %v2874_v11 = vsel %vm2746_vm14, %v2682_v21, %v2810_v42  ;;  %v2619_v56 = vmul.f32 %v6844_v19, %v6574_v40  ;;  %v3613_v2 = vmul.f32 %v6844_v19, %v8033_v47  ;;  %v8034_v3 = vld [vmem:[#allocation23_spill] sm:$0xff]  ;;  %v8035_v37 = vld [vmem:[#allocation24_spill] sm:$0xff]  ;;  %vm2749_vm2 = vcmp.gt.f32.partialorder %v2685_v30, 0.0 }
 0x1c6   :  { %v3934_v49 = vmax.f32 %v2940_v48, %v3870_v28  ;;  %v8036_v5 = vmax.f32 %v8034_v3, %v8035_v37  ;;  %v3868_v54 = vsel %vm3740_vm15, %v3676_v25, %v3804_v35  ;;  %v2813_v38 = vmul.f32 0.01, %v2685_v30  ;;  %v8038_v35 = vld [vmem:[#allocation26_spill] sm:$0xff] }
 0x1c7   :  { %vm3743_vm3 = vcmp.gt.f32.partialorder %v3679_v0, 0.0  ;;  %v3807_v21 = vmul.f32 0.01, %v3679_v0  ;;  %v2683_v42 = vadd.f32 %v6837_v12, %v2619_v56  ;;  %v3677_v40 = vadd.f32 %v6837_v12, %v3613_v2 }
 0x1c8   :  { %v2938_v45 = vmax.f32 %v8036_v5, %v2874_v11  ;;  %3999 = vst.msk [vmem:[%s7718_s4 + $0x70] sm:$0xff] %vm3984_vm1, %v3934_v49  ;;  %v2877_v48 = vsel %vm2749_vm2, %v2685_v30, %v2813_v38  ;;  %v2624_v28 = vmul.f32 %v6844_v19, %v6597_v44  ;;  %v3618_v25 = vmul.f32 %v6844_v19, %v6599_v41  ;;  %v8037_v5 = vld [vmem:[#allocation25_spill] sm:$0xff] }
 0x1c9   :  { %v8039_v11 = vmax.f32 %v8037_v5, %v8038_v35  ;;  %v3871_v3 = vsel %vm3743_vm3, %v3679_v0, %v3807_v21  ;;  %vm2747_vm4 = vcmp.gt.f32.partialorder %v2683_v42, 0.0  ;;  %v2811_v49 = vmul.f32 0.01, %v2683_v42  ;;  %v7005_v37 = vpop.f32.mrb[112].mxu0 }
 0x1ca   :  { %v3932_v6 = vmax.f32 %v2938_v45, %v3868_v54  ;;  %vm3741_vm5 = vcmp.gt.f32.partialorder %v3677_v40, 0.0  ;;  %v3805_v45 = vmul.f32 0.01, %v3677_v40  ;;  %v2688_v44 = vadd.f32 %v6837_v12, %v2624_v28  ;;  %v7013_v54 = vpop.f32.mrb[112].mxu1  ;;  %v7015_v30 = vpop.f32.mrb[113].mxu0  ;;  %v8042_v28 = vld [vmem:[#allocation28_spill] sm:$0xff] }
 0x1cb   :  { %v2941_v47 = vmax.f32 %v8039_v11, %v2877_v48  ;;  %v3682_v41 = vadd.f32 %v6837_v12, %v3618_v25  ;;  %8040 = vst [vmem:[#allocation17_spill] sm:$0xff] %v7015_v30  ;;  %v2875_v56 = vsel %vm2747_vm4, %v2683_v42, %v2811_v49  ;;  %v2622_v2 = vmul.f32 %v6844_v19, %v6605_v14  ;;  %v7021_v21 = vpop.f32.mrb[113].mxu1  ;;  %v8041_v48 = vld [vmem:[#allocation27_spill] sm:$0xff] }
 0x1cc   :  { %3997 = vst.msk [vmem:[%s7718_s4 + $0x60] sm:$0xff] %vm3984_vm1, %v3932_v6  ;;  %v3616_v38 = vmul.f32 %v6844_v19, %v6607_v60  ;;  %v7023_v6 = vpop.f32.mrb[114].mxu0  ;;  %v8043_v5 = vmax.f32 %v8041_v48, %v8042_v28  ;;  %v3869_v35 = vsel %vm3741_vm5, %v3677_v40, %v3805_v45  ;;  %vm2752_vm6 = vcmp.gt.f32.partialorder %v2688_v44, 0.0  ;;  %v7028_v30 = vpop.f32.mrb[114].mxu1  ;;  %v8047_v48 = vld [vmem:[#allocation29_spill] sm:$0xff]  ;;  %v8048_v28 = vld [vmem:[#allocation30_spill] sm:$0xff] }
 0x1cd   :  { %v3935_v0 = vmax.f32 %v2941_v47, %v3871_v3  ;;  %v2816_v11 = vmul.f32 0.01, %v2688_v44  ;;  %8044 = vst [vmem:[#allocation18_spill] sm:$0xff] %v7028_v30  ;;  %v7030_v42 = vpop.f32.mrb[115].mxu0  ;;  %vm3746_vm7 = vcmp.gt.f32.partialorder %v3682_v41, 0.0  ;;  %v2686_v60 = vadd.f32 %v6837_v12, %v2622_v2  ;;  %v7038_v3 = vpop.f32.mrb[115].mxu1 }
 0x1ce   :  { %v2939_v25 = vmax.f32 %v8043_v5, %v2875_v56  ;;  %8045 = vst [vmem:[#allocation107_spill] sm:$0xff] %v7030_v42  ;;  %v3810_v14 = vmul.f32 0.01, %v3682_v41  ;;  %v3680_v47 = vadd.f32 %v6837_v12, %v3616_v38  ;;  %8046 = vst [vmem:[#allocation108_spill] sm:$0xff] %v7038_v3  ;;  %v2625_v45 = vmul.f32 %v6844_v19, %v6613_v53 }
 0x1cf   :  { %4000 = vst.msk [vmem:[%s7718_s4 + $0x78] sm:$0xff] %vm3984_vm1, %v3935_v0  ;;  %v2880_v49 = vsel %vm2752_vm6, %v2688_v44, %v2816_v11  ;;  %v3619_v56 = vmul.f32 %v6844_v19, %v6615_v31  ;;  %v8049_v5 = vmax.f32 %v8047_v48, %v8048_v28  ;;  %vm2750_vm8 = vcmp.gt.f32.partialorder %v2686_v60, 0.0  ;;  %v8051_v11 = vld [vmem:[#allocation120_spill] sm:$0xff] }
 0x1d0   :  { %v3933_v40 = vmax.f32 %v2939_v25, %v3869_v35  ;;  %v3874_v42 = vsel %vm3746_vm7, %v3682_v41, %v3810_v14  ;;  %v2814_v30 = vmul.f32 0.01, %v2686_v60  ;;  %vm3744_vm9 = vcmp.gt.f32.partialorder %v3680_v47, 0.0  ;;  %v8050_v25 = vld [vmem:[#allocation119_spill] sm:$0xff]  ;;  %v8053_v48 = vld [vmem:[#allocation32_spill] sm:$0xff] }
 0x1d1   :  { %v2944_v0 = vmax.f32 %v8049_v5, %v2880_v49  ;;  %v3808_v44 = vmul.f32 0.01, %v3680_v47  ;;  %v2689_v2 = vadd.f32 %v6837_v12, %v2625_v45  ;;  %v3683_v53 = vadd.f32 %v6837_v12, %v3619_v56  ;;  %v7057_v14 = vpop.f32.mrb[116].mxu0  ;;  %v8052_v49 = vld [vmem:[#allocation31_spill] sm:$0xff] }
 0x1d2   :  { %3998 = vst.msk [vmem:[%s7718_s4 + $0x68] sm:$0xff] %vm3984_vm1, %v3933_v40  ;;  %v2878_v31 = vsel %vm2750_vm8, %v2686_v60, %v2814_v30  ;;  %v2623_v35 = vmul.f32 %v6844_v19, %v8050_v25  ;;  %v3617_v41 = vmul.f32 %v6844_v19, %v8051_v11  ;;  %v8054_v28 = vmax.f32 %v8052_v49, %v8053_v48  ;;  %v7062_v45 = vpop.f32.mrb[116].mxu1  ;;  %v7064_v56 = vpop.f32.mrb[117].mxu0  ;;  %v8058_v48 = vld [vmem:[#allocation33_spill] sm:$0xff] }
 0x1d3   :  { %v3938_v38 = vmax.f32 %v2944_v0, %v3874_v42  ;;  %v3872_v5 = vsel %vm3744_vm9, %v3680_v47, %v3808_v44  ;;  %vm2753_vm10 = vcmp.gt.f32.partialorder %v2689_v2, 0.0  ;;  %v2817_v3 = vmul.f32 0.01, %v2689_v2  ;;  %8055 = vst [vmem:[#allocation19_spill] sm:$0xff] %v7064_v56  ;;  %v7072_v0 = vpop.f32.mrb[117].mxu1  ;;  %v7074_v47 = vpop.f32.mrb[118].mxu0 }
 0x1d4   :  { %v2942_v40 = vmax.f32 %v8054_v28, %v2878_v31  ;;  %vm3747_vm11 = vcmp.gt.f32.partialorder %v3683_v53, 0.0  ;;  %v3811_v30 = vmul.f32 0.01, %v3683_v53  ;;  %v2687_v42 = vadd.f32 %v6837_v12, %v2623_v35  ;;  %8056 = vst [vmem:[#allocation20_spill] sm:$0xff] %v7072_v0  ;;  %8057 = vst [vmem:[#allocation110_spill] sm:$0xff] %v7074_v47  ;;  %v7080_v49 = vpop.f32.mrb[118].mxu1 }
 0x1d5   :  { %4003 = vst.msk [vmem:[%s7718_s4 + $0x90] sm:$0xff] %vm3984_vm1, %v3938_v38  ;;  %v3681_v60 = vadd.f32 %v6837_v12, %v3617_v41  ;;  %v2881_v31 = vsel %vm2753_vm10, %v2689_v2, %v2817_v3  ;;  %v2628_v25 = vmul.f32 %v6844_v19, %v6646_v34  ;;  %v3622_v11 = vmul.f32 %v6844_v19, %v6648_v8  ;;  %v7082_v38 = vpop.f32.mrb[119].mxu0  ;;  %v8059_v35 = vld [vmem:[#allocation34_spill] sm:$0xff]  ;;  %v7087_v47 = vpop.f32.mrb[119].mxu1 }
 0x1d6   :  { %v3936_v44 = vmax.f32 %v2942_v40, %v3872_v5  ;;  %v8060_v28 = vmax.f32 %v8058_v48, %v8059_v35  ;;  %v3875_v56 = vsel %vm3747_vm11, %v3683_v53, %v3811_v30  ;;  %vm2751_vm12 = vcmp.gt.f32.partialorder %v2687_v42, 0.0  ;;  %v8061_v30 = vld [vmem:[#allocation35_spill] sm:$0xff] }
 0x1d7   :  { %v2815_v0 = vmul.f32 0.01, %v2687_v42  ;;  %vm3745_vm13 = vcmp.gt.f32.partialorder %v3681_v60, 0.0  ;;  %v3809_v34 = vmul.f32 0.01, %v3681_v60  ;;  %v2692_v8 = vadd.f32 %v6837_v12, %v2628_v25 }
 0x1d8   :  { %v2945_v41 = vmax.f32 %v8060_v28, %v2881_v31  ;;  %4001 = vst.msk [vmem:[%s7718_s4 + $0x80] sm:$0xff] %vm3984_vm1, %v3936_v44  ;;  %v3686_v3 = vadd.f32 %v6837_v12, %v3622_v11  ;;  %v2626_v53 = vmul.f32 %v6844_v19, %v6652_v51  ;;  %v3620_v5 = vmul.f32 %v6844_v19, %v6654_v7  ;;  %v8062_v31 = vld [vmem:[#allocation36_spill] sm:$0xff] }
 0x1d9   :  { %v2879_v40 = vsel %vm2751_vm12, %v2687_v42, %v2815_v0  ;;  %v8063_v48 = vmax.f32 %v8061_v30, %v8062_v31  ;;  %v3873_v28 = vsel %vm3745_vm13, %v3681_v60, %v3809_v34  ;;  %vm2756_vm0 = vcmp.gt.f32.partialorder %v2692_v8, 0.0  ;;  %v7108_v0 = vpop.f32.mrb[120].mxu0 }
 0x1da   :  { %v3939_v2 = vmax.f32 %v2945_v41, %v3875_v56  ;;  %v2820_v44 = vmul.f32 0.01, %v2692_v8  ;;  %vm3750_vm14 = vcmp.gt.f32.partialorder %v3686_v3, 0.0  ;;  %v3814_v56 = vmul.f32 0.01, %v3686_v3  ;;  %v7114_v41 = vpop.f32.mrb[120].mxu1 }
 0x1db   :  { %v2943_v35 = vmax.f32 %v8063_v48, %v2879_v40  ;;  %v2690_v42 = vadd.f32 %v6837_v12, %v2626_v53  ;;  %v3684_v51 = vadd.f32 %v6837_v12, %v3620_v5  ;;  %v2629_v60 = vmul.f32 %v6844_v19, %v6661_v27  ;;  %v7116_v34 = vpop.f32.mrb[121].mxu0  ;;  %v8066_v40 = vld [vmem:[#allocation38_spill] sm:$0xff]  ;;  %v7121_v48 = vpop.f32.mrb[121].mxu1 }
 0x1dc   :  { %4004 = vst.msk [vmem:[%s7718_s4 + $0x98] sm:$0xff] %vm3984_vm1, %v3939_v2  ;;  %v2884_v25 = vsel %vm2756_vm0, %v2692_v8, %v2820_v44  ;;  %v3623_v11 = vmul.f32 %v6844_v19, %v6663_v13  ;;  %8064 = vst [vmem:[#allocation21_spill] sm:$0xff] %v7116_v34  ;;  %v8065_v2 = vld [vmem:[#allocation37_spill] sm:$0xff]  ;;  %v3878_v31 = vsel %vm3750_vm14, %v3686_v3, %v3814_v56  ;;  %v7123_v8 = vpop.f32.mrb[122].mxu0 }
 0x1dd   :  { %v3937_v7 = vmax.f32 %v2943_v35, %v3873_v28  ;;  %v8067_v30 = vmax.f32 %v8065_v2, %v8066_v40  ;;  %vm2754_vm15 = vcmp.gt.f32.partialorder %v2690_v42, 0.0  ;;  %v2818_v5 = vmul.f32 0.01, %v2690_v42  ;;  %8068 = vst [vmem:[#allocation22_spill] sm:$0xff] %v7121_v48  ;;  %8069 = vst [vmem:[#allocation113_spill] sm:$0xff] %v7123_v8  ;;  %v7131_v28 = vpop.f32.mrb[122].mxu1 }
 0x1de   :  { %vm3748_vm2 = vcmp.gt.f32.partialorder %v3684_v51, 0.0  ;;  %v3812_v13 = vmul.f32 0.01, %v3684_v51  ;;  %v2693_v27 = vadd.f32 %v6837_v12, %v2629_v60  ;;  %v3687_v35 = vadd.f32 %v6837_v12, %v3623_v11  ;;  %v7133_v3 = vpop.f32.mrb[123].mxu0  ;;  %v8070_v2 = vld [vmem:[#allocation127_spill] sm:$0xff]  ;;  %v8073_v8 = vld [vmem:[#allocation40_spill] sm:$0xff] }
 0x1df   :  { %v2948_v53 = vmax.f32 %v8067_v30, %v2884_v25  ;;  %4002 = vst.msk [vmem:[%s7718_s4 + $0x88] sm:$0xff] %vm3984_vm1, %v3937_v7  ;;  %v2882_v56 = vsel %vm2754_vm15, %v2690_v42, %v2818_v5  ;;  %v2627_v25 = vmul.f32 %v6844_v19, %v6673_v1  ;;  %v3621_v40 = vmul.f32 %v6844_v19, %v8070_v2  ;;  %v7139_v30 = vpop.f32.mrb[123].mxu1  ;;  %v8072_v7 = vld [vmem:[#allocation39_spill] sm:$0xff] }
 0x1e0   :  { %8071 = vst [vmem:[#allocation23_spill] sm:$0xff] %v7139_v30  ;;  %v8074_v48 = vmax.f32 %v8072_v7, %v8073_v8  ;;  %v3876_v34 = vsel %vm3748_vm2, %v3684_v51, %v3812_v13  ;;  %vm2757_vm3 = vcmp.gt.f32.partialorder %v2693_v27, 0.0  ;;  %v2821_v11 = vmul.f32 0.01, %v2693_v27  ;;  %v8076_v13 = vld [vmem:[#allocation42_spill] sm:$0xff] }
 0x1e1   :  { %v3942_v44 = vmax.f32 %v2948_v53, %v3878_v31  ;;  %vm3751_vm4 = vcmp.gt.f32.partialorder %v3687_v35, 0.0  ;;  %v3815_v42 = vmul.f32 0.01, %v3687_v35  ;;  %v2691_v1 = vadd.f32 %v6837_v12, %v2627_v25  ;;  %v7157_v30 = vpop.f32.mrb[124].mxu0 }
 0x1e2   :  { %v2946_v60 = vmax.f32 %v8074_v48, %v2882_v56  ;;  %v3685_v53 = vadd.f32 %v6837_v12, %v3621_v40  ;;  %v2885_v5 = vsel %vm2757_vm3, %v2693_v27, %v2821_v11  ;;  %v2632_v8 = vmul.f32 %v6844_v19, %v6698_v4  ;;  %v8075_v48 = vld [vmem:[#allocation41_spill] sm:$0xff]  ;;  %v7165_v27 = vpop.f32.mrb[124].mxu1  ;;  %v7167_v25 = vpop.f32.mrb[125].mxu0 }
 0x1e3   :  { %4007 = vst.msk [vmem:[%s7718_s4 + $0xb0] sm:$0xff] %vm3984_vm1, %v3942_v44  ;;  %v3626_v51 = vmul.f32 %v6844_v19, %v6700_v16  ;;  %v8077_v56 = vmax.f32 %v8075_v48, %v8076_v13  ;;  %v3879_v7 = vsel %vm3751_vm4, %v3687_v35, %v3815_v42  ;;  %vm2755_vm5 = vcmp.gt.f32.partialorder %v2691_v1, 0.0  ;;  %8078 = vst [vmem:[#allocation24_spill] sm:$0xff] %v7165_v27  ;;  %v8080_v11 = vld [vmem:[#allocation133_spill] sm:$0xff]  ;;  %v8081_v48 = vld [vmem:[#allocation43_spill] sm:$0xff] }
 0x1e4   :  { %v3940_v31 = vmax.f32 %v2946_v60, %v3876_v34  ;;  %v2819_v44 = vmul.f32 0.01, %v2691_v1  ;;  %vm3749_vm6 = vcmp.gt.f32.partialorder %v3685_v53, 0.0  ;;  %v3813_v34 = vmul.f32 0.01, %v3685_v53  ;;  %8079 = vst [vmem:[#allocation25_spill] sm:$0xff] %v7167_v25 }
 0x1e5   :  { %v2949_v2 = vmax.f32 %v8077_v56, %v2885_v5  ;;  %v2696_v4 = vadd.f32 %v6837_v12, %v2632_v8  ;;  %v3690_v16 = vadd.f32 %v6837_v12, %v3626_v51  ;;  %v2630_v60 = vmul.f32 %v6844_v19, %v6710_v39  ;;  %v7173_v5 = vpop.f32.mrb[125].mxu1  ;;  %v8082_v8 = vld [vmem:[#allocation44_spill] sm:$0xff] }
 0x1e6   :  { %4005 = vst.msk [vmem:[%s7718_s4 + $0xa0] sm:$0xff] %vm3984_vm1, %v3940_v31  ;;  %v2883_v40 = vsel %vm2755_vm5, %v2691_v1, %v2819_v44  ;;  %v3624_v42 = vmul.f32 %v6844_v19, %v8080_v11  ;;  %v7175_v31 = vpop.f32.mrb[126].mxu0  ;;  %v8083_v13 = vmax.f32 %v8081_v48, %v8082_v8  ;;  %v3877_v56 = vsel %vm3749_vm6, %v3685_v53, %v3813_v34  ;;  %v7180_v25 = vpop.f32.mrb[126].mxu1  ;;  %v8086_v48 = vld [vmem:[#allocation45_spill] sm:$0xff]  ;;  %v8087_v8 = vld [vmem:[#allocation46_spill] sm:$0xff] }
 0x1e7   :  { %v3943_v35 = vmax.f32 %v2949_v2, %v3879_v7  ;;  %vm2760_vm7 = vcmp.gt.f32.partialorder %v2696_v4, 0.0  ;;  %v2824_v27 = vmul.f32 0.01, %v2696_v4  ;;  %8084 = vst [vmem:[#allocation26_spill] sm:$0xff] %v7180_v25  ;;  %v7182_v1 = vpop.f32.mrb[127].mxu0  ;;  %vm3754_vm8 = vcmp.gt.f32.partialorder %v3690_v16, 0.0 }
 0x1e8   :  { %v2947_v51 = vmax.f32 %v8083_v13, %v2883_v40  ;;  %8085 = vst [vmem:[#allocation27_spill] sm:$0xff] %v7182_v1  ;;  %v3818_v39 = vmul.f32 0.01, %v3690_v16  ;;  %v2694_v2 = vadd.f32 %v6837_v12, %v2630_v60  ;;  %v3688_v7 = vadd.f32 %v6837_v12, %v3624_v42  ;;  %v7190_v44 = vpop.f32.mrb[127].mxu1  ;;  %v8089_v42 = vld [vmem:[#allocation135_spill] sm:$0xff] }
 0x1e9   :  { %4008 = vst.msk [vmem:[%s7718_s4 + $0xb8] sm:$0xff] %vm3984_vm1, %v3943_v35  ;;  %v2888_v34 = vsel %vm2760_vm7, %v2696_v4, %v2824_v27  ;;  %v2633_v40 = vmul.f32 %v6844_v19, %v6718_v50  ;;  %v3627_v11 = vmul.f32 %v6844_v19, %v6720_v59  ;;  %v8088_v13 = vmax.f32 %v8086_v48, %v8087_v8 }
 0x1ea   :  { %v3941_v53 = vmax.f32 %v2947_v51, %v3877_v56  ;;  %v3882_v1 = vsel %vm3754_vm8, %v3690_v16, %v3818_v39  ;;  %vm2758_vm9 = vcmp.gt.f32.partialorder %v2694_v2, 0.0  ;;  %v2822_v25 = vmul.f32 0.01, %v2694_v2  ;;  %v8090_v56 = vld [vmem:[#allocation136_spill] sm:$0xff]  ;;  %v8091_v39 = vld [vmem:[#allocation47_spill] sm:$0xff] }
 0x1eb   :  { %v2952_v35 = vmax.f32 %v8088_v13, %v2888_v34  ;;  %vm3752_vm10 = vcmp.gt.f32.partialorder %v3688_v7, 0.0  ;;  %v3816_v4 = vmul.f32 0.01, %v3688_v7  ;;  %v2697_v27 = vadd.f32 %v6837_v12, %v2633_v40  ;;  %v8092_v34 = vld [vmem:[#allocation48_spill] sm:$0xff] }
 0x1ec   :  { %4006 = vst.msk [vmem:[%s7718_s4 + $0xa8] sm:$0xff] %vm3984_vm1, %v3941_v53  ;;  %v3691_v50 = vadd.f32 %v6837_v12, %v3627_v11  ;;  %v2886_v59 = vsel %vm2758_vm9, %v2694_v2, %v2822_v25  ;;  %v2631_v51 = vmul.f32 %v6844_v19, %v8089_v42  ;;  %v3625_v16 = vmul.f32 %v6844_v19, %v8090_v56 }
 0x1ed   :  { %v3946_v60 = vmax.f32 %v2952_v35, %v3882_v1  ;;  %v8093_v48 = vmax.f32 %v8091_v39, %v8092_v34  ;;  %v3880_v13 = vsel %vm3752_vm10, %v3688_v7, %v3816_v4  ;;  %vm2761_vm11 = vcmp.gt.f32.partialorder %v2697_v27, 0.0  ;;  %v8094_v4 = vld [vmem:[#allocation49_spill] sm:$0xff] }
 0x1ee   :  { %v2825_v53 = vmul.f32 0.01, %v2697_v27  ;;  %vm3755_vm12 = vcmp.gt.f32.partialorder %v3691_v50, 0.0  ;;  %v3819_v25 = vmul.f32 0.01, %v3691_v50  ;;  %v2695_v1 = vadd.f32 %v6837_v12, %v2631_v51 }
 0x1ef   :  { %v2950_v8 = vmax.f32 %v8093_v48, %v2886_v59  ;;  %4011 = vst.msk [vmem:[%s7718_s4 + $0xd0] sm:$0xff] %vm3984_vm1, %v3946_v60  ;;  %v3689_v2 = vadd.f32 %v6837_v12, %v3625_v16  ;;  %v2636_v35 = vmul.f32 %v6844_v19, %v6743_v36  ;;  %v3630_v7 = vmul.f32 %v6844_v19, %v6745_v18  ;;  %v8095_v59 = vld [vmem:[#allocation50_spill] sm:$0xff]  ;;  %v8097_v48 = vld [vmem:[#allocation51_spill] sm:$0xff] }
 0x1f0   :  { %v2889_v11 = vsel %vm2761_vm11, %v2697_v27, %v2825_v53  ;;  %v8096_v42 = vmax.f32 %v8094_v4, %v8095_v59  ;;  %v3883_v39 = vsel %vm3755_vm12, %v3691_v50, %v3819_v25  ;;  %vm2759_vm13 = vcmp.gt.f32.partialorder %v2695_v1, 0.0  ;;  %v8100_v4 = vld [vmem:[#allocation53_spill] sm:$0xff]  ;;  %v8101_v59 = vld [vmem:[#allocation54_spill] sm:$0xff] }
 0x1f1   :  { %v3944_v40 = vmax.f32 %v2950_v8, %v3880_v13  ;;  %v2823_v60 = vmul.f32 0.01, %v2695_v1  ;;  %vm3753_vm0 = vcmp.gt.f32.partialorder %v3689_v2, 0.0  ;;  %v3817_v27 = vmul.f32 0.01, %v3689_v2  ;;  %v8098_v8 = vld [vmem:[#allocation52_spill] sm:$0xff] }
 0x1f2   :  { %v2953_v56 = vmax.f32 %v8096_v42, %v2889_v11  ;;  %v2700_v51 = vadd.f32 %v6837_v12, %v2636_v35  ;;  %v3694_v36 = vadd.f32 %v6837_v12, %v3630_v7  ;;  %v2634_v34 = vmul.f32 %v6844_v19, %v6750_v52 }
 0x1f3   :  { %4009 = vst.msk [vmem:[%s7718_s4 + $0xc0] sm:$0xff] %vm3984_vm1, %v3944_v40  ;;  %v2887_v18 = vsel %vm2759_vm13, %v2695_v1, %v2823_v60  ;;  %v3628_v50 = vmul.f32 %v6844_v19, %v6752_v63  ;;  %v8099_v13 = vmax.f32 %v8097_v48, %v8098_v8  ;;  %v3881_v25 = vsel %vm3753_vm0, %v3689_v2, %v3817_v27 }
 0x1f4   :  { %v3947_v16 = vmax.f32 %v2953_v56, %v3883_v39  ;;  %vm2764_vm14 = vcmp.gt.f32.partialorder %v2700_v51, 0.0  ;;  %v2828_v40 = vmul.f32 0.01, %v2700_v51  ;;  %vm3758_vm15 = vcmp.gt.f32.partialorder %v3694_v36, 0.0 }
 0x1f5   :  { %v2951_v53 = vmax.f32 %v8099_v13, %v2887_v18  ;;  %v3822_v1 = vmul.f32 0.01, %v3694_v36  ;;  %v2698_v11 = vadd.f32 %v6837_v12, %v2634_v34  ;;  %v3692_v52 = vadd.f32 %v6837_v12, %v3628_v50  ;;  %v8103_v34 = vld [vmem:[#allocation55_spill] sm:$0xff]  ;;  %v8104_v50 = vld [vmem:[#allocation56_spill] sm:$0xff] }
 0x1f6   :  { %4012 = vst.msk [vmem:[%s7718_s4 + $0xd8] sm:$0xff] %vm3984_vm1, %v3947_v16  ;;  %v2892_v63 = vsel %vm2764_vm14, %v2700_v51, %v2828_v40  ;;  %v2637_v7 = vmul.f32 %v6844_v19, %v6760_v23  ;;  %v3631_v2 = vmul.f32 %v6844_v19, %v6762_v24  ;;  %v8102_v42 = vmax.f32 %v8100_v4, %v8101_v59 }
 0x1f7   :  { %v3945_v35 = vmax.f32 %v2951_v53, %v3881_v25  ;;  %v3886_v39 = vsel %vm3758_vm15, %v3694_v36, %v3822_v1  ;;  %vm2762_vm2 = vcmp.gt.f32.partialorder %v2698_v11, 0.0  ;;  %v2826_v60 = vmul.f32 0.01, %v2698_v11 }
 0x1f8   :  { %v2956_v56 = vmax.f32 %v8102_v42, %v2892_v63  ;;  %vm3756_vm3 = vcmp.gt.f32.partialorder %v3692_v52, 0.0  ;;  %v3820_v27 = vmul.f32 0.01, %v3692_v52  ;;  %v2701_v51 = vadd.f32 %v6837_v12, %v2637_v7  ;;  %v8107_v63 = vld [vmem:[#allocation57_spill] sm:$0xff]  ;;  %v8108_v7 = vld [vmem:[#allocation58_spill] sm:$0xff] }
 0x1f9   :  { %4010 = vst.msk [vmem:[%s7718_s4 + $0xc8] sm:$0xff] %vm3984_vm1, %v3945_v35  ;;  %v3695_v23 = vadd.f32 %v6837_v12, %v3631_v2  ;;  %v2890_v24 = vsel %vm2762_vm2, %v2698_v11, %v2826_v60  ;;  %v2635_v18 = vmul.f32 %v6844_v19, %v6768_v22  ;;  %v3629_v36 = vmul.f32 %v6844_v19, %v6770_v46  ;;  %v8106_v35 = vld [vmem:[#allocation2_spill] sm:$0xff] }
 0x1fa   :  { %v3950_v16 = vmax.f32 %v2956_v56, %v3886_v39  ;;  %v8105_v48 = vmax.f32 %v8103_v34, %v8104_v50  ;;  %v3884_v13 = vsel %vm3756_vm3, %v3692_v52, %v3820_v27  ;;  %vm2765_vm4 = vcmp.gt.f32.partialorder %v2701_v51, 0.0 }
 0x1fb   :  { %v2829_v53 = vmul.f32 0.01, %v2701_v51  ;;  %vm3759_vm5 = vcmp.gt.f32.partialorder %v3695_v23, 0.0  ;;  %v3823_v25 = vmul.f32 0.01, %v3695_v23  ;;  %v2699_v40 = vadd.f32 %v6837_v12, %v2635_v18 }
 0x1fc   :  { %v2954_v8 = vmax.f32 %v8105_v48, %v2890_v24  ;;  %4015 = vst.msk [vmem:[%s7718_s4 + $0xf0] sm:$0xff] %vm3984_vm1, %v3950_v16  ;;  %v3693_v22 = vadd.f32 %v6837_v12, %v3629_v36  ;;  %v2640_v11 = vmul.f32 %v6844_v19, %v6794_v55  ;;  %v3634_v52 = vmul.f32 %v6844_v19, %v8106_v35  ;;  %v8110_v16 = vld [vmem:[#allocation59_spill] sm:$0xff]  ;;  %v8111_v24 = vld [vmem:[#allocation60_spill] sm:$0xff] }
 0x1fd   :  { %v2893_v46 = vsel %vm2765_vm4, %v2701_v51, %v2829_v53  ;;  %v8109_v2 = vmax.f32 %v8107_v63, %v8108_v7  ;;  %v3887_v59 = vsel %vm3759_vm5, %v3695_v23, %v3823_v25  ;;  %vm2763_vm6 = vcmp.gt.f32.partialorder %v2699_v40, 0.0  ;;  %v8113_v53 = vld [vmem:[#allocation3_spill] sm:$0xff] }
 0x1fe   :  { %v3948_v1 = vmax.f32 %v2954_v8, %v3884_v13  ;;  %v2827_v42 = vmul.f32 0.01, %v2699_v40  ;;  %vm3757_vm7 = vcmp.gt.f32.partialorder %v3693_v22, 0.0  ;;  %v3821_v56 = vmul.f32 0.01, %v3693_v22 }
 0x1ff   :  { %v2957_v4 = vmax.f32 %v8109_v2, %v2893_v46  ;;  %v2704_v39 = vadd.f32 %v6837_v12, %v2640_v11  ;;  %v3698_v55 = vadd.f32 %v6837_v12, %v3634_v52  ;;  %v2638_v51 = vmul.f32 %v6844_v19, %v6802_v15  ;;  %v8116_v46 = vld [vmem:[#allocation62_spill] sm:$0xff] }
 0x200   :  { %4013 = vst.msk [vmem:[%s7718_s4 + $0xe0] sm:$0xff] %vm3984_vm1, %v3948_v1  ;;  %v2891_v27 = vsel %vm2763_vm6, %v2699_v40, %v2827_v42  ;;  %v3632_v23 = vmul.f32 %v6844_v19, %v6804_v61  ;;  %v8112_v18 = vmax.f32 %v8110_v16, %v8111_v24  ;;  %v3885_v34 = vsel %vm3757_vm7, %v3693_v22, %v3821_v56  ;;  %v8114_v40 = vld [vmem:[#allocation4_spill] sm:$0xff]  ;;  %v8115_v1 = vld [vmem:[#allocation61_spill] sm:$0xff] }
 0x201   :  { %v3951_v60 = vmax.f32 %v2957_v4, %v3887_v59  ;;  %vm2768_vm8 = vcmp.gt.f32.partialorder %v2704_v39, 0.0  ;;  %v2832_v50 = vmul.f32 0.01, %v2704_v39  ;;  %vm3762_vm9 = vcmp.gt.f32.partialorder %v3698_v55, 0.0 }
 0x202   :  { %v2955_v36 = vmax.f32 %v8112_v18, %v2891_v27  ;;  %v3826_v48 = vmul.f32 0.01, %v3698_v55  ;;  %v2702_v8 = vadd.f32 %v6837_v12, %v2638_v51  ;;  %v3696_v15 = vadd.f32 %v6837_v12, %v3632_v23 }
 0x203   :  { %4016 = vst.msk [vmem:[%s7718_s4 + $0xf8] sm:$0xff] %vm3984_vm1, %v3951_v60  ;;  %v2896_v61 = vsel %vm2768_vm8, %v2704_v39, %v2832_v50  ;;  %v2641_v25 = vmul.f32 %v6844_v19, %v8113_v53  ;;  %v3635_v22 = vmul.f32 %v6844_v19, %v8114_v40  ;;  %v8117_v11 = vmax.f32 %v8115_v1, %v8116_v46  ;;  %v8119_v60 = vld [vmem:[#allocation64_spill] sm:$0xff] }
 0x204   :  { %v3949_v13 = vmax.f32 %v2955_v36, %v3885_v34  ;;  %v3890_v52 = vsel %vm3762_vm9, %v3698_v55, %v3826_v48  ;;  %vm2766_vm10 = vcmp.gt.f32.partialorder %v2702_v8, 0.0  ;;  %v2830_v63 = vmul.f32 0.01, %v2702_v8  ;;  %v8118_v55 = vld [vmem:[#allocation63_spill] sm:$0xff]  ;;  %v8121_v34 = vld [vmem:[#allocation5_spill] sm:$0xff]  ;;  %v8122_v48 = vld [vmem:[#allocation6_spill] sm:$0xff] }
 0x205   :  { %v2960_v35 = vmax.f32 %v8117_v11, %v2896_v61  ;;  %vm3760_vm11 = vcmp.gt.f32.partialorder %v3696_v15, 0.0  ;;  %v3824_v7 = vmul.f32 0.01, %v3696_v15  ;;  %v2705_v2 = vadd.f32 %v6837_v12, %v2641_v25 }
 0x206   :  { %4014 = vst.msk [vmem:[%s7718_s4 + $0xe8] sm:$0xff] %vm3984_vm1, %v3949_v13  ;;  %v3699_v4 = vadd.f32 %v6837_v12, %v3635_v22  ;;  %v2894_v42 = vsel %vm2766_vm10, %v2702_v8, %v2830_v63  ;;  %v2639_v56 = vmul.f32 %v6844_v19, %v6819_v58  ;;  %v3633_v39 = vmul.f32 %v6844_v19, %v6821_v57  ;;  %v8124_v13 = vld [vmem:[#allocation66_spill] sm:$0xff] }
 0x207   :  { %v3954_v59 = vmax.f32 %v2960_v35, %v3890_v52  ;;  %v8120_v27 = vmax.f32 %v8118_v55, %v8119_v60  ;;  %v3888_v23 = vsel %vm3760_vm11, %v3696_v15, %v3824_v7  ;;  %vm2769_vm12 = vcmp.gt.f32.partialorder %v2705_v2, 0.0  ;;  %v8123_v15 = vld [vmem:[#allocation65_spill] sm:$0xff]  ;;  %v8126_v52 = vld [vmem:[#allocation7_spill] sm:$0xff]  ;;  %v8127_v7 = vld [vmem:[#allocation8_spill] sm:$0xff] }
 0x208   :  { %v2833_v16 = vmul.f32 0.01, %v2705_v2  ;;  %vm3763_vm13 = vcmp.gt.f32.partialorder %v3699_v4, 0.0  ;;  %v3827_v24 = vmul.f32 0.01, %v3699_v4  ;;  %v2703_v18 = vadd.f32 %v6837_v12, %v2639_v56 }
 0x209   :  { %v2958_v51 = vmax.f32 %v8120_v27, %v2894_v42  ;;  %4019 = vst.msk [vmem:[%s7718_s4 + $0x110] sm:$0xff] %vm3984_vm1, %v3954_v59  ;;  %v3697_v58 = vadd.f32 %v6837_v12, %v3633_v39  ;;  %v2644_v50 = vmul.f32 %v6844_v19, %v8121_v34  ;;  %v3638_v8 = vmul.f32 %v6844_v19, %v8122_v48  ;;  %v8129_v59 = vld [vmem:[#allocation68_spill] sm:$0xff] }
 0x20a   :  { %v2897_v57 = vsel %vm2769_vm12, %v2705_v2, %v2833_v16  ;;  %v8125_v61 = vmax.f32 %v8123_v15, %v8124_v13  ;;  %v3891_v25 = vsel %vm3763_vm13, %v3699_v4, %v3827_v24  ;;  %vm2767_vm0 = vcmp.gt.f32.partialorder %v2703_v18, 0.0  ;;  %v8128_v4 = vld [vmem:[#allocation67_spill] sm:$0xff] }
 0x20b   :  { %v3952_v36 = vmax.f32 %v2958_v51, %v3888_v23  ;;  %v2831_v40 = vmul.f32 0.01, %v2703_v18  ;;  %vm3761_vm14 = vcmp.gt.f32.partialorder %v3697_v58, 0.0  ;;  %v3825_v22 = vmul.f32 0.01, %v3697_v58 }
 0x20c   :  { %v2961_v53 = vmax.f32 %v8125_v61, %v2897_v57  ;;  %v2708_v1 = vadd.f32 %v6837_v12, %v2644_v50  ;;  %v3702_v46 = vadd.f32 %v6837_v12, %v3638_v8  ;;  %v2642_v63 = vmul.f32 %v6844_v19, %v8126_v52 }
 0x20d   :  { %4017 = vst.msk [vmem:[%s7718_s4 + $0x100] sm:$0xff] %vm3984_vm1, %v3952_v36  ;;  %v2895_v35 = vsel %vm2767_vm0, %v2703_v18, %v2831_v40  ;;  %v3636_v2 = vmul.f32 %v6844_v19, %v8127_v7  ;;  %v8130_v42 = vmax.f32 %v8128_v4, %v8129_v59  ;;  %v3889_v39 = vsel %vm3761_vm14, %v3697_v58, %v3825_v22  ;;  %v8131_v58 = vld [vmem:[#allocation69_spill] sm:$0xff]  ;;  %v8132_v36 = vld [vmem:[#allocation70_spill] sm:$0xff]  ;;  %v8135_v40 = vld [vmem:[#allocation71_spill] sm:$0xff] }
 0x20e   :  { %v3955_v11 = vmax.f32 %v2961_v53, %v3891_v25  ;;  %vm2772_vm15 = vcmp.gt.f32.partialorder %v2708_v1, 0.0  ;;  %v2836_v55 = vmul.f32 0.01, %v2708_v1  ;;  %vm3766_vm2 = vcmp.gt.f32.partialorder %v3702_v46, 0.0  ;;  %v8134_v53 = vld [vmem:[#allocation98_spill] sm:$0xff]  ;;  %v8136_v22 = vld [vmem:[#allocation72_spill] sm:$0xff] }
 0x20f   :  { %v2959_v56 = vmax.f32 %v8130_v42, %v2895_v35  ;;  %v3830_v60 = vmul.f32 0.01, %v3702_v46  ;;  %v2706_v27 = vadd.f32 %v6837_v12, %v2642_v63  ;;  %v3700_v51 = vadd.f32 %v6837_v12, %v3636_v2  ;;  %v8138_v42 = vld [vmem:[#allocation73_spill] sm:$0xff] }
 0x210   :  { %4020 = vst.msk [vmem:[%s7718_s4 + $0x118] sm:$0xff] %vm3984_vm1, %v3955_v11  ;;  %v2900_v16 = vsel %vm2772_vm15, %v2708_v1, %v2836_v55  ;;  %v2645_v24 = vmul.f32 %v6844_v19, %v6871_v62  ;;  %v3639_v18 = vmul.f32 %v6844_v19, %v6873_v32  ;;  %v8133_v57 = vmax.f32 %v8131_v58, %v8132_v36  ;;  %v8142_v36 = vld [vmem:[#allocation75_spill] sm:$0xff] }
 0x211   :  { %v3953_v23 = vmax.f32 %v2959_v56, %v3889_v39  ;;  %v3894_v50 = vsel %vm3766_vm2, %v3702_v46, %v3830_v60  ;;  %vm2770_vm3 = vcmp.gt.f32.partialorder %v2706_v27, 0.0  ;;  %v2834_v48 = vmul.f32 0.01, %v2706_v27  ;;  %v8139_v56 = vld [vmem:[#allocation74_spill] sm:$0xff] }
 0x212   :  { %v2964_v34 = vmax.f32 %v8133_v57, %v2900_v16  ;;  %vm3764_vm4 = vcmp.gt.f32.partialorder %v3700_v51, 0.0  ;;  %v3828_v8 = vmul.f32 0.01, %v3700_v51  ;;  %v2709_v15 = vadd.f32 %v6837_v12, %v2645_v24  ;;  %v8143_v57 = vld [vmem:[#allocation76_spill] sm:$0xff] }
 0x213   :  { %4018 = vst.msk [vmem:[%s7718_s4 + $0x108] sm:$0xff] %vm3984_vm1, %v3953_v23  ;;  %v3703_v62 = vadd.f32 %v6837_v12, %v3639_v18  ;;  %v2898_v32 = vsel %vm2770_vm3, %v2706_v27, %v2834_v48  ;;  %v2643_v61 = vmul.f32 %v6844_v19, %v6878_v17  ;;  %v3637_v25 = vmul.f32 %v6844_v19, %v8134_v53  ;;  %v8141_v18 = vld [vmem:[#allocation9_spill] sm:$0xff] }
 0x214   :  { %v3958_v13 = vmax.f32 %v2964_v34, %v3894_v50  ;;  %v8137_v1 = vmax.f32 %v8135_v40, %v8136_v22  ;;  %v3892_v11 = vsel %vm3764_vm4, %v3700_v51, %v3828_v8  ;;  %vm2773_vm5 = vcmp.gt.f32.partialorder %v2709_v15, 0.0  ;;  %v8146_v40 = vld [vmem:[#allocation77_spill] sm:$0xff]  ;;  %v8147_v22 = vld [vmem:[#allocation78_spill] sm:$0xff] }
 0x215   :  { %v2837_v35 = vmul.f32 0.01, %v2709_v15  ;;  %vm3767_vm6 = vcmp.gt.f32.partialorder %v3703_v62, 0.0  ;;  %v3831_v52 = vmul.f32 0.01, %v3703_v62  ;;  %v2707_v63 = vadd.f32 %v6837_v12, %v2643_v61  ;;  %v8145_v61 = vld [vmem:[#allocation10_spill] sm:$0xff] }
 0x216   :  { %v2962_v46 = vmax.f32 %v8137_v1, %v2898_v32  ;;  %4023 = vst.msk [vmem:[%s7718_s4 + $0x130] sm:$0xff] %vm3984_vm1, %v3958_v13  ;;  %v3701_v17 = vadd.f32 %v6837_v12, %v3637_v25  ;;  %v2648_v4 = vmul.f32 %v6844_v19, %v6905_v9  ;;  %v3642_v59 = vmul.f32 %v6844_v19, %v6907_v20 }
 0x217   :  { %v2901_v2 = vsel %vm2773_vm5, %v2709_v15, %v2837_v35  ;;  %v8140_v39 = vmax.f32 %v8138_v42, %v8139_v56  ;;  %v3895_v60 = vsel %vm3767_vm6, %v3703_v62, %v3831_v52  ;;  %vm2771_vm7 = vcmp.gt.f32.partialorder %v2707_v63, 0.0  ;;  %v7423_v42 = vld [vmem:[%s7716_s2] ss:$0 sm:$0xff]  ;;  %v8150_v56 = vld [vmem:[#allocation11_spill] sm:$0xff] }
 0x218   :  { %v3956_v7 = vmax.f32 %v2962_v46, %v3892_v11  ;;  %v2835_v27 = vmul.f32 0.01, %v2707_v63  ;;  %vm3765_vm8 = vcmp.gt.f32.partialorder %v3701_v17, 0.0  ;;  %v3829_v51 = vmul.f32 0.01, %v3701_v17 }
 0x219   :  { %v2965_v55 = vmax.f32 %v8140_v39, %v2901_v2  ;;  %v2712_v23 = vadd.f32 %v6837_v12, %v2648_v4  ;;  %v3706_v9 = vadd.f32 %v6837_v12, %v3642_v59  ;;  %v2646_v24 = vmul.f32 %v6844_v19, %v6912_v10  ;;  %v8149_v4 = vld [vmem:[#allocation101_spill] sm:$0xff]  ;;  %v8151_v39 = vld [vmem:[#allocation79_spill] sm:$0xff] }
 0x21a   :  { %4021 = vst.msk [vmem:[%s7718_s4 + $0x120] sm:$0xff] %vm3984_vm1, %v3956_v7  ;;  %v2899_v20 = vsel %vm2771_vm7, %v2707_v63, %v2835_v27  ;;  %v3640_v58 = vmul.f32 %v6844_v19, %v8141_v18  ;;  %v8144_v34 = vmax.f32 %v8142_v36, %v8143_v57  ;;  %v3893_v48 = vsel %vm3765_vm8, %v3701_v17, %v3829_v51  ;;  %v8154_v18 = vld [vmem:[#allocation12_spill] sm:$0xff]  ;;  %v8155_v36 = vld [vmem:[#allocation13_spill] sm:$0xff] }
 0x21b   :  { %v3959_v16 = vmax.f32 %v2965_v55, %v3895_v60  ;;  %vm2776_vm9 = vcmp.gt.f32.partialorder %v2712_v23, 0.0  ;;  %v2840_v8 = vmul.f32 0.01, %v2712_v23  ;;  %vm3770_vm10 = vcmp.gt.f32.partialorder %v3706_v9, 0.0  ;;  %v8152_v55 = vld [vmem:[#allocation80_spill] sm:$0xff] }
 0x21c   :  { %v2963_v50 = vmax.f32 %v8144_v34, %v2899_v20  ;;  %v3834_v15 = vmul.f32 0.01, %v3706_v9  ;;  %v2710_v62 = vadd.f32 %v6837_v12, %v2646_v24  ;;  %v3704_v10 = vadd.f32 %v6837_v12, %v3640_v58  ;;  %v8156_v34 = vld [vmem:[#allocation81_spill] sm:$0xff] }
 0x21d   :  { %4024 = vst.msk [vmem:[%s7718_s4 + $0x138] sm:$0xff] %vm3984_vm1, %v3959_v16  ;;  %v2904_v32 = vsel %vm2776_vm9, %v2712_v23, %v2840_v8  ;;  %v2649_v53 = vmul.f32 %v6844_v19, %v8145_v61  ;;  %v3643_v25 = vmul.f32 %v6844_v19, %v6924_v26  ;;  %v8148_v1 = vmax.f32 %v8146_v40, %v8147_v22  ;;  %v7415_v26 = vld [vmem:[%s7717_s3] ss:$0 sm:$0xff] }
 0x21e   :  { %v3957_v13 = vmax.f32 %v2963_v50, %v3893_v48  ;;  %v3898_v11 = vsel %vm3770_vm10, %v3706_v9, %v3834_v15  ;;  %vm2774_vm11 = vcmp.gt.f32.partialorder %v2710_v62, 0.0  ;;  %v2838_v35 = vmul.f32 0.01, %v2710_v62  ;;  %v8157_v50 = vld [vmem:[#allocation82_spill] sm:$0xff] }
 0x21f   :  { %v2968_v46 = vmax.f32 %v8148_v1, %v2904_v32  ;;  %vm3768_vm12 = vcmp.gt.f32.partialorder %v3704_v10, 0.0  ;;  %v3832_v52 = vmul.f32 0.01, %v3704_v10  ;;  %v2713_v63 = vadd.f32 %v6837_v12, %v2649_v53  ;;  %v8159_v40 = vld [vmem:[#allocation14_spill] sm:$0xff]  ;;  %v8160_v1 = vld [vmem:[#allocation83_spill] sm:$0xff] }
 0x220   :  { %4022 = vst.msk [vmem:[%s7718_s4 + $0x128] sm:$0xff] %vm3984_vm1, %v3957_v13  ;;  %v3707_v17 = vadd.f32 %v7415_v26, %v3643_v25  ;;  %v2902_v2 = vsel %vm2774_vm11, %v2710_v62, %v2838_v35  ;;  %v2647_v59 = vmul.f32 %v6844_v19, %v8149_v4  ;;  %v3641_v12 = vmul.f32 %v7423_v42, %v8150_v56 }
 0x221   :  { %v3962_v7 = vmax.f32 %v2968_v46, %v3898_v11  ;;  %v8153_v60 = vmax.f32 %v8151_v39, %v8152_v55  ;;  %v3896_v51 = vsel %vm3768_vm12, %v3704_v10, %v3832_v52  ;;  %vm2777_vm13 = vcmp.gt.f32.partialorder %v2713_v63, 0.0  ;;  %v8161_v46 = vld [vmem:[#allocation84_spill] sm:$0xff]  ;;  %v8165_v55 = vld [vmem:[#allocation85_spill] sm:$0xff] }
 0x222   :  { %v2841_v23 = vmul.f32 0.01, %v2713_v63  ;;  %vm3771_vm0 = vcmp.gt.f32.partialorder %v3707_v17, 0.0  ;;  %v3835_v19 = vmul.f32 0.01, %v3707_v17  ;;  %v2711_v9 = vadd.f32 %v7415_v26, %v2647_v59  ;;  %v8163_v59 = vld [vmem:[#allocation15_spill] sm:$0xff] }
 0x223   :  { %v2966_v27 = vmax.f32 %v8153_v60, %v2902_v2  ;;  %4027 = vst.msk [vmem:[%s7718_s4 + $0x150] sm:$0xff] %vm3984_vm1, %v3962_v7  ;;  %v3705_v16 = vadd.f32 %v7415_v26, %v3641_v12  ;;  %v2652_v58 = vmul.f32 %v7423_v42, %v8154_v18  ;;  %v3646_v57 = vmul.f32 %v7423_v42, %v8155_v36  ;;  %v8164_v12 = vld [vmem:[#allocation16_spill] sm:$0xff]  ;;  %v8166_v60 = vld [vmem:[#allocation86_spill] sm:$0xff] }
 0x224   :  { %v2905_v24 = vsel %vm2777_vm13, %v2713_v63, %v2841_v23  ;;  %v8158_v48 = vmax.f32 %v8156_v34, %v8157_v50  ;;  %v3899_v15 = vsel %vm3771_vm0, %v3707_v17, %v3835_v19  ;;  %vm2775_vm14 = vcmp.gt.f32.partialorder %v2711_v9, 0.0  ;;  %v8169_v34 = vld [vmem:[#allocation88_spill] sm:$0xff] }
 0x225   :  { %v3960_v20 = vmax.f32 %v2966_v27, %v3896_v51  ;;  %v2839_v62 = vmul.f32 0.01, %v2711_v9  ;;  %vm3769_vm15 = vcmp.gt.f32.partialorder %v3705_v16, 0.0  ;;  %v3833_v10 = vmul.f32 0.01, %v3705_v16 }
 0x226   :  { %v2969_v8 = vmax.f32 %v8158_v48, %v2905_v24  ;;  %v2716_v13 = vadd.f32 %v7415_v26, %v2652_v58  ;;  %v3710_v32 = vadd.f32 %v7415_v26, %v3646_v57  ;;  %v2650_v25 = vmul.f32 %v7423_v42, %v6964_v33  ;;  %v8168_v57 = vld [vmem:[#allocation87_spill] sm:$0xff] }
 0x227   :  { %4025 = vst.msk [vmem:[%s7718_s4 + $0x140] sm:$0xff] %vm3984_vm1, %v3960_v20  ;;  %v2903_v53 = vsel %vm2775_vm14, %v2711_v9, %v2839_v62  ;;  %v3644_v22 = vmul.f32 %v7423_v42, %v8159_v40  ;;  %v8162_v11 = vmax.f32 %v8160_v1, %v8161_v46  ;;  %v3897_v52 = vsel %vm3769_vm15, %v3705_v16, %v3833_v10 }
 0x228   :  { %v3963_v61 = vmax.f32 %v2969_v8, %v3899_v15  ;;  %vm2780_vm2 = vcmp.gt.f32.partialorder %v2716_v13, 0.0  ;;  %v2844_v63 = vmul.f32 0.01, %v2716_v13  ;;  %vm3774_vm3 = vcmp.gt.f32.partialorder %v3710_v32, 0.0 }
 0x229   :  { %v2967_v35 = vmax.f32 %v8162_v11, %v2903_v53  ;;  %v3838_v17 = vmul.f32 0.01, %v3710_v32  ;;  %v2714_v7 = vadd.f32 %v7415_v26, %v2650_v25  ;;  %v3708_v33 = vadd.f32 %v7415_v26, %v3644_v22  ;;  %v8171_v53 = vld [vmem:[#allocation89_spill] sm:$0xff]  ;;  %v8172_v25 = vld [vmem:[#allocation90_spill] sm:$0xff] }
 0x22a   :  { %4028 = vst.msk [vmem:[%s7718_s4 + $0x158] sm:$0xff] %vm3984_vm1, %v3963_v61  ;;  %v2908_v4 = vsel %vm2780_vm2, %v2716_v13, %v2844_v63  ;;  %v2653_v56 = vmul.f32 %v7423_v42, %v8163_v59  ;;  %v3647_v39 = vmul.f32 %v7423_v42, %v8164_v12  ;;  %v8167_v27 = vmax.f32 %v8165_v55, %v8166_v60  ;;  %v8174_v63 = vld [vmem:[#allocation17_spill] sm:$0xff] }
 0x22b   :  { %v3961_v2 = vmax.f32 %v2967_v35, %v3897_v52  ;;  %v3902_v23 = vsel %vm3774_vm3, %v3710_v32, %v3838_v17  ;;  %vm2778_vm4 = vcmp.gt.f32.partialorder %v2714_v7, 0.0  ;;  %v2842_v19 = vmul.f32 0.01, %v2714_v7 }
 0x22c   :  { %v2972_v51 = vmax.f32 %v8167_v27, %v2908_v4  ;;  %vm3772_vm5 = vcmp.gt.f32.partialorder %v3708_v33, 0.0  ;;  %v3836_v9 = vmul.f32 0.01, %v3708_v33  ;;  %v2717_v16 = vadd.f32 %v7415_v26, %v2653_v56 }
 0x22d   :  { %4026 = vst.msk [vmem:[%s7718_s4 + $0x148] sm:$0xff] %vm3984_vm1, %v3961_v2  ;;  %v3711_v20 = vadd.f32 %v7415_v26, %v3647_v39  ;;  %v2906_v18 = vsel %vm2778_vm4, %v2714_v7, %v2842_v19  ;;  %v2651_v58 = vmul.f32 %v7423_v42, %v6981_v29  ;;  %v3645_v36 = vmul.f32 %v7423_v42, %v6983_v43  ;;  %v8176_v2 = vld [vmem:[#allocation92_spill] sm:$0xff] }
 0x22e   :  { %v3966_v24 = vmax.f32 %v2972_v51, %v3902_v23  ;;  %v8170_v50 = vmax.f32 %v8168_v57, %v8169_v34  ;;  %v3900_v8 = vsel %vm3772_vm5, %v3708_v33, %v3836_v9  ;;  %vm2781_vm6 = vcmp.gt.f32.partialorder %v2717_v16, 0.0  ;;  %v8175_v33 = vld [vmem:[#allocation91_spill] sm:$0xff]  ;;  %v8178_v23 = vld [vmem:[#allocation18_spill] sm:$0xff]  ;;  %v8179_v9 = vld [vmem:[#allocation93_spill] sm:$0xff] }
 0x22f   :  { %v2845_v15 = vmul.f32 0.01, %v2717_v16  ;;  %vm3775_vm7 = vcmp.gt.f32.partialorder %v3711_v20, 0.0  ;;  %v3839_v62 = vmul.f32 0.01, %v3711_v20  ;;  %v2715_v10 = vadd.f32 %v7415_v26, %v2651_v58 }
 0x230   :  { %v2970_v48 = vmax.f32 %v8170_v50, %v2906_v18  ;;  %4031 = vst.msk [vmem:[%s7718_s4 + $0x170] sm:$0xff] %vm3984_vm1, %v3966_v24  ;;  %v3709_v29 = vadd.f32 %v7415_v26, %v3645_v36  ;;  %v2656_v32 = vmul.f32 %v7423_v42, %v7005_v37  ;;  %v3650_v61 = vmul.f32 %v7423_v42, %v7013_v54 }
 0x231   :  { %v2909_v43 = vsel %vm2781_vm6, %v2717_v16, %v2845_v15  ;;  %v8173_v40 = vmax.f32 %v8171_v53, %v8172_v25  ;;  %v3903_v1 = vsel %vm3775_vm7, %v3711_v20, %v3839_v62  ;;  %vm2779_vm8 = vcmp.gt.f32.partialorder %v2715_v10, 0.0  ;;  %v8180_v16 = vld [vmem:[#allocation94_spill] sm:$0xff]  ;;  %v8183_v15 = vld [vmem:[#allocation108_spill] sm:$0xff] }
 0x232   :  { %v3964_v13 = vmax.f32 %v2970_v48, %v3900_v8  ;;  %v2843_v46 = vmul.f32 0.01, %v2715_v10  ;;  %vm3773_vm9 = vcmp.gt.f32.partialorder %v3709_v29, 0.0  ;;  %v3837_v11 = vmul.f32 0.01, %v3709_v29  ;;  %v8182_v48 = vld [vmem:[#allocation107_spill] sm:$0xff] }
 0x233   :  { %v2973_v22 = vmax.f32 %v8173_v40, %v2909_v43  ;;  %v2720_v35 = vadd.f32 %v7415_v26, %v2656_v32  ;;  %v3714_v37 = vadd.f32 %v7415_v26, %v3650_v61  ;;  %v2654_v17 = vmul.f32 %v7423_v42, %v8174_v63 }
 0x234   :  { %4029 = vst.msk [vmem:[%s7718_s4 + $0x160] sm:$0xff] %vm3984_vm1, %v3964_v13  ;;  %v2907_v54 = vsel %vm2779_vm8, %v2715_v10, %v2843_v46  ;;  %v3648_v7 = vmul.f32 %v7423_v42, %v7021_v21  ;;  %v8177_v4 = vmax.f32 %v8175_v33, %v8176_v2  ;;  %v3901_v56 = vsel %vm3773_vm9, %v3709_v29, %v3837_v11  ;;  %v8184_v10 = vld [vmem:[#allocation95_spill] sm:$0xff]  ;;  %v8185_v29 = vld [vmem:[#allocation96_spill] sm:$0xff] }
 0x235   :  { %v3967_v52 = vmax.f32 %v2973_v22, %v3903_v1  ;;  %vm2784_vm10 = vcmp.gt.f32.partialorder %v2720_v35, 0.0  ;;  %v2848_v12 = vmul.f32 0.01, %v2720_v35  ;;  %vm3778_vm11 = vcmp.gt.f32.partialorder %v3714_v37, 0.0 }
 0x236   :  { %v2971_v59 = vmax.f32 %v8177_v4, %v2907_v54  ;;  %v3842_v39 = vmul.f32 0.01, %v3714_v37  ;;  %v2718_v55 = vadd.f32 %v7415_v26, %v2654_v17  ;;  %v3712_v60 = vadd.f32 %v7415_v26, %v3648_v7  ;;  %v8190_v4 = vld [vmem:[#allocation19_spill] sm:$0xff] }
 0x237   :  { %4032 = vst.msk [vmem:[%s7718_s4 + $0x178] sm:$0xff] %vm3984_vm1, %v3967_v52  ;;  %v2912_v21 = vsel %vm2784_vm10, %v2720_v35, %v2848_v12  ;;  %v2657_v51 = vmul.f32 %v7423_v42, %v7023_v6  ;;  %v3651_v19 = vmul.f32 %v7423_v42, %v8178_v23  ;;  %v8181_v20 = vmax.f32 %v8179_v9, %v8180_v16  ;;  %v8187_v35 = vld [vmem:[#allocation97_spill] sm:$0xff] }
 0x238   :  { %v3965_v27 = vmax.f32 %v2971_v59, %v3901_v56  ;;  %v3906_v18 = vsel %vm3778_vm11, %v3714_v37, %v3842_v39  ;;  %vm2782_vm12 = vcmp.gt.f32.partialorder %v2718_v55, 0.0  ;;  %v2846_v58 = vmul.f32 0.01, %v2718_v55  ;;  %v8188_v37 = vld [vmem:[#allocation99_spill] sm:$0xff]  ;;  %v8191_v56 = vld [vmem:[#allocation20_spill] sm:$0xff] }
 0x239   :  { %v2976_v24 = vmax.f32 %v8181_v20, %v2912_v21  ;;  %vm3776_vm13 = vcmp.gt.f32.partialorder %v3712_v60, 0.0  ;;  %v3840_v36 = vmul.f32 0.01, %v3712_v60  ;;  %v2721_v57 = vadd.f32 %v7415_v26, %v2657_v51  ;;  %v8192_v39 = vld [vmem:[#allocation100_spill] sm:$0xff] }
 0x23a   :  { %4030 = vst.msk [vmem:[%s7718_s4 + $0x168] sm:$0xff] %vm3984_vm1, %v3965_v27  ;;  %v3715_v6 = vadd.f32 %v7415_v26, %v3651_v19  ;;  %v2910_v50 = vsel %vm2782_vm12, %v2718_v55, %v2846_v58  ;;  %v2655_v8 = vmul.f32 %v7423_v42, %v8182_v48  ;;  %v3649_v62 = vmul.f32 %v7423_v42, %v8183_v15  ;;  %v8193_v55 = vld [vmem:[#allocation102_spill] sm:$0xff] }
 0x23b   :  { %v3970_v34 = vmax.f32 %v2976_v24, %v3906_v18  ;;  %v8186_v13 = vmax.f32 %v8184_v10, %v8185_v29  ;;  %v3904_v32 = vsel %vm3776_vm13, %v3712_v60, %v3840_v36  ;;  %vm2785_vm0 = vcmp.gt.f32.partialorder %v2721_v57, 0.0  ;;  %v8195_v24 = vld [vmem:[#allocation110_spill] sm:$0xff]  ;;  %v8196_v36 = vld [vmem:[#allocation103_spill] sm:$0xff] }
 0x23c   :  { %v2849_v61 = vmul.f32 0.01, %v2721_v57  ;;  %vm3779_vm14 = vcmp.gt.f32.partialorder %v3715_v6, 0.0  ;;  %v3843_v53 = vmul.f32 0.01, %v3715_v6  ;;  %v2719_v25 = vadd.f32 %v7415_v26, %v2655_v8 }
 0x23d   :  { %v2974_v43 = vmax.f32 %v8186_v13, %v2910_v50  ;;  %4035 = vst.msk [vmem:[%s7718_s4 + $0x190] sm:$0xff] %vm3984_vm1, %v3970_v34  ;;  %v3713_v40 = vadd.f32 %v7415_v26, %v3649_v62  ;;  %v2660_v46 = vmul.f32 %v7423_v42, %v7057_v14  ;;  %v3654_v11 = vmul.f32 %v7423_v42, %v7062_v45 }
 0x23e   :  { %v2913_v1 = vsel %vm2785_vm0, %v2721_v57, %v2849_v61  ;;  %v8189_v52 = vmax.f32 %v8187_v35, %v8188_v37  ;;  %v3907_v63 = vsel %vm3779_vm14, %v3715_v6, %v3843_v53  ;;  %vm2783_vm15 = vcmp.gt.f32.partialorder %v2719_v25, 0.0  ;;  %v8197_v57 = vld [vmem:[#allocation104_spill] sm:$0xff]  ;;  %v8202_v37 = vld [vmem:[#allocation109_spill] sm:$0xff] }
 0x23f   :  { %v3968_v22 = vmax.f32 %v2974_v43, %v3904_v32  ;;  %v2847_v17 = vmul.f32 0.01, %v2719_v25  ;;  %vm3777_vm2 = vcmp.gt.f32.partialorder %v3713_v40, 0.0  ;;  %v3841_v7 = vmul.f32 0.01, %v3713_v40  ;;  %v8199_v43 = vld [vmem:[#allocation105_spill] sm:$0xff] }
 0x240   :  { %v2977_v54 = vmax.f32 %v8189_v52, %v2913_v1  ;;  %v2724_v33 = vadd.f32 %v7415_v26, %v2660_v46  ;;  %v3718_v14 = vadd.f32 %v7415_v26, %v3654_v11  ;;  %v2658_v59 = vmul.f32 %v7423_v42, %v8190_v4  ;;  %v8200_v32 = vld [vmem:[#allocation106_spill] sm:$0xff]  ;;  %v8203_v52 = vld [vmem:[#allocation111_spill] sm:$0xff] }
 0x241   :  { %4033 = vst.msk [vmem:[%s7718_s4 + $0x180] sm:$0xff] %vm3984_vm1, %v3968_v22  ;;  %v2911_v45 = vsel %vm2783_vm15, %v2719_v25, %v2847_v17  ;;  %v3652_v12 = vmul.f32 %v7423_v42, %v8191_v56  ;;  %v8194_v60 = vmax.f32 %v8192_v39, %v8193_v55  ;;  %v3905_v21 = vsel %vm3777_vm2, %v3713_v40, %v3841_v7  ;;  %v8208_v39 = vld [vmem:[#allocation114_spill] sm:$0xff] }
 0x242   :  { %v3971_v2 = vmax.f32 %v2977_v54, %v3907_v63  ;;  %vm2788_vm3 = vcmp.gt.f32.partialorder %v2724_v33, 0.0  ;;  %v2852_v51 = vmul.f32 0.01, %v2724_v33  ;;  %vm3782_vm4 = vcmp.gt.f32.partialorder %v3718_v14, 0.0 }
 0x243   :  { %v2975_v27 = vmax.f32 %v8194_v60, %v2911_v45  ;;  %v3846_v23 = vmul.f32 0.01, %v3718_v14  ;;  %v2722_v19 = vadd.f32 %v7415_v26, %v2658_v59  ;;  %v3716_v9 = vadd.f32 %v7415_v26, %v3652_v12  ;;  %v8205_v45 = vld [vmem:[#allocation21_spill] sm:$0xff]  ;;  %v8206_v59 = vld [vmem:[#allocation22_spill] sm:$0xff]  ;;  %v8207_v12 = vld [vmem:[#allocation112_spill] sm:$0xff] }
 0x244   :  { %4036 = vst.msk [vmem:[%s7718_s4 + $0x198] sm:$0xff] %vm3984_vm1, %v3971_v2  ;;  %v2916_v20 = vsel %vm2788_vm3, %v2724_v33, %v2852_v51  ;;  %v2661_v18 = vmul.f32 %v7423_v42, %v8195_v24  ;;  %v3655_v58 = vmul.f32 %v7423_v42, %v7080_v49  ;;  %v8198_v6 = vmax.f32 %v8196_v36, %v8197_v57  ;;  %v8212_v36 = vld [vmem:[#allocation116_spill] sm:$0xff] }
 0x245   :  { %v3969_v16 = vmax.f32 %v2975_v27, %v3905_v21  ;;  %v3910_v50 = vsel %vm3782_vm4, %v3718_v14, %v3846_v23  ;;  %vm2786_vm5 = vcmp.gt.f32.partialorder %v2722_v19, 0.0  ;;  %v2850_v48 = vmul.f32 0.01, %v2722_v19 }
 0x246   :  { %v2980_v34 = vmax.f32 %v8198_v6, %v2916_v20  ;;  %vm3780_vm6 = vcmp.gt.f32.partialorder %v3716_v9, 0.0  ;;  %v3844_v8 = vmul.f32 0.01, %v3716_v9  ;;  %v2725_v15 = vadd.f32 %v7415_v26, %v2661_v18  ;;  %v8210_v20 = vld [vmem:[#allocation113_spill] sm:$0xff] }
 0x247   :  { %4034 = vst.msk [vmem:[%s7718_s4 + $0x188] sm:$0xff] %vm3984_vm1, %v3969_v16  ;;  %v3719_v62 = vadd.f32 %v7415_v26, %v3655_v58  ;;  %v2914_v49 = vsel %vm2786_vm5, %v2722_v19, %v2850_v48  ;;  %v2659_v29 = vmul.f32 %v7423_v42, %v7082_v38  ;;  %v3653_v13 = vmul.f32 %v7423_v42, %v7087_v47  ;;  %v8211_v58 = vld [vmem:[#allocation115_spill] sm:$0xff] }
 0x248   :  { %v3974_v10 = vmax.f32 %v2980_v34, %v3910_v50  ;;  %v8201_v61 = vmax.f32 %v8199_v43, %v8200_v32  ;;  %v3908_v25 = vsel %vm3780_vm6, %v3716_v9, %v3844_v8  ;;  %vm2789_vm7 = vcmp.gt.f32.partialorder %v2725_v15, 0.0  ;;  %v8216_v43 = vld [vmem:[#allocation118_spill] sm:$0xff] }
 0x249   :  { %v2853_v40 = vmul.f32 0.01, %v2725_v15  ;;  %vm3783_vm8 = vcmp.gt.f32.partialorder %v3719_v62, 0.0  ;;  %v3847_v22 = vmul.f32 0.01, %v3719_v62  ;;  %v2723_v1 = vadd.f32 %v7415_v26, %v2659_v29 }
 0x24a   :  { %v2978_v53 = vmax.f32 %v8201_v61, %v2914_v49  ;;  %4039 = vst.msk [vmem:[%s7718_s4 + $0x1b0] sm:$0xff] %vm3984_vm1, %v3974_v10  ;;  %v3717_v38 = vadd.f32 %v7415_v26, %v3653_v13  ;;  %v2664_v11 = vmul.f32 %v7423_v42, %v7108_v0  ;;  %v3658_v35 = vmul.f32 %v7423_v42, %v7114_v41  ;;  %v8214_v49 = vld [vmem:[#allocation23_spill] sm:$0xff]  ;;  %v8215_v13 = vld [vmem:[#allocation117_spill] sm:$0xff] }
 0x24b   :  { %v2917_v47 = vsel %vm2789_vm7, %v2725_v15, %v2853_v40  ;;  %v8204_v54 = vmax.f32 %v8202_v37, %v8203_v52  ;;  %v3911_v17 = vsel %vm3783_vm8, %v3719_v62, %v3847_v22  ;;  %vm2787_vm9 = vcmp.gt.f32.partialorder %v2723_v1, 0.0  ;;  %v8220_v37 = vld [vmem:[#allocation122_spill] sm:$0xff] }
 0x24c   :  { %v3972_v46 = vmax.f32 %v2978_v53, %v3908_v25  ;;  %v2851_v7 = vmul.f32 0.01, %v2723_v1  ;;  %vm3781_vm10 = vcmp.gt.f32.partialorder %v3717_v38, 0.0  ;;  %v3845_v33 = vmul.f32 0.01, %v3717_v38 }
 0x24d   :  { %v2981_v63 = vmax.f32 %v8204_v54, %v2917_v47  ;;  %v2728_v14 = vadd.f32 %v7415_v26, %v2664_v11  ;;  %v3722_v0 = vadd.f32 %v7415_v26, %v3658_v35  ;;  %v2662_v4 = vmul.f32 %v7423_v42, %v8205_v45  ;;  %v8218_v47 = vld [vmem:[#allocation24_spill] sm:$0xff]  ;;  %v8219_v35 = vld [vmem:[#allocation121_spill] sm:$0xff] }
 0x24e   :  { %4037 = vst.msk [vmem:[%s7718_s4 + $0x1a0] sm:$0xff] %vm3984_vm1, %v3972_v46  ;;  %v2915_v41 = vsel %vm2787_vm9, %v2723_v1, %v2851_v7  ;;  %v3656_v56 = vmul.f32 %v7423_v42, %v8206_v59  ;;  %v8209_v55 = vmax.f32 %v8207_v12, %v8208_v39  ;;  %v3909_v27 = vsel %vm3781_vm10, %v3717_v38, %v3845_v33  ;;  %v8224_v59 = vld [vmem:[#allocation124_spill] sm:$0xff] }
 0x24f   :  { %v3975_v2 = vmax.f32 %v2981_v63, %v3911_v17  ;;  %vm2792_vm11 = vcmp.gt.f32.partialorder %v2728_v14, 0.0  ;;  %v2856_v21 = vmul.f32 0.01, %v2728_v14  ;;  %vm3786_vm12 = vcmp.gt.f32.partialorder %v3722_v0, 0.0 }
 0x250   :  { %v2979_v60 = vmax.f32 %v8209_v55, %v2915_v41  ;;  %v3850_v51 = vmul.f32 0.01, %v3722_v0  ;;  %v2726_v23 = vadd.f32 %v7415_v26, %v2662_v4  ;;  %v3720_v19 = vadd.f32 %v7415_v26, %v3656_v56  ;;  %v8223_v4 = vld [vmem:[#allocation123_spill] sm:$0xff] }
 0x251   :  { %4040 = vst.msk [vmem:[%s7718_s4 + $0x1b8] sm:$0xff] %vm3984_vm1, %v3975_v2  ;;  %v2920_v16 = vsel %vm2792_vm11, %v2728_v14, %v2856_v21  ;;  %v2665_v24 = vmul.f32 %v7423_v42, %v8210_v20  ;;  %v3659_v18 = vmul.f32 %v7423_v42, %v7131_v28  ;;  %v8213_v57 = vmax.f32 %v8211_v58, %v8212_v36  ;;  %v8222_v2 = vld [vmem:[#allocation25_spill] sm:$0xff]  ;;  %v8228_v20 = vld [vmem:[#allocation126_spill] sm:$0xff] }
 0x252   :  { %v3973_v9 = vmax.f32 %v2979_v60, %v3909_v27  ;;  %v3914_v34 = vsel %vm3786_vm12, %v3722_v0, %v3850_v51  ;;  %vm2790_vm13 = vcmp.gt.f32.partialorder %v2726_v23, 0.0  ;;  %v2854_v50 = vmul.f32 0.01, %v2726_v23 }
 0x253   :  { %v2984_v6 = vmax.f32 %v8213_v57, %v2920_v16  ;;  %vm3784_vm0 = vcmp.gt.f32.partialorder %v3720_v19, 0.0  ;;  %v3848_v48 = vmul.f32 0.01, %v3720_v19  ;;  %v2729_v8 = vadd.f32 %v7415_v26, %v2665_v24  ;;  %v8227_v16 = vld [vmem:[#allocation125_spill] sm:$0xff] }
 0x254   :  { %4038 = vst.msk [vmem:[%s7718_s4 + $0x1a8] sm:$0xff] %vm3984_vm1, %v3973_v9  ;;  %v3723_v15 = vadd.f32 %v7415_v26, %v3659_v18  ;;  %v2918_v28 = vsel %vm2790_vm13, %v2726_v23, %v2854_v50  ;;  %v2663_v10 = vmul.f32 %v7423_v42, %v7133_v3  ;;  %v3657_v29 = vmul.f32 %v7423_v42, %v8214_v49 }
 0x255   :  { %v3978_v62 = vmax.f32 %v2984_v6, %v3914_v34  ;;  %v8217_v32 = vmax.f32 %v8215_v13, %v8216_v43  ;;  %v3912_v53 = vsel %vm3784_vm0, %v3720_v19, %v3848_v48  ;;  %vm2793_vm14 = vcmp.gt.f32.partialorder %v2729_v8, 0.0  ;;  %v8226_v19 = vld [vmem:[#allocation26_spill] sm:$0xff]  ;;  %v8230_v48 = vld [vmem:[#allocation27_spill] sm:$0xff] }
 0x256   :  { %v2857_v25 = vmul.f32 0.01, %v2729_v8  ;;  %vm3787_vm15 = vcmp.gt.f32.partialorder %v3723_v15, 0.0  ;;  %v3851_v40 = vmul.f32 0.01, %v3723_v15  ;;  %v2727_v22 = vadd.f32 %v7415_v26, %v2663_v10 }
 0x257   :  { %v2982_v61 = vmax.f32 %v8217_v32, %v2918_v28  ;;  %4043 = vst.msk [vmem:[%s7718_s4 + $0x1d0] sm:$0xff] %vm3984_vm1, %v3978_v62  ;;  %v3721_v3 = vadd.f32 %v7415_v26, %v3657_v29  ;;  %v2668_v46 = vmul.f32 %v7423_v42, %v7157_v30  ;;  %v3662_v11 = vmul.f32 %v7423_v42, %v8218_v47  ;;  %v8231_v62 = vld [vmem:[#allocation128_spill] sm:$0xff]  ;;  %v8232_v28 = vld [vmem:[#allocation129_spill] sm:$0xff] }
 0x258   :  { %v2921_v38 = vsel %vm2793_vm14, %v2729_v8, %v2857_v25  ;;  %v8221_v52 = vmax.f32 %v8219_v35, %v8220_v37  ;;  %v3915_v63 = vsel %vm3787_vm15, %v3723_v15, %v3851_v40  ;;  %vm2791_vm2 = vcmp.gt.f32.partialorder %v2727_v22, 0.0  ;;  %v8235_v25 = vld [vmem:[#allocation131_spill] sm:$0xff] }
 0x259   :  { %v3976_v1 = vmax.f32 %v2982_v61, %v3912_v53  ;;  %v2855_v17 = vmul.f32 0.01, %v2727_v22  ;;  %vm3785_vm3 = vcmp.gt.f32.partialorder %v3721_v3, 0.0  ;;  %v3849_v7 = vmul.f32 0.01, %v3721_v3 }
 0x25a   :  { %v2985_v54 = vmax.f32 %v8221_v52, %v2921_v38  ;;  %v2732_v33 = vadd.f32 %v7415_v26, %v2668_v46  ;;  %v3726_v30 = vadd.f32 %v7415_v26, %v3662_v11  ;;  %v2666_v41 = vmul.f32 %v7423_v42, %v8222_v2  ;;  %v8237_v11 = vld [vmem:[#allocation132_spill] sm:$0xff] }
 0x25b   :  { %4041 = vst.msk [vmem:[%s7718_s4 + $0x1c0] sm:$0xff] %vm3984_vm1, %v3976_v1  ;;  %v2919_v0 = vsel %vm2791_vm2, %v2727_v22, %v2855_v17  ;;  %v3660_v45 = vmul.f32 %v7423_v42, %v7173_v5  ;;  %v8225_v56 = vmax.f32 %v8223_v4, %v8224_v59  ;;  %v3913_v39 = vsel %vm3785_vm3, %v3721_v3, %v3849_v7 }
 0x25c   :  { %v3979_v14 = vmax.f32 %v2985_v54, %v3915_v63  ;;  %vm2796_vm4 = vcmp.gt.f32.partialorder %v2732_v33, 0.0  ;;  %v2860_v55 = vmul.f32 0.01, %v2732_v33  ;;  %vm3790_vm5 = vcmp.gt.f32.partialorder %v3726_v30, 0.0 }
 0x25d   :  { %v2983_v12 = vmax.f32 %v8225_v56, %v2919_v0  ;;  %v3854_v60 = vmul.f32 0.01, %v3726_v30  ;;  %v2730_v27 = vadd.f32 %v7415_v26, %v2666_v41  ;;  %v3724_v21 = vadd.f32 %v7415_v26, %v3660_v45 }
 0x25e   :  { %4044 = vst.msk [vmem:[%s7718_s4 + $0x1d8] sm:$0xff] %vm3984_vm1, %v3979_v14  ;;  %v2924_v5 = vsel %vm2796_vm4, %v2732_v33, %v2860_v55  ;;  %v2669_v23 = vmul.f32 %v7423_v42, %v7175_v31  ;;  %v3663_v9 = vmul.f32 %v7423_v42, %v8226_v19  ;;  %v8229_v24 = vmax.f32 %v8227_v16, %v8228_v20 }
 0x25f   :  { %v3977_v51 = vmax.f32 %v2983_v12, %v3913_v39  ;;  %v3918_v58 = vsel %vm3790_vm5, %v3726_v30, %v3854_v60  ;;  %vm2794_vm6 = vcmp.gt.f32.partialorder %v2730_v27, 0.0  ;;  %v2858_v36 = vmul.f32 0.01, %v2730_v27 }
 0x260   :  { %v2988_v18 = vmax.f32 %v8229_v24, %v2924_v5  ;;  %vm3788_vm7 = vcmp.gt.f32.partialorder %v3724_v21, 0.0  ;;  %v3852_v57 = vmul.f32 0.01, %v3724_v21  ;;  %v2733_v6 = vadd.f32 %v7415_v26, %v2669_v23 }
 0x261   :  { %4042 = vst.msk [vmem:[%s7718_s4 + $0x1c8] sm:$0xff] %vm3984_vm1, %v3977_v51  ;;  %v3727_v31 = vadd.f32 %v7415_v26, %v3663_v9  ;;  %v2922_v50 = vsel %vm2794_vm6, %v2730_v27, %v2858_v36  ;;  %v2667_v8 = vmul.f32 %v7423_v42, %v8230_v48  ;;  %v3661_v15 = vmul.f32 %v7423_v42, %v7190_v44  ;;  %v8234_v42 = vld [vmem:[#allocation130_spill] sm:$0xff] }
 0x262   :  { %v3982_v34 = vmax.f32 %v2988_v18, %v3918_v58  ;;  %v8233_v10 = vmax.f32 %v8231_v62, %v8232_v28  ;;  %v3916_v29 = vsel %vm3788_vm7, %v3724_v21, %v3852_v57  ;;  %vm2797_vm8 = vcmp.gt.f32.partialorder %v2733_v6, 0.0 }
 0x263   :  { %v2861_v13 = vmul.f32 0.01, %v2733_v6  ;;  %vm3791_vm9 = vcmp.gt.f32.partialorder %v3727_v31, 0.0  ;;  %v3855_v43 = vmul.f32 0.01, %v3727_v31  ;;  %v2731_v32 = vadd.f32 %v7415_v26, %v2667_v8 }
 0x264   :  { %v2986_v49 = vmax.f32 %v8233_v10, %v2922_v50  ;;  %4047 = vst.msk [vmem:[%s7718_s4 + $0x1f0] sm:$0xff] %vm3984_vm1, %v3982_v34  ;;  %v3725_v61 = vadd.f32 %v7415_v26, %v3661_v15  ;;  %v8236_v40 = vmax.f32 %v8234_v42, %v8235_v25  ;;  %v8238_v26 = vld [vmem:[#allocation134_spill] sm:$0xff] }
 0x265   :  { %v2925_v44 = vsel %vm2797_vm8, %v2733_v6, %v2861_v13  ;;  %vm2795_vm10 = vcmp.gt.f32.partialorder %v2731_v32, 0.0  ;;  %v2859_v3 = vmul.f32 0.01, %v2731_v32  ;;  %v3919_v1 = vsel %vm3791_vm9, %v3727_v31, %v3855_v43 }
 0x266   :  { %v3980_v53 = vmax.f32 %v2986_v49, %v3916_v29  ;;  %v2989_v22 = vmax.f32 %v8236_v40, %v2925_v44  ;;  %vm3789_vm11 = vcmp.gt.f32.partialorder %v3725_v61, 0.0  ;;  %v3853_v38 = vmul.f32 0.01, %v3725_v61 }
 0x267   :  { %v2923_v47 = vsel %vm2795_vm10, %v2731_v32, %v2859_v3  ;;  %v8239_v35 = vmax.f32 %v8237_v11, %v8238_v26 }
 0x268   :  { %4045 = vst.msk [vmem:[%s7718_s4 + $0x1e0] sm:$0xff] %vm3984_vm1, %v3980_v53  ;;  %v3983_v46 = vmax.f32 %v2989_v22, %v3919_v1  ;;  %v3917_v52 = vsel %vm3789_vm11, %v3725_v61, %v3853_v38 }
 0x269   :  { %v2987_v37 = vmax.f32 %v8239_v35, %v2923_v47 }
 0x26a   :  { %4048 = vst.msk [vmem:[%s7718_s4 + $0x1f8] sm:$0xff] %vm3984_vm1, %v3983_v46 }
 0x26b   :  { %v3981_v54 = vmax.f32 %v2987_v37, %v3917_v52 }
 0x26d   :  { %4046 = vst.msk [vmem:[%s7718_s4 + $0x1e8] sm:$0xff] %vm3984_vm1, %v3981_v54 }

// kernel: custom_convnet_forward.8
= control target key start
LH: loop header
LB: loop body
LE: loop exit
PB: predicated region body
PF: predicated region fallthrough
CT: control target
= control target key end

     0   :  { %vm202_vm0 = vcmask 261120   ;;  %vm840_vm14 = vcmask 523264   ;;  %s1470_s1 = inlined_call_operand.vmem [shape: bf16[288,64], index: 1, kind: input, shape index: {}]   ;;  %s1471_s0 = inlined_call_operand.vmem [shape: bf16[4,32,288], index: 0, kind: input, shape index: {}]   ;;  %s1472_s2 = inlined_call_operand.vmem [shape: f32[1,64], index: 2, kind: input, shape index: {}]   ;;  %s1473_s3 = inlined_call_operand.vmem [shape: f32[1,64], index: 3, kind: input, shape index: {}]   ;;  %s1474_s4 = inlined_call_operand.vmem [shape: f32[32,64], index: 4, kind: output, shape index: {}]  }
   0x1   :  { %v1163_v0 = vld [vmem:[%s1470_s1 + $0x40] sm:$0xff]   ;;  %v1180_v3 = vld [vmem:[%s1470_s1 + $0x48] sm:$0xff]   ;;  %v1199_v6 = vld [vmem:[%s1470_s1 + $0x50] sm:$0xff]  }
   0x2   :  { %v1168_v1 = vld [vmem:[%s1470_s1 + $0x80] sm:$0xff]   ;;  %925 = vmatprep.subr.bf16.mxu0 %v1163_v0  ;;  %v1187_v4 = vld [vmem:[%s1470_s1 + $0x88] sm:$0xff]   ;;  %v1209_v8 = vld [vmem:[%s1470_s1 + $0x10] sm:$0xff]  }
   0x3   :  { %v1174_v2 = vld [vmem:[%s1470_s1] sm:$0xff]   ;;  %1053 = vmatprep.subr.bf16.mxu1 %v1168_v1  ;;  %v1193_v5 = vld [vmem:[%s1470_s1 + $0x8] sm:$0xff]   ;;  %v1220_v10 = vld [vmem:[%s1470_s1 + $0x58] sm:$0xff]  }
   0x4   :  { %926 = vmatpush3.bf16.msra.mxu0 %v1174_v2  ;;  %1054 = vmatpush3.bf16.msra.mxu1 %v1168_v1  ;;  %v1092_v7 = vld [vmem:[%s1471_s0 + $0x8] ss:$12 sps:$4 sm:$0xff]   ;;  %v1094_v9 = vld [vmem:[%s1471_s0 + $0x20] ss:$12 sps:$4 sm:$0xff]   ;;  %v1228_v11 = vld [vmem:[%s1470_s1 + $0x18] sm:$0xff]  }
   0x5   :  { %927 = vmatprep.subr.bf16.mxu0 %v1180_v3  ;;  %1055 = vmatprep.subr.bf16.mxu1 %v1187_v4  ;;  %v1235_v12 = vld [vmem:[%s1470_s1 + $0x60] sm:$0xff]   ;;  %v1249_v14 = vld [vmem:[%s1470_s1 + $0x68] sm:$0xff]   ;;  %v1261_v16 = vld [vmem:[%s1470_s1 + $0x70] sm:$0xff]  }
   0x6   :  { %1057 = vmatprep.mubr.msk.bf16.mxu1 %vm202_vm0, %v1092_v7  ;;  %v1242_v13 = vld [vmem:[%s1470_s1 + $0x20] sm:$0xff]   ;;  %v1254_v15 = vld [vmem:[%s1470_s1 + $0x28] sm:$0xff]   ;;  %v1276_v19 = vld [vmem:[%s1470_s1 + $0x30] sm:$0xff]  }
   0x7   :  { %v1107_v17 = vld [vmem:[%s1471_s0 + $0x4] ss:$12 sps:$4 sm:$0xff]   ;;  %v1112_v18 = vld [vmem:[%s1471_s0 + $0x34] ss:$12 sps:$4 sm:$0xff]   ;;  %v1283_v20 = vld [vmem:[%s1470_s1 + $0x78] sm:$0xff]  }
   0x8   :  { %928 = vmatpush3.bf16.msra.mxu0 %v1193_v5  ;;  %1056 = vmatpush3.bf16.msra.mxu1 %v1187_v4  ;;  %v1290_v21 = vld [vmem:[%s1470_s1 + $0x38] sm:$0xff]   ;;  %v1105_v22 = vld [vmem:[%s1471_s0] ss:$12 sps:$4 sm:$0xff]   ;;  %v1117_v28 = vld [vmem:[%s1471_s0 + $0x48] ss:$12 sps:$4 sm:$0xff]  }
   0x9   :  { %929 = vmatprep.subr.bf16.mxu0 %v1199_v6  ;;  %957 = vmatprep.subr.bf16.mxu1 %v1163_v0  ;;  %v1108_v23 = vld [vmem:[%s1471_s0 + $0x1c] ss:$12 sps:$4 sm:$0xff]   ;;  %v1113_v25 = vld [vmem:[%s1471_s0 + $0x18] ss:$12 sps:$4 sm:$0xff]   ;;  %v1120_v32 = vld [vmem:[%s1471_s0 + $0x80] ss:$12 sps:$4 sm:$0xff]  }
   0xa   :  { %241 = vmatprep.mubr.bf16.mxu0 %v1107_v17  ;;  %v1110_v24 = vld [vmem:[%s1471_s0 + $0x30] ss:$12 sps:$4 sm:$0xff]   ;;  %v1114_v26 = vld [vmem:[%s1471_s0 + $0x4c] ss:$12 sps:$4 sm:$0xff]   ;;  %v1119_v30 = vld [vmem:[%s1471_s0 + $0x68] ss:$12 sps:$4 sm:$0xff]  }
   0xb   :  { %1058 = vmatmul.mubr.msk.bf16.vlgmr.msra.gmra.mrb[0].mxu1 %vm202_vm0, %v1094_v9  ;;  %v1116_v27 = vld [vmem:[%s1471_s0 + $0x38] ss:$12 sps:$4 sm:$0xff]   ;;  %v1118_v29 = vld [vmem:[%s1471_s0 + $0x50] ss:$12 sps:$4 sm:$0xff]   ;;  %v1129_v33 = vld [vmem:[%s1471_s0 + $0x94] ss:$12 sps:$4 sm:$0xff]  }
   0xc   :  { %930 = vmatpush3.bf16.msra.mxu0 %v1209_v8  ;;  %958 = vmatpush3.bf16.msra.mxu1 %v1174_v2  ;;  %v1123_v31 = vld [vmem:[%s1471_s0 + $0x64] ss:$12 sps:$4 sm:$0xff]   ;;  %v1121_v34 = vld [vmem:[%s1471_s0 + $0x60] ss:$12 sps:$4 sm:$0xff]   ;;  %v1124_v35 = vld [vmem:[%s1471_s0 + $0x7c] ss:$12 sps:$4 sm:$0xff]  }
   0xd   :  { %931 = vmatprep.subr.bf16.mxu0 %v1220_v10  ;;  %959 = vmatprep.subr.bf16.mxu1 %v1180_v3  ;;  %v1126_v36 = vld [vmem:[%s1471_s0 + $0x78] ss:$12 sps:$4 sm:$0xff]   ;;  %v1127_v38 = vld [vmem:[%s1471_s0 + $0x90] ss:$12 sps:$4 sm:$0xff]   ;;  %v1134_v41 = vld [vmem:[%s1471_s0 + $0xa8] ss:$12 sps:$4 sm:$0xff]  }
   0xe   :  { %416 = vmatprep.mubr.bf16.mxu1 %v1112_v18  ;;  %v1130_v37 = vld [vmem:[%s1471_s0 + $0x98] ss:$12 sps:$4 sm:$0xff]   ;;  %v1131_v39 = vld [vmem:[%s1471_s0 + $0xb0] ss:$12 sps:$4 sm:$0xff]   ;;  %v1413_v56 = vld [vmem:[%s1472_s2] ss:$0 sm:$0xff] }
   0xf   :  { %v1132_v40 = vld [vmem:[%s1471_s0 + $0xac] ss:$12 sps:$4 sm:$0xff]  }
  0x10   :  { %932 = vmatpush3.bf16.msra.mxu0 %v1228_v11  ;;  %960 = vmatpush3.bf16.msra.mxu1 %v1193_v5 }
  0x11   :  { %933 = vmatprep.subr.bf16.mxu0 %v1235_v12  ;;  %961 = vmatprep.subr.bf16.mxu1 %v1199_v6 }
  0x14   :  { %934 = vmatpush3.bf16.msra.mxu0 %v1242_v13  ;;  %962 = vmatpush3.bf16.msra.mxu1 %v1209_v8 }
  0x15   :  { %935 = vmatprep.subr.bf16.mxu0 %v1249_v14  ;;  %963 = vmatprep.subr.bf16.mxu1 %v1220_v10 }
  0x18   :  { %936 = vmatpush3.bf16.msra.mxu0 %v1254_v15  ;;  %964 = vmatpush3.bf16.msra.mxu1 %v1228_v11 }
  0x19   :  { %937 = vmatprep.subr.bf16.mxu0 %v1261_v16  ;;  %965 = vmatprep.subr.bf16.mxu1 %v1235_v12 }
  0x1c   :  { %938 = vmatpush3.bf16.msra.mxu0 %v1276_v19  ;;  %966 = vmatpush3.bf16.msra.mxu1 %v1242_v13 }
  0x1d   :  { %939 = vmatprep.subr.bf16.mxu0 %v1283_v20  ;;  %967 = vmatprep.subr.bf16.mxu1 %v1249_v14 }
  0x20   :  { %940 = vmatpush3.bf16.msra.mxu0 %v1290_v21  ;;  %968 = vmatpush3.bf16.msra.mxu1 %v1254_v15 }
  0x21   :  { %969 = vmatprep.subr.bf16.mxu1 %v1261_v16  ;;  %1061 = vmatprep.subr.bf16.mxu0 %v1168_v1 }
  0x23   :  { %242 = vmatmul.mubr.bf16.vlgmr.msra.gmra.mrb[0].mxu0 %v1105_v22 }
  0x24   :  { %970 = vmatpush3.bf16.msra.mxu1 %v1276_v19  ;;  %1062 = vmatpush3.bf16.msra.mxu0 %v1168_v1 }
  0x25   :  { %971 = vmatprep.subr.bf16.mxu1 %v1283_v20  ;;  %249 = vmatprep.mubr.bf16.mxu0 %v1108_v23 }
  0x26   :  { %1063 = vmatprep.subr.bf16.mxu0 %v1187_v4 }
  0x28   :  { %972 = vmatpush3.bf16.msra.mxu1 %v1290_v21  ;;  %1064 = vmatpush3.bf16.msra.mxu0 %v1187_v4 }
  0x29   :  { %989 = vmatprep.subr.bf16.mxu1 %v1163_v0  ;;  %1069 = vmatprep.subr.bf16.mxu0 %v1168_v1 }
  0x2b   :  { %250 = vmatmul.mubr.bf16.gmra.mrb[4].mxu0 %v1113_v25  ;;  %417 = vmatmul.mubr.bf16.vlgmr.msra.gmra.mrb[4].mxu1 %v1110_v24 }
  0x2c   :  { %990 = vmatpush3.bf16.msra.mxu1 %v1174_v2  ;;  %424 = vmatprep.mubr.bf16.mxu1 %v1114_v26 }
  0x2d   :  { %991 = vmatprep.subr.bf16.mxu1 %v1180_v3  ;;  %1065 = vmatprep.mubr.msk.bf16.mxu0 %vm202_vm0, %v1116_v27 }
  0x30   :  { %992 = vmatpush3.bf16.msra.mxu1 %v1193_v5 }
  0x31   :  { %993 = vmatprep.subr.bf16.mxu1 %v1199_v6 }
  0x33   :  { %425 = vmatmul.mubr.bf16.gmra.mrb[8].mxu1 %v1117_v28  ;;  %1066 = vmatmul.mubr.msk.bf16.vlgmr.msra.gmra.mrb[8].mxu0 %vm202_vm0, %v1118_v29 }
  0x34   :  { %1070 = vmatpush3.bf16.msra.mxu0 %v1168_v1  ;;  %994 = vmatpush3.bf16.msra.mxu1 %v1209_v8 }
  0x35   :  { %1071 = vmatprep.subr.bf16.mxu0 %v1187_v4  ;;  %995 = vmatprep.subr.bf16.mxu1 %v1220_v10 }
  0x36   :  { %1073 = vmatprep.mubr.msk.bf16.mxu0 %vm202_vm0, %v1119_v30  ;;  %583 = vmatprep.mubr.bf16.mxu1 %v1123_v31 }
  0x38   :  { %1072 = vmatpush3.bf16.msra.mxu0 %v1187_v4  ;;  %996 = vmatpush3.bf16.msra.mxu1 %v1228_v11 }
  0x39   :  { %1021 = vmatprep.subr.bf16.mxu0 %v1163_v0  ;;  %997 = vmatprep.subr.bf16.mxu1 %v1235_v12 }
  0x3b   :  { %1074 = vmatmul.mubr.msk.bf16.vlgmr.msra.gmra.mrb[12].mxu0 %vm202_vm0, %v1120_v32 }
  0x3c   :  { %1022 = vmatpush3.bf16.msra.mxu0 %v1174_v2  ;;  %998 = vmatpush3.bf16.msra.mxu1 %v1242_v13 }
  0x3d   :  { %1023 = vmatprep.subr.bf16.mxu0 %v1180_v3  ;;  %999 = vmatprep.subr.bf16.mxu1 %v1249_v14 }
  0x3e   :  { %750 = vmatprep.mubr.bf16.mxu0 %v1129_v33 }
  0x40   :  { %1024 = vmatpush3.bf16.msra.mxu0 %v1193_v5  ;;  %1000 = vmatpush3.bf16.msra.mxu1 %v1254_v15 }
  0x41   :  { %1025 = vmatprep.subr.bf16.mxu0 %v1199_v6  ;;  %1001 = vmatprep.subr.bf16.mxu1 %v1261_v16 }
  0x44   :  { %1026 = vmatpush3.bf16.msra.mxu0 %v1209_v8  ;;  %1002 = vmatpush3.bf16.msra.mxu1 %v1276_v19 }
  0x45   :  { %1027 = vmatprep.subr.bf16.mxu0 %v1220_v10  ;;  %1003 = vmatprep.subr.bf16.mxu1 %v1283_v20 }
  0x48   :  { %1028 = vmatpush3.bf16.msra.mxu0 %v1228_v11  ;;  %1004 = vmatpush3.bf16.msra.mxu1 %v1290_v21 }
  0x49   :  { %1029 = vmatprep.subr.bf16.mxu0 %v1235_v12  ;;  %1077 = vmatprep.subr.bf16.mxu1 %v1168_v1 }
  0x4b   :  { %584 = vmatmul.mubr.bf16.vlgmr.msra.gmra.mrb[12].mxu1 %v1121_v34 }
  0x4c   :  { %1030 = vmatpush3.bf16.msra.mxu0 %v1242_v13  ;;  %591 = vmatprep.mubr.bf16.mxu1 %v1124_v35 }
  0x4d   :  { %1031 = vmatprep.subr.bf16.mxu0 %v1249_v14  ;;  %1078 = vmatpush3.bf16.msra.mxu1 %v1168_v1 }
  0x4e   :  { %1079 = vmatprep.subr.bf16.mxu1 %v1187_v4 }
  0x50   :  { %1032 = vmatpush3.bf16.msra.mxu0 %v1254_v15 }
  0x51   :  { %1033 = vmatprep.subr.bf16.mxu0 %v1261_v16  ;;  %1080 = vmatpush3.bf16.msra.mxu1 %v1187_v4  ;;  %v1419_v4 = vld [vmem:[%s1473_s3] ss:$0 sm:$0xff] }
  0x53   :  { %592 = vmatmul.mubr.bf16.gmra.mrb[16].mxu1 %v1126_v36 }
  0x54   :  { %1034 = vmatpush3.bf16.msra.mxu0 %v1276_v19  ;;  %1081 = vmatprep.mubr.msk.bf16.mxu1 %vm202_vm0, %v1130_v37 }
  0x55   :  { %1035 = vmatprep.subr.bf16.mxu0 %v1283_v20 }
  0x58   :  { %1036 = vmatpush3.bf16.msra.mxu0 %v1290_v21 }
  0x5b   :  { %751 = vmatmul.mubr.bf16.vlgmr.msra.gmra.mrb[16].mxu0 %v1127_v38  ;;  %1082 = vmatmul.mubr.msk.bf16.vlgmr.msra.gmra.mrb[20].mxu1 %vm202_vm0, %v1131_v39 }
  0x5c   :  { %758 = vmatprep.mubr.bf16.mxu0 %v1132_v40 }
  0x63   :  { %759 = vmatmul.mubr.bf16.gmra.mrb[20].mxu0 %v1134_v41 }
  0xde   :  { %v1059_v42 = vpop.f32.mrb[0].mxu1 }
  0xdf   :  { %v292_v43 = vpop.f32.mrb[1].mxu1 }
  0xe0   :  { %v1060_v44 = vpop.f32.mrb[2].mxu1 }
  0xe1   :  { %v295_v45 = vpop.f32.mrb[3].mxu1 }
  0xf6   :  { %v941_v46 = vpop.f32.mrb[0].mxu0 }
  0xf7   :  { %v942_v47 = vpop.f32.mrb[1].mxu0 }
  0xf8   :  { %v943_v48 = vadd.f32 %v942_v47, %v941_v46  ;;  %v944_v49 = vpop.f32.mrb[2].mxu0 }
  0xf9   :  { %v945_v50 = vpop.f32.mrb[3].mxu0 }
  0xfa   :  { %v293_v51 = vadd.f32 %v943_v48, %v292_v43  ;;  %v946_v52 = vadd.f32 %v945_v50, %v944_v49 }
  0xfc   :  { %v296_v53 = vadd.f32 %v946_v52, %v295_v45  ;;  %v313_v1 = vmul.f32 %v1413_v56, %v293_v51 }
  0xfe   :  { %v947_v54 = vpop.f32.mrb[4].mxu0  ;;  %v973_v55 = vpop.f32.mrb[4].mxu1  ;;  %v314_v6 = vmul.f32 %v1413_v56, %v296_v53  ;;  %v323_v8 = vadd.f32 %v1419_v4, %v313_v1 }
  0xff   :  { %v948_v57 = vpop.f32.mrb[5].mxu0  ;;  %v974_v58 = vpop.f32.mrb[5].mxu1 }
 0x100   :  { %v949_v59 = vadd.f32 %v948_v57, %v947_v54  ;;  %v950_v60 = vpop.f32.mrb[6].mxu0  ;;  %v976_v61 = vpop.f32.mrb[6].mxu1  ;;  %v975_v63 = vadd.f32 %v974_v58, %v973_v55  ;;  %v324_v14 = vadd.f32 %v1419_v4, %v314_v6  ;;  %v331_v22 = vmul.f32 0.01, %v323_v8 }
 0x101   :  { %v951_v62 = vpop.f32.mrb[7].mxu0  ;;  %v977_v0 = vpop.f32.mrb[7].mxu1  ;;  %vm327_vm1 = vcmp.gt.f32.partialorder %v323_v8, 0.0 }
 0x102   :  { %v301_v2 = vadd.f32 %v1059_v42, %v949_v59  ;;  %v952_v3 = vadd.f32 %v951_v62, %v950_v60  ;;  %v978_v5 = vadd.f32 %v977_v0, %v976_v61  ;;  %v332_v28 = vmul.f32 0.01, %v324_v14 }
 0x103   :  { %vm328_vm2 = vcmp.gt.f32.partialorder %v324_v14, 0.0  ;;  %v335_v36 = vsel %vm327_vm1, %v323_v8, %v331_v22 }
 0x104   :  { %v304_v7 = vadd.f32 %v1060_v44, %v952_v3  ;;  %v315_v9 = vmul.f32 %v1413_v56, %v301_v2  ;;  %v336_v44 = vsel %vm328_vm2, %v324_v14, %v332_v28 }
 0x106   :  { %v979_v10 = vpop.f32.mrb[8].mxu1  ;;  %v1067_v11 = vpop.f32.mrb[8].mxu0  ;;  %v316_v15 = vmul.f32 %v1413_v56, %v304_v7  ;;  %v325_v23 = vadd.f32 %v1419_v4, %v315_v9 }
 0x107   :  { %v980_v12 = vpop.f32.mrb[9].mxu1  ;;  %v467_v13 = vpop.f32.mrb[9].mxu0 }
 0x108   :  { %v981_v16 = vadd.f32 %v980_v12, %v979_v10  ;;  %v982_v17 = vpop.f32.mrb[10].mxu1  ;;  %v1068_v18 = vpop.f32.mrb[10].mxu0  ;;  %v468_v19 = vadd.f32 %v975_v63, %v467_v13  ;;  %v326_v29 = vadd.f32 %v1419_v4, %v316_v15  ;;  %vm329_vm3 = vcmp.gt.f32.partialorder %v325_v23, 0.0 }
 0x109   :  { %v983_v20 = vpop.f32.mrb[11].mxu1  ;;  %v470_v21 = vpop.f32.mrb[11].mxu0  ;;  %v333_v34 = vmul.f32 0.01, %v325_v23 }
 0x10a   :  { %v476_v24 = vadd.f32 %v1067_v11, %v981_v16  ;;  %v482_v25 = vmul.f32 %v1413_v56, %v468_v19  ;;  %v984_v26 = vadd.f32 %v983_v20, %v982_v17  ;;  %v471_v27 = vadd.f32 %v978_v5, %v470_v21 }
 0x10b   :  { %v334_v42 = vmul.f32 0.01, %v326_v29  ;;  %v337_v50 = vsel %vm329_vm3, %v325_v23, %v333_v34  ;;  %vm330_vm7 = vcmp.gt.f32.partialorder %v326_v29, 0.0 }
 0x10c   :  { %v484_v30 = vmul.f32 %v1413_v56, %v476_v24  ;;  %v486_v31 = vadd.f32 %v1419_v4, %v482_v25  ;;  %v479_v32 = vadd.f32 %v1068_v18, %v984_v26  ;;  %v483_v33 = vmul.f32 %v1413_v56, %v471_v27 }
 0x10d   :  { %v338_v58 = vsel %vm330_vm7, %v326_v29, %v334_v42 }
 0x10e   :  { %v488_v35 = vadd.f32 %v1419_v4, %v484_v30  ;;  %v1075_v37 = vpop.f32.mrb[12].mxu0  ;;  %vm490_vm4 = vcmp.gt.f32.partialorder %v486_v31, 0.0  ;;  %v494_v38 = vmul.f32 0.01, %v486_v31  ;;  %v485_v39 = vmul.f32 %v1413_v56, %v479_v32 }
 0x10f   :  { %v487_v40 = vadd.f32 %v1419_v4, %v483_v33  ;;  %v634_v41 = vpop.f32.mrb[13].mxu0 }
 0x110   :  { %vm492_vm5 = vcmp.gt.f32.partialorder %v488_v35, 0.0  ;;  %v496_v43 = vmul.f32 0.01, %v488_v35  ;;  %v1076_v45 = vpop.f32.mrb[14].mxu0  ;;  %v498_v46 = vsel %vm490_vm4, %v486_v31, %v494_v38  ;;  %v489_v47 = vadd.f32 %v1419_v4, %v485_v39 }
 0x111   :  { %vm491_vm6 = vcmp.gt.f32.partialorder %v487_v40, 0.0  ;;  %v495_v48 = vmul.f32 0.01, %v487_v40  ;;  %v637_v49 = vpop.f32.mrb[15].mxu0  ;;  %v502_v52 = vmax.f32 %v335_v36, %v498_v46 }
 0x112   :  { %v500_v51 = vsel %vm492_vm5, %v488_v35, %v496_v43  ;;  %vm493_vm8 = vcmp.gt.f32.partialorder %v489_v47, 0.0  ;;  %v497_v54 = vmul.f32 0.01, %v489_v47 }
 0x113   :  { %v504_v53 = vmax.f32 %v337_v50, %v500_v51  ;;  %v499_v55 = vsel %vm491_vm6, %v487_v40, %v495_v48 }
 0x114   :  { %v503_v57 = vmax.f32 %v336_v44, %v499_v55  ;;  %v501_v59 = vsel %vm493_vm8, %v489_v47, %v497_v54 }
 0x115   :  { %v505_v60 = vmax.f32 %v338_v58, %v501_v59 }
 0x11e   :  { %v1005_v61 = vpop.f32.mrb[12].mxu1 }
 0x11f   :  { %v1006_v62 = vpop.f32.mrb[13].mxu1 }
 0x120   :  { %v1007_v63 = vadd.f32 %v1006_v62, %v1005_v61  ;;  %v1008_v0 = vpop.f32.mrb[14].mxu1 }
 0x121   :  { %v1009_v1 = vpop.f32.mrb[15].mxu1 }
 0x122   :  { %v635_v2 = vadd.f32 %v1007_v63, %v634_v41  ;;  %v1010_v3 = vadd.f32 %v1009_v1, %v1008_v0 }
 0x124   :  { %v649_v5 = vmul.f32 %v1413_v56, %v635_v2  ;;  %v638_v6 = vadd.f32 %v1010_v3, %v637_v49 }
 0x126   :  { %v653_v7 = vadd.f32 %v1419_v4, %v649_v5  ;;  %v650_v8 = vmul.f32 %v1413_v56, %v638_v6  ;;  %v1011_v9 = vpop.f32.mrb[16].mxu1 }
 0x127   :  { %v1012_v10 = vpop.f32.mrb[17].mxu1 }
 0x128   :  { %vm657_vm9 = vcmp.gt.f32.partialorder %v653_v7, 0.0  ;;  %v661_v11 = vmul.f32 0.01, %v653_v7  ;;  %v654_v12 = vadd.f32 %v1419_v4, %v650_v8  ;;  %v1013_v13 = vadd.f32 %v1012_v10, %v1011_v9  ;;  %v1014_v14 = vpop.f32.mrb[18].mxu1 }
 0x129   :  { %v1015_v15 = vpop.f32.mrb[19].mxu1 }
 0x12a   :  { %v665_v16 = vsel %vm657_vm9, %v653_v7, %v661_v11  ;;  %vm658_vm10 = vcmp.gt.f32.partialorder %v654_v12, 0.0  ;;  %v662_v17 = vmul.f32 0.01, %v654_v12  ;;  %v643_v18 = vadd.f32 %v1075_v37, %v1013_v13 }
 0x12b   :  { %v1016_v19 = vadd.f32 %v1015_v15, %v1014_v14  ;;  %v669_v20 = vmax.f32 %v502_v52, %v665_v16 }
 0x12c   :  { %v666_v21 = vsel %vm658_vm10, %v654_v12, %v662_v17  ;;  %v651_v22 = vmul.f32 %v1413_v56, %v643_v18 }
 0x12d   :  { %v646_v23 = vadd.f32 %v1076_v45, %v1016_v19  ;;  %v670_v24 = vmax.f32 %v503_v57, %v666_v21 }
 0x12e   :  { %v655_v25 = vadd.f32 %v1419_v4, %v651_v22  ;;  %v1037_v26 = vpop.f32.mrb[16].mxu0  ;;  %v1083_v27 = vpop.f32.mrb[20].mxu1 }
 0x12f   :  { %v652_v28 = vmul.f32 %v1413_v56, %v646_v23  ;;  %v1038_v29 = vpop.f32.mrb[17].mxu0  ;;  %v801_v30 = vpop.f32.mrb[21].mxu1 }
 0x130   :  { %vm659_vm11 = vcmp.gt.f32.partialorder %v655_v25, 0.0  ;;  %v663_v31 = vmul.f32 0.01, %v655_v25  ;;  %v1039_v32 = vadd.f32 %v1038_v29, %v1037_v26  ;;  %v1040_v33 = vpop.f32.mrb[18].mxu0  ;;  %v1084_v34 = vpop.f32.mrb[22].mxu1 }
 0x131   :  { %v656_v35 = vadd.f32 %v1419_v4, %v652_v28  ;;  %v1041_v36 = vpop.f32.mrb[19].mxu0  ;;  %v804_v37 = vpop.f32.mrb[23].mxu1 }
 0x132   :  { %v667_v38 = vsel %vm659_vm11, %v655_v25, %v663_v31  ;;  %v1042_v39 = vadd.f32 %v1041_v36, %v1040_v33  ;;  %v802_v40 = vadd.f32 %v1039_v32, %v801_v30 }
 0x133   :  { %v671_v41 = vmax.f32 %v504_v53, %v667_v38  ;;  %vm660_vm12 = vcmp.gt.f32.partialorder %v656_v35, 0.0  ;;  %v664_v42 = vmul.f32 0.01, %v656_v35 }
 0x134   :  { %v816_v43 = vmul.f32 %v1413_v56, %v802_v40  ;;  %v805_v44 = vadd.f32 %v1042_v39, %v804_v37 }
 0x135   :  { %v668_v45 = vsel %vm660_vm12, %v656_v35, %v664_v42 }
 0x136   :  { %v672_v46 = vmax.f32 %v505_v60, %v668_v45  ;;  %v820_v47 = vadd.f32 %v1419_v4, %v816_v43  ;;  %v817_v48 = vmul.f32 %v1413_v56, %v805_v44  ;;  %v1043_v49 = vpop.f32.mrb[20].mxu0 }
 0x137   :  { %v1044_v50 = vpop.f32.mrb[21].mxu0 }
 0x138   :  { %vm824_vm13 = vcmp.gt.f32.partialorder %v820_v47, 0.0  ;;  %v828_v51 = vmul.f32 0.01, %v820_v47  ;;  %v821_v52 = vadd.f32 %v1419_v4, %v817_v48  ;;  %v1045_v54 = vadd.f32 %v1044_v50, %v1043_v49  ;;  %v1046_v55 = vpop.f32.mrb[22].mxu0 }
 0x139   :  { %v1047_v53 = vpop.f32.mrb[23].mxu0 }
 0x13a   :  { %v832_v57 = vsel %vm824_vm13, %v820_v47, %v828_v51  ;;  %vm825_vm15 = vcmp.gt.f32.partialorder %v821_v52, 0.0  ;;  %v829_v58 = vmul.f32 0.01, %v821_v52  ;;  %v810_v59 = vadd.f32 %v1083_v27, %v1045_v54 }
 0x13b   :  { %v836_v61 = vmax.f32 %v669_v20, %v832_v57  ;;  %v1048_v60 = vadd.f32 %v1047_v53, %v1046_v55 }
 0x13c   :  { %v833_v62 = vsel %vm825_vm15, %v821_v52, %v829_v58  ;;  %v818_v63 = vmul.f32 %v1413_v56, %v810_v59 }
 0x13d   :  { %841 = vst.msk [vmem:[%s1474_s4] sm:$0xff] %vm840_vm14, %v836_v61  ;;  %v837_v0 = vmax.f32 %v670_v24, %v833_v62  ;;  %v813_v1 = vadd.f32 %v1084_v34, %v1048_v60 }
 0x13e   :  { %v822_v2 = vadd.f32 %v1419_v4, %v818_v63 }
 0x13f   :  { %842 = vst.msk [vmem:[%s1474_s4 + $0x8] sm:$0xff] %vm840_vm14, %v837_v0  ;;  %v819_v3 = vmul.f32 %v1413_v56, %v813_v1 }
 0x140   :  { %vm826_vm0 = vcmp.gt.f32.partialorder %v822_v2, 0.0  ;;  %v830_v5 = vmul.f32 0.01, %v822_v2 }
 0x141   :  { %v823_v6 = vadd.f32 %v1419_v4, %v819_v3 }
 0x142   :  { %v834_v7 = vsel %vm826_vm0, %v822_v2, %v830_v5 }
 0x143   :  { %v838_v8 = vmax.f32 %v671_v41, %v834_v7  ;;  %vm827_vm1 = vcmp.gt.f32.partialorder %v823_v6, 0.0  ;;  %v831_v9 = vmul.f32 0.01, %v823_v6 }
 0x145   :  { %843 = vst.msk [vmem:[%s1474_s4 + $0x10] sm:$0xff] %vm840_vm14, %v838_v8  ;;  %v835_v10 = vsel %vm827_vm1, %v823_v6, %v831_v9 }
 0x146   :  { %v839_v11 = vmax.f32 %v672_v46, %v835_v10 }
 0x148   :  { %844 = vst.msk [vmem:[%s1474_s4 + $0x18] sm:$0xff] %vm840_vm14, %v839_v11 }

// kernel: custom_convnet_forward.9
= control target key start
LH: loop header
LB: loop body
LE: loop exit
PB: predicated region body
PF: predicated region fallthrough
CT: control target
= control target key end

     0   :  { %v1297_v39 = vmov 0.0   ;;  %vm1298_vm0 = vmmov 0   ;;  %vm328_vm1 = vcmask 523264   ;;  %s1727_s1 = inlined_call_operand.vmem [shape: bf16[576,128], index: 1, kind: input, shape index: {}]   ;;  %s1728_s0 = inlined_call_operand.vmem [shape: bf16[4,8,576], index: 0, kind: input, shape index: {}]   ;;  %s1729_s2 = inlined_call_operand.vmem [shape: f32[1,128], index: 2, kind: input, shape index: {}]   ;;  %s1730_s3 = inlined_call_operand.vmem [shape: f32[1,128], index: 3, kind: input, shape index: {}]   ;;  %s1731_s4 = inlined_call_operand.vmem [shape: f32[8,128], index: 4, kind: output, shape index: {}]  }
   0x1   :  { %v1327_v0 = vld [vmem:[%s1727_s1 + $0x40] sm:$0xff]   ;;  %v1350_v4 = vld [vmem:[%s1727_s1 + $0x48] sm:$0xff]   ;;  %v1374_v8 = vld [vmem:[%s1727_s1 + $0x50] sm:$0xff]  }
   0x2   :  { %v1332_v1 = vld [vmem:[%s1727_s1 + $0xc0] sm:$0xff]   ;;  %995 = vmatprep.subr.bf16.mxu0 %v1327_v0  ;;  %v1356_v5 = vld [vmem:[%s1727_s1 + $0xc8] sm:$0xff]   ;;  %v1380_v9 = vld [vmem:[%s1727_s1 + $0xd0] sm:$0xff]  }
   0x3   :  { %v1338_v2 = vld [vmem:[%s1727_s1] sm:$0xff]   ;;  %1017 = vmatprep.subr.bf16.mxu1 %v1332_v1  ;;  %v1362_v6 = vld [vmem:[%s1727_s1 + $0x8] sm:$0xff]   ;;  %v1386_v10 = vld [vmem:[%s1727_s1 + $0x10] sm:$0xff]  }
   0x4   :  { %v1344_v3 = vld [vmem:[%s1727_s1 + $0x80] sm:$0xff]   ;;  %996 = vmatpush3.bf16.msra.mxu0 %v1338_v2  ;;  %v1368_v7 = vld [vmem:[%s1727_s1 + $0x88] sm:$0xff]   ;;  %v1392_v11 = vld [vmem:[%s1727_s1 + $0x90] sm:$0xff]  }
   0x5   :  { %1018 = vmatpush3.bf16.msra.mxu1 %v1344_v3  ;;  %997 = vmatprep.subr.bf16.mxu0 %v1350_v4  ;;  %v1398_v12 = vld [vmem:[%s1727_s1 + $0x58] sm:$0xff]   ;;  %v1422_v16 = vld [vmem:[%s1727_s1 + $0x60] sm:$0xff]   ;;  %v1446_v20 = vld [vmem:[%s1727_s1 + $0x68] sm:$0xff]  }
   0x6   :  { %1019 = vmatprep.subr.bf16.mxu1 %v1356_v5  ;;  %v1404_v13 = vld [vmem:[%s1727_s1 + $0xd8] sm:$0xff]   ;;  %v1428_v17 = vld [vmem:[%s1727_s1 + $0xe0] sm:$0xff]   ;;  %v1452_v21 = vld [vmem:[%s1727_s1 + $0xe8] sm:$0xff]  }
   0x7   :  { %v1410_v14 = vld [vmem:[%s1727_s1 + $0x18] sm:$0xff]   ;;  %v1434_v18 = vld [vmem:[%s1727_s1 + $0x20] sm:$0xff]   ;;  %v1458_v22 = vld [vmem:[%s1727_s1 + $0x28] sm:$0xff]  }
   0x8   :  { %998 = vmatpush3.bf16.msra.mxu0 %v1362_v6  ;;  %v1416_v15 = vld [vmem:[%s1727_s1 + $0x98] sm:$0xff]   ;;  %v1440_v19 = vld [vmem:[%s1727_s1 + $0xa0] sm:$0xff]   ;;  %v1464_v23 = vld [vmem:[%s1727_s1 + $0xa8] sm:$0xff]  }
   0x9   :  { %1020 = vmatpush3.bf16.msra.mxu1 %v1368_v7  ;;  %999 = vmatprep.subr.bf16.mxu0 %v1374_v8  ;;  %v1470_v24 = vld [vmem:[%s1727_s1 + $0x70] sm:$0xff]   ;;  %v1494_v28 = vld [vmem:[%s1727_s1 + $0x78] sm:$0xff]   ;;  %v92_v32 = vld [vmem:[%s1728_s0] sm:$0xff] }
   0xa   :  { %1021 = vmatprep.subr.bf16.mxu1 %v1380_v9  ;;  %v1476_v25 = vld [vmem:[%s1727_s1 + $0xf0] sm:$0xff]   ;;  %v1500_v29 = vld [vmem:[%s1727_s1 + $0xf8] sm:$0xff]   ;;  %v93_v33 = vld [vmem:[%s1728_s0 + $0x8] sm:$0xff]  ;;  %v924_v34 = vcombine.low %v92_v32, %v92_v32  ;;  %v925_v35 = vcombine.high %v92_v32, %v92_v32 }
   0xb   :  { %v1482_v26 = vld [vmem:[%s1727_s1 + $0x30] sm:$0xff]   ;;  %v1506_v30 = vld [vmem:[%s1727_s1 + $0x38] sm:$0xff]   ;;  %v926_v36 = vcombine.low %v93_v33, %v93_v33  ;;  %v927_v37 = vcombine.high %v93_v33, %v93_v33  ;;  %v1525_v38 = vld [vmem:[%s1727_s1 + $0x100] sm:$0xff]  }
   0xc   :  { %1000 = vmatpush3.bf16.msra.mxu0 %v1386_v10  ;;  %v1488_v27 = vld [vmem:[%s1727_s1 + $0xb0] sm:$0xff]   ;;  %v1512_v31 = vld [vmem:[%s1727_s1 + $0xb8] sm:$0xff]   ;;  %364 = vmatprep.mubr.bf16.mxu0 %v925_v35  ;;  %v1534_v40 = vld [vmem:[%s1727_s1 + $0x108] sm:$0xff]  }
   0xd   :  { %1022 = vmatpush3.bf16.msra.mxu1 %v1392_v11  ;;  %1001 = vmatprep.subr.bf16.mxu0 %v1398_v12  ;;  %v968_v41 = vld [vmem:[%s1728_s0 + $0x14] sm:$0xff]  ;;  %v1281_v45 = vld [vmem:[%s1728_s0 + $0x10] ss:$0 sps:$4 sm:$0xff]   ;;  %v969_v46 = vld [vmem:[%s1728_s0 + $0x1c] sm:$0xff] }
   0xe   :  { %1023 = vmatprep.subr.bf16.mxu1 %v1404_v13  ;;  %404 = vmatprep.mubr.bf16.mxu1 %v927_v37  ;;  %v972_v42 = vcombine.high %v968_v41, %v968_v41  ;;  %v1548_v43 = vld [vmem:[%s1727_s1 + $0x110] sm:$0xff]   ;;  %v1557_v44 = vld [vmem:[%s1727_s1 + $0x118] sm:$0xff]   ;;  %v974_v47 = vcombine.high %v969_v46, %v969_v46  ;;  %v971_v48 = vcombine.low %v968_v41, %v968_v41  ;;  %v1286_v50 = vld [vmem:[%s1728_s0 + $0x24] ss:$0 sps:$4 sm:$0xff]  }
   0xf   :  { %v973_v49 = vcombine.low %v969_v46, %v969_v46  ;;  %v977_v51 = vld [vmem:[%s1728_s0 + $0x28] sm:$0xff]  ;;  %v978_v52 = vld [vmem:[%s1728_s0 + $0x30] sm:$0xff]  ;;  %v986_v57 = vld [vmem:[%s1728_s0 + $0x3c] sm:$0xff] }
  0x10   :  { %1002 = vmatpush3.bf16.msra.mxu0 %v1410_v14  ;;  %v981_v53 = vcombine.high %v977_v51, %v977_v51  ;;  %v983_v54 = vcombine.high %v978_v52, %v978_v52  ;;  %v980_v55 = vcombine.low %v977_v51, %v977_v51  ;;  %v982_v56 = vcombine.low %v978_v52, %v978_v52  ;;  %v1291_v59 = vld [vmem:[%s1728_s0 + $0x38] ss:$0 sps:$4 sm:$0xff]   ;;  %v987_v60 = vld [vmem:[%s1728_s0 + $0x44] sm:$0xff] }
  0x11   :  { %1024 = vmatpush3.bf16.msra.mxu1 %v1416_v15  ;;  %1003 = vmatprep.subr.bf16.mxu0 %v1422_v16  ;;  %v990_v58 = vcombine.high %v986_v57, %v986_v57  ;;  %v992_v61 = vcombine.high %v987_v60, %v987_v60  ;;  %v989_v62 = vcombine.low %v986_v57, %v986_v57 }
  0x12   :  { %1025 = vmatprep.subr.bf16.mxu1 %v1428_v17  ;;  %v991_v63 = vcombine.low %v987_v60, %v987_v60 }
  0x14   :  { %1004 = vmatpush3.bf16.msra.mxu0 %v1434_v18 }
  0x15   :  { %1026 = vmatpush3.bf16.msra.mxu1 %v1440_v19  ;;  %1005 = vmatprep.subr.bf16.mxu0 %v1446_v20 }
  0x16   :  { %1027 = vmatprep.subr.bf16.mxu1 %v1452_v21 }
  0x18   :  { %1006 = vmatpush3.bf16.msra.mxu0 %v1458_v22 }
  0x19   :  { %1028 = vmatpush3.bf16.msra.mxu1 %v1464_v23  ;;  %1007 = vmatprep.subr.bf16.mxu0 %v1470_v24 }
  0x1a   :  { %1029 = vmatprep.subr.bf16.mxu1 %v1476_v25 }
  0x1c   :  { %1008 = vmatpush3.bf16.msra.mxu0 %v1482_v26 }
  0x1d   :  { %1030 = vmatpush3.bf16.msra.mxu1 %v1488_v27  ;;  %1009 = vmatprep.subr.bf16.mxu0 %v1494_v28 }
  0x1e   :  { %1031 = vmatprep.subr.bf16.mxu1 %v1500_v29 }
  0x20   :  { %1010 = vmatpush3.bf16.msra.mxu0 %v1506_v30 }
  0x21   :  { %1032 = vmatpush3.bf16.msra.mxu1 %v1512_v31  ;;  %1191 = vmatprep.subr.bf16.mxu0 %v1297_v39 }
  0x22   :  { %1044 = vmatprep.subr.bf16.mxu1 %v1327_v0 }
  0x23   :  { %365 = vmatmul.mubr.bf16.vlgmr.msra.gmra.mrb[0].mxu0 %v924_v34 }
  0x24   :  { %405 = vmatmul.mubr.bf16.vlgmr.msra.gmra.mrb[0].mxu1 %v926_v36  ;;  %1192 = vmatpush3.bf16.msra.mxu0 %v1525_v38 }
  0x25   :  { %1045 = vmatpush3.bf16.msra.mxu1 %v1338_v2  ;;  %1193 = vmatprep.subr.bf16.mxu0 %v1297_v39 }
  0x26   :  { %1046 = vmatprep.subr.bf16.mxu1 %v1350_v4  ;;  %1199 = vmatprep.mubr.msk.bf16.mxu0 %vm1298_vm0, %v1297_v39 }
  0x27   :  { %525 = vmatprep.mubr.bf16.mxu1 %v972_v42 }
  0x28   :  { %1194 = vmatpush3.bf16.msra.mxu0 %v1534_v40 }
  0x29   :  { %1047 = vmatpush3.bf16.msra.mxu1 %v1362_v6  ;;  %1195 = vmatprep.subr.bf16.mxu0 %v1297_v39 }
  0x2a   :  { %1048 = vmatprep.subr.bf16.mxu1 %v1374_v8 }
  0x2c   :  { %1196 = vmatpush3.bf16.msra.mxu0 %v1548_v43 }
  0x2d   :  { %1049 = vmatpush3.bf16.msra.mxu1 %v1386_v10  ;;  %1197 = vmatprep.subr.bf16.mxu0 %v1297_v39 }
  0x2e   :  { %1050 = vmatprep.subr.bf16.mxu1 %v1398_v12 }
  0x30   :  { %1198 = vmatpush3.bf16.msra.mxu0 %v1557_v44 }
  0x31   :  { %1051 = vmatpush3.bf16.msra.mxu1 %v1410_v14  ;;  %1066 = vmatprep.subr.bf16.mxu0 %v1332_v1 }
  0x32   :  { %1052 = vmatprep.subr.bf16.mxu1 %v1422_v16 }
  0x33   :  { %1200 = vmatmul.mubr.msk.bf16.vlgmr.msra.gmra.mrb[4].mxu0 %vm328_vm1, %v1281_v45 }
  0x34   :  { %1067 = vmatpush3.bf16.msra.mxu0 %v1344_v3  ;;  %565 = vmatprep.mubr.bf16.mxu0 %v974_v47 }
  0x35   :  { %1053 = vmatpush3.bf16.msra.mxu1 %v1434_v18  ;;  %1068 = vmatprep.subr.bf16.mxu0 %v1356_v5 }
  0x36   :  { %1054 = vmatprep.subr.bf16.mxu1 %v1446_v20 }
  0x38   :  { %1069 = vmatpush3.bf16.msra.mxu0 %v1368_v7 }
  0x39   :  { %1055 = vmatpush3.bf16.msra.mxu1 %v1458_v22  ;;  %1070 = vmatprep.subr.bf16.mxu0 %v1380_v9 }
  0x3a   :  { %1056 = vmatprep.subr.bf16.mxu1 %v1470_v24 }
  0x3c   :  { %1071 = vmatpush3.bf16.msra.mxu0 %v1392_v11 }
  0x3d   :  { %1057 = vmatpush3.bf16.msra.mxu1 %v1482_v26  ;;  %1072 = vmatprep.subr.bf16.mxu0 %v1404_v13 }
  0x3e   :  { %1058 = vmatprep.subr.bf16.mxu1 %v1494_v28 }
  0x40   :  { %1073 = vmatpush3.bf16.msra.mxu0 %v1416_v15 }
  0x41   :  { %1059 = vmatpush3.bf16.msra.mxu1 %v1506_v30  ;;  %1074 = vmatprep.subr.bf16.mxu0 %v1428_v17 }
  0x42   :  { %1203 = vmatprep.subr.bf16.mxu1 %v1297_v39 }
  0x44   :  { %526 = vmatmul.mubr.bf16.vlgmr.msra.gmra.mrb[4].mxu1 %v971_v48  ;;  %1075 = vmatpush3.bf16.msra.mxu0 %v1440_v19 }
  0x45   :  { %1204 = vmatpush3.bf16.msra.mxu1 %v1525_v38  ;;  %1076 = vmatprep.subr.bf16.mxu0 %v1452_v21 }
  0x46   :  { %1205 = vmatprep.subr.bf16.mxu1 %v1297_v39  ;;  %1211 = vmatprep.mubr.msk.bf16.mxu1 %vm1298_vm0, %v1297_v39 }
  0x48   :  { %1077 = vmatpush3.bf16.msra.mxu0 %v1464_v23 }
  0x49   :  { %1206 = vmatpush3.bf16.msra.mxu1 %v1534_v40  ;;  %1078 = vmatprep.subr.bf16.mxu0 %v1476_v25 }
  0x4a   :  { %1207 = vmatprep.subr.bf16.mxu1 %v1297_v39 }
  0x4c   :  { %1079 = vmatpush3.bf16.msra.mxu0 %v1488_v27 }
  0x4d   :  { %1208 = vmatpush3.bf16.msra.mxu1 %v1548_v43  ;;  %1080 = vmatprep.subr.bf16.mxu0 %v1500_v29 }
  0x4e   :  { %1209 = vmatprep.subr.bf16.mxu1 %v1297_v39 }
  0x50   :  { %1081 = vmatpush3.bf16.msra.mxu0 %v1512_v31 }
  0x51   :  { %1210 = vmatpush3.bf16.msra.mxu1 %v1557_v44  ;;  %1093 = vmatprep.subr.bf16.mxu0 %v1327_v0 }
  0x52   :  { %1115 = vmatprep.subr.bf16.mxu1 %v1332_v1 }
  0x53   :  { %566 = vmatmul.mubr.bf16.vlgmr.msra.gmra.mrb[8].mxu0 %v973_v49 }
  0x54   :  { %1212 = vmatmul.mubr.msk.bf16.vlgmr.msra.gmra.mrb[8].mxu1 %vm328_vm1, %v1286_v50  ;;  %1094 = vmatpush3.bf16.msra.mxu0 %v1338_v2 }
  0x55   :  { %1116 = vmatpush3.bf16.msra.mxu1 %v1344_v3  ;;  %1095 = vmatprep.subr.bf16.mxu0 %v1350_v4 }
  0x56   :  { %1117 = vmatprep.subr.bf16.mxu1 %v1356_v5  ;;  %675 = vmatprep.mubr.bf16.mxu0 %v981_v53 }
  0x57   :  { %715 = vmatprep.mubr.bf16.mxu1 %v983_v54 }
  0x58   :  { %1096 = vmatpush3.bf16.msra.mxu0 %v1362_v6 }
  0x59   :  { %1118 = vmatpush3.bf16.msra.mxu1 %v1368_v7  ;;  %1097 = vmatprep.subr.bf16.mxu0 %v1374_v8 }
  0x5a   :  { %1119 = vmatprep.subr.bf16.mxu1 %v1380_v9 }
  0x5c   :  { %1098 = vmatpush3.bf16.msra.mxu0 %v1386_v10 }
  0x5d   :  { %1120 = vmatpush3.bf16.msra.mxu1 %v1392_v11  ;;  %1099 = vmatprep.subr.bf16.mxu0 %v1398_v12 }
  0x5e   :  { %1121 = vmatprep.subr.bf16.mxu1 %v1404_v13 }
  0x60   :  { %1100 = vmatpush3.bf16.msra.mxu0 %v1410_v14 }
  0x61   :  { %1122 = vmatpush3.bf16.msra.mxu1 %v1416_v15  ;;  %1101 = vmatprep.subr.bf16.mxu0 %v1422_v16 }
  0x62   :  { %1123 = vmatprep.subr.bf16.mxu1 %v1428_v17 }
  0x64   :  { %1102 = vmatpush3.bf16.msra.mxu0 %v1434_v18 }
  0x65   :  { %1124 = vmatpush3.bf16.msra.mxu1 %v1440_v19  ;;  %1103 = vmatprep.subr.bf16.mxu0 %v1446_v20 }
  0x66   :  { %1125 = vmatprep.subr.bf16.mxu1 %v1452_v21 }
  0x68   :  { %1104 = vmatpush3.bf16.msra.mxu0 %v1458_v22 }
  0x69   :  { %1126 = vmatpush3.bf16.msra.mxu1 %v1464_v23  ;;  %1105 = vmatprep.subr.bf16.mxu0 %v1470_v24 }
  0x6a   :  { %1127 = vmatprep.subr.bf16.mxu1 %v1476_v25 }
  0x6c   :  { %1106 = vmatpush3.bf16.msra.mxu0 %v1482_v26 }
  0x6d   :  { %1128 = vmatpush3.bf16.msra.mxu1 %v1488_v27  ;;  %1107 = vmatprep.subr.bf16.mxu0 %v1494_v28 }
  0x6e   :  { %1129 = vmatprep.subr.bf16.mxu1 %v1500_v29 }
  0x70   :  { %1108 = vmatpush3.bf16.msra.mxu0 %v1506_v30 }
  0x71   :  { %1130 = vmatpush3.bf16.msra.mxu1 %v1512_v31  ;;  %1215 = vmatprep.subr.bf16.mxu0 %v1297_v39 }
  0x72   :  { %1142 = vmatprep.subr.bf16.mxu1 %v1327_v0  ;;  %v1296_v0 = vld [vmem:[%s1728_s0 + $0x4c] ss:$0 sps:$4 sm:$0xff]  }
  0x73   :  { %676 = vmatmul.mubr.bf16.vlgmr.msra.gmra.mrb[12].mxu0 %v980_v55 }
  0x74   :  { %716 = vmatmul.mubr.bf16.vlgmr.msra.gmra.mrb[12].mxu1 %v982_v56  ;;  %1216 = vmatpush3.bf16.msra.mxu0 %v1525_v38 }
  0x75   :  { %1143 = vmatpush3.bf16.msra.mxu1 %v1338_v2  ;;  %1217 = vmatprep.subr.bf16.mxu0 %v1297_v39 }
  0x76   :  { %1144 = vmatprep.subr.bf16.mxu1 %v1350_v4  ;;  %1223 = vmatprep.mubr.msk.bf16.mxu0 %vm1298_vm0, %v1297_v39 }
  0x77   :  { %825 = vmatprep.mubr.bf16.mxu1 %v990_v58 }
  0x78   :  { %1218 = vmatpush3.bf16.msra.mxu0 %v1534_v40 }
  0x79   :  { %1145 = vmatpush3.bf16.msra.mxu1 %v1362_v6  ;;  %1219 = vmatprep.subr.bf16.mxu0 %v1297_v39 }
  0x7a   :  { %1146 = vmatprep.subr.bf16.mxu1 %v1374_v8 }
  0x7c   :  { %1220 = vmatpush3.bf16.msra.mxu0 %v1548_v43 }
  0x7d   :  { %1147 = vmatpush3.bf16.msra.mxu1 %v1386_v10  ;;  %1221 = vmatprep.subr.bf16.mxu0 %v1297_v39 }
  0x7e   :  { %1148 = vmatprep.subr.bf16.mxu1 %v1398_v12 }
  0x80   :  { %1222 = vmatpush3.bf16.msra.mxu0 %v1557_v44 }
  0x81   :  { %1149 = vmatpush3.bf16.msra.mxu1 %v1410_v14  ;;  %1164 = vmatprep.subr.bf16.mxu0 %v1332_v1 }
  0x82   :  { %1150 = vmatprep.subr.bf16.mxu1 %v1422_v16 }
  0x83   :  { %1224 = vmatmul.mubr.msk.bf16.vlgmr.msra.gmra.mrb[16].mxu0 %vm328_vm1, %v1291_v59 }
  0x84   :  { %1165 = vmatpush3.bf16.msra.mxu0 %v1344_v3  ;;  %865 = vmatprep.mubr.bf16.mxu0 %v992_v61 }
  0x85   :  { %1151 = vmatpush3.bf16.msra.mxu1 %v1434_v18  ;;  %1166 = vmatprep.subr.bf16.mxu0 %v1356_v5 }
  0x86   :  { %1152 = vmatprep.subr.bf16.mxu1 %v1446_v20 }
  0x88   :  { %1167 = vmatpush3.bf16.msra.mxu0 %v1368_v7 }
  0x89   :  { %1153 = vmatpush3.bf16.msra.mxu1 %v1458_v22  ;;  %1168 = vmatprep.subr.bf16.mxu0 %v1380_v9  ;;  %v1715_v22 = vld [vmem:[%s1729_s2] ss:$0 sm:$0xff] }
  0x8a   :  { %1154 = vmatprep.subr.bf16.mxu1 %v1470_v24 }
  0x8c   :  { %1169 = vmatpush3.bf16.msra.mxu0 %v1392_v11 }
  0x8d   :  { %1155 = vmatpush3.bf16.msra.mxu1 %v1482_v26  ;;  %1170 = vmatprep.subr.bf16.mxu0 %v1404_v13 }
  0x8e   :  { %1156 = vmatprep.subr.bf16.mxu1 %v1494_v28 }
  0x90   :  { %1171 = vmatpush3.bf16.msra.mxu0 %v1416_v15 }
  0x91   :  { %1157 = vmatpush3.bf16.msra.mxu1 %v1506_v30  ;;  %1172 = vmatprep.subr.bf16.mxu0 %v1428_v17 }
  0x92   :  { %1227 = vmatprep.subr.bf16.mxu1 %v1297_v39 }
  0x94   :  { %826 = vmatmul.mubr.bf16.vlgmr.msra.gmra.mrb[16].mxu1 %v989_v62  ;;  %1173 = vmatpush3.bf16.msra.mxu0 %v1440_v19 }
  0x95   :  { %1228 = vmatpush3.bf16.msra.mxu1 %v1525_v38  ;;  %1174 = vmatprep.subr.bf16.mxu0 %v1452_v21 }
  0x96   :  { %1229 = vmatprep.subr.bf16.mxu1 %v1297_v39  ;;  %1235 = vmatprep.mubr.msk.bf16.mxu1 %vm1298_vm0, %v1297_v39 }
  0x98   :  { %1175 = vmatpush3.bf16.msra.mxu0 %v1464_v23 }
  0x99   :  { %1230 = vmatpush3.bf16.msra.mxu1 %v1534_v40  ;;  %1176 = vmatprep.subr.bf16.mxu0 %v1476_v25 }
  0x9a   :  { %1231 = vmatprep.subr.bf16.mxu1 %v1297_v39 }
  0x9c   :  { %1177 = vmatpush3.bf16.msra.mxu0 %v1488_v27 }
  0x9d   :  { %1232 = vmatpush3.bf16.msra.mxu1 %v1548_v43  ;;  %1178 = vmatprep.subr.bf16.mxu0 %v1500_v29 }
  0x9e   :  { %1233 = vmatprep.subr.bf16.mxu1 %v1297_v39 }
  0xa0   :  { %1179 = vmatpush3.bf16.msra.mxu0 %v1512_v31  ;;  %v967_v31 = vld [vmem:[%s1730_s3] ss:$0 sm:$0xff] }
  0xa1   :  { %1234 = vmatpush3.bf16.msra.mxu1 %v1557_v44 }
  0xa3   :  { %866 = vmatmul.mubr.bf16.vlgmr.msra.gmra.mrb[20].mxu0 %v991_v63 }
  0xa4   :  { %1236 = vmatmul.mubr.msk.bf16.vlgmr.msra.gmra.mrb[20].mxu1 %vm328_vm1, %v1296_v0 }
  0xf6   :  { %v1011_v1 = vpop.f32.mrb[0].mxu0 }
  0xf7   :  { %v1033_v2 = vpop.f32.mrb[0].mxu1  ;;  %v1012_v3 = vpop.f32.mrb[1].mxu0 }
  0xf8   :  { %v1034_v4 = vpop.f32.mrb[1].mxu1  ;;  %v1013_v5 = vadd.f32 %v1012_v3, %v1011_v1  ;;  %v1014_v7 = vpop.f32.mrb[2].mxu0 }
  0xf9   :  { %v1035_v6 = vadd.f32 %v1034_v4, %v1033_v2  ;;  %v1036_v8 = vpop.f32.mrb[2].mxu1  ;;  %v1015_v9 = vpop.f32.mrb[3].mxu0 }
  0xfa   :  { %v1037_v10 = vpop.f32.mrb[3].mxu1 }
  0xfb   :  { %v407_v11 = vadd.f32 %v1035_v6, %v1013_v5 }
 0x106   :  { %v446_v12 = vpop.f32.mrb[4].mxu0 }
 0x107   :  { %v447_v13 = vadd.f32 %v446_v12, %v407_v11  ;;  %v1201_v14 = vpop.f32.mrb[5].mxu0 }
 0x108   :  { %v449_v15 = vpop.f32.mrb[6].mxu0 }
 0x109   :  { %v1202_v16 = vpop.f32.mrb[7].mxu0  ;;  %v458_v27 = vmul.f32 %v1715_v22, %v447_v13 }
 0x10b   :  { %v465_v35 = vadd.f32 %v967_v31, %v458_v27 }
 0x10d   :  { %v467_v38 = vmul.f32 0.01, %v465_v35  ;;  %vm466_vm2 = vcmp.gt.f32.partialorder %v465_v35, 0.0 }
 0x10f   :  { %v468_v41 = vsel %vm466_vm2, %v465_v35, %v467_v38 }
 0x117   :  { %v1060_v17 = vpop.f32.mrb[4].mxu1 }
 0x118   :  { %v1061_v18 = vpop.f32.mrb[5].mxu1 }
 0x119   :  { %v1062_v19 = vadd.f32 %v1061_v18, %v1060_v17  ;;  %v1063_v20 = vpop.f32.mrb[6].mxu1 }
 0x11a   :  { %v1064_v21 = vpop.f32.mrb[7].mxu1 }
 0x126   :  { %v1082_v23 = vpop.f32.mrb[8].mxu0 }
 0x127   :  { %v607_v24 = vpop.f32.mrb[8].mxu1  ;;  %v1083_v25 = vpop.f32.mrb[9].mxu0 }
 0x128   :  { %v1213_v26 = vpop.f32.mrb[9].mxu1  ;;  %v1084_v28 = vadd.f32 %v1083_v25, %v1082_v23  ;;  %v1085_v29 = vpop.f32.mrb[10].mxu0 }
 0x129   :  { %v610_v30 = vpop.f32.mrb[10].mxu1  ;;  %v1086_v32 = vpop.f32.mrb[11].mxu0 }
 0x12a   :  { %v1214_v33 = vpop.f32.mrb[11].mxu1  ;;  %v568_v34 = vadd.f32 %v1084_v28, %v1062_v19 }
 0x12c   :  { %v608_v36 = vadd.f32 %v607_v24, %v568_v34 }
 0x12e   :  { %v613_v37 = vmul.f32 %v1715_v22, %v608_v36 }
 0x130   :  { %v614_v39 = vadd.f32 %v967_v31, %v613_v37 }
 0x132   :  { %vm615_vm3 = vcmp.gt.f32.partialorder %v614_v39, 0.0  ;;  %v616_v40 = vmul.f32 0.01, %v614_v39 }
 0x134   :  { %v617_v42 = vsel %vm615_vm3, %v614_v39, %v616_v40 }
 0x135   :  { %v618_v43 = vmax.f32 %v468_v41, %v617_v42 }
 0x146   :  { %v1109_v44 = vpop.f32.mrb[12].mxu0 }
 0x147   :  { %v1131_v45 = vpop.f32.mrb[12].mxu1  ;;  %v1110_v46 = vpop.f32.mrb[13].mxu0 }
 0x148   :  { %v1132_v47 = vpop.f32.mrb[13].mxu1  ;;  %v1111_v48 = vadd.f32 %v1110_v46, %v1109_v44  ;;  %v1112_v50 = vpop.f32.mrb[14].mxu0 }
 0x149   :  { %v1133_v49 = vadd.f32 %v1132_v47, %v1131_v45  ;;  %v1134_v51 = vpop.f32.mrb[14].mxu1  ;;  %v1113_v52 = vpop.f32.mrb[15].mxu0 }
 0x14a   :  { %v1135_v53 = vpop.f32.mrb[15].mxu1 }
 0x14b   :  { %v718_v54 = vadd.f32 %v1133_v49, %v1111_v48 }
 0x156   :  { %v757_v55 = vpop.f32.mrb[16].mxu0 }
 0x157   :  { %v758_v56 = vadd.f32 %v757_v55, %v718_v54  ;;  %v1225_v57 = vpop.f32.mrb[17].mxu0 }
 0x158   :  { %v760_v58 = vpop.f32.mrb[18].mxu0 }
 0x159   :  { %v763_v59 = vmul.f32 %v1715_v22, %v758_v56  ;;  %v1226_v60 = vpop.f32.mrb[19].mxu0 }
 0x15b   :  { %v764_v61 = vadd.f32 %v967_v31, %v763_v59 }
 0x15d   :  { %vm765_vm4 = vcmp.gt.f32.partialorder %v764_v61, 0.0  ;;  %v766_v62 = vmul.f32 0.01, %v764_v61 }
 0x15f   :  { %v767_v63 = vsel %vm765_vm4, %v764_v61, %v766_v62 }
 0x160   :  { %v768_v0 = vmax.f32 %v618_v43, %v767_v63 }
 0x167   :  { %v1158_v1 = vpop.f32.mrb[16].mxu1 }
 0x168   :  { %v1159_v2 = vpop.f32.mrb[17].mxu1 }
 0x169   :  { %v1160_v3 = vadd.f32 %v1159_v2, %v1158_v1  ;;  %v1161_v4 = vpop.f32.mrb[18].mxu1 }
 0x16a   :  { %v1162_v5 = vpop.f32.mrb[19].mxu1 }
 0x176   :  { %v1180_v6 = vpop.f32.mrb[20].mxu0 }
 0x177   :  { %v907_v7 = vpop.f32.mrb[20].mxu1  ;;  %v1181_v8 = vpop.f32.mrb[21].mxu0 }
 0x178   :  { %v1237_v9 = vpop.f32.mrb[21].mxu1  ;;  %v1182_v10 = vadd.f32 %v1181_v8, %v1180_v6  ;;  %v1183_v11 = vpop.f32.mrb[22].mxu0 }
 0x179   :  { %v910_v12 = vpop.f32.mrb[22].mxu1  ;;  %v1184_v13 = vpop.f32.mrb[23].mxu0 }
 0x17a   :  { %v1238_v14 = vpop.f32.mrb[23].mxu1  ;;  %v868_v15 = vadd.f32 %v1182_v10, %v1160_v3 }
 0x17c   :  { %v908_v16 = vadd.f32 %v907_v7, %v868_v15 }
 0x17e   :  { %v913_v17 = vmul.f32 %v1715_v22, %v908_v16 }
 0x180   :  { %v914_v18 = vadd.f32 %v967_v31, %v913_v17 }
 0x182   :  { %vm915_vm5 = vcmp.gt.f32.partialorder %v914_v18, 0.0  ;;  %v916_v19 = vmul.f32 0.01, %v914_v18 }
 0x184   :  { %v917_v20 = vsel %vm915_vm5, %v914_v18, %v916_v19 }
 0x185   :  { %v918_v21 = vmax.f32 %v768_v0, %v917_v20 }
 0x187   :  { %919 = vst [vmem:[%s1731_s4] sm:$0xff] %v918_v21 }

// kernel: custom_convnet_forward.10
= control target key start
LH: loop header
LB: loop body
LE: loop exit
PB: predicated region body
PF: predicated region fallthrough
CT: control target
= control target key end

     0   :  { %v2569_v7 = vmov 1966171168   ;;  %v172_v9 = vlaneseq  ;;  %s4052_s1 = inlined_call_operand.vmem [shape: bf16[1152,256], index: 1, kind: input, shape index: {}]   ;;  %s4053_s0 = inlined_call_operand.vmem [shape: bf16[4,2,1152], index: 0, kind: input, shape index: {}]   ;;  %s4054_s2 = inlined_call_operand.vmem [shape: f32[1,256], index: 2, kind: input, shape index: {}]   ;;  %s4055_s3 = inlined_call_operand.vmem [shape: f32[1,256], index: 3, kind: input, shape index: {}]   ;;  %s4056_s4 = inlined_call_operand.vmem [shape: f32[2,256], index: 4, kind: output, shape index: {}]  }
   0x1   :  { %v2316_v0 = vld [vmem:[%s4052_s1 + $0x4] ss:$8 sps:$4 sm:$0xff]   ;;  %v2318_v1 = vld [vmem:[%s4052_s1] ss:$8 sps:$4 sm:$0xff]   ;;  %v2319_v2 = vld [vmem:[%s4052_s1 + $0x14] ss:$8 sps:$4 sm:$0xff]   ;;  %v170_v8 = vunpack.c.l.s4 %v2569_v7 }
   0x2   :  { %960 = vmatprep.subr.bf16.mxu0 %v2316_v0  ;;  %1274 = vmatprep.subr.bf16.mxu1 %v2316_v0  ;;  %v2321_v3 = vld [vmem:[%s4052_s1 + $0x10] ss:$8 sps:$4 sm:$0xff]   ;;  %v2322_v4 = vld [vmem:[%s4052_s1 + $0x24] ss:$8 sps:$4 sm:$0xff]   ;;  %v2324_v5 = vld [vmem:[%s4052_s1 + $0x20] ss:$8 sps:$4 sm:$0xff]  }
   0x3   :  { %961 = vmatpush1.bf16.msra.mxu0 %v2318_v1  ;;  %1275 = vmatpush1.bf16.msra.mxu1 %v2318_v1  ;;  %v2325_v6 = vld [vmem:[%s4052_s1 + $0x34] ss:$8 sps:$4 sm:$0xff]   ;;  %v2327_v10 = vld [vmem:[%s4052_s1 + $0x30] ss:$8 sps:$4 sm:$0xff]   ;;  %v2328_v11 = vld [vmem:[%s4052_s1 + $0x44] ss:$8 sps:$4 sm:$0xff]   ;;  %v171_v12 = vunpack.c.0.s8 %v170_v8 }
   0x4   :  { %962 = vmatprep.subr.bf16.mxu0 %v2319_v2  ;;  %1276 = vmatprep.subr.bf16.mxu1 %v2319_v2  ;;  %v2623_v13 = vshrl.u32 %v172_v9, 7  ;;  %v2330_v14 = vld [vmem:[%s4052_s1 + $0x40] ss:$8 sps:$4 sm:$0xff]   ;;  %v2331_v15 = vld [vmem:[%s4052_s1 + $0x54] ss:$8 sps:$4 sm:$0xff]  }
   0x5   :  { %v2333_v17 = vld [vmem:[%s4052_s1 + $0x50] ss:$8 sps:$4 sm:$0xff]   ;;  %v2334_v18 = vld [vmem:[%s4052_s1 + $0x64] ss:$8 sps:$4 sm:$0xff]   ;;  %v2336_v22 = vld [vmem:[%s4052_s1 + $0x60] ss:$8 sps:$4 sm:$0xff]  }
   0x6   :  { %4185 = vst [vmem:[#allocation2_spill] sm:$0xff] %v2623_v13  ;;  %v2632_v16 = vsub.s32 %v171_v12, %v2623_v13  ;;  %v2643_v19 = vld [vmem:[%s4053_s0] sm:$0xff]  ;;  %v2652_v21 = vld [vmem:[%s4053_s0 + $0x9] sm:$0xff]  ;;  %v2337_v24 = vld [vmem:[%s4052_s1 + $0x74] ss:$8 sps:$4 sm:$0xff]  }
   0x7   :  { %963 = vmatpush1.bf16.msra.mxu0 %v2321_v3  ;;  %1277 = vmatpush1.bf16.msra.mxu1 %v2321_v3  ;;  %v2339_v28 = vld [vmem:[%s4052_s1 + $0x70] ss:$8 sps:$4 sm:$0xff]   ;;  %v2340_v30 = vld [vmem:[%s4052_s1 + $0x84] ss:$8 sps:$4 sm:$0xff]   ;;  %v2342_v31 = vld [vmem:[%s4052_s1 + $0x80] ss:$8 sps:$4 sm:$0xff]  }
   0x8   :  { %964 = vmatprep.subr.bf16.mxu0 %v2322_v4  ;;  %1278 = vmatprep.subr.bf16.mxu1 %v2322_v4  ;;  %v2647_v20 = vrot.slane %v2643_v19, %v2632_v16  ;;  %v2659_v23 = vrot.slane %v2652_v21, %v2632_v16  ;;  %v2343_v32 = vld [vmem:[%s4052_s1 + $0x94] ss:$8 sps:$4 sm:$0xff]   ;;  %v2345_v33 = vld [vmem:[%s4052_s1 + $0x90] ss:$8 sps:$4 sm:$0xff]   ;;  %v2346_v34 = vld [vmem:[%s4052_s1 + $0xa4] ss:$8 sps:$4 sm:$0xff]  }
   0x9   :  { %v2348_v35 = vld [vmem:[%s4052_s1 + $0xa0] ss:$8 sps:$4 sm:$0xff]   ;;  %v2349_v36 = vld [vmem:[%s4052_s1 + $0xb4] ss:$8 sps:$4 sm:$0xff]   ;;  %v2351_v37 = vld [vmem:[%s4052_s1 + $0xb0] ss:$8 sps:$4 sm:$0xff]  }
   0xa   :  { %v183_v25 = vcombine.high %v2647_v20, %v2647_v20  ;;  %v1217_v26 = vcombine.high %v2659_v23, %v2659_v23  ;;  %v2352_v38 = vld [vmem:[%s4052_s1 + $0xc4] ss:$8 sps:$4 sm:$0xff]   ;;  %v2354_v39 = vld [vmem:[%s4052_s1 + $0xc0] ss:$8 sps:$4 sm:$0xff]   ;;  %v2355_v40 = vld [vmem:[%s4052_s1 + $0xd4] ss:$8 sps:$4 sm:$0xff]   ;;  %v2734_v47 = vrot.slane %v2647_v20, %v2632_v16  ;;  %v2738_v48 = vrot.slane %v2659_v23, %v2632_v16 }
   0xb   :  { %965 = vmatpush1.bf16.msra.mxu0 %v2324_v5  ;;  %1279 = vmatpush1.bf16.msra.mxu1 %v2324_v5  ;;  %v2357_v41 = vld [vmem:[%s4052_s1 + $0xd0] ss:$8 sps:$4 sm:$0xff]   ;;  %v2358_v42 = vld [vmem:[%s4052_s1 + $0xe4] ss:$8 sps:$4 sm:$0xff]   ;;  %v2360_v43 = vld [vmem:[%s4052_s1 + $0xe0] ss:$8 sps:$4 sm:$0xff]  }
   0xc   :  { %966 = vmatprep.subr.bf16.mxu0 %v2325_v6  ;;  %1280 = vmatprep.subr.bf16.mxu1 %v2325_v6  ;;  %v2669_v27 = vrot.slane %v183_v25, %v2632_v16  ;;  %v2675_v29 = vrot.slane %v1217_v26, %v2632_v16  ;;  %v2361_v44 = vld [vmem:[%s4052_s1 + $0xf4] ss:$8 sps:$4 sm:$0xff]   ;;  %v2363_v45 = vld [vmem:[%s4052_s1 + $0xf0] ss:$8 sps:$4 sm:$0xff]   ;;  %v2730_v46 = vld [vmem:[%s4052_s1 + $0x104] ss:$8 sps:$4 sm:$0xff]  }
   0xd   :  { %v2743_v49 = vld [vmem:[%s4052_s1 + $0x100] ss:$8 sps:$4 sm:$0xff]   ;;  %v2750_v50 = vld [vmem:[%s4052_s1 + $0x114] ss:$8 sps:$4 sm:$0xff]   ;;  %v2763_v53 = vld [vmem:[%s4052_s1 + $0x110] ss:$8 sps:$4 sm:$0xff]  }
   0xe   :  { %992 = vmatprep.mubr.bf16.mxu0 %v2669_v27  ;;  %1306 = vmatprep.mubr.bf16.mxu1 %v2675_v29  ;;  %v215_v51 = vcombine.high %v2669_v27, %v2669_v27  ;;  %v1249_v52 = vcombine.high %v2675_v29, %v2675_v29  ;;  %v2770_v54 = vld [vmem:[%s4052_s1 + $0x124] ss:$8 sps:$4 sm:$0xff]   ;;  %v2777_v55 = vld [vmem:[%s4052_s1 + $0x120] ss:$8 sps:$4 sm:$0xff]   ;;  %v2784_v56 = vld [vmem:[%s4052_s1 + $0x134] ss:$8 sps:$4 sm:$0xff]   ;;  %v213_v27 = vcombine.high %v2734_v47, %v2734_v47 }
   0xf   :  { %967 = vmatpush1.bf16.msra.mxu0 %v2327_v10  ;;  %1281 = vmatpush1.bf16.msra.mxu1 %v2327_v10  ;;  %v2791_v57 = vld [vmem:[%s4052_s1 + $0x130] ss:$8 sps:$4 sm:$0xff]   ;;  %v2798_v58 = vld [vmem:[%s4052_s1 + $0x144] ss:$8 sps:$4 sm:$0xff]   ;;  %v2805_v59 = vld [vmem:[%s4052_s1 + $0x140] ss:$8 sps:$4 sm:$0xff]  }
  0x10   :  { %968 = vmatprep.subr.bf16.mxu0 %v2328_v11  ;;  %1282 = vmatprep.subr.bf16.mxu1 %v2328_v11  ;;  %v2812_v60 = vld [vmem:[%s4052_s1 + $0x154] ss:$8 sps:$4 sm:$0xff]   ;;  %v2819_v61 = vld [vmem:[%s4052_s1 + $0x150] ss:$8 sps:$4 sm:$0xff]   ;;  %v2826_v62 = vld [vmem:[%s4052_s1 + $0x164] ss:$8 sps:$4 sm:$0xff]  }
  0x11   :  { %v2833_v63 = vld [vmem:[%s4052_s1 + $0x160] ss:$8 sps:$4 sm:$0xff]   ;;  %v2840_v0 = vld [vmem:[%s4052_s1 + $0x174] ss:$8 sps:$4 sm:$0xff]   ;;  %v2847_v1 = vld [vmem:[%s4052_s1 + $0x170] ss:$8 sps:$4 sm:$0xff]  }
  0x12   :  { %v2854_v2 = vld [vmem:[%s4052_s1 + $0x184] ss:$8 sps:$4 sm:$0xff]   ;;  %v2861_v3 = vld [vmem:[%s4052_s1 + $0x180] ss:$8 sps:$4 sm:$0xff]   ;;  %v2868_v4 = vld [vmem:[%s4052_s1 + $0x194] ss:$8 sps:$4 sm:$0xff]  }
  0x13   :  { %969 = vmatpush1.bf16.msra.mxu0 %v2330_v14  ;;  %1283 = vmatpush1.bf16.msra.mxu1 %v2330_v14  ;;  %v2875_v5 = vld [vmem:[%s4052_s1 + $0x190] ss:$8 sps:$4 sm:$0xff]   ;;  %v2882_v6 = vld [vmem:[%s4052_s1 + $0x1a4] ss:$8 sps:$4 sm:$0xff]   ;;  %v2889_v7 = vld [vmem:[%s4052_s1 + $0x1a0] ss:$8 sps:$4 sm:$0xff]  }
  0x14   :  { %970 = vmatprep.subr.bf16.mxu0 %v2331_v15  ;;  %1284 = vmatprep.subr.bf16.mxu1 %v2331_v15  ;;  %v2896_v8 = vld [vmem:[%s4052_s1 + $0x1b4] ss:$8 sps:$4 sm:$0xff]   ;;  %v2903_v9 = vld [vmem:[%s4052_s1 + $0x1b0] ss:$8 sps:$4 sm:$0xff]   ;;  %v2910_v10 = vld [vmem:[%s4052_s1 + $0x1c4] ss:$8 sps:$4 sm:$0xff]  }
  0x15   :  { %v2917_v11 = vld [vmem:[%s4052_s1 + $0x1c0] ss:$8 sps:$4 sm:$0xff]   ;;  %v2924_v12 = vld [vmem:[%s4052_s1 + $0x1d4] ss:$8 sps:$4 sm:$0xff]   ;;  %v2931_v14 = vld [vmem:[%s4052_s1 + $0x1d0] ss:$8 sps:$4 sm:$0xff]  }
  0x16   :  { %v2938_v15 = vld [vmem:[%s4052_s1 + $0x1e4] ss:$8 sps:$4 sm:$0xff]   ;;  %v2949_v20 = vld [vmem:[%s4052_s1 + $0x1e0] ss:$8 sps:$4 sm:$0xff]   ;;  %v2969_v23 = vld [vmem:[%s4052_s1 + $0x1f0] ss:$8 sps:$4 sm:$0xff]  }
  0x17   :  { %971 = vmatpush1.bf16.msra.mxu0 %v2333_v17  ;;  %1285 = vmatpush1.bf16.msra.mxu1 %v2333_v17  ;;  %v168_v17 = vcombine.high %v2643_v19, %v2643_v19  ;;  %v2956_v19 = vld [vmem:[%s4052_s1 + $0x1f4] ss:$8 sps:$4 sm:$0xff]   ;;  %v2991_v29 = vld [vmem:[%s4052_s1 + $0x200] ss:$8 sps:$4 sm:$0xff]  }
  0x18   :  { %972 = vmatprep.subr.bf16.mxu0 %v2334_v18  ;;  %1286 = vmatprep.subr.bf16.mxu1 %v2334_v18  ;;  %v1202_v18 = vcombine.high %v2652_v21, %v2652_v21  ;;  %v3174_v13 = vld [vmem:[%s4052_s1 + $0x2d4] ss:$8 sps:$4 sm:$0xff]  }
  0x19   :  { %v2959_v21 = vrot.slane %v168_v17, %v2632_v16  ;;  %v3132_v17 = vld [vmem:[%s4052_s1 + $0x2a4] ss:$8 sps:$4 sm:$0xff]   ;;  %4195 = vst [vmem:[#allocation12_spill] sm:$0xff] %v3174_v13 }
  0x1a   :  { %4189 = vst [vmem:[#allocation6_spill] sm:$0xff] %v3132_v17 }
  0x1b   :  { %973 = vmatpush1.bf16.msra.mxu0 %v2336_v22  ;;  %1287 = vmatpush1.bf16.msra.mxu1 %v2336_v22  ;;  %v2962_v22 = vrot.slane %v1202_v18, %v2632_v16  ;;  %v184_v25 = vcombine.high %v2959_v21, %v2959_v21  ;;  %v3139_v18 = vld [vmem:[%s4052_s1 + $0x2a0] ss:$8 sps:$4 sm:$0xff]  }
  0x1c   :  { %974 = vmatprep.subr.bf16.mxu0 %v2337_v24  ;;  %1288 = vmatprep.subr.bf16.mxu1 %v2337_v24  ;;  %v2976_v24 = vld [vmem:[%s4052_s1 + $0x204] ss:$8 sps:$4 sm:$0xff]   ;;  %4190 = vst [vmem:[#allocation7_spill] sm:$0xff] %v3139_v18 }
  0x1d   :  { %v1218_v26 = vcombine.high %v2962_v22, %v2962_v22 }
  0x1f   :  { %975 = vmatpush1.bf16.msra.mxu0 %v2339_v28  ;;  %1289 = vmatpush1.bf16.msra.mxu1 %v2339_v28  ;;  %v1247_v28 = vcombine.high %v2738_v48, %v2738_v48 }
  0x20   :  { %976 = vmatprep.subr.bf16.mxu0 %v2340_v30  ;;  %1290 = vmatprep.subr.bf16.mxu1 %v2340_v30  ;;  %v2998_v30 = vld [vmem:[%s4052_s1 + $0x214] ss:$8 sps:$4 sm:$0xff]  }
  0x23   :  { %977 = vmatpush1.bf16.msra.mxu0 %v2342_v31  ;;  %1291 = vmatpush1.bf16.msra.mxu1 %v2342_v31  ;;  %v3001_v31 = vrot.slane %v184_v25, %v2632_v16  ;;  %v3146_v25 = vld [vmem:[%s4052_s1 + $0x2b4] ss:$8 sps:$4 sm:$0xff]  }
  0x24   :  { %978 = vmatprep.subr.bf16.mxu0 %v2343_v32  ;;  %1292 = vmatprep.subr.bf16.mxu1 %v2343_v32  ;;  %v3004_v32 = vrot.slane %v1218_v26, %v2632_v16  ;;  %4191 = vst [vmem:[#allocation8_spill] sm:$0xff] %v3146_v25  ;;  %v3153_v26 = vld [vmem:[%s4052_s1 + $0x2b0] ss:$8 sps:$4 sm:$0xff]  }
  0x25   :  { %4192 = vst [vmem:[#allocation9_spill] sm:$0xff] %v3153_v26 }
  0x27   :  { %979 = vmatpush1.bf16.msra.mxu0 %v2345_v33  ;;  %1293 = vmatpush1.bf16.msra.mxu1 %v2345_v33  ;;  %v3011_v33 = vld [vmem:[%s4052_s1 + $0x210] ss:$8 sps:$4 sm:$0xff]  }
  0x28   :  { %980 = vmatprep.subr.bf16.mxu0 %v2346_v34  ;;  %1294 = vmatprep.subr.bf16.mxu1 %v2346_v34  ;;  %v3018_v34 = vld [vmem:[%s4052_s1 + $0x224] ss:$8 sps:$4 sm:$0xff]  }
  0x2b   :  { %981 = vmatpush1.bf16.msra.mxu0 %v2348_v35  ;;  %1295 = vmatpush1.bf16.msra.mxu1 %v2348_v35  ;;  %v3027_v35 = vld [vmem:[%s4052_s1 + $0x220] ss:$8 sps:$4 sm:$0xff]  }
  0x2c   :  { %982 = vmatprep.subr.bf16.mxu0 %v2349_v36  ;;  %1296 = vmatprep.subr.bf16.mxu1 %v2349_v36  ;;  %v3034_v36 = vld [vmem:[%s4052_s1 + $0x234] ss:$8 sps:$4 sm:$0xff]  }
  0x2f   :  { %983 = vmatpush1.bf16.msra.mxu0 %v2351_v37  ;;  %1297 = vmatpush1.bf16.msra.mxu1 %v2351_v37  ;;  %v3041_v37 = vld [vmem:[%s4052_s1 + $0x230] ss:$8 sps:$4 sm:$0xff]  }
  0x30   :  { %984 = vmatprep.subr.bf16.mxu0 %v2352_v38  ;;  %1298 = vmatprep.subr.bf16.mxu1 %v2352_v38  ;;  %v3048_v38 = vld [vmem:[%s4052_s1 + $0x244] ss:$8 sps:$4 sm:$0xff]  }
  0x33   :  { %985 = vmatpush1.bf16.msra.mxu0 %v2354_v39  ;;  %1299 = vmatpush1.bf16.msra.mxu1 %v2354_v39  ;;  %v3055_v39 = vld [vmem:[%s4052_s1 + $0x240] ss:$8 sps:$4 sm:$0xff]  }
  0x34   :  { %986 = vmatprep.subr.bf16.mxu0 %v2355_v40  ;;  %1300 = vmatprep.subr.bf16.mxu1 %v2355_v40  ;;  %v3062_v40 = vld [vmem:[%s4052_s1 + $0x254] ss:$8 sps:$4 sm:$0xff]  }
  0x37   :  { %987 = vmatpush1.bf16.msra.mxu0 %v2357_v41  ;;  %1301 = vmatpush1.bf16.msra.mxu1 %v2357_v41  ;;  %v3069_v41 = vld [vmem:[%s4052_s1 + $0x250] ss:$8 sps:$4 sm:$0xff]  }
  0x38   :  { %988 = vmatprep.subr.bf16.mxu0 %v2358_v42  ;;  %1302 = vmatprep.subr.bf16.mxu1 %v2358_v42  ;;  %v3076_v42 = vld [vmem:[%s4052_s1 + $0x264] ss:$8 sps:$4 sm:$0xff]  }
  0x3b   :  { %989 = vmatpush1.bf16.msra.mxu0 %v2360_v43  ;;  %1303 = vmatpush1.bf16.msra.mxu1 %v2360_v43  ;;  %v3083_v43 = vld [vmem:[%s4052_s1 + $0x260] ss:$8 sps:$4 sm:$0xff]  }
  0x3c   :  { %990 = vmatprep.subr.bf16.mxu0 %v2361_v44  ;;  %1304 = vmatprep.subr.bf16.mxu1 %v2361_v44  ;;  %v3090_v44 = vld [vmem:[%s4052_s1 + $0x274] ss:$8 sps:$4 sm:$0xff]  }
  0x3f   :  { %991 = vmatpush1.bf16.msra.mxu0 %v2363_v45  ;;  %1305 = vmatpush1.bf16.msra.mxu1 %v2363_v45  ;;  %v3097_v45 = vld [vmem:[%s4052_s1 + $0x270] ss:$8 sps:$4 sm:$0xff]  }
  0x40   :  { %1001 = vmatprep.subr.bf16.mxu0 %v2730_v46  ;;  %1315 = vmatprep.subr.bf16.mxu1 %v2730_v46 }
  0x42   :  { %993 = vmatmul.mubr.bf16.vlgmr.msra.gmra.mrb[0].mxu0 %v2734_v47  ;;  %1307 = vmatmul.mubr.bf16.vlgmr.msra.gmra.mrb[0].mxu1 %v2738_v48  ;;  %v3104_v47 = vld [vmem:[%s4052_s1 + $0x284] ss:$8 sps:$4 sm:$0xff]   ;;  %v3111_v48 = vld [vmem:[%s4052_s1 + $0x280] ss:$8 sps:$4 sm:$0xff]  }
  0x43   :  { %1002 = vmatpush1.bf16.msra.mxu0 %v2743_v49  ;;  %1316 = vmatpush1.bf16.msra.mxu1 %v2743_v49  ;;  %4186 = vst [vmem:[#allocation3_spill] sm:$0xff] %v3111_v48 }
  0x44   :  { %1003 = vmatprep.subr.bf16.mxu0 %v2750_v50  ;;  %1317 = vmatprep.subr.bf16.mxu1 %v2750_v50 }
  0x45   :  { %1033 = vmatprep.mubr.bf16.mxu0 %v215_v51  ;;  %1347 = vmatprep.mubr.bf16.mxu1 %v1249_v52  ;;  %v3118_v51 = vld [vmem:[%s4052_s1 + $0x294] ss:$8 sps:$4 sm:$0xff]   ;;  %v3125_v52 = vld [vmem:[%s4052_s1 + $0x290] ss:$8 sps:$4 sm:$0xff]  }
  0x46   :  { %4187 = vst [vmem:[#allocation4_spill] sm:$0xff] %v3118_v51  ;;  %4188 = vst [vmem:[#allocation5_spill] sm:$0xff] %v3125_v52 }
  0x47   :  { %1004 = vmatpush1.bf16.msra.mxu0 %v2763_v53  ;;  %1318 = vmatpush1.bf16.msra.mxu1 %v2763_v53 }
  0x48   :  { %1005 = vmatprep.subr.bf16.mxu0 %v2770_v54  ;;  %1319 = vmatprep.subr.bf16.mxu1 %v2770_v54 }
  0x4b   :  { %1006 = vmatpush1.bf16.msra.mxu0 %v2777_v55  ;;  %1320 = vmatpush1.bf16.msra.mxu1 %v2777_v55 }
  0x4c   :  { %1007 = vmatprep.subr.bf16.mxu0 %v2784_v56  ;;  %1321 = vmatprep.subr.bf16.mxu1 %v2784_v56 }
  0x4f   :  { %1008 = vmatpush1.bf16.msra.mxu0 %v2791_v57  ;;  %1322 = vmatpush1.bf16.msra.mxu1 %v2791_v57 }
  0x50   :  { %1009 = vmatprep.subr.bf16.mxu0 %v2798_v58  ;;  %1323 = vmatprep.subr.bf16.mxu1 %v2798_v58 }
  0x53   :  { %1010 = vmatpush1.bf16.msra.mxu0 %v2805_v59  ;;  %1324 = vmatpush1.bf16.msra.mxu1 %v2805_v59 }
  0x54   :  { %1011 = vmatprep.subr.bf16.mxu0 %v2812_v60  ;;  %1325 = vmatprep.subr.bf16.mxu1 %v2812_v60 }
  0x57   :  { %1012 = vmatpush1.bf16.msra.mxu0 %v2819_v61  ;;  %1326 = vmatpush1.bf16.msra.mxu1 %v2819_v61 }
  0x58   :  { %1013 = vmatprep.subr.bf16.mxu0 %v2826_v62  ;;  %1327 = vmatprep.subr.bf16.mxu1 %v2826_v62 }
  0x5b   :  { %1014 = vmatpush1.bf16.msra.mxu0 %v2833_v63  ;;  %1328 = vmatpush1.bf16.msra.mxu1 %v2833_v63 }
  0x5c   :  { %1015 = vmatprep.subr.bf16.mxu0 %v2840_v0  ;;  %1329 = vmatprep.subr.bf16.mxu1 %v2840_v0 }
  0x5f   :  { %1016 = vmatpush1.bf16.msra.mxu0 %v2847_v1  ;;  %1330 = vmatpush1.bf16.msra.mxu1 %v2847_v1 }
  0x60   :  { %1017 = vmatprep.subr.bf16.mxu0 %v2854_v2  ;;  %1331 = vmatprep.subr.bf16.mxu1 %v2854_v2 }
  0x63   :  { %1018 = vmatpush1.bf16.msra.mxu0 %v2861_v3  ;;  %1332 = vmatpush1.bf16.msra.mxu1 %v2861_v3 }
  0x64   :  { %1019 = vmatprep.subr.bf16.mxu0 %v2868_v4  ;;  %1333 = vmatprep.subr.bf16.mxu1 %v2868_v4 }
  0x67   :  { %1020 = vmatpush1.bf16.msra.mxu0 %v2875_v5  ;;  %1334 = vmatpush1.bf16.msra.mxu1 %v2875_v5 }
  0x68   :  { %1021 = vmatprep.subr.bf16.mxu0 %v2882_v6  ;;  %1335 = vmatprep.subr.bf16.mxu1 %v2882_v6 }
  0x6b   :  { %1022 = vmatpush1.bf16.msra.mxu0 %v2889_v7  ;;  %1336 = vmatpush1.bf16.msra.mxu1 %v2889_v7 }
  0x6c   :  { %1023 = vmatprep.subr.bf16.mxu0 %v2896_v8  ;;  %1337 = vmatprep.subr.bf16.mxu1 %v2896_v8 }
  0x6f   :  { %1024 = vmatpush1.bf16.msra.mxu0 %v2903_v9  ;;  %1338 = vmatpush1.bf16.msra.mxu1 %v2903_v9 }
  0x70   :  { %1025 = vmatprep.subr.bf16.mxu0 %v2910_v10  ;;  %1339 = vmatprep.subr.bf16.mxu1 %v2910_v10 }
  0x73   :  { %1026 = vmatpush1.bf16.msra.mxu0 %v2917_v11  ;;  %1340 = vmatpush1.bf16.msra.mxu1 %v2917_v11 }
  0x74   :  { %1027 = vmatprep.subr.bf16.mxu0 %v2924_v12  ;;  %1341 = vmatprep.subr.bf16.mxu1 %v2924_v12 }
  0x77   :  { %1028 = vmatpush1.bf16.msra.mxu0 %v2931_v14  ;;  %1342 = vmatpush1.bf16.msra.mxu1 %v2931_v14 }
  0x78   :  { %1029 = vmatprep.subr.bf16.mxu0 %v2938_v15  ;;  %1343 = vmatprep.subr.bf16.mxu1 %v2938_v15 }
  0x7b   :  { %1030 = vmatpush1.bf16.msra.mxu0 %v2949_v20  ;;  %1344 = vmatpush1.bf16.msra.mxu1 %v2949_v20 }
  0x7c   :  { %1031 = vmatprep.subr.bf16.mxu0 %v2956_v19  ;;  %1345 = vmatprep.subr.bf16.mxu1 %v2956_v19 }
  0x7f   :  { %1032 = vmatpush1.bf16.msra.mxu0 %v2969_v23  ;;  %1346 = vmatpush1.bf16.msra.mxu1 %v2969_v23 }
  0x80   :  { %1042 = vmatprep.subr.bf16.mxu0 %v2976_v24  ;;  %1356 = vmatprep.subr.bf16.mxu1 %v2976_v24 }
  0x82   :  { %1034 = vmatmul.mubr.bf16.vlgmr.msra.gmra.mrb[0].mxu0 %v213_v27  ;;  %1348 = vmatmul.mubr.bf16.vlgmr.msra.gmra.mrb[0].mxu1 %v1247_v28  ;;  %v3160_v27 = vld [vmem:[%s4052_s1 + $0x2c4] ss:$8 sps:$4 sm:$0xff]   ;;  %v3167_v28 = vld [vmem:[%s4052_s1 + $0x2c0] ss:$8 sps:$4 sm:$0xff]  }
  0x83   :  { %1043 = vmatpush1.bf16.msra.mxu0 %v2991_v29  ;;  %1357 = vmatpush1.bf16.msra.mxu1 %v2991_v29  ;;  %4193 = vst [vmem:[#allocation10_spill] sm:$0xff] %v3160_v27  ;;  %4194 = vst [vmem:[#allocation11_spill] sm:$0xff] %v3167_v28 }
  0x84   :  { %1044 = vmatprep.subr.bf16.mxu0 %v2998_v30  ;;  %1358 = vmatprep.subr.bf16.mxu1 %v2998_v30 }
  0x85   :  { %1074 = vmatprep.mubr.bf16.mxu0 %v3001_v31  ;;  %1388 = vmatprep.mubr.bf16.mxu1 %v3004_v32 }
  0x87   :  { %1045 = vmatpush1.bf16.msra.mxu0 %v3011_v33  ;;  %1359 = vmatpush1.bf16.msra.mxu1 %v3011_v33 }
  0x88   :  { %1046 = vmatprep.subr.bf16.mxu0 %v3018_v34  ;;  %1360 = vmatprep.subr.bf16.mxu1 %v3018_v34 }
  0x8b   :  { %1047 = vmatpush1.bf16.msra.mxu0 %v3027_v35  ;;  %1361 = vmatpush1.bf16.msra.mxu1 %v3027_v35 }
  0x8c   :  { %1048 = vmatprep.subr.bf16.mxu0 %v3034_v36  ;;  %1362 = vmatprep.subr.bf16.mxu1 %v3034_v36 }
  0x8f   :  { %1049 = vmatpush1.bf16.msra.mxu0 %v3041_v37  ;;  %1363 = vmatpush1.bf16.msra.mxu1 %v3041_v37 }
  0x90   :  { %1050 = vmatprep.subr.bf16.mxu0 %v3048_v38  ;;  %1364 = vmatprep.subr.bf16.mxu1 %v3048_v38 }
  0x93   :  { %1051 = vmatpush1.bf16.msra.mxu0 %v3055_v39  ;;  %1365 = vmatpush1.bf16.msra.mxu1 %v3055_v39 }
  0x94   :  { %1052 = vmatprep.subr.bf16.mxu0 %v3062_v40  ;;  %1366 = vmatprep.subr.bf16.mxu1 %v3062_v40 }
  0x97   :  { %1053 = vmatpush1.bf16.msra.mxu0 %v3069_v41  ;;  %1367 = vmatpush1.bf16.msra.mxu1 %v3069_v41 }
  0x98   :  { %1054 = vmatprep.subr.bf16.mxu0 %v3076_v42  ;;  %1368 = vmatprep.subr.bf16.mxu1 %v3076_v42 }
  0x9b   :  { %1055 = vmatpush1.bf16.msra.mxu0 %v3083_v43  ;;  %1369 = vmatpush1.bf16.msra.mxu1 %v3083_v43 }
  0x9c   :  { %1056 = vmatprep.subr.bf16.mxu0 %v3090_v44  ;;  %1370 = vmatprep.subr.bf16.mxu1 %v3090_v44 }
  0x9f   :  { %1057 = vmatpush1.bf16.msra.mxu0 %v3097_v45  ;;  %1371 = vmatpush1.bf16.msra.mxu1 %v3097_v45 }
  0xa0   :  { %1058 = vmatprep.subr.bf16.mxu0 %v3104_v47  ;;  %1372 = vmatprep.subr.bf16.mxu1 %v3104_v47 }
  0xa3   :  { %1059 = vmatpush1.bf16.msra.mxu0 %v3111_v48  ;;  %1373 = vmatpush1.bf16.msra.mxu1 %v3111_v48 }
  0xa4   :  { %1060 = vmatprep.subr.bf16.mxu0 %v3118_v51  ;;  %1374 = vmatprep.subr.bf16.mxu1 %v3118_v51  ;;  %v2536_v51 = vld [vmem:[%s4052_s1 + $0x4] ss:$8 sps:$4 sm:$0xff]  }
  0xa7   :  { %1061 = vmatpush1.bf16.msra.mxu0 %v3125_v52  ;;  %1375 = vmatpush1.bf16.msra.mxu1 %v3125_v52 }
  0xa8   :  { %1062 = vmatprep.subr.bf16.mxu0 %v3132_v17  ;;  %1376 = vmatprep.subr.bf16.mxu1 %v3132_v17 }
  0xab   :  { %1063 = vmatpush1.bf16.msra.mxu0 %v3139_v18  ;;  %1377 = vmatpush1.bf16.msra.mxu1 %v3139_v18 }
  0xac   :  { %1064 = vmatprep.subr.bf16.mxu0 %v3146_v25  ;;  %1378 = vmatprep.subr.bf16.mxu1 %v3146_v25  ;;  %v3220_v25 = vrot.slane %v2959_v21, %v2632_v16  ;;  %v3238_v21 = vld [vmem:[%s4052_s1 + $0x314] ss:$8 sps:$4 sm:$0xff]  }
  0xad   :  { %4203 = vst [vmem:[#allocation20_spill] sm:$0xff] %v3238_v21 }
  0xaf   :  { %1065 = vmatpush1.bf16.msra.mxu0 %v3153_v26  ;;  %1379 = vmatpush1.bf16.msra.mxu1 %v3153_v26  ;;  %v3181_v26 = vld [vmem:[%s4052_s1 + $0x2d0] ss:$8 sps:$4 sm:$0xff]  }
  0xb0   :  { %1066 = vmatprep.subr.bf16.mxu0 %v3160_v27  ;;  %1380 = vmatprep.subr.bf16.mxu1 %v3160_v27  ;;  %4196 = vst [vmem:[#allocation13_spill] sm:$0xff] %v3181_v26  ;;  %v3188_v27 = vld [vmem:[%s4052_s1 + $0x2e4] ss:$8 sps:$4 sm:$0xff]  }
  0xb1   :  { %4197 = vst [vmem:[#allocation14_spill] sm:$0xff] %v3188_v27 }
  0xb3   :  { %1067 = vmatpush1.bf16.msra.mxu0 %v3167_v28  ;;  %1381 = vmatpush1.bf16.msra.mxu1 %v3167_v28  ;;  %v3195_v28 = vld [vmem:[%s4052_s1 + $0x2e0] ss:$8 sps:$4 sm:$0xff]  }
  0xb4   :  { %1068 = vmatprep.subr.bf16.mxu0 %v3174_v13  ;;  %1382 = vmatprep.subr.bf16.mxu1 %v3174_v13  ;;  %4198 = vst [vmem:[#allocation15_spill] sm:$0xff] %v3195_v28  ;;  %v3202_v13 = vld [vmem:[%s4052_s1 + $0x2f4] ss:$8 sps:$4 sm:$0xff]  }
  0xb5   :  { %4199 = vst [vmem:[#allocation16_spill] sm:$0xff] %v3202_v13 }
  0xb7   :  { %1069 = vmatpush1.bf16.msra.mxu0 %v3181_v26  ;;  %1383 = vmatpush1.bf16.msra.mxu1 %v3181_v26  ;;  %v3209_v26 = vld [vmem:[%s4052_s1 + $0x2f0] ss:$8 sps:$4 sm:$0xff]  }
  0xb8   :  { %1070 = vmatprep.subr.bf16.mxu0 %v3188_v27  ;;  %1384 = vmatprep.subr.bf16.mxu1 %v3188_v27  ;;  %4200 = vst [vmem:[#allocation17_spill] sm:$0xff] %v3209_v26  ;;  %v3216_v27 = vld [vmem:[%s4052_s1 + $0x304] ss:$8 sps:$4 sm:$0xff]  }
  0xb9   :  { %4201 = vst [vmem:[#allocation18_spill] sm:$0xff] %v3216_v27 }
  0xbb   :  { %1071 = vmatpush1.bf16.msra.mxu0 %v3195_v28  ;;  %1385 = vmatpush1.bf16.msra.mxu1 %v3195_v28  ;;  %v3224_v28 = vrot.slane %v2962_v22, %v2632_v16  ;;  %v216_v22 = vcombine.high %v3001_v31, %v3001_v31  ;;  %v3258_v31 = vld [vmem:[%s4052_s1 + $0x324] ss:$8 sps:$4 sm:$0xff]  }
  0xbc   :  { %1072 = vmatprep.subr.bf16.mxu0 %v3202_v13  ;;  %1386 = vmatprep.subr.bf16.mxu1 %v3202_v13  ;;  %v3231_v13 = vld [vmem:[%s4052_s1 + $0x300] ss:$8 sps:$4 sm:$0xff]   ;;  %4205 = vst [vmem:[#allocation22_spill] sm:$0xff] %v3258_v31 }
  0xbd   :  { %4202 = vst [vmem:[#allocation19_spill] sm:$0xff] %v3231_v13 }
  0xbf   :  { %1073 = vmatpush1.bf16.msra.mxu0 %v3209_v26  ;;  %1387 = vmatpush1.bf16.msra.mxu1 %v3209_v26  ;;  %v1250_v26 = vcombine.high %v3004_v32, %v3004_v32  ;;  %v3265_v32 = vld [vmem:[%s4052_s1 + $0x320] ss:$8 sps:$4 sm:$0xff]  }
  0xc0   :  { %1083 = vmatprep.subr.bf16.mxu0 %v3216_v27  ;;  %1397 = vmatprep.subr.bf16.mxu1 %v3216_v27  ;;  %v3251_v27 = vld [vmem:[%s4052_s1 + $0x310] ss:$8 sps:$4 sm:$0xff]   ;;  %4206 = vst [vmem:[#allocation23_spill] sm:$0xff] %v3265_v32 }
  0xc1   :  { %4204 = vst [vmem:[#allocation21_spill] sm:$0xff] %v3251_v27 }
  0xc2   :  { %1075 = vmatmul.mubr.bf16.vlgmr.msra.gmra.mrb[0].mxu0 %v3220_v25  ;;  %1389 = vmatmul.mubr.bf16.vlgmr.msra.gmra.mrb[0].mxu1 %v3224_v28 }
  0xc3   :  { %1084 = vmatpush1.bf16.msra.mxu0 %v3231_v13  ;;  %1398 = vmatpush1.bf16.msra.mxu1 %v3231_v13  ;;  %v2242_v13 = vld.sshfl [vmem:[%s4053_s0 + $0x11] sm:$0x1 pattern:$0x75316420] }
  0xc4   :  { %1085 = vmatprep.subr.bf16.mxu0 %v3238_v21  ;;  %1399 = vmatprep.subr.bf16.mxu1 %v3238_v21  ;;  %v3272_v21 = vld [vmem:[%s4052_s1 + $0x334] ss:$8 sps:$4 sm:$0xff]   ;;  %v1264_v52 = vrot.slane %v2242_v13, %v2632_v16  ;;  %v2537_v13 = vld [vmem:[%s4052_s1] ss:$8 sps:$4 sm:$0xff]  }
  0xc5   :  { %1115 = vmatprep.mubr.bf16.mxu0 %v216_v22  ;;  %1429 = vmatprep.mubr.bf16.mxu1 %v1250_v26  ;;  %4207 = vst [vmem:[#allocation24_spill] sm:$0xff] %v3272_v21  ;;  %v3279_v26 = vld [vmem:[%s4052_s1 + $0x330] ss:$8 sps:$4 sm:$0xff]   ;;  %v3286_v22 = vld [vmem:[%s4052_s1 + $0x344] ss:$8 sps:$4 sm:$0xff]  }
  0xc6   :  { %4208 = vst [vmem:[#allocation25_spill] sm:$0xff] %v3279_v26  ;;  %4209 = vst [vmem:[#allocation26_spill] sm:$0xff] %v3286_v22 }
  0xc7   :  { %1086 = vmatpush1.bf16.msra.mxu0 %v3251_v27  ;;  %1400 = vmatpush1.bf16.msra.mxu1 %v3251_v27  ;;  %v3465_v27 = vld [vmem:[%s4052_s1 + $0x400] ss:$8 sps:$4 sm:$0xff]  }
  0xc8   :  { %1087 = vmatprep.subr.bf16.mxu0 %v3258_v31  ;;  %1401 = vmatprep.subr.bf16.mxu1 %v3258_v31  ;;  %v214_v31 = vcombine.high %v3220_v25, %v3220_v25  ;;  %4234 = vst [vmem:[#allocation51_spill] sm:$0xff] %v3465_v27  ;;  %v3472_v25 = vld [vmem:[%s4052_s1 + $0x414] ss:$8 sps:$4 sm:$0xff]  }
  0xc9   :  { %4235 = vst [vmem:[#allocation52_spill] sm:$0xff] %v3472_v25 }
  0xcb   :  { %1088 = vmatpush1.bf16.msra.mxu0 %v3265_v32  ;;  %1402 = vmatpush1.bf16.msra.mxu1 %v3265_v32  ;;  %v3293_v32 = vld [vmem:[%s4052_s1 + $0x340] ss:$8 sps:$4 sm:$0xff]  }
  0xcc   :  { %1089 = vmatprep.subr.bf16.mxu0 %v3272_v21  ;;  %1403 = vmatprep.subr.bf16.mxu1 %v3272_v21  ;;  %4210 = vst [vmem:[#allocation27_spill] sm:$0xff] %v3293_v32  ;;  %v3300_v21 = vld [vmem:[%s4052_s1 + $0x354] ss:$8 sps:$4 sm:$0xff]  }
  0xcd   :  { %4211 = vst [vmem:[#allocation28_spill] sm:$0xff] %v3300_v21 }
  0xcf   :  { %1090 = vmatpush1.bf16.msra.mxu0 %v3279_v26  ;;  %1404 = vmatpush1.bf16.msra.mxu1 %v3279_v26  ;;  %v3307_v26 = vld [vmem:[%s4052_s1 + $0x350] ss:$8 sps:$4 sm:$0xff]  }
  0xd0   :  { %1091 = vmatprep.subr.bf16.mxu0 %v3286_v22  ;;  %1405 = vmatprep.subr.bf16.mxu1 %v3286_v22  ;;  %4212 = vst [vmem:[#allocation29_spill] sm:$0xff] %v3307_v26  ;;  %v3314_v22 = vld [vmem:[%s4052_s1 + $0x364] ss:$8 sps:$4 sm:$0xff]  }
  0xd1   :  { %4213 = vst [vmem:[#allocation30_spill] sm:$0xff] %v3314_v22 }
  0xd3   :  { %1092 = vmatpush1.bf16.msra.mxu0 %v3293_v32  ;;  %1406 = vmatpush1.bf16.msra.mxu1 %v3293_v32  ;;  %v3321_v32 = vld [vmem:[%s4052_s1 + $0x360] ss:$8 sps:$4 sm:$0xff]  }
  0xd4   :  { %1093 = vmatprep.subr.bf16.mxu0 %v3300_v21  ;;  %1407 = vmatprep.subr.bf16.mxu1 %v3300_v21  ;;  %4214 = vst [vmem:[#allocation31_spill] sm:$0xff] %v3321_v32  ;;  %v3328_v21 = vld [vmem:[%s4052_s1 + $0x374] ss:$8 sps:$4 sm:$0xff]  }
  0xd5   :  { %4215 = vst [vmem:[#allocation32_spill] sm:$0xff] %v3328_v21 }
  0xd7   :  { %1094 = vmatpush1.bf16.msra.mxu0 %v3307_v26  ;;  %1408 = vmatpush1.bf16.msra.mxu1 %v3307_v26  ;;  %v3335_v26 = vld [vmem:[%s4052_s1 + $0x370] ss:$8 sps:$4 sm:$0xff]  }
  0xd8   :  { %1095 = vmatprep.subr.bf16.mxu0 %v3314_v22  ;;  %1409 = vmatprep.subr.bf16.mxu1 %v3314_v22  ;;  %4216 = vst [vmem:[#allocation33_spill] sm:$0xff] %v3335_v26  ;;  %v3342_v22 = vld [vmem:[%s4052_s1 + $0x384] ss:$8 sps:$4 sm:$0xff]  }
  0xd9   :  { %4217 = vst [vmem:[#allocation34_spill] sm:$0xff] %v3342_v22 }
  0xdb   :  { %1096 = vmatpush1.bf16.msra.mxu0 %v3321_v32  ;;  %1410 = vmatpush1.bf16.msra.mxu1 %v3321_v32  ;;  %v3349_v32 = vld [vmem:[%s4052_s1 + $0x380] ss:$8 sps:$4 sm:$0xff]  }
  0xdc   :  { %1097 = vmatprep.subr.bf16.mxu0 %v3328_v21  ;;  %1411 = vmatprep.subr.bf16.mxu1 %v3328_v21  ;;  %4218 = vst [vmem:[#allocation35_spill] sm:$0xff] %v3349_v32  ;;  %v3356_v21 = vld [vmem:[%s4052_s1 + $0x394] ss:$8 sps:$4 sm:$0xff]  }
  0xdd   :  { %4219 = vst [vmem:[#allocation36_spill] sm:$0xff] %v3356_v21 }
  0xdf   :  { %1098 = vmatpush1.bf16.msra.mxu0 %v3335_v26  ;;  %1412 = vmatpush1.bf16.msra.mxu1 %v3335_v26  ;;  %v3363_v26 = vld [vmem:[%s4052_s1 + $0x390] ss:$8 sps:$4 sm:$0xff]  }
  0xe0   :  { %1099 = vmatprep.subr.bf16.mxu0 %v3342_v22  ;;  %1413 = vmatprep.subr.bf16.mxu1 %v3342_v22  ;;  %4220 = vst [vmem:[#allocation37_spill] sm:$0xff] %v3363_v26  ;;  %v3370_v22 = vld [vmem:[%s4052_s1 + $0x3a4] ss:$8 sps:$4 sm:$0xff]  }
  0xe1   :  { %4221 = vst [vmem:[#allocation38_spill] sm:$0xff] %v3370_v22 }
  0xe3   :  { %1100 = vmatpush1.bf16.msra.mxu0 %v3349_v32  ;;  %1414 = vmatpush1.bf16.msra.mxu1 %v3349_v32  ;;  %v3377_v32 = vld [vmem:[%s4052_s1 + $0x3a0] ss:$8 sps:$4 sm:$0xff]  }
  0xe4   :  { %1101 = vmatprep.subr.bf16.mxu0 %v3356_v21  ;;  %1415 = vmatprep.subr.bf16.mxu1 %v3356_v21  ;;  %4222 = vst [vmem:[#allocation39_spill] sm:$0xff] %v3377_v32  ;;  %v3384_v21 = vld [vmem:[%s4052_s1 + $0x3b4] ss:$8 sps:$4 sm:$0xff]  }
  0xe5   :  { %4223 = vst [vmem:[#allocation40_spill] sm:$0xff] %v3384_v21 }
  0xe7   :  { %1102 = vmatpush1.bf16.msra.mxu0 %v3363_v26  ;;  %1416 = vmatpush1.bf16.msra.mxu1 %v3363_v26  ;;  %v3391_v26 = vld [vmem:[%s4052_s1 + $0x3b0] ss:$8 sps:$4 sm:$0xff]  }
  0xe8   :  { %1103 = vmatprep.subr.bf16.mxu0 %v3370_v22  ;;  %1417 = vmatprep.subr.bf16.mxu1 %v3370_v22  ;;  %4224 = vst [vmem:[#allocation41_spill] sm:$0xff] %v3391_v26  ;;  %v3398_v22 = vld [vmem:[%s4052_s1 + $0x3c4] ss:$8 sps:$4 sm:$0xff]  }
  0xe9   :  { %4225 = vst [vmem:[#allocation42_spill] sm:$0xff] %v3398_v22 }
  0xeb   :  { %1104 = vmatpush1.bf16.msra.mxu0 %v3377_v32  ;;  %1418 = vmatpush1.bf16.msra.mxu1 %v3377_v32  ;;  %v3405_v32 = vld [vmem:[%s4052_s1 + $0x3c0] ss:$8 sps:$4 sm:$0xff]  }
  0xec   :  { %1105 = vmatprep.subr.bf16.mxu0 %v3384_v21  ;;  %1419 = vmatprep.subr.bf16.mxu1 %v3384_v21  ;;  %4226 = vst [vmem:[#allocation43_spill] sm:$0xff] %v3405_v32  ;;  %v3412_v21 = vld [vmem:[%s4052_s1 + $0x3d4] ss:$8 sps:$4 sm:$0xff]  }
  0xed   :  { %4227 = vst [vmem:[#allocation44_spill] sm:$0xff] %v3412_v21 }
  0xef   :  { %1106 = vmatpush1.bf16.msra.mxu0 %v3391_v26  ;;  %1420 = vmatpush1.bf16.msra.mxu1 %v3391_v26  ;;  %v3419_v26 = vld [vmem:[%s4052_s1 + $0x3d0] ss:$8 sps:$4 sm:$0xff]  }
  0xf0   :  { %1107 = vmatprep.subr.bf16.mxu0 %v3398_v22  ;;  %1421 = vmatprep.subr.bf16.mxu1 %v3398_v22  ;;  %4228 = vst [vmem:[#allocation45_spill] sm:$0xff] %v3419_v26  ;;  %v3426_v22 = vld [vmem:[%s4052_s1 + $0x3e4] ss:$8 sps:$4 sm:$0xff]  }
  0xf1   :  { %4229 = vst [vmem:[#allocation46_spill] sm:$0xff] %v3426_v22 }
  0xf3   :  { %1108 = vmatpush1.bf16.msra.mxu0 %v3405_v32  ;;  %1422 = vmatpush1.bf16.msra.mxu1 %v3405_v32  ;;  %v3433_v32 = vld [vmem:[%s4052_s1 + $0x3e0] ss:$8 sps:$4 sm:$0xff]  }
  0xf4   :  { %1109 = vmatprep.subr.bf16.mxu0 %v3412_v21  ;;  %1423 = vmatprep.subr.bf16.mxu1 %v3412_v21  ;;  %4230 = vst [vmem:[#allocation47_spill] sm:$0xff] %v3433_v32  ;;  %v3440_v21 = vld [vmem:[%s4052_s1 + $0x3f4] ss:$8 sps:$4 sm:$0xff]  }
  0xf5   :  { %4231 = vst [vmem:[#allocation48_spill] sm:$0xff] %v3440_v21 }
  0xf7   :  { %1110 = vmatpush1.bf16.msra.mxu0 %v3419_v26  ;;  %1424 = vmatpush1.bf16.msra.mxu1 %v3419_v26  ;;  %v3447_v26 = vld [vmem:[%s4052_s1 + $0x3f0] ss:$8 sps:$4 sm:$0xff]  }
  0xf8   :  { %1111 = vmatprep.subr.bf16.mxu0 %v3426_v22  ;;  %1425 = vmatprep.subr.bf16.mxu1 %v3426_v22  ;;  %4232 = vst [vmem:[#allocation49_spill] sm:$0xff] %v3447_v26  ;;  %v3454_v22 = vld [vmem:[%s4052_s1 + $0x404] ss:$8 sps:$4 sm:$0xff]  }
  0xf9   :  { %4233 = vst [vmem:[#allocation50_spill] sm:$0xff] %v3454_v22 }
  0xfb   :  { %1112 = vmatpush1.bf16.msra.mxu0 %v3433_v32  ;;  %1426 = vmatpush1.bf16.msra.mxu1 %v3433_v32  ;;  %v1248_v32 = vcombine.high %v3224_v28, %v3224_v28  ;;  %v3479_v28 = vld [vmem:[%s4052_s1 + $0x410] ss:$8 sps:$4 sm:$0xff]  }
  0xfc   :  { %1113 = vmatprep.subr.bf16.mxu0 %v3440_v21  ;;  %1427 = vmatprep.subr.bf16.mxu1 %v3440_v21  ;;  %4236 = vst [vmem:[#allocation53_spill] sm:$0xff] %v3479_v28  ;;  %v2095_v21 = vld.sshfl [vmem:[%s4053_s0 + $0x8] sm:$0x1 pattern:$0x75316420] }
  0xff   :  { %1114 = vmatpush1.bf16.msra.mxu0 %v3447_v26  ;;  %1428 = vmatpush1.bf16.msra.mxu1 %v3447_v26 }
 0x100   :  { %1124 = vmatprep.subr.bf16.mxu0 %v3454_v22  ;;  %1438 = vmatprep.subr.bf16.mxu1 %v3454_v22  ;;  %v3486_v22 = vld [vmem:[%s4052_s1 + $0x424] ss:$8 sps:$4 sm:$0xff]  }
 0x101   :  { %4237 = vst [vmem:[#allocation54_spill] sm:$0xff] %v3486_v22 }
 0x102   :  { %1116 = vmatmul.mubr.bf16.vlgmr.msra.gmra.mrb[0].mxu0 %v214_v31  ;;  %1430 = vmatmul.mubr.bf16.vlgmr.msra.gmra.mrb[0].mxu1 %v1248_v32  ;;  %v4141_v31 = vmov 0   ;;  %v3495_v32 = vld [vmem:[%s4052_s1 + $0x420] ss:$8 sps:$4 sm:$0xff]  }
 0x103   :  { %1125 = vmatpush1.bf16.msra.mxu0 %v3465_v27  ;;  %1439 = vmatpush1.bf16.msra.mxu1 %v3465_v27  ;;  %4238 = vst [vmem:[#allocation55_spill] sm:$0xff] %v3495_v32  ;;  %v3568_v27 = vld [vmem:[%s4052_s1 + $0x474] ss:$8 sps:$4 sm:$0xff]  }
 0x104   :  { %1126 = vmatprep.subr.bf16.mxu0 %v3472_v25  ;;  %1440 = vmatprep.subr.bf16.mxu1 %v3472_v25  ;;  %v3502_v25 = vld [vmem:[%s4052_s1 + $0x434] ss:$8 sps:$4 sm:$0xff]   ;;  %4247 = vst [vmem:[#allocation64_spill] sm:$0xff] %v3568_v27 }
 0x105   :  { %1156 = vmatprep.mubr.bf16.mxu0 %v4141_v31  ;;  %1470 = vmatprep.mubr.bf16.mxu1 %v4141_v31  ;;  %4239 = vst [vmem:[#allocation56_spill] sm:$0xff] %v3502_v25  ;;  %v3509_v31 = vld [vmem:[%s4052_s1 + $0x430] ss:$8 sps:$4 sm:$0xff]  }
 0x106   :  { %4240 = vst [vmem:[#allocation57_spill] sm:$0xff] %v3509_v31 }
 0x107   :  { %1127 = vmatpush1.bf16.msra.mxu0 %v3479_v28  ;;  %1441 = vmatpush1.bf16.msra.mxu1 %v3479_v28  ;;  %v3549_v28 = vld [vmem:[%s4053_s0 + $0x12] sm:$0xff] }
 0x108   :  { %1128 = vmatprep.subr.bf16.mxu0 %v3486_v22  ;;  %1442 = vmatprep.subr.bf16.mxu1 %v3486_v22  ;;  %v3516_v22 = vld [vmem:[%s4052_s1 + $0x444] ss:$8 sps:$4 sm:$0xff]   ;;  %v3572_v26 = vrot.slane %v3549_v28, %v2632_v16 }
 0x109   :  { %4241 = vst [vmem:[#allocation58_spill] sm:$0xff] %v3516_v22 }
 0x10a   :  { %v1511_v18 = vcombine.high %v3572_v26, %v3572_v26 }
 0x10b   :  { %1129 = vmatpush1.bf16.msra.mxu0 %v3495_v32  ;;  %1443 = vmatpush1.bf16.msra.mxu1 %v3495_v32  ;;  %v3523_v32 = vld [vmem:[%s4052_s1 + $0x440] ss:$8 sps:$4 sm:$0xff]  }
 0x10c   :  { %1130 = vmatprep.subr.bf16.mxu0 %v3502_v25  ;;  %1444 = vmatprep.subr.bf16.mxu1 %v3502_v25  ;;  %4242 = vst [vmem:[#allocation59_spill] sm:$0xff] %v3523_v32  ;;  %v3530_v25 = vld [vmem:[%s4052_s1 + $0x454] ss:$8 sps:$4 sm:$0xff]  }
 0x10d   :  { %4243 = vst [vmem:[#allocation60_spill] sm:$0xff] %v3530_v25 }
 0x10f   :  { %1131 = vmatpush1.bf16.msra.mxu0 %v3509_v31  ;;  %1445 = vmatpush1.bf16.msra.mxu1 %v3509_v31  ;;  %v3537_v31 = vld [vmem:[%s4052_s1 + $0x450] ss:$8 sps:$4 sm:$0xff]  }
 0x110   :  { %1132 = vmatprep.subr.bf16.mxu0 %v3516_v22  ;;  %1446 = vmatprep.subr.bf16.mxu1 %v3516_v22  ;;  %4244 = vst [vmem:[#allocation61_spill] sm:$0xff] %v3537_v31  ;;  %v3544_v22 = vld [vmem:[%s4052_s1 + $0x464] ss:$8 sps:$4 sm:$0xff]  }
 0x111   :  { %4245 = vst [vmem:[#allocation62_spill] sm:$0xff] %v3544_v22 }
 0x113   :  { %1133 = vmatpush1.bf16.msra.mxu0 %v3523_v32  ;;  %1447 = vmatpush1.bf16.msra.mxu1 %v3523_v32  ;;  %v3554_v32 = vld [vmem:[%s4053_s0 + $0x1b] sm:$0xff] }
 0x114   :  { %1134 = vmatprep.subr.bf16.mxu0 %v3530_v25  ;;  %1448 = vmatprep.subr.bf16.mxu1 %v3530_v25  ;;  %v3561_v25 = vld [vmem:[%s4052_s1 + $0x460] ss:$8 sps:$4 sm:$0xff]  }
 0x115   :  { %4246 = vst [vmem:[#allocation63_spill] sm:$0xff] %v3561_v25 }
 0x117   :  { %1135 = vmatpush1.bf16.msra.mxu0 %v3537_v31  ;;  %1449 = vmatpush1.bf16.msra.mxu1 %v3537_v31  ;;  %v3576_v31 = vrot.slane %v3554_v32, %v2632_v16 }
 0x118   :  { %1136 = vmatprep.subr.bf16.mxu0 %v3544_v22  ;;  %1450 = vmatprep.subr.bf16.mxu1 %v3544_v22  ;;  %v3586_v22 = vld [vmem:[%s4052_s1 + $0x470] ss:$8 sps:$4 sm:$0xff]  }
 0x119   :  { %v1805_v17 = vcombine.high %v3576_v31, %v3576_v31 }
 0x11b   :  { %1137 = vmatpush1.bf16.msra.mxu0 %v3561_v25  ;;  %1451 = vmatpush1.bf16.msra.mxu1 %v3561_v25  ;;  %v230_v25 = vrot.slane %v2095_v21, %v2632_v16  ;;  %v3608_v48 = vrot.slane %v1805_v17, %v2632_v16  ;;  %v2538_v21 = vld [vmem:[%s4052_s1 + $0x14] ss:$8 sps:$4 sm:$0xff]   ;;  %v2541_v17 = vld [vmem:[%s4052_s1 + $0x20] ss:$8 sps:$4 sm:$0xff]  }
 0x11c   :  { %1138 = vmatprep.subr.bf16.mxu0 %v3568_v27  ;;  %1452 = vmatprep.subr.bf16.mxu1 %v3568_v27  ;;  %v3605_v27 = vrot.slane %v1511_v18, %v2632_v16  ;;  %v2542_v18 = vld [vmem:[%s4052_s1 + $0x34] ss:$8 sps:$4 sm:$0xff]  }
 0x11f   :  { %1139 = vmatpush1.bf16.msra.mxu0 %v3586_v22  ;;  %1453 = vmatpush1.bf16.msra.mxu1 %v3586_v22 }
 0x120   :  { %1568 = vmatprep.subr.bf16.mxu0 %v2536_v51  ;;  %1862 = vmatprep.subr.bf16.mxu1 %v2536_v51  ;;  %v2539_v51 = vld [vmem:[%s4052_s1 + $0x10] ss:$8 sps:$4 sm:$0xff]  }
 0x122   :  { %1157 = vmatmul.mubr.bf16.vlgmr.msra.gmra.mrb[0].mxu0 %v230_v25  ;;  %1471 = vmatmul.mubr.bf16.vlgmr.msra.gmra.mrb[0].mxu1 %v1264_v52  ;;  %v2540_v52 = vld [vmem:[%s4052_s1 + $0x24] ss:$8 sps:$4 sm:$0xff]   ;;  %v2543_v25 = vld [vmem:[%s4052_s1 + $0x30] ss:$8 sps:$4 sm:$0xff]  }
 0x123   :  { %1569 = vmatpush1.bf16.msra.mxu0 %v2537_v13  ;;  %1863 = vmatpush1.bf16.msra.mxu1 %v2537_v13  ;;  %v2544_v13 = vld [vmem:[%s4052_s1 + $0x44] ss:$8 sps:$4 sm:$0xff]  }
 0x124   :  { %1570 = vmatprep.subr.bf16.mxu0 %v2538_v21  ;;  %1864 = vmatprep.subr.bf16.mxu1 %v2538_v21  ;;  %v2545_v21 = vld [vmem:[%s4052_s1 + $0x40] ss:$8 sps:$4 sm:$0xff]  }
 0x125   :  { %1600 = vmatprep.mubr.bf16.mxu0 %v3605_v27  ;;  %1894 = vmatprep.mubr.bf16.mxu1 %v3608_v48 }
 0x127   :  { %1571 = vmatpush1.bf16.msra.mxu0 %v2539_v51  ;;  %1865 = vmatpush1.bf16.msra.mxu1 %v2539_v51  ;;  %v2546_v51 = vld [vmem:[%s4052_s1 + $0x54] ss:$8 sps:$4 sm:$0xff]  }
 0x128   :  { %1572 = vmatprep.subr.bf16.mxu0 %v2540_v52  ;;  %1866 = vmatprep.subr.bf16.mxu1 %v2540_v52  ;;  %v2547_v52 = vld [vmem:[%s4052_s1 + $0x50] ss:$8 sps:$4 sm:$0xff]  }
 0x12b   :  { %1573 = vmatpush1.bf16.msra.mxu0 %v2541_v17  ;;  %1867 = vmatpush1.bf16.msra.mxu1 %v2541_v17  ;;  %v2548_v17 = vld [vmem:[%s4052_s1 + $0x64] ss:$8 sps:$4 sm:$0xff]  }
 0x12c   :  { %1574 = vmatprep.subr.bf16.mxu0 %v2542_v18  ;;  %1868 = vmatprep.subr.bf16.mxu1 %v2542_v18  ;;  %v2549_v18 = vld [vmem:[%s4052_s1 + $0x60] ss:$8 sps:$4 sm:$0xff]  }
 0x12f   :  { %1575 = vmatpush1.bf16.msra.mxu0 %v2543_v25  ;;  %1869 = vmatpush1.bf16.msra.mxu1 %v2543_v25  ;;  %v2550_v25 = vld [vmem:[%s4052_s1 + $0x74] ss:$8 sps:$4 sm:$0xff]  }
 0x130   :  { %1576 = vmatprep.subr.bf16.mxu0 %v2544_v13  ;;  %1870 = vmatprep.subr.bf16.mxu1 %v2544_v13  ;;  %v2551_v13 = vld [vmem:[%s4052_s1 + $0x70] ss:$8 sps:$4 sm:$0xff]  }
 0x133   :  { %1577 = vmatpush1.bf16.msra.mxu0 %v2545_v21  ;;  %1871 = vmatpush1.bf16.msra.mxu1 %v2545_v21  ;;  %v2552_v21 = vld [vmem:[%s4052_s1 + $0x84] ss:$8 sps:$4 sm:$0xff]  }
 0x134   :  { %1578 = vmatprep.subr.bf16.mxu0 %v2546_v51  ;;  %1872 = vmatprep.subr.bf16.mxu1 %v2546_v51  ;;  %v2553_v51 = vld [vmem:[%s4052_s1 + $0x80] ss:$8 sps:$4 sm:$0xff]  }
 0x137   :  { %1579 = vmatpush1.bf16.msra.mxu0 %v2547_v52  ;;  %1873 = vmatpush1.bf16.msra.mxu1 %v2547_v52  ;;  %v2554_v52 = vld [vmem:[%s4052_s1 + $0x94] ss:$8 sps:$4 sm:$0xff]  }
 0x138   :  { %1580 = vmatprep.subr.bf16.mxu0 %v2548_v17  ;;  %1874 = vmatprep.subr.bf16.mxu1 %v2548_v17  ;;  %v2555_v17 = vld [vmem:[%s4052_s1 + $0x90] ss:$8 sps:$4 sm:$0xff]  }
 0x13b   :  { %1581 = vmatpush1.bf16.msra.mxu0 %v2549_v18  ;;  %1875 = vmatpush1.bf16.msra.mxu1 %v2549_v18  ;;  %v2556_v18 = vld [vmem:[%s4052_s1 + $0xa4] ss:$8 sps:$4 sm:$0xff]  }
 0x13c   :  { %1582 = vmatprep.subr.bf16.mxu0 %v2550_v25  ;;  %1876 = vmatprep.subr.bf16.mxu1 %v2550_v25  ;;  %v2557_v25 = vld [vmem:[%s4052_s1 + $0xa0] ss:$8 sps:$4 sm:$0xff]  }
 0x13f   :  { %1583 = vmatpush1.bf16.msra.mxu0 %v2551_v13  ;;  %1877 = vmatpush1.bf16.msra.mxu1 %v2551_v13  ;;  %v2558_v13 = vld [vmem:[%s4052_s1 + $0xb4] ss:$8 sps:$4 sm:$0xff]  }
 0x140   :  { %1584 = vmatprep.subr.bf16.mxu0 %v2552_v21  ;;  %1878 = vmatprep.subr.bf16.mxu1 %v2552_v21  ;;  %v2559_v21 = vld [vmem:[%s4052_s1 + $0xb0] ss:$8 sps:$4 sm:$0xff]  }
 0x143   :  { %1585 = vmatpush1.bf16.msra.mxu0 %v2553_v51  ;;  %1879 = vmatpush1.bf16.msra.mxu1 %v2553_v51  ;;  %v2560_v51 = vld [vmem:[%s4052_s1 + $0xc4] ss:$8 sps:$4 sm:$0xff]  }
 0x144   :  { %1586 = vmatprep.subr.bf16.mxu0 %v2554_v52  ;;  %1880 = vmatprep.subr.bf16.mxu1 %v2554_v52  ;;  %v2561_v52 = vld [vmem:[%s4052_s1 + $0xc0] ss:$8 sps:$4 sm:$0xff]  }
 0x147   :  { %1587 = vmatpush1.bf16.msra.mxu0 %v2555_v17  ;;  %1881 = vmatpush1.bf16.msra.mxu1 %v2555_v17  ;;  %v2562_v17 = vld [vmem:[%s4052_s1 + $0xd4] ss:$8 sps:$4 sm:$0xff]  }
 0x148   :  { %1588 = vmatprep.subr.bf16.mxu0 %v2556_v18  ;;  %1882 = vmatprep.subr.bf16.mxu1 %v2556_v18  ;;  %v2563_v18 = vld [vmem:[%s4052_s1 + $0xd0] ss:$8 sps:$4 sm:$0xff]  }
 0x14b   :  { %1589 = vmatpush1.bf16.msra.mxu0 %v2557_v25  ;;  %1883 = vmatpush1.bf16.msra.mxu1 %v2557_v25  ;;  %v2564_v25 = vld [vmem:[%s4052_s1 + $0xe4] ss:$8 sps:$4 sm:$0xff]  }
 0x14c   :  { %1590 = vmatprep.subr.bf16.mxu0 %v2558_v13  ;;  %1884 = vmatprep.subr.bf16.mxu1 %v2558_v13  ;;  %v2565_v13 = vld [vmem:[%s4052_s1 + $0xe0] ss:$8 sps:$4 sm:$0xff]  }
 0x14f   :  { %1591 = vmatpush1.bf16.msra.mxu0 %v2559_v21  ;;  %1885 = vmatpush1.bf16.msra.mxu1 %v2559_v21  ;;  %v2566_v21 = vld [vmem:[%s4052_s1 + $0xf4] ss:$8 sps:$4 sm:$0xff]  }
 0x150   :  { %1592 = vmatprep.subr.bf16.mxu0 %v2560_v51  ;;  %1886 = vmatprep.subr.bf16.mxu1 %v2560_v51  ;;  %v3704_v51 = vrot.slane %v3572_v26, %v2632_v16  ;;  %v1543_v26 = vcombine.high %v3605_v27, %v3605_v27 }
 0x153   :  { %1593 = vmatpush1.bf16.msra.mxu0 %v2561_v52  ;;  %1887 = vmatpush1.bf16.msra.mxu1 %v2561_v52  ;;  %v3708_v52 = vrot.slane %v3576_v31, %v2632_v16  ;;  %v1837_v31 = vcombine.high %v3608_v48, %v3608_v48 }
 0x154   :  { %1594 = vmatprep.subr.bf16.mxu0 %v2562_v17  ;;  %1888 = vmatprep.subr.bf16.mxu1 %v2562_v17  ;;  %v2567_v17 = vld [vmem:[%s4052_s1 + $0xf0] ss:$8 sps:$4 sm:$0xff]  }
 0x157   :  { %1595 = vmatpush1.bf16.msra.mxu0 %v2563_v18  ;;  %1889 = vmatpush1.bf16.msra.mxu1 %v2563_v18  ;;  %v2568_v18 = vld [vmem:[%s4052_s1 + $0x104] ss:$8 sps:$4 sm:$0xff]  }
 0x158   :  { %1596 = vmatprep.subr.bf16.mxu0 %v2564_v25  ;;  %1890 = vmatprep.subr.bf16.mxu1 %v2564_v25 }
 0x15b   :  { %1597 = vmatpush1.bf16.msra.mxu0 %v2565_v13  ;;  %1891 = vmatpush1.bf16.msra.mxu1 %v2565_v13 }
 0x15c   :  { %1598 = vmatprep.subr.bf16.mxu0 %v2566_v21  ;;  %1892 = vmatprep.subr.bf16.mxu1 %v2566_v21 }
 0x15f   :  { %1599 = vmatpush1.bf16.msra.mxu0 %v2567_v17  ;;  %1893 = vmatpush1.bf16.msra.mxu1 %v2567_v17 }
 0x160   :  { %1609 = vmatprep.subr.bf16.mxu0 %v2730_v46  ;;  %1903 = vmatprep.subr.bf16.mxu1 %v2568_v18  ;;  %v1496_v46 = vcombine.high %v3549_v28, %v3549_v28  ;;  %v4275_v18 = vld [vmem:[#allocation29_spill] sm:$0xff] }
 0x162   :  { %1601 = vmatmul.mubr.bf16.vlgmr.msra.gmra.mrb[4].mxu0 %v3704_v51  ;;  %1895 = vmatmul.mubr.bf16.vlgmr.msra.gmra.mrb[4].mxu1 %v3708_v52 }
 0x163   :  { %1610 = vmatpush1.bf16.msra.mxu0 %v2743_v49  ;;  %1904 = vmatpush1.bf16.msra.mxu1 %v2743_v49  ;;  %v1790_v49 = vcombine.high %v3554_v32, %v3554_v32 }
 0x164   :  { %1611 = vmatprep.subr.bf16.mxu0 %v2750_v50  ;;  %1905 = vmatprep.subr.bf16.mxu1 %v2750_v50  ;;  %v3784_v50 = vrot.slane %v1496_v46, %v2632_v16 }
 0x165   :  { %1641 = vmatprep.mubr.bf16.mxu0 %v1543_v26  ;;  %1935 = vmatprep.mubr.bf16.mxu1 %v1837_v31 }
 0x167   :  { %1612 = vmatpush1.bf16.msra.mxu0 %v2763_v53  ;;  %1906 = vmatpush1.bf16.msra.mxu1 %v2763_v53  ;;  %v3787_v53 = vrot.slane %v1790_v49, %v2632_v16 }
 0x168   :  { %1613 = vmatprep.subr.bf16.mxu0 %v2770_v54  ;;  %1907 = vmatprep.subr.bf16.mxu1 %v2770_v54  ;;  %v1512_v54 = vcombine.high %v3784_v50, %v3784_v50 }
 0x16b   :  { %1614 = vmatpush1.bf16.msra.mxu0 %v2777_v55  ;;  %1908 = vmatpush1.bf16.msra.mxu1 %v2777_v55  ;;  %v1806_v55 = vcombine.high %v3787_v53, %v3787_v53 }
 0x16c   :  { %1615 = vmatprep.subr.bf16.mxu0 %v2784_v56  ;;  %1909 = vmatprep.subr.bf16.mxu1 %v2784_v56  ;;  %v1541_v56 = vcombine.high %v3704_v51, %v3704_v51 }
 0x16f   :  { %1616 = vmatpush1.bf16.msra.mxu0 %v2791_v57  ;;  %1910 = vmatpush1.bf16.msra.mxu1 %v2791_v57  ;;  %v1835_v57 = vcombine.high %v3708_v52, %v3708_v52 }
 0x170   :  { %1617 = vmatprep.subr.bf16.mxu0 %v2798_v58  ;;  %1911 = vmatprep.subr.bf16.mxu1 %v2798_v58  ;;  %v3806_v58 = vrot.slane %v1512_v54, %v2632_v16 }
 0x173   :  { %1618 = vmatpush1.bf16.msra.mxu0 %v2805_v59  ;;  %1912 = vmatpush1.bf16.msra.mxu1 %v2805_v59  ;;  %v3809_v59 = vrot.slane %v1806_v55, %v2632_v16 }
 0x174   :  { %1619 = vmatprep.subr.bf16.mxu0 %v2812_v60  ;;  %1913 = vmatprep.subr.bf16.mxu1 %v2812_v60  ;;  %v4248_v60 = vld [vmem:[#allocation3_spill] sm:$0xff] }
 0x177   :  { %1620 = vmatpush1.bf16.msra.mxu0 %v2819_v61  ;;  %1914 = vmatpush1.bf16.msra.mxu1 %v2819_v61  ;;  %v4249_v61 = vld [vmem:[#allocation4_spill] sm:$0xff] }
 0x178   :  { %1621 = vmatprep.subr.bf16.mxu0 %v2826_v62  ;;  %1915 = vmatprep.subr.bf16.mxu1 %v2826_v62  ;;  %v4250_v62 = vld [vmem:[#allocation5_spill] sm:$0xff] }
 0x17b   :  { %1622 = vmatpush1.bf16.msra.mxu0 %v2833_v63  ;;  %1916 = vmatpush1.bf16.msra.mxu1 %v2833_v63  ;;  %v4251_v63 = vld [vmem:[#allocation6_spill] sm:$0xff] }
 0x17c   :  { %1623 = vmatprep.subr.bf16.mxu0 %v2840_v0  ;;  %1917 = vmatprep.subr.bf16.mxu1 %v2840_v0  ;;  %v4252_v0 = vld [vmem:[#allocation7_spill] sm:$0xff] }
 0x17f   :  { %1624 = vmatpush1.bf16.msra.mxu0 %v2847_v1  ;;  %1918 = vmatpush1.bf16.msra.mxu1 %v2847_v1  ;;  %v4253_v1 = vld [vmem:[#allocation8_spill] sm:$0xff] }
 0x180   :  { %1625 = vmatprep.subr.bf16.mxu0 %v2854_v2  ;;  %1919 = vmatprep.subr.bf16.mxu1 %v2854_v2  ;;  %v4254_v2 = vld [vmem:[#allocation9_spill] sm:$0xff] }
 0x183   :  { %1626 = vmatpush1.bf16.msra.mxu0 %v2861_v3  ;;  %1920 = vmatpush1.bf16.msra.mxu1 %v2861_v3  ;;  %v4255_v3 = vld [vmem:[#allocation10_spill] sm:$0xff] }
 0x184   :  { %1627 = vmatprep.subr.bf16.mxu0 %v2868_v4  ;;  %1921 = vmatprep.subr.bf16.mxu1 %v2868_v4  ;;  %v4256_v4 = vld [vmem:[#allocation11_spill] sm:$0xff] }
 0x187   :  { %1628 = vmatpush1.bf16.msra.mxu0 %v2875_v5  ;;  %1922 = vmatpush1.bf16.msra.mxu1 %v2875_v5  ;;  %v4257_v5 = vld [vmem:[#allocation12_spill] sm:$0xff] }
 0x188   :  { %1629 = vmatprep.subr.bf16.mxu0 %v2882_v6  ;;  %1923 = vmatprep.subr.bf16.mxu1 %v2882_v6  ;;  %v4258_v6 = vld [vmem:[#allocation13_spill] sm:$0xff] }
 0x18b   :  { %1630 = vmatpush1.bf16.msra.mxu0 %v2889_v7  ;;  %1924 = vmatpush1.bf16.msra.mxu1 %v2889_v7  ;;  %v4259_v7 = vld [vmem:[#allocation14_spill] sm:$0xff] }
 0x18c   :  { %1631 = vmatprep.subr.bf16.mxu0 %v2896_v8  ;;  %1925 = vmatprep.subr.bf16.mxu1 %v2896_v8  ;;  %v4260_v8 = vld [vmem:[#allocation15_spill] sm:$0xff] }
 0x18f   :  { %1632 = vmatpush1.bf16.msra.mxu0 %v2903_v9  ;;  %1926 = vmatpush1.bf16.msra.mxu1 %v2903_v9  ;;  %v4261_v9 = vld [vmem:[#allocation16_spill] sm:$0xff] }
 0x190   :  { %1633 = vmatprep.subr.bf16.mxu0 %v2910_v10  ;;  %1927 = vmatprep.subr.bf16.mxu1 %v2910_v10  ;;  %v3875_v10 = vrot.slane %v3784_v50, %v2632_v16  ;;  %v4276_v50 = vld [vmem:[#allocation30_spill] sm:$0xff] }
 0x193   :  { %1634 = vmatpush1.bf16.msra.mxu0 %v2917_v11  ;;  %1928 = vmatpush1.bf16.msra.mxu1 %v2917_v11  ;;  %v3879_v11 = vrot.slane %v3787_v53, %v2632_v16 }
 0x194   :  { %1635 = vmatprep.subr.bf16.mxu0 %v2924_v12  ;;  %1929 = vmatprep.subr.bf16.mxu1 %v2924_v12  ;;  %v4262_v12 = vld [vmem:[#allocation17_spill] sm:$0xff] }
 0x197   :  { %1636 = vmatpush1.bf16.msra.mxu0 %v2931_v14  ;;  %1930 = vmatpush1.bf16.msra.mxu1 %v2931_v14  ;;  %v4263_v14 = vld [vmem:[#allocation18_spill] sm:$0xff] }
 0x198   :  { %1637 = vmatprep.subr.bf16.mxu0 %v2938_v15  ;;  %1931 = vmatprep.subr.bf16.mxu1 %v2938_v15  ;;  %v1544_v15 = vcombine.high %v3806_v58, %v3806_v58 }
 0x19b   :  { %1638 = vmatpush1.bf16.msra.mxu0 %v2949_v20  ;;  %1932 = vmatpush1.bf16.msra.mxu1 %v2949_v20  ;;  %v1838_v20 = vcombine.high %v3809_v59, %v3809_v59 }
 0x19c   :  { %1639 = vmatprep.subr.bf16.mxu0 %v2956_v19  ;;  %1933 = vmatprep.subr.bf16.mxu1 %v2956_v19  ;;  %v4264_v19 = vld [vmem:[#allocation19_spill] sm:$0xff] }
 0x19f   :  { %1640 = vmatpush1.bf16.msra.mxu0 %v2969_v23  ;;  %1934 = vmatpush1.bf16.msra.mxu1 %v2969_v23  ;;  %v4265_v23 = vld [vmem:[#allocation20_spill] sm:$0xff] }
 0x1a0   :  { %1650 = vmatprep.subr.bf16.mxu0 %v2976_v24  ;;  %1944 = vmatprep.subr.bf16.mxu1 %v2976_v24  ;;  %v4266_v24 = vld [vmem:[#allocation21_spill] sm:$0xff] }
 0x1a2   :  { %1642 = vmatmul.mubr.bf16.vlgmr.msra.gmra.mrb[4].mxu0 %v1541_v56  ;;  %1936 = vmatmul.mubr.bf16.vlgmr.msra.gmra.mrb[4].mxu1 %v1835_v57 }
 0x1a3   :  { %1651 = vmatpush1.bf16.msra.mxu0 %v2991_v29  ;;  %1945 = vmatpush1.bf16.msra.mxu1 %v2991_v29  ;;  %v4267_v29 = vld [vmem:[#allocation22_spill] sm:$0xff] }
 0x1a4   :  { %1652 = vmatprep.subr.bf16.mxu0 %v2998_v30  ;;  %1946 = vmatprep.subr.bf16.mxu1 %v2998_v30  ;;  %v4268_v30 = vld [vmem:[#allocation23_spill] sm:$0xff] }
 0x1a5   :  { %1682 = vmatprep.mubr.bf16.mxu0 %v3806_v58  ;;  %1976 = vmatprep.mubr.bf16.mxu1 %v3809_v59  ;;  %v4277_v59 = vld [vmem:[#allocation31_spill] sm:$0xff] }
 0x1a7   :  { %1653 = vmatpush1.bf16.msra.mxu0 %v3011_v33  ;;  %1947 = vmatpush1.bf16.msra.mxu1 %v3011_v33  ;;  %v4269_v33 = vld [vmem:[#allocation24_spill] sm:$0xff] }
 0x1a8   :  { %1654 = vmatprep.subr.bf16.mxu0 %v3018_v34  ;;  %1948 = vmatprep.subr.bf16.mxu1 %v3018_v34  ;;  %v4270_v34 = vld [vmem:[#allocation2_spill] sm:$0xff] }
 0x1ab   :  { %1655 = vmatpush1.bf16.msra.mxu0 %v3027_v35  ;;  %1949 = vmatpush1.bf16.msra.mxu1 %v3027_v35  ;;  %v1168_v35 = vsub.s32 0, %v4270_v34 }
 0x1ac   :  { %1656 = vmatprep.subr.bf16.mxu0 %v3034_v36  ;;  %1950 = vmatprep.subr.bf16.mxu1 %v3034_v36  ;;  %v4271_v36 = vld [vmem:[#allocation25_spill] sm:$0xff] }
 0x1af   :  { %1657 = vmatpush1.bf16.msra.mxu0 %v3041_v37  ;;  %1951 = vmatpush1.bf16.msra.mxu1 %v3041_v37  ;;  %v162_v37 = vld [vmem:[%s4054_s2] sm:$0x3] }
 0x1b0   :  { %1658 = vmatprep.subr.bf16.mxu0 %v3048_v38  ;;  %1952 = vmatprep.subr.bf16.mxu1 %v3048_v38  ;;  %v1172_v38 = vsub.s32 1, %v4270_v34  ;;  %v1836_v34 = vcombine.high %v3879_v11, %v3879_v11 }
 0x1b3   :  { %1659 = vmatpush1.bf16.msra.mxu0 %v3055_v39  ;;  %1953 = vmatpush1.bf16.msra.mxu1 %v3055_v39  ;;  %v4272_v39 = vld [vmem:[#allocation26_spill] sm:$0xff] }
 0x1b4   :  { %1660 = vmatprep.subr.bf16.mxu0 %v3062_v40  ;;  %1954 = vmatprep.subr.bf16.mxu1 %v3062_v40  ;;  %v163_v40 = vld [vmem:[%s4055_s3] sm:$0x3] }
 0x1b5   :  { %v3925_v27 = vrot.slane %v163_v40, %v1172_v38 }
 0x1b7   :  { %1661 = vmatpush1.bf16.msra.mxu0 %v3069_v41  ;;  %1955 = vmatpush1.bf16.msra.mxu1 %v3069_v41  ;;  %v3915_v41 = vrot.slane %v162_v37, %v1168_v35 }
 0x1b8   :  { %1662 = vmatprep.subr.bf16.mxu0 %v3076_v42  ;;  %1956 = vmatprep.subr.bf16.mxu1 %v3076_v42  ;;  %v4273_v42 = vld [vmem:[#allocation27_spill] sm:$0xff] }
 0x1bb   :  { %1663 = vmatpush1.bf16.msra.mxu0 %v3083_v43  ;;  %1957 = vmatpush1.bf16.msra.mxu1 %v3083_v43  ;;  %v3919_v43 = vrot.slane %v162_v37, %v1172_v38  ;;  %v4297_v37 = vld [vmem:[#allocation51_spill] sm:$0xff]  ;;  %v4298_v38 = vld [vmem:[#allocation52_spill] sm:$0xff] }
 0x1bc   :  { %1664 = vmatprep.subr.bf16.mxu0 %v3090_v44  ;;  %1958 = vmatprep.subr.bf16.mxu1 %v3090_v44  ;;  %v3921_v44 = vrot.slane %v163_v40, %v1168_v35  ;;  %v4295_v35 = vld [vmem:[#allocation49_spill] sm:$0xff]  ;;  %v4302_v40 = vld [vmem:[#allocation55_spill] sm:$0xff] }
 0x1bf   :  { %1665 = vmatpush1.bf16.msra.mxu0 %v3097_v45  ;;  %1959 = vmatpush1.bf16.msra.mxu1 %v3097_v45  ;;  %v4274_v45 = vld [vmem:[#allocation28_spill] sm:$0xff] }
 0x1c0   :  { %1666 = vmatprep.subr.bf16.mxu0 %v3104_v47  ;;  %1960 = vmatprep.subr.bf16.mxu1 %v3104_v47 }
 0x1c3   :  { %1667 = vmatpush1.bf16.msra.mxu0 %v4248_v60  ;;  %1961 = vmatpush1.bf16.msra.mxu1 %v4248_v60 }
 0x1c4   :  { %1668 = vmatprep.subr.bf16.mxu0 %v4249_v61  ;;  %1962 = vmatprep.subr.bf16.mxu1 %v4249_v61 }
 0x1c7   :  { %1669 = vmatpush1.bf16.msra.mxu0 %v4250_v62  ;;  %1963 = vmatpush1.bf16.msra.mxu1 %v4250_v62  ;;  %v4278_v62 = vld [vmem:[#allocation32_spill] sm:$0xff] }
 0x1c8   :  { %1670 = vmatprep.subr.bf16.mxu0 %v4251_v63  ;;  %1964 = vmatprep.subr.bf16.mxu1 %v4251_v63 }
 0x1cb   :  { %1671 = vmatpush1.bf16.msra.mxu0 %v4252_v0  ;;  %1965 = vmatpush1.bf16.msra.mxu1 %v4252_v0 }
 0x1cc   :  { %1672 = vmatprep.subr.bf16.mxu0 %v4253_v1  ;;  %1966 = vmatprep.subr.bf16.mxu1 %v4253_v1 }
 0x1cf   :  { %1673 = vmatpush1.bf16.msra.mxu0 %v4254_v2  ;;  %1967 = vmatpush1.bf16.msra.mxu1 %v4254_v2 }
 0x1d0   :  { %1674 = vmatprep.subr.bf16.mxu0 %v4255_v3  ;;  %1968 = vmatprep.subr.bf16.mxu1 %v4255_v3  ;;  %v4279_v3 = vld [vmem:[#allocation33_spill] sm:$0xff] }
 0x1d3   :  { %1675 = vmatpush1.bf16.msra.mxu0 %v4256_v4  ;;  %1969 = vmatpush1.bf16.msra.mxu1 %v4256_v4  ;;  %v4280_v4 = vld [vmem:[#allocation34_spill] sm:$0xff] }
 0x1d4   :  { %1676 = vmatprep.subr.bf16.mxu0 %v4257_v5  ;;  %1970 = vmatprep.subr.bf16.mxu1 %v4257_v5  ;;  %v4281_v5 = vld [vmem:[#allocation35_spill] sm:$0xff] }
 0x1d7   :  { %1677 = vmatpush1.bf16.msra.mxu0 %v4258_v6  ;;  %1971 = vmatpush1.bf16.msra.mxu1 %v4258_v6  ;;  %v4282_v6 = vld [vmem:[#allocation36_spill] sm:$0xff] }
 0x1d8   :  { %1678 = vmatprep.subr.bf16.mxu0 %v4259_v7  ;;  %1972 = vmatprep.subr.bf16.mxu1 %v4259_v7  ;;  %v4283_v7 = vld [vmem:[#allocation37_spill] sm:$0xff] }
 0x1db   :  { %1679 = vmatpush1.bf16.msra.mxu0 %v4260_v8  ;;  %1973 = vmatpush1.bf16.msra.mxu1 %v4260_v8  ;;  %v4284_v8 = vld [vmem:[#allocation38_spill] sm:$0xff] }
 0x1dc   :  { %1680 = vmatprep.subr.bf16.mxu0 %v4261_v9  ;;  %1974 = vmatprep.subr.bf16.mxu1 %v4261_v9  ;;  %v4285_v9 = vld [vmem:[#allocation39_spill] sm:$0xff] }
 0x1df   :  { %1681 = vmatpush1.bf16.msra.mxu0 %v4262_v12  ;;  %1975 = vmatpush1.bf16.msra.mxu1 %v4262_v12  ;;  %v4286_v12 = vld [vmem:[#allocation40_spill] sm:$0xff] }
 0x1e0   :  { %1691 = vmatprep.subr.bf16.mxu0 %v4263_v14  ;;  %1985 = vmatprep.subr.bf16.mxu1 %v4263_v14  ;;  %v4287_v14 = vld [vmem:[#allocation41_spill] sm:$0xff] }
 0x1e2   :  { %1683 = vmatmul.mubr.bf16.vlgmr.msra.gmra.mrb[4].mxu0 %v3875_v10  ;;  %1977 = vmatmul.mubr.bf16.vlgmr.msra.gmra.mrb[4].mxu1 %v3879_v11  ;;  %v4300_v11 = vld [vmem:[#allocation53_spill] sm:$0xff] }
 0x1e3   :  { %1692 = vmatpush1.bf16.msra.mxu0 %v4264_v19  ;;  %1986 = vmatpush1.bf16.msra.mxu1 %v4264_v19  ;;  %v4290_v19 = vld [vmem:[#allocation44_spill] sm:$0xff] }
 0x1e4   :  { %1693 = vmatprep.subr.bf16.mxu0 %v4265_v23  ;;  %1987 = vmatprep.subr.bf16.mxu1 %v4265_v23  ;;  %v4291_v23 = vld [vmem:[#allocation45_spill] sm:$0xff] }
 0x1e5   :  { %1723 = vmatprep.mubr.bf16.mxu0 %v1544_v15  ;;  %2017 = vmatprep.mubr.bf16.mxu1 %v1838_v20  ;;  %v4288_v15 = vld [vmem:[#allocation42_spill] sm:$0xff]  ;;  %v4289_v20 = vld [vmem:[#allocation43_spill] sm:$0xff] }
 0x1e7   :  { %1694 = vmatpush1.bf16.msra.mxu0 %v4266_v24  ;;  %1988 = vmatpush1.bf16.msra.mxu1 %v4266_v24  ;;  %v4292_v24 = vld [vmem:[#allocation46_spill] sm:$0xff] }
 0x1e8   :  { %1695 = vmatprep.subr.bf16.mxu0 %v4267_v29  ;;  %1989 = vmatprep.subr.bf16.mxu1 %v4267_v29  ;;  %v4293_v29 = vld [vmem:[#allocation47_spill] sm:$0xff] }
 0x1eb   :  { %1696 = vmatpush1.bf16.msra.mxu0 %v4268_v30  ;;  %1990 = vmatpush1.bf16.msra.mxu1 %v4268_v30  ;;  %v4294_v30 = vld [vmem:[#allocation48_spill] sm:$0xff] }
 0x1ec   :  { %1697 = vmatprep.subr.bf16.mxu0 %v4269_v33  ;;  %1991 = vmatprep.subr.bf16.mxu1 %v4269_v33  ;;  %v1542_v33 = vcombine.high %v3875_v10, %v3875_v10  ;;  %v4299_v10 = vmov 0  }
 0x1ef   :  { %1698 = vmatpush1.bf16.msra.mxu0 %v4271_v36  ;;  %1992 = vmatpush1.bf16.msra.mxu1 %v4271_v36  ;;  %v4296_v36 = vld [vmem:[#allocation50_spill] sm:$0xff] }
 0x1f0   :  { %1699 = vmatprep.subr.bf16.mxu0 %v4272_v39  ;;  %1993 = vmatprep.subr.bf16.mxu1 %v4272_v39  ;;  %v4301_v39 = vld [vmem:[#allocation54_spill] sm:$0xff] }
 0x1f3   :  { %1700 = vmatpush1.bf16.msra.mxu0 %v4273_v42  ;;  %1994 = vmatpush1.bf16.msra.mxu1 %v4273_v42  ;;  %v4303_v42 = vld [vmem:[#allocation56_spill] sm:$0xff] }
 0x1f4   :  { %1701 = vmatprep.subr.bf16.mxu0 %v4274_v45  ;;  %1995 = vmatprep.subr.bf16.mxu1 %v4274_v45  ;;  %v4304_v45 = vld [vmem:[#allocation57_spill] sm:$0xff] }
 0x1f5   :  { %v1158_v47 = vpop.f32.mrb[0].mxu0  ;;  %v1472_v48 = vpop.f32.mrb[0].mxu1 }
 0x1f6   :  { %v1176_v28 = vmul.f32 %v3915_v41, %v1158_v47  ;;  %v1479_v32 = vmul.f32 %v1472_v48, %v3915_v41  ;;  %v1160_v25 = vpop.f32.mrb[1].mxu0  ;;  %v1474_v13 = vpop.f32.mrb[1].mxu1  ;;  %v4305_v47 = vld [vmem:[#allocation58_spill] sm:$0xff]  ;;  %v4306_v48 = vld [vmem:[#allocation59_spill] sm:$0xff] }
 0x1f7   :  { %v1177_v21 = vmul.f32 %v3919_v43, %v1160_v25  ;;  %v1480_v51 = vmul.f32 %v1474_v13, %v3919_v43  ;;  %v1162_v52 = vpop.f32.mrb[2].mxu0  ;;  %v1476_v17 = vpop.f32.mrb[2].mxu1  ;;  %1702 = vmatpush1.bf16.msra.mxu0 %v4275_v18  ;;  %1996 = vmatpush1.bf16.msra.mxu1 %v4275_v18  ;;  %v4309_v25 = vld [vmem:[#allocation62_spill] sm:$0xff] }
 0x1f8   :  { %v1189_v26 = vadd.f32 %v3921_v44, %v1176_v28  ;;  %v1481_v31 = vadd.f32 %v1479_v32, %v3921_v44  ;;  %v1163_v46 = vpop.f32.mrb[3].mxu0  ;;  %v1477_v49 = vpop.f32.mrb[3].mxu1  ;;  %1703 = vmatprep.subr.bf16.mxu0 %v4276_v50  ;;  %1997 = vmatprep.subr.bf16.mxu1 %v4276_v50  ;;  %v4307_v28 = vld [vmem:[#allocation60_spill] sm:$0xff]  ;;  %v4308_v32 = vld [vmem:[#allocation61_spill] sm:$0xff] }
 0x1f9   :  { %v1190_v53 = vadd.f32 %v3925_v27, %v1177_v21  ;;  %v1482_v54 = vadd.f32 %v1480_v51, %v3925_v27  ;;  %v2245_v13 = vld.sshfl [vmem:[%s4053_s0 + $0x1a] sm:$0x1 pattern:$0x75316420]  ;;  %v4310_v21 = vld [vmem:[#allocation63_spill] sm:$0xff]  ;;  %v4311_v52 = vld [vmem:[#allocation64_spill] sm:$0xff] }
 0x1fa   :  { %vm1191_vm0 = vcmp.gt.f32.partialorder %v1189_v26, 0.0  ;;  %v1193_v55 = vmul.f32 0.01, %v1189_v26  ;;  %vm1483_vm1 = vcmp.gt.f32.partialorder %v1481_v31, 0.0  ;;  %v1485_v56 = vmul.f32 0.01, %v1481_v31 }
 0x1fb   :  { %vm1192_vm2 = vcmp.gt.f32.partialorder %v1190_v53, 0.0  ;;  %v1194_v57 = vmul.f32 0.01, %v1190_v53  ;;  %vm1484_vm3 = vcmp.gt.f32.partialorder %v1482_v54, 0.0  ;;  %v1486_v58 = vmul.f32 0.01, %v1482_v54  ;;  %1704 = vmatpush1.bf16.msra.mxu0 %v4277_v59  ;;  %1998 = vmatpush1.bf16.msra.mxu1 %v4277_v59 }
 0x1fc   :  { %v3941_v60 = vsel %vm1191_vm0, %v1189_v26, %v1193_v55  ;;  %v3943_v61 = vsel %vm1483_vm1, %v1481_v31, %v1485_v56  ;;  %1705 = vmatprep.subr.bf16.mxu0 %v4278_v62  ;;  %1999 = vmatprep.subr.bf16.mxu1 %v4278_v62  ;;  %v2248_v51 = vld.sshfl [vmem:[%s4053_s0 + $0x23] sm:$0x1 pattern:$0x75316420]  ;;  %v1558_v17 = vrot.slane %v2245_v13, %v2632_v16 }
 0x1fd   :  { %v1489_v63 = vmax.f32 %v3941_v60, %v3943_v61  ;;  %v3949_v0 = vsel %vm1192_vm2, %v1190_v53, %v1194_v57  ;;  %v3951_v1 = vsel %vm1484_vm3, %v1482_v54, %v1486_v58  ;;  %v1852_v18 = vrot.slane %v2248_v51, %v2632_v16 }
 0x1fe   :  { %v1490_v2 = vmax.f32 %v3949_v0, %v3951_v1 }
 0x1ff   :  { %1706 = vmatpush1.bf16.msra.mxu0 %v4279_v3  ;;  %2000 = vmatpush1.bf16.msra.mxu1 %v4279_v3 }
 0x200   :  { %1707 = vmatprep.subr.bf16.mxu0 %v4280_v4  ;;  %2001 = vmatprep.subr.bf16.mxu1 %v4280_v4 }
 0x203   :  { %1708 = vmatpush1.bf16.msra.mxu0 %v4281_v5  ;;  %2002 = vmatpush1.bf16.msra.mxu1 %v4281_v5 }
 0x204   :  { %1709 = vmatprep.subr.bf16.mxu0 %v4282_v6  ;;  %2003 = vmatprep.subr.bf16.mxu1 %v4282_v6 }
 0x207   :  { %1710 = vmatpush1.bf16.msra.mxu0 %v4283_v7  ;;  %2004 = vmatpush1.bf16.msra.mxu1 %v4283_v7 }
 0x208   :  { %1711 = vmatprep.subr.bf16.mxu0 %v4284_v8  ;;  %2005 = vmatprep.subr.bf16.mxu1 %v4284_v8 }
 0x20b   :  { %1712 = vmatpush1.bf16.msra.mxu0 %v4285_v9  ;;  %2006 = vmatpush1.bf16.msra.mxu1 %v4285_v9 }
 0x20c   :  { %1713 = vmatprep.subr.bf16.mxu0 %v4286_v12  ;;  %2007 = vmatprep.subr.bf16.mxu1 %v4286_v12 }
 0x20f   :  { %1714 = vmatpush1.bf16.msra.mxu0 %v4287_v14  ;;  %2008 = vmatpush1.bf16.msra.mxu1 %v4287_v14 }
 0x210   :  { %1715 = vmatprep.subr.bf16.mxu0 %v4288_v15  ;;  %2009 = vmatprep.subr.bf16.mxu1 %v4288_v15 }
 0x213   :  { %1716 = vmatpush1.bf16.msra.mxu0 %v4289_v20  ;;  %2010 = vmatpush1.bf16.msra.mxu1 %v4289_v20 }
 0x214   :  { %1717 = vmatprep.subr.bf16.mxu0 %v4290_v19  ;;  %2011 = vmatprep.subr.bf16.mxu1 %v4290_v19 }
 0x217   :  { %1718 = vmatpush1.bf16.msra.mxu0 %v4291_v23  ;;  %2012 = vmatpush1.bf16.msra.mxu1 %v4291_v23 }
 0x218   :  { %1719 = vmatprep.subr.bf16.mxu0 %v4292_v24  ;;  %2013 = vmatprep.subr.bf16.mxu1 %v4292_v24 }
 0x21b   :  { %1720 = vmatpush1.bf16.msra.mxu0 %v4293_v29  ;;  %2014 = vmatpush1.bf16.msra.mxu1 %v4293_v29 }
 0x21c   :  { %1721 = vmatprep.subr.bf16.mxu0 %v4294_v30  ;;  %2015 = vmatprep.subr.bf16.mxu1 %v4294_v30 }
 0x21f   :  { %1722 = vmatpush1.bf16.msra.mxu0 %v4295_v35  ;;  %2016 = vmatpush1.bf16.msra.mxu1 %v4295_v35 }
 0x220   :  { %1732 = vmatprep.subr.bf16.mxu0 %v4296_v36  ;;  %2026 = vmatprep.subr.bf16.mxu1 %v4296_v36 }
 0x222   :  { %1724 = vmatmul.mubr.bf16.vlgmr.msra.gmra.mrb[4].mxu0 %v1542_v33  ;;  %2018 = vmatmul.mubr.bf16.vlgmr.msra.gmra.mrb[4].mxu1 %v1836_v34 }
 0x223   :  { %1733 = vmatpush1.bf16.msra.mxu0 %v4297_v37  ;;  %2027 = vmatpush1.bf16.msra.mxu1 %v4297_v37 }
 0x224   :  { %1734 = vmatprep.subr.bf16.mxu0 %v4298_v38  ;;  %2028 = vmatprep.subr.bf16.mxu1 %v4298_v38 }
 0x225   :  { %1764 = vmatprep.mubr.bf16.mxu0 %v4299_v10  ;;  %2058 = vmatprep.mubr.bf16.mxu1 %v4299_v10 }
 0x227   :  { %1735 = vmatpush1.bf16.msra.mxu0 %v4300_v11  ;;  %2029 = vmatpush1.bf16.msra.mxu1 %v4300_v11 }
 0x228   :  { %1736 = vmatprep.subr.bf16.mxu0 %v4301_v39  ;;  %2030 = vmatprep.subr.bf16.mxu1 %v4301_v39 }
 0x22b   :  { %1737 = vmatpush1.bf16.msra.mxu0 %v4302_v40  ;;  %2031 = vmatpush1.bf16.msra.mxu1 %v4302_v40 }
 0x22c   :  { %1738 = vmatprep.subr.bf16.mxu0 %v4303_v42  ;;  %2032 = vmatprep.subr.bf16.mxu1 %v4303_v42 }
 0x22f   :  { %1739 = vmatpush1.bf16.msra.mxu0 %v4304_v45  ;;  %2033 = vmatpush1.bf16.msra.mxu1 %v4304_v45 }
 0x230   :  { %1740 = vmatprep.subr.bf16.mxu0 %v4305_v47  ;;  %2034 = vmatprep.subr.bf16.mxu1 %v4305_v47 }
 0x233   :  { %1741 = vmatpush1.bf16.msra.mxu0 %v4306_v48  ;;  %2035 = vmatpush1.bf16.msra.mxu1 %v4306_v48 }
 0x234   :  { %1742 = vmatprep.subr.bf16.mxu0 %v4307_v28  ;;  %2036 = vmatprep.subr.bf16.mxu1 %v4307_v28 }
 0x237   :  { %1743 = vmatpush1.bf16.msra.mxu0 %v4308_v32  ;;  %2037 = vmatpush1.bf16.msra.mxu1 %v4308_v32 }
 0x238   :  { %1744 = vmatprep.subr.bf16.mxu0 %v4309_v25  ;;  %2038 = vmatprep.subr.bf16.mxu1 %v4309_v25 }
 0x23b   :  { %1745 = vmatpush1.bf16.msra.mxu0 %v4310_v21  ;;  %2039 = vmatpush1.bf16.msra.mxu1 %v4310_v21 }
 0x23c   :  { %1746 = vmatprep.subr.bf16.mxu0 %v4311_v52  ;;  %2040 = vmatprep.subr.bf16.mxu1 %v4311_v52 }
 0x23f   :  { %1747 = vmatpush1.bf16.msra.mxu0 %v3586_v22  ;;  %2041 = vmatpush1.bf16.msra.mxu1 %v3586_v22 }
 0x242   :  { %1765 = vmatmul.mubr.bf16.vlgmr.msra.gmra.mrb[4].mxu0 %v1558_v17  ;;  %2059 = vmatmul.mubr.bf16.vlgmr.msra.gmra.mrb[4].mxu1 %v1852_v18 }
 0x315   :  { %v1766_v26 = vpop.f32.mrb[4].mxu0  ;;  %v2060_v31 = vpop.f32.mrb[4].mxu1 }
 0x316   :  { %v1773_v46 = vmul.f32 %v1766_v26, %v3915_v41  ;;  %v2067_v49 = vmul.f32 %v2060_v31, %v3915_v41  ;;  %v1768_v50 = vpop.f32.mrb[5].mxu0  ;;  %v2062_v53 = vpop.f32.mrb[5].mxu1 }
 0x317   :  { %v1774_v54 = vmul.f32 %v1768_v50, %v3919_v43  ;;  %v2068_v55 = vmul.f32 %v2062_v53, %v3919_v43  ;;  %v1770_v56 = vpop.f32.mrb[6].mxu0  ;;  %v2064_v16 = vpop.f32.mrb[6].mxu1 }
 0x318   :  { %v1775_v57 = vadd.f32 %v1773_v46, %v3921_v44  ;;  %v2069_v22 = vadd.f32 %v2067_v49, %v3921_v44  ;;  %v1771_v58 = vpop.f32.mrb[7].mxu0  ;;  %v2065_v59 = vpop.f32.mrb[7].mxu1 }
 0x319   :  { %v1776_v62 = vadd.f32 %v1774_v54, %v3925_v27  ;;  %v2070_v3 = vadd.f32 %v2068_v55, %v3925_v27 }
 0x31a   :  { %vm1777_vm4 = vcmp.gt.f32.partialorder %v1775_v57, 0.0  ;;  %v1779_v41 = vmul.f32 0.01, %v1775_v57  ;;  %v2073_v4 = vmul.f32 0.01, %v2069_v22  ;;  %vm2071_vm5 = vcmp.gt.f32.partialorder %v2069_v22, 0.0 }
 0x31b   :  { %vm1778_vm6 = vcmp.gt.f32.partialorder %v1776_v62, 0.0  ;;  %v1780_v5 = vmul.f32 0.01, %v1776_v62  ;;  %v2074_v6 = vmul.f32 0.01, %v2070_v3  ;;  %vm2072_vm7 = vcmp.gt.f32.partialorder %v2070_v3, 0.0 }
 0x31c   :  { %v1781_v43 = vsel %vm1777_vm4, %v1775_v57, %v1779_v41  ;;  %v2075_v8 = vsel %vm2071_vm5, %v2069_v22, %v2073_v4 }
 0x31d   :  { %v1783_v7 = vmax.f32 %v1489_v63, %v1781_v43  ;;  %v1782_v44 = vsel %vm1778_vm6, %v1776_v62, %v1780_v5  ;;  %v2076_v12 = vsel %vm2072_vm7, %v2070_v3, %v2074_v6 }
 0x31e   :  { %v1784_v9 = vmax.f32 %v1490_v2, %v1782_v44 }
 0x31f   :  { %v2077_v27 = vmax.f32 %v1783_v7, %v2075_v8 }
 0x320   :  { %v2078_v14 = vmax.f32 %v1784_v9, %v2076_v12 }
 0x322   :  { %v2081_v15 = vcombine.low %v2077_v27, %v2078_v14 }
 0x324   :  { %2249 = vst.sshfl [vmem:[%s4056_s4] sm:$0x33 pattern:$0x76325410] %v2081_v15 }

// kernel: custom_convnet_forward.11
= control target key start
LH: loop header
LB: loop body
LE: loop exit
PB: predicated region body
PF: predicated region fallthrough
CT: control target
= control target key end

     0   :  { %v320_v29 = vlaneseq  ;;  %v2320_v35 = vmov 1966171168   ;;  %s2842_s0 = inlined_call_operand.vmem [shape: bf16[2,2304], index: 0, kind: input, shape index: {}]   ;;  %s2843_s1 = inlined_call_operand.vmem [shape: bf16[2304,4], index: 1, kind: input, shape index: {}]   ;;  %s2844_s2 = inlined_call_operand.vmem [shape: f32[2,2], index: 2, kind: input, shape index: {}]   ;;  %s2845_s3 = inlined_call_operand.vmem [shape: f32[1,4], index: 3, kind: input, shape index: {}]   ;;  %s2846_s4 = inlined_call_operand.vmem [shape: f32[1,4], index: 4, kind: input, shape index: {}]   ;;  %s2847_s5 = inlined_call_operand.hbm [shape: f32[2,4], index: 5, kind: output, shape index: {}]  }
   0x1   :  { %v2150_v0 = vld [vmem:[%s2843_s1 + $0x40] sm:$0xff]   ;;  %v2154_v4 = vld [vmem:[%s2843_s1 + $0x48] sm:$0xff]   ;;  %v2158_v8 = vld [vmem:[%s2843_s1 + $0x50] sm:$0xff]   ;;  %v318_v36 = vunpack.c.l.s4 %v2320_v35 }
   0x2   :  { %v2151_v1 = vld [vmem:[%s2843_s1 + $0xc0] sm:$0xff]   ;;  %1941 = vmatprep.subr.bf16.mxu0 %v2150_v0  ;;  %v2155_v5 = vld [vmem:[%s2843_s1 + $0xc8] sm:$0xff]   ;;  %v2159_v9 = vld [vmem:[%s2843_s1 + $0xd0] sm:$0xff]   ;;  %v321_v33 = vshrl.u32 %v320_v29, 7 }
   0x3   :  { %v2152_v2 = vld [vmem:[%s2843_s1] sm:$0xff]   ;;  %1963 = vmatprep.subr.bf16.mxu1 %v2151_v1  ;;  %v2156_v6 = vld [vmem:[%s2843_s1 + $0x8] sm:$0xff]   ;;  %v2160_v10 = vld [vmem:[%s2843_s1 + $0x10] sm:$0xff]   ;;  %v319_v39 = vunpack.c.0.s8 %v318_v36 }
   0x4   :  { %v2153_v3 = vld [vmem:[%s2843_s1 + $0x80] sm:$0xff]   ;;  %1942 = vmatpush3.bf16.msra.mxu0 %v2152_v2  ;;  %v2157_v7 = vld [vmem:[%s2843_s1 + $0x88] sm:$0xff]   ;;  %v2161_v11 = vld [vmem:[%s2843_s1 + $0x90] sm:$0xff]  }
   0x5   :  { %1964 = vmatpush3.bf16.msra.mxu1 %v2153_v3  ;;  %1943 = vmatprep.subr.bf16.mxu0 %v2154_v4  ;;  %v2162_v12 = vld [vmem:[%s2843_s1 + $0x58] sm:$0xff]   ;;  %v2166_v16 = vld [vmem:[%s2843_s1 + $0x60] sm:$0xff]   ;;  %v2170_v20 = vld [vmem:[%s2843_s1 + $0x68] sm:$0xff]   ;;  %v2459_v41 = vsub.s32 %v319_v39, %v321_v33 }
   0x6   :  { %1965 = vmatprep.subr.bf16.mxu1 %v2155_v5  ;;  %v2163_v13 = vld [vmem:[%s2843_s1 + $0xd8] sm:$0xff]   ;;  %v2167_v17 = vld [vmem:[%s2843_s1 + $0xe0] sm:$0xff]   ;;  %v2171_v21 = vld [vmem:[%s2843_s1 + $0xe8] sm:$0xff]  }
   0x7   :  { %v2164_v14 = vld [vmem:[%s2843_s1 + $0x18] sm:$0xff]   ;;  %v2168_v18 = vld [vmem:[%s2843_s1 + $0x20] sm:$0xff]   ;;  %v2172_v22 = vld [vmem:[%s2843_s1 + $0x28] sm:$0xff]  }
   0x8   :  { %1944 = vmatpush3.bf16.msra.mxu0 %v2156_v6  ;;  %v2165_v15 = vld [vmem:[%s2843_s1 + $0x98] sm:$0xff]   ;;  %v2169_v19 = vld [vmem:[%s2843_s1 + $0xa0] sm:$0xff]   ;;  %v2173_v23 = vld [vmem:[%s2843_s1 + $0xa8] sm:$0xff]  }
   0x9   :  { %1966 = vmatpush3.bf16.msra.mxu1 %v2157_v7  ;;  %1945 = vmatprep.subr.bf16.mxu0 %v2158_v8  ;;  %v2174_v24 = vld [vmem:[%s2843_s1 + $0x70] sm:$0xff]   ;;  %v2178_v28 = vld [vmem:[%s2843_s1 + $0x78] sm:$0xff]   ;;  %v2183_v34 = vld [vmem:[%s2843_s1 + $0x140] sm:$0xff]  }
   0xa   :  { %1967 = vmatprep.subr.bf16.mxu1 %v2159_v9  ;;  %v2175_v25 = vld [vmem:[%s2843_s1 + $0xf0] sm:$0xff]   ;;  %v2179_v30 = vld [vmem:[%s2843_s1 + $0xf8] sm:$0xff]   ;;  %v22_v37 = vld [vmem:[%s2842_s0] sm:$0xff] }
   0xb   :  { %v2176_v26 = vld [vmem:[%s2843_s1 + $0x30] sm:$0xff]   ;;  %v2180_v31 = vld [vmem:[%s2843_s1 + $0x38] sm:$0xff]   ;;  %v316_v38 = vcombine.high %v22_v37, %v22_v37  ;;  %v2185_v40 = vld [vmem:[%s2843_s1 + $0x1c0] sm:$0xff]   ;;  %v323_v42 = vrot.slane %v22_v37, %v2459_v41 }
   0xc   :  { %1946 = vmatpush3.bf16.msra.mxu0 %v2160_v10  ;;  %v2177_v27 = vld [vmem:[%s2843_s1 + $0xb0] sm:$0xff]   ;;  %v2181_v32 = vld [vmem:[%s2843_s1 + $0xb8] sm:$0xff]   ;;  %v2184_v48 = vld [vmem:[%s2843_s1 + $0x100] sm:$0xff]  }
   0xd   :  { %1968 = vmatpush3.bf16.msra.mxu1 %v2161_v11  ;;  %1947 = vmatprep.subr.bf16.mxu0 %v2162_v12  ;;  %v2463_v43 = vrot.slane %v316_v38, %v2459_v41  ;;  %v331_v44 = vcombine.high %v323_v42, %v323_v42  ;;  %v339_v45 = vrot.slane %v323_v42, %v2459_v41  ;;  %v2187_v51 = vld [vmem:[%s2843_s1 + $0x148] sm:$0xff]   ;;  %v2186_v53 = vld [vmem:[%s2843_s1 + $0x180] sm:$0xff]   ;;  %v2191_v57 = vld [vmem:[%s2843_s1 + $0x150] sm:$0xff]  }
   0xe   :  { %1969 = vmatprep.subr.bf16.mxu1 %v2163_v13  ;;  %v2189_v54 = vld [vmem:[%s2843_s1 + $0x1c8] sm:$0xff]   ;;  %v2193_v59 = vld [vmem:[%s2843_s1 + $0x1d0] sm:$0xff]   ;;  %v2195_v61 = vld [vmem:[%s2843_s1 + $0x158] sm:$0xff]  }
   0xf   :  { %v332_v46 = vcombine.high %v2463_v43, %v2463_v43  ;;  %v353_v47 = vrot.slane %v331_v44, %v2459_v41  ;;  %v361_v50 = vcombine.high %v339_v45, %v339_v45  ;;  %v2188_v56 = vld [vmem:[%s2843_s1 + $0x108] sm:$0xff]   ;;  %v2192_v60 = vld [vmem:[%s2843_s1 + $0x110] sm:$0xff]   ;;  %v2197_v63 = vld [vmem:[%s2843_s1 + $0x1d8] sm:$0xff]  }
  0x10   :  { %1948 = vmatpush3.bf16.msra.mxu0 %v2164_v14  ;;  %v2190_v58 = vld [vmem:[%s2843_s1 + $0x188] sm:$0xff]   ;;  %v2194_v62 = vld [vmem:[%s2843_s1 + $0x190] sm:$0xff]   ;;  %v2196_v0 = vld [vmem:[%s2843_s1 + $0x118] sm:$0xff]  }
  0x11   :  { %1970 = vmatpush3.bf16.msra.mxu1 %v2165_v15  ;;  %1949 = vmatprep.subr.bf16.mxu0 %v2166_v16  ;;  %v360_v49 = vrot.slane %v332_v46, %v2459_v41  ;;  %v363_v52 = vcombine.high %v353_v47, %v353_v47  ;;  %v2199_v1 = vld [vmem:[%s2843_s1 + $0x160] sm:$0xff]   ;;  %v2198_v2 = vld [vmem:[%s2843_s1 + $0x198] sm:$0xff]   ;;  %v2203_v5 = vld [vmem:[%s2843_s1 + $0x168] sm:$0xff]  }
  0x12   :  { %1971 = vmatprep.subr.bf16.mxu1 %v2167_v17  ;;  %1350 = vmatprep.mubr.bf16.mxu0 %v353_v47  ;;  %v2201_v3 = vld [vmem:[%s2843_s1 + $0x1e0] sm:$0xff]   ;;  %v2205_v7 = vld [vmem:[%s2843_s1 + $0x1e8] sm:$0xff]   ;;  %v2207_v9 = vld [vmem:[%s2843_s1 + $0x170] sm:$0xff]   ;;  %v346_v17 = vrot.slane %v2463_v43, %v2459_v41 }
  0x13   :  { %v364_v55 = vcombine.high %v360_v49, %v360_v49  ;;  %1390 = vmatprep.mubr.bf16.mxu1 %v363_v52  ;;  %v2200_v4 = vld [vmem:[%s2843_s1 + $0x120] sm:$0xff]   ;;  %v2204_v8 = vld [vmem:[%s2843_s1 + $0x128] sm:$0xff]   ;;  %v2209_v11 = vld [vmem:[%s2843_s1 + $0x1f0] sm:$0xff]  }
  0x14   :  { %1950 = vmatpush3.bf16.msra.mxu0 %v2168_v18  ;;  %v2202_v6 = vld [vmem:[%s2843_s1 + $0x1a0] sm:$0xff]   ;;  %v2206_v10 = vld [vmem:[%s2843_s1 + $0x1a8] sm:$0xff]   ;;  %v2208_v12 = vld [vmem:[%s2843_s1 + $0x130] sm:$0xff]  }
  0x15   :  { %1972 = vmatpush3.bf16.msra.mxu1 %v2169_v19  ;;  %1951 = vmatprep.subr.bf16.mxu0 %v2170_v20  ;;  %v2211_v13 = vld [vmem:[%s2843_s1 + $0x178] sm:$0xff]   ;;  %v2210_v14 = vld [vmem:[%s2843_s1 + $0x1b0] sm:$0xff]   ;;  %v2215_v18 = vld [vmem:[%s2843_s1 + $0x240] sm:$0xff]  }
  0x16   :  { %1973 = vmatprep.subr.bf16.mxu1 %v2171_v21  ;;  %v2213_v15 = vld [vmem:[%s2843_s1 + $0x1f8] sm:$0xff]   ;;  %v2217_v20 = vld [vmem:[%s2843_s1 + $0x2c0] sm:$0xff]   ;;  %v2225_v29 = vld [vmem:[%s2843_s1 + $0x2d0] sm:$0xff]  }
  0x17   :  { %v2212_v16 = vld [vmem:[%s2843_s1 + $0x138] sm:$0xff]   ;;  %v2216_v21 = vld [vmem:[%s2843_s1 + $0x200] sm:$0xff]   ;;  %v2235_v39 = vld [vmem:[%s2843_s1 + $0x268] sm:$0xff]  }
  0x18   :  { %1952 = vmatpush3.bf16.msra.mxu0 %v2172_v22  ;;  %v2214_v19 = vld [vmem:[%s2843_s1 + $0x1b8] sm:$0xff]   ;;  %v362_v22 = vcombine.high %v346_v17, %v346_v17  ;;  %v2231_v35 = vld [vmem:[%s2843_s1 + $0x260] sm:$0xff]   ;;  %v2237_v42 = vld [vmem:[%s2843_s1 + $0x2e8] sm:$0xff]  }
  0x19   :  { %1974 = vmatpush3.bf16.msra.mxu1 %v2173_v23  ;;  %1953 = vmatprep.subr.bf16.mxu0 %v2174_v24  ;;  %v2219_v23 = vld [vmem:[%s2843_s1 + $0x248] sm:$0xff]   ;;  %v2218_v24 = vld [vmem:[%s2843_s1 + $0x280] sm:$0xff]   ;;  %v2229_v33 = vld [vmem:[%s2843_s1 + $0x2d8] sm:$0xff]  }
  0x1a   :  { %1975 = vmatprep.subr.bf16.mxu1 %v2175_v25  ;;  %v2221_v25 = vld [vmem:[%s2843_s1 + $0x2c8] sm:$0xff]   ;;  %v2230_v36 = vld [vmem:[%s2843_s1 + $0x298] sm:$0xff]   ;;  %v2233_v37 = vld [vmem:[%s2843_s1 + $0x2e0] sm:$0xff]  }
  0x1b   :  { %v2232_v38 = vld [vmem:[%s2843_s1 + $0x220] sm:$0xff]   ;;  %v2236_v43 = vld [vmem:[%s2843_s1 + $0x228] sm:$0xff]   ;;  %v2240_v52 = vld [vmem:[%s2843_s1 + $0x230] sm:$0xff]  }
  0x1c   :  { %1954 = vmatpush3.bf16.msra.mxu0 %v2176_v26  ;;  %v2220_v26 = vld [vmem:[%s2843_s1 + $0x208] sm:$0xff]  }
  0x1d   :  { %1976 = vmatpush3.bf16.msra.mxu1 %v2177_v27  ;;  %1955 = vmatprep.subr.bf16.mxu0 %v2178_v28  ;;  %v2223_v27 = vld [vmem:[%s2843_s1 + $0x250] sm:$0xff]   ;;  %v2222_v28 = vld [vmem:[%s2843_s1 + $0x288] sm:$0xff]  }
  0x1e   :  { %1977 = vmatprep.subr.bf16.mxu1 %v2179_v30  ;;  %v2224_v30 = vld [vmem:[%s2843_s1 + $0x210] sm:$0xff]   ;;  %v23_v44 = vld [vmem:[%s2842_s0 + $0x8] sm:$0xff] }
  0x1f   :  { %v372_v46 = vrot.slane %v23_v44, %v2459_v41  ;;  %v365_v47 = vcombine.high %v23_v44, %v23_v44 }
  0x20   :  { %1956 = vmatpush3.bf16.msra.mxu0 %v2180_v31  ;;  %v2227_v31 = vld [vmem:[%s2843_s1 + $0x258] sm:$0xff]  }
  0x21   :  { %1978 = vmatpush3.bf16.msra.mxu1 %v2181_v32  ;;  %1985 = vmatprep.subr.bf16.mxu0 %v2183_v34  ;;  %v2226_v32 = vld [vmem:[%s2843_s1 + $0x290] sm:$0xff]   ;;  %v2228_v34 = vld [vmem:[%s2843_s1 + $0x218] sm:$0xff]  }
  0x22   :  { %2007 = vmatprep.subr.bf16.mxu1 %v2185_v40  ;;  %v2234_v40 = vld [vmem:[%s2843_s1 + $0x2a0] sm:$0xff]  }
  0x23   :  { %1351 = vmatmul.mubr.bf16.vlgmr.msra.gmra.mrb[0].mxu0 %v339_v45  ;;  %v2239_v45 = vld [vmem:[%s2843_s1 + $0x270] sm:$0xff]  }
  0x24   :  { %1986 = vmatpush3.bf16.msra.mxu0 %v2184_v48  ;;  %1391 = vmatmul.mubr.bf16.vlgmr.msra.gmra.mrb[0].mxu1 %v361_v50  ;;  %v2238_v48 = vld [vmem:[%s2843_s1 + $0x2a8] sm:$0xff]   ;;  %v380_v50 = vcombine.high %v372_v46, %v372_v46 }
  0x25   :  { %1987 = vmatprep.subr.bf16.mxu0 %v2187_v51  ;;  %2008 = vmatpush3.bf16.msra.mxu1 %v2186_v53  ;;  %v2645_v51 = vrot.slane %v365_v47, %v2459_v41  ;;  %v2243_v53 = vld [vmem:[%s2843_s1 + $0x278] sm:$0xff]  }
  0x26   :  { %1430 = vmatprep.mubr.bf16.mxu0 %v360_v49  ;;  %2009 = vmatprep.subr.bf16.mxu1 %v2189_v54  ;;  %v2241_v49 = vld [vmem:[%s2843_s1 + $0x2f0] sm:$0xff]   ;;  %v402_v54 = vrot.slane %v380_v50, %v2459_v41 }
  0x27   :  { %1470 = vmatprep.mubr.bf16.mxu1 %v364_v55  ;;  %v2242_v55 = vld [vmem:[%s2843_s1 + $0x2b0] sm:$0xff]  }
  0x28   :  { %1988 = vmatpush3.bf16.msra.mxu0 %v2188_v56  ;;  %v381_v56 = vcombine.high %v2645_v51, %v2645_v51 }
  0x29   :  { %1989 = vmatprep.subr.bf16.mxu0 %v2191_v57  ;;  %2010 = vmatpush3.bf16.msra.mxu1 %v2190_v58  ;;  %v2245_v57 = vld [vmem:[%s2843_s1 + $0x2f8] sm:$0xff]   ;;  %v412_v58 = vcombine.high %v402_v54, %v402_v54 }
  0x2a   :  { %2011 = vmatprep.subr.bf16.mxu1 %v2193_v59  ;;  %v2244_v59 = vld [vmem:[%s2843_s1 + $0x238] sm:$0xff]  }
  0x2c   :  { %1990 = vmatpush3.bf16.msra.mxu0 %v2192_v60  ;;  %v388_v60 = vrot.slane %v372_v46, %v2459_v41 }
  0x2d   :  { %1991 = vmatprep.subr.bf16.mxu0 %v2195_v61  ;;  %2012 = vmatpush3.bf16.msra.mxu1 %v2194_v62  ;;  %v2247_v61 = vld [vmem:[%s2843_s1 + $0x340] sm:$0xff]   ;;  %v2246_v62 = vld [vmem:[%s2843_s1 + $0x2b8] sm:$0xff]  }
  0x2e   :  { %2013 = vmatprep.subr.bf16.mxu1 %v2197_v63  ;;  %v409_v63 = vrot.slane %v381_v56, %v2459_v41 }
  0x30   :  { %1992 = vmatpush3.bf16.msra.mxu0 %v2196_v0  ;;  %v2249_v0 = vld [vmem:[%s2843_s1 + $0x3c0] sm:$0xff]  }
  0x31   :  { %1993 = vmatprep.subr.bf16.mxu0 %v2199_v1  ;;  %2014 = vmatpush3.bf16.msra.mxu1 %v2198_v2  ;;  %v2248_v1 = vld [vmem:[%s2843_s1 + $0x300] sm:$0xff]   ;;  %v410_v2 = vcombine.high %v388_v60, %v388_v60 }
  0x32   :  { %2015 = vmatprep.subr.bf16.mxu1 %v2201_v3  ;;  %v2251_v3 = vld [vmem:[%s2843_s1 + $0x348] sm:$0xff]  }
  0x34   :  { %1994 = vmatpush3.bf16.msra.mxu0 %v2200_v4  ;;  %v2250_v4 = vld [vmem:[%s2843_s1 + $0x380] sm:$0xff]  }
  0x35   :  { %1995 = vmatprep.subr.bf16.mxu0 %v2203_v5  ;;  %2016 = vmatpush3.bf16.msra.mxu1 %v2202_v6  ;;  %v413_v5 = vcombine.high %v409_v63, %v409_v63  ;;  %v2253_v6 = vld [vmem:[%s2843_s1 + $0x3c8] sm:$0xff]  }
  0x36   :  { %2017 = vmatprep.subr.bf16.mxu1 %v2205_v7  ;;  %v2252_v7 = vld [vmem:[%s2843_s1 + $0x308] sm:$0xff]  }
  0x38   :  { %1996 = vmatpush3.bf16.msra.mxu0 %v2204_v8  ;;  %v2255_v8 = vld [vmem:[%s2843_s1 + $0x350] sm:$0xff]  }
  0x39   :  { %1997 = vmatprep.subr.bf16.mxu0 %v2207_v9  ;;  %2018 = vmatpush3.bf16.msra.mxu1 %v2206_v10  ;;  %v2254_v9 = vld [vmem:[%s2843_s1 + $0x388] sm:$0xff]   ;;  %v2257_v10 = vld [vmem:[%s2843_s1 + $0x3d0] sm:$0xff]  }
  0x3a   :  { %2019 = vmatprep.subr.bf16.mxu1 %v2209_v11  ;;  %v2256_v11 = vld [vmem:[%s2843_s1 + $0x310] sm:$0xff]  }
  0x3c   :  { %1998 = vmatpush3.bf16.msra.mxu0 %v2208_v12  ;;  %v2259_v12 = vld [vmem:[%s2843_s1 + $0x358] sm:$0xff]  }
  0x3d   :  { %1999 = vmatprep.subr.bf16.mxu0 %v2211_v13  ;;  %2020 = vmatpush3.bf16.msra.mxu1 %v2210_v14  ;;  %v2258_v13 = vld [vmem:[%s2843_s1 + $0x390] sm:$0xff]   ;;  %v2261_v14 = vld [vmem:[%s2843_s1 + $0x3d8] sm:$0xff]  }
  0x3e   :  { %2021 = vmatprep.subr.bf16.mxu1 %v2213_v15  ;;  %v2260_v15 = vld [vmem:[%s2843_s1 + $0x318] sm:$0xff]  }
  0x40   :  { %2000 = vmatpush3.bf16.msra.mxu0 %v2212_v16  ;;  %v2263_v16 = vld [vmem:[%s2843_s1 + $0x360] sm:$0xff]  }
  0x41   :  { %2029 = vmatprep.subr.bf16.mxu0 %v2215_v18  ;;  %2022 = vmatpush3.bf16.msra.mxu1 %v2214_v19  ;;  %v2265_v18 = vld [vmem:[%s2843_s1 + $0x3e0] sm:$0xff]  }
  0x42   :  { %2051 = vmatprep.subr.bf16.mxu1 %v2217_v20  ;;  %v2264_v19 = vld [vmem:[%s2843_s1 + $0x320] sm:$0xff]   ;;  %v2267_v20 = vld [vmem:[%s2843_s1 + $0x368] sm:$0xff]  }
  0x43   :  { %1431 = vmatmul.mubr.bf16.vlgmr.msra.gmra.mrb[4].mxu0 %v346_v17  ;;  %v2262_v17 = vld [vmem:[%s2843_s1 + $0x398] sm:$0xff]  }
  0x44   :  { %2030 = vmatpush3.bf16.msra.mxu0 %v2216_v21  ;;  %1471 = vmatmul.mubr.bf16.vlgmr.msra.gmra.mrb[4].mxu1 %v362_v22  ;;  %v2266_v21 = vld [vmem:[%s2843_s1 + $0x3a0] sm:$0xff]   ;;  %v2269_v22 = vld [vmem:[%s2843_s1 + $0x3e8] sm:$0xff]  }
  0x45   :  { %2031 = vmatprep.subr.bf16.mxu0 %v2219_v23  ;;  %2052 = vmatpush3.bf16.msra.mxu1 %v2218_v24  ;;  %v2268_v23 = vld [vmem:[%s2843_s1 + $0x328] sm:$0xff]   ;;  %v2271_v24 = vld [vmem:[%s2843_s1 + $0x370] sm:$0xff]  }
  0x46   :  { %2053 = vmatprep.subr.bf16.mxu1 %v2221_v25  ;;  %1510 = vmatprep.mubr.bf16.mxu0 %v402_v54  ;;  %v2270_v25 = vld [vmem:[%s2843_s1 + $0x3a8] sm:$0xff]  }
  0x47   :  { %1550 = vmatprep.mubr.bf16.mxu1 %v412_v58 }
  0x48   :  { %2032 = vmatpush3.bf16.msra.mxu0 %v2220_v26  ;;  %v2273_v26 = vld [vmem:[%s2843_s1 + $0x3f0] sm:$0xff]  }
  0x49   :  { %2033 = vmatprep.subr.bf16.mxu0 %v2223_v27  ;;  %2054 = vmatpush3.bf16.msra.mxu1 %v2222_v28  ;;  %v2272_v27 = vld [vmem:[%s2843_s1 + $0x330] sm:$0xff]   ;;  %v2275_v28 = vld [vmem:[%s2843_s1 + $0x378] sm:$0xff]  }
  0x4a   :  { %2055 = vmatprep.subr.bf16.mxu1 %v2225_v29  ;;  %v2274_v29 = vld [vmem:[%s2843_s1 + $0x3b0] sm:$0xff]  }
  0x4c   :  { %2034 = vmatpush3.bf16.msra.mxu0 %v2224_v30  ;;  %v2277_v30 = vld [vmem:[%s2843_s1 + $0x3f8] sm:$0xff]  }
  0x4d   :  { %2035 = vmatprep.subr.bf16.mxu0 %v2227_v31  ;;  %2056 = vmatpush3.bf16.msra.mxu1 %v2226_v32  ;;  %v2276_v31 = vld [vmem:[%s2843_s1 + $0x338] sm:$0xff]   ;;  %v395_v32 = vrot.slane %v2645_v51, %v2459_v41 }
  0x4e   :  { %2057 = vmatprep.subr.bf16.mxu1 %v2229_v33  ;;  %v2280_v33 = vld [vmem:[%s2843_s1 + $0x440] sm:$0xff]  }
  0x50   :  { %2036 = vmatpush3.bf16.msra.mxu0 %v2228_v34  ;;  %v2279_v34 = vld [vmem:[%s2843_s1 + $0x3b8] sm:$0xff]  }
  0x51   :  { %2037 = vmatprep.subr.bf16.mxu0 %v2231_v35  ;;  %2058 = vmatpush3.bf16.msra.mxu1 %v2230_v36  ;;  %v2281_v35 = vld [vmem:[%s2843_s1 + $0x400] sm:$0xff]   ;;  %v411_v36 = vcombine.high %v395_v32, %v395_v32 }
  0x52   :  { %2059 = vmatprep.subr.bf16.mxu1 %v2233_v37  ;;  %v2282_v37 = vld [vmem:[%s2843_s1 + $0x448] sm:$0xff]  }
  0x54   :  { %2038 = vmatpush3.bf16.msra.mxu0 %v2232_v38  ;;  %v2283_v38 = vld [vmem:[%s2843_s1 + $0x408] sm:$0xff]  }
  0x55   :  { %2039 = vmatprep.subr.bf16.mxu0 %v2235_v39  ;;  %2060 = vmatpush3.bf16.msra.mxu1 %v2234_v40  ;;  %v2284_v39 = vld [vmem:[%s2843_s1 + $0x450] sm:$0xff]  }
  0x56   :  { %2061 = vmatprep.subr.bf16.mxu1 %v2237_v42 }
  0x58   :  { %2040 = vmatpush3.bf16.msra.mxu0 %v2236_v43 }
  0x59   :  { %2041 = vmatprep.subr.bf16.mxu0 %v2239_v45  ;;  %2062 = vmatpush3.bf16.msra.mxu1 %v2238_v48 }
  0x5a   :  { %2063 = vmatprep.subr.bf16.mxu1 %v2241_v49 }
  0x5c   :  { %2042 = vmatpush3.bf16.msra.mxu0 %v2240_v52 }
  0x5d   :  { %2043 = vmatprep.subr.bf16.mxu0 %v2243_v53  ;;  %2064 = vmatpush3.bf16.msra.mxu1 %v2242_v55 }
  0x5e   :  { %2065 = vmatprep.subr.bf16.mxu1 %v2245_v57 }
  0x60   :  { %2044 = vmatpush3.bf16.msra.mxu0 %v2244_v59 }
  0x61   :  { %2073 = vmatprep.subr.bf16.mxu0 %v2247_v61  ;;  %2066 = vmatpush3.bf16.msra.mxu1 %v2246_v62 }
  0x62   :  { %2095 = vmatprep.subr.bf16.mxu1 %v2249_v0 }
  0x63   :  { %1511 = vmatmul.mubr.bf16.vlgmr.msra.gmra.mrb[8].mxu0 %v388_v60 }
  0x64   :  { %2074 = vmatpush3.bf16.msra.mxu0 %v2248_v1  ;;  %1590 = vmatprep.mubr.bf16.mxu0 %v409_v63 }
  0x65   :  { %1551 = vmatmul.mubr.bf16.vlgmr.msra.gmra.mrb[8].mxu1 %v410_v2  ;;  %2075 = vmatprep.subr.bf16.mxu0 %v2251_v3 }
  0x66   :  { %2096 = vmatpush3.bf16.msra.mxu1 %v2250_v4  ;;  %1630 = vmatprep.mubr.bf16.mxu1 %v413_v5 }
  0x67   :  { %2097 = vmatprep.subr.bf16.mxu1 %v2253_v6 }
  0x68   :  { %2076 = vmatpush3.bf16.msra.mxu0 %v2252_v7 }
  0x69   :  { %2077 = vmatprep.subr.bf16.mxu0 %v2255_v8 }
  0x6a   :  { %2098 = vmatpush3.bf16.msra.mxu1 %v2254_v9 }
  0x6b   :  { %2099 = vmatprep.subr.bf16.mxu1 %v2257_v10 }
  0x6c   :  { %2078 = vmatpush3.bf16.msra.mxu0 %v2256_v11 }
  0x6d   :  { %2079 = vmatprep.subr.bf16.mxu0 %v2259_v12 }
  0x6e   :  { %2100 = vmatpush3.bf16.msra.mxu1 %v2258_v13 }
  0x6f   :  { %2101 = vmatprep.subr.bf16.mxu1 %v2261_v14 }
  0x70   :  { %2080 = vmatpush3.bf16.msra.mxu0 %v2260_v15 }
  0x71   :  { %2081 = vmatprep.subr.bf16.mxu0 %v2263_v16 }
  0x72   :  { %2102 = vmatpush3.bf16.msra.mxu1 %v2262_v17 }
  0x73   :  { %2103 = vmatprep.subr.bf16.mxu1 %v2265_v18 }
  0x74   :  { %2082 = vmatpush3.bf16.msra.mxu0 %v2264_v19 }
  0x75   :  { %2083 = vmatprep.subr.bf16.mxu0 %v2267_v20 }
  0x76   :  { %2104 = vmatpush3.bf16.msra.mxu1 %v2266_v21 }
  0x77   :  { %2105 = vmatprep.subr.bf16.mxu1 %v2269_v22 }
  0x78   :  { %2084 = vmatpush3.bf16.msra.mxu0 %v2268_v23 }
  0x79   :  { %2085 = vmatprep.subr.bf16.mxu0 %v2271_v24 }
  0x7a   :  { %2106 = vmatpush3.bf16.msra.mxu1 %v2270_v25 }
  0x7b   :  { %2107 = vmatprep.subr.bf16.mxu1 %v2273_v26 }
  0x7c   :  { %2086 = vmatpush3.bf16.msra.mxu0 %v2272_v27 }
  0x7d   :  { %2087 = vmatprep.subr.bf16.mxu0 %v2275_v28 }
  0x7e   :  { %2108 = vmatpush3.bf16.msra.mxu1 %v2274_v29 }
  0x7f   :  { %2109 = vmatprep.subr.bf16.mxu1 %v2277_v30 }
  0x80   :  { %2088 = vmatpush3.bf16.msra.mxu0 %v2276_v31 }
  0x81   :  { %2117 = vmatprep.subr.bf16.mxu0 %v2280_v33 }
  0x82   :  { %2110 = vmatpush3.bf16.msra.mxu1 %v2279_v34 }
  0x83   :  { %1591 = vmatmul.mubr.bf16.vlgmr.msra.gmra.mrb[12].mxu0 %v395_v32 }
  0x84   :  { %2118 = vmatpush3.bf16.msra.mxu0 %v2281_v35 }
  0x85   :  { %1631 = vmatmul.mubr.bf16.vlgmr.msra.gmra.mrb[12].mxu1 %v411_v36  ;;  %2119 = vmatprep.subr.bf16.mxu0 %v2282_v37 }
  0x86   :  { %10 = vsyncpa [#allocation3], 0  ;;  %v1792_v40 = vld.sshfl [vmem:[%s2842_s0 + $0x10] sm:$0x11 pattern:$0x75316420] }
  0x87   :  { %v421_v42 = vcombine.high %v1792_v40, %v1792_v40  ;;  %v2285_v43 = vld [vmem:[%s2843_s1 + $0x410] sm:$0xff]   ;;  %v2286_v44 = vld [vmem:[%s2843_s1 + $0x458] sm:$0xff]   ;;  %v2288_v47 = vld [vmem:[%s2843_s1 + $0x460] sm:$0xff]   ;;  %v428_v55 = vrot.slane %v1792_v40, %v2459_v41  ;;  %v2321_v3 = vmov 0.0   ;;  %vm2322_vm0 = vmmov 0  }
  0x88   :  { %2120 = vmatpush3.bf16.msra.mxu0 %v2283_v38  ;;  %v2287_v46 = vld [vmem:[%s2843_s1 + $0x418] sm:$0xff]   ;;  %v2289_v48 = vld [vmem:[%s2843_s1 + $0x420] sm:$0xff]   ;;  %v2290_v49 = vld [vmem:[%s2843_s1 + $0x468] sm:$0xff]   ;;  %2141 = vmatprep.subr.mxu1 %v2321_v3  ;;  %vm1702_vm2 = vcmask 1041408   ;;  %vm1698_vm3 = vcmask 15360   ;;  %vm1776_vm4 = vcmask 25600  }
  0x89   :  { %2121 = vmatprep.subr.bf16.mxu0 %v2284_v39  ;;  %v435_v45 = vrot.slane %v421_v42, %v2459_v41  ;;  %v2291_v50 = vld [vmem:[%s2843_s1 + $0x428] sm:$0xff]   ;;  %v2292_v51 = vld [vmem:[%s2843_s1 + $0x470] sm:$0xff]   ;;  %v2294_v53 = vld [vmem:[%s2843_s1 + $0x478] sm:$0xff]   ;;  %2143 = vmatprep.mubr.msk.f32.mxu1 %vm2322_vm0, %v2321_v3 }
  0x8a   :  { %v2293_v52 = vld [vmem:[%s2843_s1 + $0x430] sm:$0xff]   ;;  %v2295_v54 = vld [vmem:[%s2843_s1 + $0x438] sm:$0xff]  }
  0x8b   :  { %1670 = vmatprep.mubr.bf16.mxu0 %v435_v45 }
  0x8c   :  { %2122 = vmatpush3.bf16.msra.mxu0 %v2285_v43 }
  0x8d   :  { %2123 = vmatprep.subr.bf16.mxu0 %v2286_v44  ;;  %v1937_v44 = vld [vmem:[%s2845_s3] ss:$0 sm:$0xff]  ;;  %s2323_s3 = smov [#allocation2]  }
  0x8e   :  { %s1784_s16 = sshll.u32 %s2323_s3, 4  ;;  %s1785_s16 = int_to_ptr.vmem [resolvable:$true] %s1784_s16 }
  0x8f   :  { %p2301_p1 = scmp.lt.s32.totalorder %s1785_s16, %s1785_s16 }
  0x90   :  { %2124 = vmatpush3.bf16.msra.mxu0 %v2287_v46 }
  0x91   :  { %2125 = vmatprep.subr.bf16.mxu0 %v2288_v47  ;;  %v1938_v47 = vld [vmem:[%s2846_s4] ss:$0 sm:$0xff]  ;;  %s2296_s4 = scalar_lea.vmem %s1785_s16, 32 }
  0x92   :  { %p2297_p0 = scmp.ne.s32.totalorder %s1785_s16, %s2296_s4  ;;  %p2302_p2 = scmp.lt.s32.totalorder %s2296_s4, %s2296_s4 }
  0x94   :  { %2126 = vmatpush3.bf16.msra.mxu0 %v2289_v48  ;;  %p2303_p3 = por %p2302_p2, %p2301_p1 }
  0x95   :  { %2127 = vmatprep.subr.bf16.mxu0 %v2290_v49 }
  0x96   :  { %p2304_p4 = pnand %p2303_p3, %p2297_p0 }
  0x98   :  { %2128 = vmatpush3.bf16.msra.mxu0 %v2291_v50 }
  0x99   :  { %2129 = vmatprep.subr.bf16.mxu0 %v2292_v51  ;;  %v1697_v51 = vld [vmem:[%s2844_s2] sm:$0x3] }
  0x9c   :  { %2130 = vmatpush3.bf16.msra.mxu0 %v2293_v52 }
  0x9d   :  { %2131 = vmatprep.subr.bf16.mxu0 %v2294_v53 }
  0xa0   :  { %2132 = vmatpush3.bf16.msra.mxu0 %v2295_v54 }
  0xa3   :  { %1671 = vmatmul.mubr.bf16.vlgmr.msra.gmra.mrb[16].mxu0 %v428_v55 }
  0xf6   :  { %v1957_v56 = vpop.f32.mrb[0].mxu0 }
  0xf7   :  { %v1958_v57 = vpop.f32.mrb[1].mxu0  ;;  %v1979_v58 = vpop.f32.mrb[0].mxu1 }
  0xf8   :  { %v1959_v59 = vadd.f32 %v1958_v57, %v1957_v56  ;;  %v1960_v60 = vpop.f32.mrb[2].mxu0  ;;  %v1980_v61 = vpop.f32.mrb[1].mxu1 }
  0xf9   :  { %v1961_v62 = vpop.f32.mrb[3].mxu0  ;;  %v1981_v63 = vadd.f32 %v1980_v61, %v1979_v58  ;;  %v1982_v0 = vpop.f32.mrb[2].mxu1 }
  0xfa   :  { %v1983_v1 = vpop.f32.mrb[3].mxu1 }
  0xfb   :  { %v1393_v2 = vadd.f32 %v1981_v63, %v1959_v59 }
 0x116   :  { %v2001_v4 = vpop.f32.mrb[4].mxu0 }
 0x117   :  { %v2002_v5 = vpop.f32.mrb[5].mxu0  ;;  %v2023_v7 = vpop.f32.mrb[4].mxu1 }
 0x118   :  { %v2003_v41 = vadd.f32 %v2002_v5, %v2001_v4  ;;  %v2004_v6 = vpop.f32.mrb[6].mxu0  ;;  %v2024_v9 = vpop.f32.mrb[5].mxu1 }
 0x119   :  { %v2005_v8 = vpop.f32.mrb[7].mxu0  ;;  %v2025_v11 = vadd.f32 %v2024_v9, %v2023_v7  ;;  %v2026_v12 = vpop.f32.mrb[6].mxu1 }
 0x11a   :  { %v1433_v10 = vadd.f32 %v2003_v41, %v1393_v2  ;;  %v2027_v13 = vpop.f32.mrb[7].mxu1 }
 0x11c   :  { %v1473_v14 = vadd.f32 %v2025_v11, %v1433_v10 }
 0x136   :  { %v2045_v15 = vpop.f32.mrb[8].mxu0 }
 0x137   :  { %v2046_v16 = vpop.f32.mrb[9].mxu0 }
 0x138   :  { %v2047_v17 = vadd.f32 %v2046_v16, %v2045_v15  ;;  %v2048_v18 = vpop.f32.mrb[10].mxu0  ;;  %v2067_v19 = vpop.f32.mrb[8].mxu1 }
 0x139   :  { %v2049_v20 = vpop.f32.mrb[11].mxu0  ;;  %v2068_v21 = vpop.f32.mrb[9].mxu1 }
 0x13a   :  { %v1513_v22 = vadd.f32 %v2047_v17, %v1473_v14  ;;  %v2069_v23 = vadd.f32 %v2068_v21, %v2067_v19  ;;  %v2070_v24 = vpop.f32.mrb[10].mxu1 }
 0x13b   :  { %v2071_v25 = vpop.f32.mrb[11].mxu1 }
 0x13c   :  { %v1553_v26 = vadd.f32 %v2069_v23, %v1513_v22 }
 0x156   :  { %v2089_v27 = vpop.f32.mrb[12].mxu0 }
 0x157   :  { %v2090_v28 = vpop.f32.mrb[13].mxu0 }
 0x158   :  { %v2091_v29 = vadd.f32 %v2090_v28, %v2089_v27  ;;  %v2092_v30 = vpop.f32.mrb[14].mxu0  ;;  %v2111_v31 = vpop.f32.mrb[12].mxu1 }
 0x159   :  { %v2093_v32 = vpop.f32.mrb[15].mxu0  ;;  %v2112_v33 = vpop.f32.mrb[13].mxu1 }
 0x15a   :  { %v1593_v34 = vadd.f32 %v2091_v29, %v1553_v26  ;;  %v2113_v35 = vadd.f32 %v2112_v33, %v2111_v31  ;;  %v2114_v36 = vpop.f32.mrb[14].mxu1 }
 0x15b   :  { %v2115_v37 = vpop.f32.mrb[15].mxu1 }
 0x15c   :  { %v1633_v38 = vadd.f32 %v2113_v35, %v1593_v34 }
 0x176   :  { %v2133_v39 = vpop.f32.mrb[16].mxu0 }
 0x177   :  { %v2134_v40 = vpop.f32.mrb[17].mxu0 }
 0x178   :  { %v2135_v42 = vadd.f32 %v2134_v40, %v2133_v39  ;;  %v2136_v43 = vpop.f32.mrb[18].mxu0 }
 0x179   :  { %v2137_v45 = vpop.f32.mrb[19].mxu0 }
 0x17a   :  { %v1673_v46 = vadd.f32 %v2135_v42, %v1633_v38 }
 0x17c   :  { %v1685_v48 = vmul.f32 %v1937_v44, %v1673_v46 }
 0x17e   :  { %v1693_v49 = vadd.f32 %v1938_v47, %v1685_v48 }
 0x180   :  { %vm1694_vm1 = vcmp.gt.f32.partialorder %v1693_v49, 0.0  ;;  %v1695_v50 = vmul.f32 0.01, %v1693_v49 }
 0x182   :  { %v1696_v52 = vsel %vm1694_vm1, %v1693_v49, %v1695_v50 }
 0x183   :  { %2142 = vmatpush3.msk.msra.mxu1 %vm1702_vm2, %v1696_v52 }
 0x184   :  { %2144 = vmatmul.mubr.msk.f32.vlgmr.msra.gmra.mrb[16].mxu1 %vm1698_vm3, %v1697_v51 }
 0x257   :  { %v1772_v53 = vpop.f32.mrb[16].mxu1 }
 0x258   :  { %1777 = vst.msk [vmem:[#allocation2] sm:$0x3] %vm1776_vm4, %v1772_v53  ;;  %v2145_v54 = vpop.f32.mrb[17].mxu1 }
 0x259   :  { %2307 = shalt.err (!%p2304_p4)
}
 0x25a   :  { %s2308_s18 = scalar_lea.hbm %s2847_s5, 32 }
 0x25b   :  { %p2309_p5 = scmp.ne.s32.totalorder %s2847_s5, %s2308_s18  ;;  %p2312_p6 = scmp.lt.u32.totalorder %s2308_s18, %s2847_s5 }
 0x25d   :  { %p2314_p7 = pnand %p2312_p6, %p2309_p5 }
 0x25f   :  { %2317 = shalt.err (!%p2314_p7)
}
 0x260   :  { %1787 = dma.vmem_to_hbm [thread:$0]  %s1785_s16, 32, %s2847_s5, [#allocation3]  }
 0x261   :  { %2318 = dma.done.wait [#allocation3], 32  }
 0x262   :  { %2319 = vsyncadd [#allocation3], 4294967264 }
 0x263   :  { %1791 = vsyncpa [#allocation3], 1 }

</bundles_post_ra>
